<compile_context>
chip_gen: v7x
topology: tpu7x:2x2x1
jax: 0.10.0
libtpu: 0.0.40
codegen_flags: <defaults>
</compile_context>

<pallas_src>
import numpy as np
import jax
import jax.numpy as jnp
from jax import lax
from jax.experimental import pallas as pl
from jax.experimental.pallas import tpu as pltpu

# Exact f32 matmuls everywhere (kernel dots, wrapper weight folding, reference)
# so the Pallas output matches the pure-JAX reference to tight tolerance.
jax.config.update("jax_default_matmul_precision", "highest")

OUTPUT_SIZE = 65
OUT_PAD = 128            # lane-padded head width (cols 65..127 are zero)
BN_EPS = 1e-5


# ---------------------------------------------------------------------------
# Pallas kernel: 7 chained lane-dense matmuls (5 conv-as-matmul, fc1, fused head)
# ---------------------------------------------------------------------------
def _conv5_dueling_kernel(
    x_ref,                                   # (TB, 2*64)   NCHW-flattened input
    m1_ref, b1_ref,                          # conv1 lowered: (2*64, C*64), (1, C*64)
    m2_ref, b2_ref,
    m3_ref, b3_ref,
    m4_ref, b4_ref,
    m5_ref, b5_ref,
    fc1w_ref, fc1b_ref,                      # (C*64, H), (1, H)
    headw_ref, headb_ref,                    # fused adv/val/dueling: (H, 128), (1, 128)
    out_ref,                                 # (TB, 128)  (cols >= 65 are zero)
):
    def layer(a, m_ref, b_ref):
        # one MXU dot per layer, bias add + ReLU on the VPU
        z = jnp.dot(a, m_ref[...], preferred_element_type=jnp.float32) + b_ref[...]
        return jnp.maximum(z, 0.0)

    a = x_ref[...]
    a = layer(a, m1_ref, b1_ref)
    a = layer(a, m2_ref, b2_ref)
    a = layer(a, m3_ref, b3_ref)
    a = layer(a, m4_ref, b4_ref)
    a = layer(a, m5_ref, b5_ref)             # (TB, C*64), already NCHW-flatten order
    h = layer(a, fc1w_ref, fc1b_ref)          # fc1 + ReLU  (Dropout p=0.0 = identity)
    # Fused dueling head: adv + val - mean(adv) pre-combined into the weights.
    out_ref[...] = (jnp.dot(h, headw_ref[...], preferred_element_type=jnp.float32)
                    + headb_ref[...])


# ---------------------------------------------------------------------------
# Wrapper: parameter folding / conv lowering + pallas_call
# ---------------------------------------------------------------------------
def _fold_bn(conv_b, gamma, beta, mean, var):
    s = gamma / jnp.sqrt(var + BN_EPS)            # folded BN scale (goes into weights)
    bias = (conv_b - mean) * s + beta             # folded BN bias
    return s, bias


def _shift_indicator():
    # S[d, p, x] = 1  iff input row p feeds output row x through tap d (pad=1)
    S = np.zeros((3, 8, 8), np.float32)
    for d in range(3):
        for xo in range(8):
            p = xo + d - 1
            if 0 <= p < 8:
                S[d, p, xo] = 1.0
    return jnp.asarray(S)


def _conv_as_matrix(w_oihw, s):
    # Lower a 3x3 / pad=1 conv on an 8x8 grid to a (Cin*64, Cout*64) matrix,
    # with the BN scale folded in (review: fold scale into weights).
    Cout, Cin = w_oihw.shape[0], w_oihw.shape[1]
    w_s = w_oihw * s[:, None, None, None]
    S = _shift_indicator()
    # M[ci, p, q, co, x, y] = w_s[co, ci, p-x+1, q-y+1]  (0 outside the 3x3 window)
    M = jnp.einsum("oiab,apx,bqy->ipqoxy", w_s, S, S)
    return M.reshape(Cin * 64, Cout * 64)


def conv5_dueling_forward(x_nchw, params, num_channels, batch_tile=8):
    if x_nchw.ndim == 3:                          # mirrors the torch unsqueeze(0)
        x_nchw = x_nchw[None]
    B = x_nchw.shape[0]
    x_flat = x_nchw.astype(jnp.float32).reshape(B, 2 * 64)   # NCHW flatten

    # Batch tiling: whole batch when small, else sublane-aligned 8-row tiles
    # (parallel grid -> v7x's two TensorCores split the batch; bounds VMEM).
    if B <= batch_tile:
        TB, Bp = B, B
    else:
        TB = 8
        Bp = pl.cdiv(B, TB) * TB
        x_flat = jnp.pad(x_flat, ((0, Bp - B), (0, 0)))

    args = [x_flat]
    for i in range(1, 6):
        w, b, g, beta, mean, var = params[f"conv{i}"]
        s, bias = _fold_bn(b, g, beta, mean, var)
        args.append(_conv_as_matrix(w, s))                      # (Cin*64, Cout*64)
        args.append(jnp.repeat(bias, 64).reshape(1, -1))        # (1, Cout*64)

    fc1_w, fc1_b = params["fc1"]
    args += [fc1_w.T, fc1_b.reshape(1, -1)]                     # flatten order matches NCHW

    # Fuse adv head, val head, and the dueling mean into one matmul,
    # lane-padded to 128 output columns (unmasked final store).
    adv_w, adv_b = params["adv"]
    val_w, val_b = params["val"]
    A = adv_w.T                                                 # (H, 65)
    W_head = A + val_w.T - jnp.mean(A, axis=1, keepdims=True)   # (H, 65)
    b_head = adv_b + val_b - jnp.mean(adv_b)                    # (65,)
    H = A.shape[0]
    W_head_p = jnp.zeros((H, OUT_PAD), jnp.float32).at[:, :OUTPUT_SIZE].set(W_head)
    b_head_p = jnp.zeros((1, OUT_PAD), jnp.float32).at[:, :OUTPUT_SIZE].set(
        b_head.reshape(1, -1))
    args += [W_head_p, b_head_p]

    in_specs = [pl.BlockSpec((TB, 2 * 64), lambda i: (i, 0))]
    in_specs += [pl.BlockSpec(a.shape, lambda i: (0, 0)) for a in args[1:]]
    out_spec = pl.BlockSpec((TB, OUT_PAD), lambda i: (i, 0))

    out = pl.pallas_call(
        _conv5_dueling_kernel,
        out_shape=jax.ShapeDtypeStruct((Bp, OUT_PAD), jnp.float32),
        grid=(Bp // TB,),
        in_specs=in_specs,
        out_specs=out_spec,
        compiler_params=pltpu.CompilerParams(dimension_semantics=("parallel",)),
    )(*args)
    return out[:B, :OUTPUT_SIZE]


# ---------------------------------------------------------------------------
# Deterministic synthetic parameters (shapes from the module's __init__)
# ---------------------------------------------------------------------------
def init_params(key, num_channels, fc_hidden_size):
    keys = iter(jax.random.split(key, 48))

    def nrm(shape, scale):
        return scale * jax.random.normal(next(keys), shape, jnp.float32)

    params = {}
    cin = 2
    for i in range(1, 6):
        cout = num_channels
        params[f"conv{i}"] = (
            nrm((cout, cin, 3, 3), 0.2),                               # conv weight (OIHW)
            nrm((cout,), 0.1),                                         # conv bias
            1.0 + nrm((cout,), 0.1),                                   # bn gamma
            nrm((cout,), 0.1),                                         # bn beta
            nrm((cout,), 0.1),                                         # bn running_mean
            1.0 + 0.1 * jnp.abs(jax.random.normal(next(keys), (cout,), jnp.float32)),  # running_var
        )
        cin = cout
    params["fc1"] = (nrm((fc_hidden_size, num_channels * 64), 0.05), nrm((fc_hidden_size,), 0.1))
    params["adv"] = (nrm((OUTPUT_SIZE, fc_hidden_size), 0.1), nrm((OUTPUT_SIZE,), 0.1))
    params["val"] = (nrm((1, fc_hidden_size), 0.1), nrm((1,), 0.1))
    return params


# ---------------------------------------------------------------------------
# Pure-JAX reference (mirrors the PyTorch forward, eval-mode BN) for checking
# ---------------------------------------------------------------------------
def ref_forward(x_nchw, params):
    if x_nchw.ndim == 3:
        x_nchw = x_nchw[None]
    x = x_nchw.astype(jnp.float32)

    def conv_layer(x, w, b, g, beta, mean, var):
        y = lax.conv_general_dilated(
            x, w, window_strides=(1, 1), padding=((1, 1), (1, 1)),
            dimension_numbers=("NCHW", "OIHW", "NCHW"))
        y = y + b[None, :, None, None]
        y = (y - mean[None, :, None, None]) / jnp.sqrt(var[None, :, None, None] + BN_EPS)
        y = y * g[None, :, None, None] + beta[None, :, None, None]
        return jnp.maximum(y, 0.0)

    for i in range(1, 6):
        x = conv_layer(x, *params[f"conv{i}"])
    flat = x.reshape(x.shape[0], -1)                         # NCHW flatten (torch .view)
    fc1_w, fc1_b = params["fc1"]
    h = jnp.maximum(flat @ fc1_w.T + fc1_b, 0.0)
    adv_w, adv_b = params["adv"]
    val_w, val_b = params["val"]
    adv = h @ adv_w.T + adv_b
    val = h @ val_w.T + val_b
    return val + adv - jnp.mean(adv, axis=1, keepdims=True)


if __name__ == "__main__":
    num_channels, fc_hidden_size, batch = 4, 32, 2

    key = jax.random.PRNGKey(0)
    pkey, xkey = jax.random.split(key)
    params = init_params(pkey, num_channels, fc_hidden_size)
    x = jax.random.normal(xkey, (batch, 2, 8, 8), jnp.float32)   # NCHW, like PyTorch

    out = conv5_dueling_forward(x, params, num_channels)
    out = jax.block_until_ready(out)
    assert out.shape == (batch, OUTPUT_SIZE)

    ref = jax.block_until_ready(ref_forward(x, params))
    np.testing.assert_allclose(np.asarray(out), np.asarray(ref), rtol=2e-4, atol=2e-4)

    print("KERNEL_OK")
</pallas_src>

<mosaic_0001>
module attributes {stable_mosaic.version = 11 : i64} {
  func.func @_conv5_dueling_kernel(%arg0: i32, %arg1: memref<2x128xf32, #tpu.memory_space<vmem>>, %arg2: memref<128x256xf32, #tpu.memory_space<vmem>>, %arg3: memref<1x256xf32, #tpu.memory_space<vmem>>, %arg4: memref<256x256xf32, #tpu.memory_space<vmem>>, %arg5: memref<1x256xf32, #tpu.memory_space<vmem>>, %arg6: memref<256x256xf32, #tpu.memory_space<vmem>>, %arg7: memref<1x256xf32, #tpu.memory_space<vmem>>, %arg8: memref<256x256xf32, #tpu.memory_space<vmem>>, %arg9: memref<1x256xf32, #tpu.memory_space<vmem>>, %arg10: memref<256x256xf32, #tpu.memory_space<vmem>>, %arg11: memref<1x256xf32, #tpu.memory_space<vmem>>, %arg12: memref<256x32xf32, #tpu.memory_space<vmem>>, %arg13: memref<1x32xf32, #tpu.memory_space<vmem>>, %arg14: memref<32x128xf32, #tpu.memory_space<vmem>>, %arg15: memref<1x128xf32, #tpu.memory_space<vmem>>, %arg16: memref<2x128xf32, #tpu.memory_space<vmem>>) attributes {dimension_semantics = [#tpu.dimension_semantics<parallel>], iteration_bounds = array<i64: 1>, scalar_prefetch = 0 : i64, scratch_operands = 0 : i64, tpu.core_type = #tpu.core_type<tc>, window_params = [{transform_indices = @transform_0, window_bounds = array<i64: 2, 128>}, {pipeline_mode = #tpu.pipeline_mode<synchronous>, transform_indices = @transform_1, window_bounds = array<i64: 128, 256>}, {pipeline_mode = #tpu.pipeline_mode<synchronous>, transform_indices = @transform_2, window_bounds = array<i64: 1, 256>}, {pipeline_mode = #tpu.pipeline_mode<synchronous>, transform_indices = @transform_3, window_bounds = array<i64: 256, 256>}, {pipeline_mode = #tpu.pipeline_mode<synchronous>, transform_indices = @transform_4, window_bounds = array<i64: 1, 256>}, {pipeline_mode = #tpu.pipeline_mode<synchronous>, transform_indices = @transform_5, window_bounds = array<i64: 256, 256>}, {pipeline_mode = #tpu.pipeline_mode<synchronous>, transform_indices = @transform_6, window_bounds = array<i64: 1, 256>}, {pipeline_mode = #tpu.pipeline_mode<synchronous>, transform_indices = @transform_7, window_bounds = array<i64: 256, 256>}, {pipeline_mode = #tpu.pipeline_mode<synchronous>, transform_indices = @transform_8, window_bounds = array<i64: 1, 256>}, {pipeline_mode = #tpu.pipeline_mode<synchronous>, transform_indices = @transform_9, window_bounds = array<i64: 256, 256>}, {pipeline_mode = #tpu.pipeline_mode<synchronous>, transform_indices = @transform_10, window_bounds = array<i64: 1, 256>}, {pipeline_mode = #tpu.pipeline_mode<synchronous>, transform_indices = @transform_11, window_bounds = array<i64: 256, 32>}, {pipeline_mode = #tpu.pipeline_mode<synchronous>, transform_indices = @transform_12, window_bounds = array<i64: 1, 32>}, {pipeline_mode = #tpu.pipeline_mode<synchronous>, transform_indices = @transform_13, window_bounds = array<i64: 32, 128>}, {pipeline_mode = #tpu.pipeline_mode<synchronous>, transform_indices = @transform_14, window_bounds = array<i64: 1, 128>}, {transform_indices = @transform_15, window_bounds = array<i64: 2, 128>}]} {
    %c0 = arith.constant 0 : index
    %c0_0 = arith.constant 0 : index
    %0 = vector.load %arg1[%c0, %c0_0] : memref<2x128xf32, #tpu.memory_space<vmem>>, vector<2x128xf32>
    %c0_1 = arith.constant 0 : index
    %c0_2 = arith.constant 0 : index
    %1 = vector.load %arg2[%c0_1, %c0_2] : memref<128x256xf32, #tpu.memory_space<vmem>>, vector<128x256xf32>
    %cst = arith.constant dense<0.000000e+00> : vector<2x256xf32>
    %2 = tpu.matmul %0, %1, %cst {dimension_numbers = #tpu.dot_dimension_numbers<[1], [0], [0], [1], [0, 0, 1, 1], [], []>, precision = #tpu.contract_precision<fp32>} : vector<2x128xf32>, vector<128x256xf32>, vector<2x256xf32> -> vector<2x256xf32>
    %c0_3 = arith.constant 0 : index
    %c0_4 = arith.constant 0 : index
    %3 = vector.load %arg3[%c0_3, %c0_4] : memref<1x256xf32, #tpu.memory_space<vmem>>, vector<1x256xf32>
    %4 = vector.broadcast %3 : vector<1x256xf32> to vector<2x256xf32>
    %5 = arith.addf %2, %4 : vector<2x256xf32>
    %cst_5 = arith.constant 0.000000e+00 : f32
    %6 = vector.broadcast %cst_5 : f32 to vector<2x256xf32>
    %7 = arith.maximumf %5, %6 : vector<2x256xf32>
    %c0_6 = arith.constant 0 : index
    %c0_7 = arith.constant 0 : index
    %8 = vector.load %arg4[%c0_6, %c0_7] : memref<256x256xf32, #tpu.memory_space<vmem>>, vector<256x256xf32>
    %cst_8 = arith.constant dense<0.000000e+00> : vector<2x256xf32>
    %9 = tpu.matmul %7, %8, %cst_8 {dimension_numbers = #tpu.dot_dimension_numbers<[1], [0], [0], [1], [0, 0, 1, 1], [], []>, precision = #tpu.contract_precision<fp32>} : vector<2x256xf32>, vector<256x256xf32>, vector<2x256xf32> -> vector<2x256xf32>
    %c0_9 = arith.constant 0 : index
    %c0_10 = arith.constant 0 : index
    %10 = vector.load %arg5[%c0_9, %c0_10] : memref<1x256xf32, #tpu.memory_space<vmem>>, vector<1x256xf32>
    %11 = vector.broadcast %10 : vector<1x256xf32> to vector<2x256xf32>
    %12 = arith.addf %9, %11 : vector<2x256xf32>
    %cst_11 = arith.constant 0.000000e+00 : f32
    %13 = vector.broadcast %cst_11 : f32 to vector<2x256xf32>
    %14 = arith.maximumf %12, %13 : vector<2x256xf32>
    %c0_12 = arith.constant 0 : index
    %c0_13 = arith.constant 0 : index
    %15 = vector.load %arg6[%c0_12, %c0_13] : memref<256x256xf32, #tpu.memory_space<vmem>>, vector<256x256xf32>
    %cst_14 = arith.constant dense<0.000000e+00> : vector<2x256xf32>
    %16 = tpu.matmul %14, %15, %cst_14 {dimension_numbers = #tpu.dot_dimension_numbers<[1], [0], [0], [1], [0, 0, 1, 1], [], []>, precision = #tpu.contract_precision<fp32>} : vector<2x256xf32>, vector<256x256xf32>, vector<2x256xf32> -> vector<2x256xf32>
    %c0_15 = arith.constant 0 : index
    %c0_16 = arith.constant 0 : index
    %17 = vector.load %arg7[%c0_15, %c0_16] : memref<1x256xf32, #tpu.memory_space<vmem>>, vector<1x256xf32>
    %18 = vector.broadcast %17 : vector<1x256xf32> to vector<2x256xf32>
    %19 = arith.addf %16, %18 : vector<2x256xf32>
    %cst_17 = arith.constant 0.000000e+00 : f32
    %20 = vector.broadcast %cst_17 : f32 to vector<2x256xf32>
    %21 = arith.maximumf %19, %20 : vector<2x256xf32>
    %c0_18 = arith.constant 0 : index
    %c0_19 = arith.constant 0 : index
    %22 = vector.load %arg8[%c0_18, %c0_19] : memref<256x256xf32, #tpu.memory_space<vmem>>, vector<256x256xf32>
    %cst_20 = arith.constant dense<0.000000e+00> : vector<2x256xf32>
    %23 = tpu.matmul %21, %22, %cst_20 {dimension_numbers = #tpu.dot_dimension_numbers<[1], [0], [0], [1], [0, 0, 1, 1], [], []>, precision = #tpu.contract_precision<fp32>} : vector<2x256xf32>, vector<256x256xf32>, vector<2x256xf32> -> vector<2x256xf32>
    %c0_21 = arith.constant 0 : index
    %c0_22 = arith.constant 0 : index
    %24 = vector.load %arg9[%c0_21, %c0_22] : memref<1x256xf32, #tpu.memory_space<vmem>>, vector<1x256xf32>
    %25 = vector.broadcast %24 : vector<1x256xf32> to vector<2x256xf32>
    %26 = arith.addf %23, %25 : vector<2x256xf32>
    %cst_23 = arith.constant 0.000000e+00 : f32
    %27 = vector.broadcast %cst_23 : f32 to vector<2x256xf32>
    %28 = arith.maximumf %26, %27 : vector<2x256xf32>
    %c0_24 = arith.constant 0 : index
    %c0_25 = arith.constant 0 : index
    %29 = vector.load %arg10[%c0_24, %c0_25] : memref<256x256xf32, #tpu.memory_space<vmem>>, vector<256x256xf32>
    %cst_26 = arith.constant dense<0.000000e+00> : vector<2x256xf32>
    %30 = tpu.matmul %28, %29, %cst_26 {dimension_numbers = #tpu.dot_dimension_numbers<[1], [0], [0], [1], [0, 0, 1, 1], [], []>, precision = #tpu.contract_precision<fp32>} : vector<2x256xf32>, vector<256x256xf32>, vector<2x256xf32> -> vector<2x256xf32>
    %c0_27 = arith.constant 0 : index
    %c0_28 = arith.constant 0 : index
    %31 = vector.load %arg11[%c0_27, %c0_28] : memref<1x256xf32, #tpu.memory_space<vmem>>, vector<1x256xf32>
    %32 = vector.broadcast %31 : vector<1x256xf32> to vector<2x256xf32>
    %33 = arith.addf %30, %32 : vector<2x256xf32>
    %cst_29 = arith.constant 0.000000e+00 : f32
    %34 = vector.broadcast %cst_29 : f32 to vector<2x256xf32>
    %35 = arith.maximumf %33, %34 : vector<2x256xf32>
    %c0_30 = arith.constant 0 : index
    %c0_31 = arith.constant 0 : index
    %36 = vector.load %arg12[%c0_30, %c0_31] : memref<256x32xf32, #tpu.memory_space<vmem>>, vector<256x32xf32>
    %cst_32 = arith.constant dense<0.000000e+00> : vector<2x32xf32>
    %37 = tpu.matmul %35, %36, %cst_32 {dimension_numbers = #tpu.dot_dimension_numbers<[1], [0], [0], [1], [0, 0, 1, 1], [], []>, precision = #tpu.contract_precision<fp32>} : vector<2x256xf32>, vector<256x32xf32>, vector<2x32xf32> -> vector<2x32xf32>
    %c0_33 = arith.constant 0 : index
    %c0_34 = arith.constant 0 : index
    %38 = vector.load %arg13[%c0_33, %c0_34] : memref<1x32xf32, #tpu.memory_space<vmem>>, vector<1x32xf32>
    %39 = vector.broadcast %38 : vector<1x32xf32> to vector<2x32xf32>
    %40 = arith.addf %37, %39 : vector<2x32xf32>
    %cst_35 = arith.constant 0.000000e+00 : f32
    %41 = vector.broadcast %cst_35 : f32 to vector<2x32xf32>
    %42 = arith.maximumf %40, %41 : vector<2x32xf32>
    %c0_36 = arith.constant 0 : index
    %c0_37 = arith.constant 0 : index
    %43 = vector.load %arg14[%c0_36, %c0_37] : memref<32x128xf32, #tpu.memory_space<vmem>>, vector<32x128xf32>
    %cst_38 = arith.constant dense<0.000000e+00> : vector<2x128xf32>
    %44 = tpu.matmul %42, %43, %cst_38 {dimension_numbers = #tpu.dot_dimension_numbers<[1], [0], [0], [1], [0, 0, 1, 1], [], []>, precision = #tpu.contract_precision<fp32>} : vector<2x32xf32>, vector<32x128xf32>, vector<2x128xf32> -> vector<2x128xf32>
    %c0_39 = arith.constant 0 : index
    %c0_40 = arith.constant 0 : index
    %45 = vector.load %arg15[%c0_39, %c0_40] : memref<1x128xf32, #tpu.memory_space<vmem>>, vector<1x128xf32>
    %46 = vector.broadcast %45 : vector<1x128xf32> to vector<2x128xf32>
    %47 = arith.addf %44, %46 : vector<2x128xf32>
    %c0_41 = arith.constant 0 : index
    %c0_42 = arith.constant 0 : index
    %48 = vector.load %arg16[%c0_41, %c0_42] : memref<2x128xf32, #tpu.memory_space<vmem>>, vector<2x128xf32>
    tpu.vector_store %arg16[%c0_41, %c0_42], %47 {strides = array<i32>} : memref<2x128xf32, #tpu.memory_space<vmem>>, vector<2x128xf32>,
    return
  }
  func.func @transform_0(%arg0: i32) -> (i32, i32) {
    %c0_i32 = arith.constant 0 : i32
    %c0_i32_0 = arith.constant 0 : i32
    return %arg0, %c0_i32 : i32, i32
  }
  func.func @transform_1(%arg0: i32) -> (i32, i32) {
    %c0_i32 = arith.constant 0 : i32
    %c0_i32_0 = arith.constant 0 : i32
    %c0_i32_1 = arith.constant 0 : i32
    return %c0_i32, %c0_i32_0 : i32, i32
  }
  func.func @transform_2(%arg0: i32) -> (i32, i32) {
    %c0_i32 = arith.constant 0 : i32
    %c0_i32_0 = arith.constant 0 : i32
    %c0_i32_1 = arith.constant 0 : i32
    return %c0_i32, %c0_i32_0 : i32, i32
  }
  func.func @transform_3(%arg0: i32) -> (i32, i32) {
    %c0_i32 = arith.constant 0 : i32
    %c0_i32_0 = arith.constant 0 : i32
    %c0_i32_1 = arith.constant 0 : i32
    return %c0_i32, %c0_i32_0 : i32, i32
  }
  func.func @transform_4(%arg0: i32) -> (i32, i32) {
    %c0_i32 = arith.constant 0 : i32
    %c0_i32_0 = arith.constant 0 : i32
    %c0_i32_1 = arith.constant 0 : i32
    return %c0_i32, %c0_i32_0 : i32, i32
  }
  func.func @transform_5(%arg0: i32) -> (i32, i32) {
    %c0_i32 = arith.constant 0 : i32
    %c0_i32_0 = arith.constant 0 : i32
    %c0_i32_1 = arith.constant 0 : i32
    return %c0_i32, %c0_i32_0 : i32, i32
  }
  func.func @transform_6(%arg0: i32) -> (i32, i32) {
    %c0_i32 = arith.constant 0 : i32
    %c0_i32_0 = arith.constant 0 : i32
    %c0_i32_1 = arith.constant 0 : i32
    return %c0_i32, %c0_i32_0 : i32, i32
  }
  func.func @transform_7(%arg0: i32) -> (i32, i32) {
    %c0_i32 = arith.constant 0 : i32
    %c0_i32_0 = arith.constant 0 : i32
    %c0_i32_1 = arith.constant 0 : i32
    return %c0_i32, %c0_i32_0 : i32, i32
  }
  func.func @transform_8(%arg0: i32) -> (i32, i32) {
    %c0_i32 = arith.constant 0 : i32
    %c0_i32_0 = arith.constant 0 : i32
    %c0_i32_1 = arith.constant 0 : i32
    return %c0_i32, %c0_i32_0 : i32, i32
  }
  func.func @transform_9(%arg0: i32) -> (i32, i32) {
    %c0_i32 = arith.constant 0 : i32
    %c0_i32_0 = arith.constant 0 : i32
    %c0_i32_1 = arith.constant 0 : i32
    return %c0_i32, %c0_i32_0 : i32, i32
  }
  func.func @transform_10(%arg0: i32) -> (i32, i32) {
    %c0_i32 = arith.constant 0 : i32
    %c0_i32_0 = arith.constant 0 : i32
    %c0_i32_1 = arith.constant 0 : i32
    return %c0_i32, %c0_i32_0 : i32, i32
  }
  func.func @transform_11(%arg0: i32) -> (i32, i32) {
    %c0_i32 = arith.constant 0 : i32
    %c0_i32_0 = arith.constant 0 : i32
    %c0_i32_1 = arith.constant 0 : i32
    return %c0_i32, %c0_i32_0 : i32, i32
  }
  func.func @transform_12(%arg0: i32) -> (i32, i32) {
    %c0_i32 = arith.constant 0 : i32
    %c0_i32_0 = arith.constant 0 : i32
    %c0_i32_1 = arith.constant 0 : i32
    return %c0_i32, %c0_i32_0 : i32, i32
  }
  func.func @transform_13(%arg0: i32) -> (i32, i32) {
    %c0_i32 = arith.constant 0 : i32
    %c0_i32_0 = arith.constant 0 : i32
    %c0_i32_1 = arith.constant 0 : i32
    return %c0_i32, %c0_i32_0 : i32, i32
  }
  func.func @transform_14(%arg0: i32) -> (i32, i32) {
    %c0_i32 = arith.constant 0 : i32
    %c0_i32_0 = arith.constant 0 : i32
    %c0_i32_1 = arith.constant 0 : i32
    return %c0_i32, %c0_i32_0 : i32, i32
  }
  func.func @transform_15(%arg0: i32) -> (i32, i32) {
    %c0_i32 = arith.constant 0 : i32
    %c0_i32_0 = arith.constant 0 : i32
    return %arg0, %c0_i32 : i32, i32
  }
}

</mosaic_0001>

<bundles_post_ra>
// kernel: tpu_custom_call.1
= control target key start
LH: loop header
LB: loop body
LE: loop exit
PB: predicated region body
PF: predicated region fallthrough
CT: control target
= control target key end

     0   :  { %20 = vsyncpa [#allocation3], 0  ;;  %s15724_s0 = inlined_call_operand.vmem [shape: f32[2,128], index: 0, kind: input, shape index: {}]   ;;  %s15725_s1 = inlined_call_operand.vmem [shape: f32[128,256], index: 1, kind: input, shape index: {}]   ;;  %s15726_s2 = inlined_call_operand.vmem [shape: f32[1,256], index: 2, kind: input, shape index: {}]   ;;  %s15727_s3 = inlined_call_operand.hbm [shape: f32[256,256], index: 3, kind: input, shape index: {}]   ;;  %s15728_s4 = inlined_call_operand.vmem [shape: f32[1,256], index: 4, kind: input, shape index: {}]   ;;  %s15729_s5 = inlined_call_operand.hbm [shape: f32[256,256], index: 5, kind: input, shape index: {}]   ;;  %s15730_s6 = inlined_call_operand.vmem [shape: f32[1,256], index: 6, kind: input, shape index: {}]   ;;  %s15731_s7 = inlined_call_operand.hbm [shape: f32[256,256], index: 7, kind: input, shape index: {}]   ;;  %s15732_s8 = inlined_call_operand.vmem [shape: f32[1,256], index: 8, kind: input, shape index: {}]   ;;  %s15733_s9 = inlined_call_operand.hbm [shape: f32[256,256], index: 9, kind: input, shape index: {}]   ;;  %s15734_s10 = inlined_call_operand.vmem [shape: f32[1,256], index: 10, kind: input, shape index: {}]   ;;  %s15735_s11 = inlined_call_operand.vmem [shape: f32[256,32], index: 11, kind: input, shape index: {}]   ;;  %s15736_s12 = inlined_call_operand.vmem [shape: f32[1,32], index: 12, kind: input, shape index: {}]   ;;  %s15737_s13 = inlined_call_operand.vmem [shape: f32[32,128], index: 13, kind: input, shape index: {}]   ;;  %s15738_s14 = inlined_call_operand.vmem [shape: f32[1,128], index: 14, kind: input, shape index: {}]   ;;  %s15739_s15 = inlined_call_operand.hbm [shape: f32[2,128], index: 15, kind: output, shape index: {}]  }
   0x1   :  { %21 = vsyncpa [#allocation6], 0 }
   0x2   :  { %22 = vsyncpa [#allocation9], 0 }
   0x3   :  { %23 = vsyncpa [#allocation4], 0  ;;  %s10339_s18 = smov [#allocation5]   ;;  %s10340_s20 = smov [#allocation2]  }
   0x4   :  { %s49_s19 = sshll.u32 %s10339_s18, 4  ;;  %s35_s21 = sshll.u32 %s10340_s20, 4  ;;  %s50_s19 = int_to_ptr.vmem [resolvable:$true] %s49_s19  ;;  %s10429_s21 = int_to_ptr.vmem [resolvable:$true] %s35_s21 }
   0x5   :  { %s10221_s24 = scalar_lea.hbm %s15729_s5, 8192 }
   0x6   :  { %p10222_p0 = scmp.ne.s32.totalorder %s15729_s5, %s10221_s24  ;;  %p10225_p1 = scmp.lt.u32.totalorder %s10221_s24, %s15729_s5 }
   0x8   :  { %p10227_p2 = pnand %p10225_p1, %p10222_p0 }
   0xa   :  { %10230 = shalt.err (!%p10227_p2)
}
   0xb   :  { %s10231_s29 = scalar_lea.vmem %s50_s19, 8192  ;;  %p10236_p4 = scmp.lt.s32.totalorder %s50_s19, %s50_s19 }
   0xc   :  { %p10232_p3 = scmp.ne.s32.totalorder %s50_s19, %s10231_s29  ;;  %p10237_p5 = scmp.lt.s32.totalorder %s10231_s29, %s10231_s29 }
   0xe   :  { %p10238_p6 = por %p10237_p5, %p10236_p4 }
  0x10   :  { %p10239_p7 = pnand %p10238_p6, %p10232_p3 }
  0x12   :  { %10242 = shalt.err (!%p10239_p7)
}
  0x13   :  { %s10341_s30 = smov 256   ;;  %s10342_s16 = smov 16  }
  0x14   :  { %55 = dma.hbm_to_vmem [thread:$0]  %s15729_s5, 8192, %s50_s19, [#allocation6], %s10341_s30, %s10341_s30, %s10342_s16  }
  0x15   :  { %s10243_s23 = scalar_lea.hbm %s15727_s3, 8192 }
  0x16   :  { %p10244_p8 = scmp.ne.s32.totalorder %s15727_s3, %s10243_s23  ;;  %p10247_p9 = scmp.lt.u32.totalorder %s10243_s23, %s15727_s3 }
  0x18   :  { %p10249_p10 = pnand %p10247_p9, %p10244_p8 }
  0x1a   :  { %10252 = shalt.err (!%p10249_p10)
}
  0x1b   :  { %s10253_s28 = scalar_lea.vmem %s10429_s21, 8192  ;;  %p10258_p12 = scmp.lt.s32.totalorder %s10429_s21, %s10429_s21 }
  0x1c   :  { %p10254_p11 = scmp.ne.s32.totalorder %s10429_s21, %s10253_s28  ;;  %p10259_p13 = scmp.lt.s32.totalorder %s10253_s28, %s10253_s28 }
  0x1e   :  { %p10260_p0 = por %p10259_p13, %p10258_p12 }
  0x20   :  { %p10261_p1 = pnand %p10260_p0, %p10254_p11 }
  0x22   :  { %10264 = shalt.err (!%p10261_p1)
}
  0x23   :  { %41 = dma.hbm_to_vmem [thread:$0]  %s15727_s3, 8192, %s10429_s21, [#allocation3], %s10341_s30, %s10341_s30, %s10342_s16  }
  0x24   :  { %s10343_s29 = smov [#allocation7]   ;;  %s10344_s18 = smov [#allocation8]  }
  0x25   :  { %s63_s17 = sshll.u32 %s10343_s29, 4  ;;  %s77_s20 = sshll.u32 %s10344_s18, 4  ;;  %s64_s17 = int_to_ptr.vmem [resolvable:$true] %s63_s17  ;;  %s10466_s20 = int_to_ptr.vmem [resolvable:$true] %s77_s20 }
  0x26   :  { %s10265_s24 = scalar_lea.hbm %s15731_s7, 8192 }
  0x27   :  { %p10266_p2 = scmp.ne.s32.totalorder %s15731_s7, %s10265_s24  ;;  %p10269_p3 = scmp.lt.u32.totalorder %s10265_s24, %s15731_s7 }
  0x29   :  { %p10271_p4 = pnand %p10269_p3, %p10266_p2 }
  0x2b   :  { %10274 = shalt.err (!%p10271_p4)
}
  0x2c   :  { %s10275_s3 = scalar_lea.vmem %s64_s17, 8192  ;;  %p10280_p6 = scmp.lt.s32.totalorder %s64_s17, %s64_s17 }
  0x2d   :  { %p10276_p5 = scmp.ne.s32.totalorder %s64_s17, %s10275_s3  ;;  %p10281_p7 = scmp.lt.s32.totalorder %s10275_s3, %s10275_s3 }
  0x2f   :  { %p10282_p8 = por %p10281_p7, %p10280_p6 }
  0x31   :  { %p10283_p9 = pnand %p10282_p8, %p10276_p5 }
  0x33   :  { %10286 = shalt.err (!%p10283_p9)
}
  0x34   :  { %69 = dma.hbm_to_vmem [thread:$0]  %s15731_s7, 8192, %s64_s17, [#allocation6], %s10341_s30, %s10341_s30, %s10342_s16  }
  0x35   :  { %s10287_s18 = scalar_lea.hbm %s15733_s9, 8192 }
  0x36   :  { %p10288_p10 = scmp.ne.s32.totalorder %s15733_s9, %s10287_s18  ;;  %p10291_p11 = scmp.lt.u32.totalorder %s10287_s18, %s15733_s9 }
  0x38   :  { %p10293_p12 = pnand %p10291_p11, %p10288_p10 }
  0x3a   :  { %10296 = shalt.err (!%p10293_p12)
}
  0x3b   :  { %s10297_s26 = scalar_lea.vmem %s10466_s20, 8192  ;;  %p10302_p0 = scmp.lt.s32.totalorder %s10466_s20, %s10466_s20 }
  0x3c   :  { %p10298_p13 = scmp.ne.s32.totalorder %s10466_s20, %s10297_s26  ;;  %p10303_p1 = scmp.lt.s32.totalorder %s10297_s26, %s10297_s26 }
  0x3e   :  { %p10304_p2 = por %p10303_p1, %p10302_p0 }
  0x40   :  { %p10305_p3 = pnand %p10304_p2, %p10298_p13 }
  0x42   :  { %10308 = shalt.err (!%p10305_p3)
}
  0x43   :  { %83 = dma.hbm_to_vmem [thread:$0]  %s15733_s9, 8192, %s10466_s20, [#allocation9], %s10341_s30, %s10341_s30, %s10342_s16  }
  0x44   :  { %10331 = dma.done.wait [#allocation3], 8192  }
  0x45   :  { %10332 = vsyncadd [#allocation3], 4294959104 }
  0x46   :  { %10333 = dma.done.wait [#allocation6], 16384  }
  0x47   :  { %10334 = vsyncadd [#allocation6], 4294950912 }
  0x48   :  { %10335 = dma.done.wait [#allocation9], 8192  }
  0x49   :  { %10336 = vsyncadd [#allocation9], 4294959104  ;;  %v15753_v0 = vmov 0.0   ;;  %v10508_v1 = vld [vmem:[%s15725_s1 + $0x8] sm:$0xff]  ;;  %v10513_v2 = vld [vmem:[%s15725_s1 + $0x18] sm:$0xff]  ;;  %vm10347_vm0 = vmmov 0  }
  0x4a   :  { %483 = vmatprep.mubr.f32.mxu0 %v15753_v0  ;;  %247 = vmatprep.mubr.f32.mxu1 %v15753_v0  ;;  %v10518_v3 = vld [vmem:[%s15725_s1] sm:$0xff]  ;;  %v15786_v4 = vand.u32 4294901760, %v10508_v1  ;;  %v15784_v5 = vand.u32 4294901760, %v10513_v2  ;;  %v10525_v6 = vld [vmem:[%s15725_s1 + $0x10] sm:$0xff]  ;;  %v10531_v8 = vld [vmem:[%s15725_s1 + $0x28] sm:$0xff]  ;;  %vm7369_vm1 = vcmask 261120  }
  0x4b   :  { %v15780_v7 = vand.u32 4294901760, %v10518_v3  ;;  %v10536_v9 = vld [vmem:[%s15725_s1 + $0x38] sm:$0xff]  ;;  %v15778_v10 = vand.u32 4294901760, %v10525_v6  ;;  %v15777_v11 = vand.u32 4294901760, %v10531_v8  ;;  %v10544_v13 = vld [vmem:[%s15725_s1 + $0x20] sm:$0xff]  ;;  %v10549_v14 = vld [vmem:[%s15725_s1 + $0x30] sm:$0xff] }
  0x4c   :  { %v15776_v12 = vand.u32 4294901760, %v10536_v9  ;;  %v10554_v15 = vsub.f32 %v10508_v1, %v15786_v4  ;;  %v10559_v16 = vsub.f32 %v10513_v2, %v15784_v5  ;;  %v15773_v18 = vand.u32 4294901760, %v10544_v13  ;;  %v10622_v39 = vld [vmem:[%s15725_s1 + $0x48] sm:$0xff]  ;;  %v10627_v40 = vld [vmem:[%s15725_s1 + $0x58] sm:$0xff]  ;;  %v10635_v45 = vld [vmem:[%s15725_s1 + $0x40] sm:$0xff]  ;;  %s10348_s18 = smov [#allocation10]  }
  0x4d   :  { %v10564_v17 = vsub.f32 %v10518_v3, %v15780_v7  ;;  %v10570_v19 = vsub.f32 %v10525_v6, %v15778_v10  ;;  %v10575_v20 = vsub.f32 %v10531_v8, %v15777_v11  ;;  %v15770_v22 = vand.u32 4294901760, %v10549_v14  ;;  %v10643_v50 = vld [vmem:[%s15725_s1 + $0x50] sm:$0xff]  ;;  %v10648_v51 = vld [vmem:[%s15725_s1 + $0x68] sm:$0xff]  ;;  %v10655_v56 = vld [vmem:[%s15725_s1 + $0x78] sm:$0xff] }
  0x4e   :  { %v10580_v21 = vsub.f32 %v10536_v9, %v15776_v12  ;;  %v15763_v23 = vand.u32 4294901760, %v10554_v15  ;;  %v15761_v24 = vand.u32 4294901760, %v10559_v16  ;;  %v10589_v26 = vsub.f32 %v10544_v13, %v15773_v18  ;;  %v10660_v57 = vld [vmem:[%s15725_s1 + $0x60] sm:$0xff]  ;;  %v10842_v18 = vld [vmem:[%s15725_s1 + $0xc8] sm:$0xff] }
  0x4f   :  { %v15760_v25 = vand.u32 4294901760, %v10564_v17  ;;  %v15759_v27 = vand.u32 4294901760, %v10570_v19  ;;  %v15758_v28 = vand.u32 4294901760, %v10575_v20  ;;  %v10597_v30 = vsub.f32 %v10549_v14, %v15770_v22  ;;  %16708 = vst [vmem:[#allocation15_spill] sm:$0xff] %v10660_v57  ;;  %16718 = vst [vmem:[#allocation25_spill] sm:$0xff] %v10842_v18  ;;  %v10872_v5 = vld [vmem:[%s15725_s1 + $0xc0] sm:$0xff] }
  0x50   :  { %v15755_v29 = vand.u32 4294901760, %v10580_v21  ;;  %v262_v31 = vsub.f32 %v10554_v15, %v15763_v23  ;;  %v274_v32 = vsub.f32 %v10559_v16, %v15761_v24  ;;  %v15750_v34 = vand.u32 4294901760, %v10589_v26  ;;  %16720 = vst [vmem:[#allocation27_spill] sm:$0xff] %v10872_v5 }
  0x51   :  { %v268_v33 = vsub.f32 %v10564_v17, %v15760_v25  ;;  %v280_v35 = vsub.f32 %v10570_v19, %v15759_v27  ;;  %v286_v36 = vsub.f32 %v10575_v20, %v15758_v28  ;;  %v15749_v38 = vand.u32 4294901760, %v10597_v30 }
  0x52   :  { %v298_v37 = vsub.f32 %v10580_v21, %v15755_v29  ;;  %v263_v41 = vand.u32 4294901760, %v262_v31  ;;  %v275_v42 = vand.u32 4294901760, %v274_v32  ;;  %v292_v44 = vsub.f32 %v10589_v26, %v15750_v34 }
  0x53   :  { %v269_v43 = vand.u32 4294901760, %v268_v33  ;;  %v281_v46 = vand.u32 4294901760, %v280_v35  ;;  %v287_v47 = vand.u32 4294901760, %v286_v36  ;;  %v304_v49 = vsub.f32 %v10597_v30, %v15749_v38  ;;  %v10678_v33 = vld [vmem:[%s15725_s1 + $0x70] sm:$0xff] }
  0x54   :  { %v299_v48 = vand.u32 4294901760, %v298_v37  ;;  %v8216_v52 = vpack.c.bf16 %v275_v42, %v263_v41  ;;  %v293_v53 = vand.u32 4294901760, %v292_v44  ;;  %v15769_v54 = vand.u32 4294901760, %v10622_v39  ;;  %16709 = vst [vmem:[#allocation16_spill] sm:$0xff] %v10678_v33 }
  0x55   :  { %v15767_v55 = vand.u32 4294901760, %v10627_v40  ;;  %v8218_v58 = vpack.c.bf16 %v281_v46, %v269_v43  ;;  %v305_v60 = vand.u32 4294901760, %v304_v49  ;;  %v15744_v61 = vand.u32 4294901760, %v10635_v45 }
  0x56   :  { %v8220_v59 = vpack.c.bf16 %v299_v48, %v287_v47  ;;  %8217 = vmatprep.subr.bf16.mxu0 %v8216_v52  ;;  %v10666_v62 = vsub.f32 %v10622_v39, %v15769_v54  ;;  %v15743_v31 = vand.u32 4294901760, %v10643_v50  ;;  %v15742_v32 = vand.u32 4294901760, %v10648_v51 }
  0x57   :  { %v10671_v63 = vsub.f32 %v10627_v40, %v15767_v55  ;;  %8219 = vmatpush1.bf16.msra.mxu0 %v8218_v58  ;;  %v8222_v35 = vpack.c.bf16 %v305_v60, %v293_v53  ;;  %v10683_v36 = vsub.f32 %v10635_v45, %v15744_v61  ;;  %v15740_v37 = vand.u32 4294901760, %v10655_v56  ;;  %v10732_v61 = vld [vmem:[%s15725_s1 + $0x88] sm:$0xff] }
  0x58   :  { %v15741_v41 = vand.u32 4294901760, %v10660_v57  ;;  %8221 = vmatprep.subr.bf16.mxu0 %v8220_v59  ;;  %v15747_v42 = vand.u32 4294901760, %v10666_v62  ;;  %v10692_v44 = vsub.f32 %v10643_v50, %v15743_v31  ;;  %v10697_v46 = vsub.f32 %v10648_v51, %v15742_v32  ;;  %16710 = vst [vmem:[#allocation17_spill] sm:$0xff] %v10732_v61 }
  0x59   :  { %v15745_v43 = vand.u32 4294901760, %v10671_v63  ;;  %v15746_v47 = vand.u32 4294901760, %v10683_v36  ;;  %v10703_v48 = vsub.f32 %v10655_v56, %v15740_v37  ;;  %v15748_v49 = vand.u32 4294901760, %v10678_v33 }
  0x5a   :  { %v10709_v52 = vsub.f32 %v10660_v57, %v15741_v41  ;;  %v310_v53 = vsub.f32 %v10666_v62, %v15747_v42  ;;  %v15752_v59 = vand.u32 4294901760, %v10692_v44  ;;  %v15751_v60 = vand.u32 4294901760, %v10697_v46 }
  0x5b   :  { %v322_v58 = vsub.f32 %v10671_v63, %v15745_v43  ;;  %8223 = vmatpush1.bf16.msra.mxu0 %v8222_v35  ;;  %v316_v37 = vsub.f32 %v10683_v36, %v15746_v47  ;;  %v15756_v41 = vand.u32 4294901760, %v10703_v48  ;;  %v10727_v31 = vsub.f32 %v10678_v33, %v15748_v49  ;;  %v10743_v49 = vld [vmem:[%s15725_s1 + $0x98] sm:$0xff] }
  0x5c   :  { %v15757_v32 = vand.u32 4294901760, %v10709_v52  ;;  %v311_v43 = vand.u32 4294901760, %v310_v53  ;;  %v328_v47 = vsub.f32 %v10692_v44, %v15752_v59  ;;  %v334_v42 = vsub.f32 %v10697_v46, %v15751_v60  ;;  %16711 = vst [vmem:[#allocation18_spill] sm:$0xff] %v10743_v49  ;;  %v10755_v60 = vld [vmem:[%s15725_s1 + $0x80] sm:$0xff]  ;;  %v10760_v59 = vld [vmem:[%s15725_s1 + $0x90] sm:$0xff] }
  0x5d   :  { %v323_v35 = vand.u32 4294901760, %v322_v58  ;;  %v317_v38 = vand.u32 4294901760, %v316_v37  ;;  %v346_v34 = vsub.f32 %v10703_v48, %v15756_v41  ;;  %v15762_v58 = vand.u32 4294901760, %v10727_v31  ;;  %16712 = vst [vmem:[#allocation19_spill] sm:$0xff] %v10755_v60  ;;  %16713 = vst [vmem:[#allocation20_spill] sm:$0xff] %v10760_v59 }
  0x5e   :  { %v340_v53 = vsub.f32 %v10709_v52, %v15757_v32  ;;  %v329_v0 = vand.u32 4294901760, %v328_v47  ;;  %v335_v29 = vand.u32 4294901760, %v334_v42  ;;  %v15764_v41 = vand.u32 4294901760, %v10732_v61  ;;  %v10766_v32 = vld [vmem:[%s15725_s1 + $0xa8] sm:$0xff] }
  0x5f   :  { %v8224_v37 = vpack.c.bf16 %v323_v35, %v311_v43  ;;  %16714 = vst [vmem:[#allocation21_spill] sm:$0xff] %v10766_v32  ;;  %v347_v28 = vand.u32 4294901760, %v346_v34  ;;  %v352_v25 = vsub.f32 %v10727_v31, %v15762_v58  ;;  %v15765_v24 = vand.u32 4294901760, %v10743_v49  ;;  %v10775_v43 = vld [vmem:[%s15725_s1 + $0xb8] sm:$0xff] }
  0x60   :  { %v341_v27 = vand.u32 4294901760, %v340_v53  ;;  %16715 = vst [vmem:[#allocation22_spill] sm:$0xff] %v10775_v43  ;;  %v8226_v42 = vpack.c.bf16 %v329_v0, %v317_v38  ;;  %v10780_v47 = vsub.f32 %v10732_v61, %v15764_v41  ;;  %v15766_v34 = vand.u32 4294901760, %v10755_v60  ;;  %v10787_v53 = vld [vmem:[%s15725_s1 + $0xa0] sm:$0xff] }
  0x61   :  { %8225 = vmatprep.subr.bf16.mxu0 %v8224_v37  ;;  %v15768_v35 = vand.u32 4294901760, %v10760_v59  ;;  %16716 = vst [vmem:[#allocation23_spill] sm:$0xff] %v10787_v53  ;;  %v8228_v58 = vpack.c.bf16 %v347_v28, %v335_v29  ;;  %v353_v23 = vand.u32 4294901760, %v352_v25  ;;  %v10792_v0 = vsub.f32 %v10743_v49, %v15765_v24  ;;  %v10810_v29 = vld [vmem:[%s15725_s1 + $0xb0] sm:$0xff] }
  0x62   :  { %v15771_v38 = vand.u32 4294901760, %v10766_v32  ;;  %8227 = vmatpush1.bf16.msra.mxu0 %v8226_v42  ;;  %v15772_v37 = vand.u32 4294901760, %v10780_v47  ;;  %v10799_v41 = vsub.f32 %v10755_v60, %v15766_v34  ;;  %v15774_v25 = vand.u32 4294901760, %v10775_v43  ;;  %16717 = vst [vmem:[#allocation24_spill] sm:$0xff] %v10810_v29 }
  0x63   :  { %v10804_v28 = vsub.f32 %v10760_v59, %v15768_v35  ;;  %8229 = vmatprep.subr.bf16.mxu0 %v8228_v58  ;;  %v8230_v42 = vpack.c.bf16 %v353_v23, %v341_v27  ;;  %v15775_v24 = vand.u32 4294901760, %v10792_v0  ;;  %v15779_v55 = vand.u32 4294901760, %v10787_v53 }
  0x64   :  { %v10816_v34 = vsub.f32 %v10766_v32, %v15771_v38  ;;  %v358_v35 = vsub.f32 %v10780_v47, %v15772_v37  ;;  %v15782_v54 = vand.u32 4294901760, %v10799_v41  ;;  %v10827_v23 = vsub.f32 %v10775_v43, %v15774_v25 }
  0x65   :  { %v15781_v22 = vand.u32 4294901760, %v10804_v28  ;;  %v370_v27 = vsub.f32 %v10792_v0, %v15775_v24  ;;  %v15785_v38 = vand.u32 4294901760, %v10810_v29  ;;  %v10837_v37 = vsub.f32 %v10787_v53, %v15779_v55 }
  0x66   :  { %v15783_v58 = vand.u32 4294901760, %v10816_v34  ;;  %8231 = vmatpush1.bf16.msra.mxu0 %v8230_v42  ;;  %v359_v25 = vand.u32 4294901760, %v358_v35  ;;  %v364_v24 = vsub.f32 %v10799_v41, %v15782_v54  ;;  %v15787_v11 = vand.u32 4294901760, %v10827_v23  ;;  %v10863_v42 = vld [vmem:[%s15725_s1 + $0xd8] sm:$0xff] }
  0x67   :  { %v376_v12 = vsub.f32 %v10804_v28, %v15781_v22  ;;  %v371_v10 = vand.u32 4294901760, %v370_v27  ;;  %v10858_v35 = vsub.f32 %v10810_v29, %v15785_v38  ;;  %16719 = vst [vmem:[#allocation26_spill] sm:$0xff] %v10863_v42  ;;  %v10877_v38 = vld [vmem:[%s15725_s1 + $0xd0] sm:$0xff]  ;;  %v16724_v32 = vand.u32 4294901760, %v10842_v18 }
  0x68   :  { %v382_v55 = vsub.f32 %v10816_v34, %v15783_v58  ;;  %v365_v22 = vand.u32 4294901760, %v364_v24  ;;  %v394_v27 = vsub.f32 %v10827_v23, %v15787_v11  ;;  %16721 = vst [vmem:[#allocation28_spill] sm:$0xff] %v10877_v38  ;;  %v10886_v58 = vld [vmem:[%s15725_s1 + $0xe8] sm:$0xff]  ;;  %v16728_v59 = vand.u32 4294901760, %v10877_v38 }
  0x69   :  { %v377_v54 = vand.u32 4294901760, %v376_v12  ;;  %v8232_v4 = vpack.c.bf16 %v371_v10, %v359_v25  ;;  %v16722_v12 = vand.u32 4294901760, %v10837_v37  ;;  %v15792_v11 = vand.u32 4294901760, %v10858_v35  ;;  %16723 = vst [vmem:[#allocation29_spill] sm:$0xff] %v10886_v58 }
  0x6a   :  { %v383_v7 = vand.u32 4294901760, %v382_v55  ;;  %v395_v53 = vand.u32 4294901760, %v394_v27  ;;  %v10892_v10 = vsub.f32 %v10842_v18, %v16724_v32  ;;  %v10897_v55 = vld [vmem:[%s15725_s1 + $0xf8] sm:$0xff]  ;;  %v10907_v32 = vld [vmem:[%s15725_s1 + $0xe0] sm:$0xff] }
  0x6b   :  { %v388_v24 = vsub.f32 %v10837_v37, %v16722_v12  ;;  %v8234_v29 = vpack.c.bf16 %v377_v54, %v365_v22  ;;  %16725 = vst [vmem:[#allocation30_spill] sm:$0xff] %v10897_v55  ;;  %8233 = vmatprep.subr.bf16.mxu0 %v8232_v4  ;;  %v400_v12 = vsub.f32 %v10858_v35, %v15792_v11  ;;  %v15795_v22 = vand.u32 4294901760, %v10872_v5 }
  0x6c   :  { %16726 = vst [vmem:[#allocation31_spill] sm:$0xff] %v10907_v32  ;;  %v8236_v27 = vpack.c.bf16 %v395_v53, %v383_v7  ;;  %v15799_v43 = vand.u32 4294901760, %v10892_v10  ;;  %v16727_v4 = vand.u32 4294901760, %v10863_v42  ;;  %v15801_v11 = vand.u32 4294901760, %v10886_v58  ;;  %v10930_v53 = vld [vmem:[%s15725_s1 + $0xf0] sm:$0xff] }
  0x6d   :  { %v389_v25 = vand.u32 4294901760, %v388_v24  ;;  %8235 = vmatpush1.bf16.msra.mxu0 %v8234_v29  ;;  %v401_v18 = vand.u32 4294901760, %v400_v12  ;;  %v10919_v54 = vsub.f32 %v10872_v5, %v15795_v22  ;;  %v10924_v29 = vsub.f32 %v10877_v38, %v16728_v59 }
  0x6e   :  { %v10913_v24 = vsub.f32 %v10863_v42, %v16727_v4  ;;  %8237 = vmatprep.subr.bf16.mxu0 %v8236_v27  ;;  %v406_v12 = vsub.f32 %v10892_v10, %v15799_v43  ;;  %v10939_v22 = vsub.f32 %v10886_v58, %v15801_v11  ;;  %v15809_v59 = vand.u32 4294901760, %v10907_v32 }
  0x6f   :  { %v8238_v7 = vpack.c.bf16 %v401_v18, %v389_v25  ;;  %v15804_v38 = vand.u32 4294901760, %v10919_v54  ;;  %v15807_v5 = vand.u32 4294901760, %v10924_v29  ;;  %v16729_v27 = vand.u32 4294901760, %v10897_v55 }
  0x70   :  { %v15803_v4 = vand.u32 4294901760, %v10913_v24  ;;  %v407_v43 = vand.u32 4294901760, %v406_v12  ;;  %v15813_v11 = vand.u32 4294901760, %v10939_v22  ;;  %v15814_v58 = vand.u32 4294901760, %v10930_v53 }
  0x71   :  { %v10947_v42 = vsub.f32 %v10897_v55, %v16729_v27  ;;  %8239 = vmatpush1.bf16.msra.mxu0 %v8238_v7  ;;  %v412_v18 = vsub.f32 %v10919_v54, %v15804_v38  ;;  %v424_v25 = vsub.f32 %v10924_v29, %v15807_v5  ;;  %v10964_v12 = vsub.f32 %v10907_v32, %v15809_v59 }
  0x72   :  { %v418_v60 = vsub.f32 %v10913_v24, %v15803_v4  ;;  %v430_v7 = vsub.f32 %v10939_v22, %v15813_v11  ;;  %v10972_v38 = vsub.f32 %v10930_v53, %v15814_v58 }
  0x73   :  { %v15817_v27 = vand.u32 4294901760, %v10947_v42  ;;  %v413_v55 = vand.u32 4294901760, %v412_v18  ;;  %v425_v49 = vand.u32 4294901760, %v424_v25  ;;  %v15816_v61 = vand.u32 4294901760, %v10964_v12 }
  0x74   :  { %v419_v4 = vand.u32 4294901760, %v418_v60  ;;  %v431_v32 = vand.u32 4294901760, %v430_v7  ;;  %v15815_v60 = vand.u32 4294901760, %v10972_v38  ;;  %v16734_v7 = vand.u32 4294901760, %v10525_v6 }
  0x75   :  { %v442_v5 = vsub.f32 %v10947_v42, %v15817_v27  ;;  %v8242_v33 = vpack.c.bf16 %v425_v49, %v413_v55  ;;  %v436_v11 = vsub.f32 %v10964_v12, %v15816_v61  ;;  %v16740_v6 = vand.u32 4294901760, %v10627_v40 }
  0x76   :  { %v8240_v59 = vpack.c.bf16 %v419_v4, %v407_v43  ;;  %v448_v18 = vsub.f32 %v10972_v38, %v15815_v60  ;;  %v10988_v43 = vld [vmem:[%s15724_s0] sm:$0x3]  ;;  %v16748_v40 = vand.u32 4294901760, %v10580_v21  ;;  %v16781_v60 = vand.u32 4294901760, %v10919_v54 }
  0x77   :  { %v443_v57 = vand.u32 4294901760, %v442_v5  ;;  %v437_v58 = vand.u32 4294901760, %v436_v11  ;;  %v8248_v5 = vpack.c.bf16 %v10559_v16, %v10554_v15  ;;  %v10993_v55 = vand.u32 4294901760, %v10988_v43 }
  0x78   :  { %8241 = vmatprep.subr.bf16.mxu0 %v8240_v59  ;;  %v449_v4 = vand.u32 4294901760, %v448_v18  ;;  %v8250_v59 = vpack.c.bf16 %v10570_v19, %v10564_v17  ;;  %v8252_v11 = vpack.c.bf16 %v10580_v21, %v10575_v20  ;;  %v16731_v18 = vand.u32 4294901760, %v10508_v1 }
  0x79   :  { %8243 = vmatpush1.bf16.msra.mxu0 %v8242_v33  ;;  %v8244_v25 = vpack.c.bf16 %v443_v57, %v431_v32  ;;  %16730 = vst [vmem:[#allocation32_spill] sm:$0xff] %v10993_v55  ;;  %v8254_v57 = vpack.c.bf16 %v10597_v30, %v10589_v26  ;;  %v8256_v33 = vpack.c.bf16 %v10671_v63, %v10666_v62 }
  0x7a   :  { %v8246_v49 = vpack.c.bf16 %v449_v4, %v437_v58  ;;  %v16733_v58 = vand.u32 4294901760, %v10518_v3  ;;  %v16739_v3 = vand.u32 4294901760, %v10622_v39  ;;  %v16747_v39 = vand.u32 4294901760, %v10575_v20 }
  0x7b   :  { %8245 = vmatprep.subr.bf16.mxu0 %v8244_v25  ;;  %v16732_v25 = vand.u32 4294901760, %v10513_v2  ;;  %v16735_v2 = vand.u32 4294901760, %v10531_v8  ;;  %v16741_v8 = vand.u32 4294901760, %v10554_v15  ;;  %v16750_v15 = vmov 0.0  }
  0x7c   :  { %v11025_v61 = vpack.c.bf16 %v16734_v7, %v16733_v58  ;;  %v11045_v58 = vpack.c.bf16 %v16740_v6, %v16739_v3  ;;  %v16755_v20 = vand.u32 4294901760, %v10671_v63  ;;  %v16757_v3 = vand.u32 4294901760, %v10683_v36 }
  0x7d   :  { %8247 = vmatpush1.bf16.msra.mxu0 %v8246_v49  ;;  %v11013_v4 = vpack.c.bf16 %v16732_v25, %v16731_v18  ;;  %v16737_v25 = vand.u32 4294901760, %v10544_v13  ;;  %v16738_v49 = vand.u32 4294901760, %v10549_v14  ;;  %v16744_v13 = vand.u32 4294901760, %v10564_v17 }
  0x7e   :  { %8249 = vmatprep.subr.bf16.mxu0 %v8248_v5  ;;  %v16736_v5 = vand.u32 4294901760, %v10536_v9  ;;  %v16742_v9 = vand.u32 4294901760, %v10559_v16  ;;  %v16745_v14 = vand.u32 4294901760, %v10570_v19  ;;  %v16751_v16 = vand.u32 4294901760, %v10589_v26 }
  0x7f   :  { %v11039_v32 = vpack.c.bf16 %v16738_v49, %v16737_v25  ;;  %8185 = vmatprep.subr.bf16.mxu1 %v11013_v4  ;;  %v16752_v17 = vand.u32 4294901760, %v10597_v30  ;;  %v16754_v25 = vand.u32 4294901760, %v10666_v62  ;;  %v16758_v6 = vand.u32 4294901760, %v10692_v44 }
  0x80   :  { %v11033_v18 = vpack.c.bf16 %v16736_v5, %v16735_v2  ;;  %485 = vmatmul.mubr.f32.vlgmr.msra.gmra.mrb[0].mxu0 %v10993_v55  ;;  %v11053_v7 = vpack.c.bf16 %v16742_v9, %v16741_v8  ;;  %v11059_v49 = vpack.c.bf16 %v16745_v14, %v16744_v13  ;;  %v11065_v2 = vpack.c.bf16 %v16748_v40, %v16747_v39  ;;  %v11068_v5 = vld [vmem:[#allocation2 + $0x8] sm:$0xff] }
  0x81   :  { %8187 = vmatpush1.bf16.msra.mxu1 %v11025_v61  ;;  %8251 = vmatpush1.bf16.msra.mxu0 %v8250_v59  ;;  %v11075_v19 = vpack.c.bf16 %v16752_v17, %v16751_v16  ;;  %v11081_v21 = vpack.c.bf16 %v16755_v20, %v16754_v25  ;;  %v11087_v8 = vpack.c.bf16 %v16758_v6, %v16757_v3  ;;  %v11089_v59 = vld [vmem:[#allocation2 + $0x18] sm:$0xff]  ;;  %v16760_v30 = vand.u32 4294901760, %v10697_v46  ;;  %v11116_v20 = vld [vmem:[#allocation2] sm:$0xff]  ;;  %v11118_v3 = vld [vmem:[#allocation2 + $0x10] sm:$0xff] }
  0x82   :  { %16743 = vst [vmem:[#allocation33_spill] sm:$0xff] %v11053_v7  ;;  %16746 = vst [vmem:[#allocation34_spill] sm:$0xff] %v11059_v49  ;;  %619 = vmatprep.mubr.f32.mxu0 %v16750_v15  ;;  %8253 = vmatprep.subr.bf16.mxu0 %v8252_v11  ;;  %v16761_v9 = vand.u32 4294901760, %v10703_v48  ;;  %v16763_v63 = vand.u32 4294901760, %v10709_v52  ;;  %v16764_v13 = vand.u32 4294901760, %v10727_v31  ;;  %v16766_v39 = vand.u32 4294901760, %v10780_v47 }
  0x83   :  { %16749 = vst [vmem:[#allocation35_spill] sm:$0xff] %v11065_v2  ;;  %16753 = vst [vmem:[#allocation36_spill] sm:$0xff] %v11075_v19  ;;  %v16767_v40 = vand.u32 4294901760, %v10792_v0  ;;  %v16769_v11 = vand.u32 4294901760, %v10799_v41  ;;  %v16770_v17 = vand.u32 4294901760, %v10804_v28  ;;  %v11120_v6 = vld [vmem:[#allocation2 + $0x28] sm:$0xff]  ;;  %8189 = vmatprep.subr.bf16.mxu1 %v11033_v18 }
  0x84   :  { %16756 = vst [vmem:[#allocation37_spill] sm:$0xff] %v11081_v21  ;;  %16759 = vst [vmem:[#allocation38_spill] sm:$0xff] %v11087_v8  ;;  %v11096_v62 = vpack.c.bf16 %v16761_v9, %v16760_v30  ;;  %v11102_v14 = vpack.c.bf16 %v16764_v13, %v16763_v63  ;;  %v16772_v30 = vand.u32 4294901760, %v10816_v34  ;;  %v16773_v9 = vand.u32 4294901760, %v10827_v23  ;;  %v11360_v19 = vld [vmem:[#allocation2 + $0xb0] sm:$0xff]  ;;  %v11362_v2 = vld [vmem:[#allocation2 + $0xc8] sm:$0xff] }
  0x85   :  { %v11108_v16 = vpack.c.bf16 %v16767_v40, %v16766_v39  ;;  %v11114_v25 = vpack.c.bf16 %v16770_v17, %v16769_v11  ;;  %v16775_v13 = vand.u32 4294901760, %v10837_v37  ;;  %v16776_v39 = vand.u32 4294901760, %v10858_v35  ;;  %8191 = vmatpush1.bf16.msra.mxu1 %v11039_v32  ;;  %8255 = vmatpush1.bf16.msra.mxu0 %v8254_v57 }
  0x86   :  { %16762 = vst [vmem:[#allocation39_spill] sm:$0xff] %v11096_v62  ;;  %16765 = vst [vmem:[#allocation40_spill] sm:$0xff] %v11102_v14  ;;  %v11126_v63 = vpack.c.bf16 %v16773_v9, %v16772_v30  ;;  %v16778_v11 = vand.u32 4294901760, %v10892_v10  ;;  %v16779_v17 = vand.u32 4294901760, %v10913_v24  ;;  %v16782_v26 = vand.u32 4294901760, %v10924_v29  ;;  %v11147_v30 = vld [vmem:[#allocation2 + $0x38] sm:$0xff]  ;;  %8193 = vmatprep.subr.bf16.mxu1 %v11045_v58  ;;  %8257 = vmatprep.subr.bf16.mxu0 %v8256_v33 }
  0x87   :  { %16768 = vst [vmem:[#allocation41_spill] sm:$0xff] %v11108_v16  ;;  %16771 = vst [vmem:[#allocation42_spill] sm:$0xff] %v11114_v25  ;;  %v11132_v40 = vpack.c.bf16 %v16776_v39, %v16775_v13  ;;  %v16784_v13 = vand.u32 4294901760, %v10939_v22  ;;  %v16785_v39 = vand.u32 4294901760, %v10947_v42  ;;  %v11196_v33 = vld [vmem:[#allocation2 + $0x40] sm:$0xff]  ;;  %v16796_v57 = vand.u32 4294901760, %v10648_v51 }
  0x88   :  { %16774 = vst [vmem:[#allocation43_spill] sm:$0xff] %v11126_v63  ;;  %v11138_v1 = vpack.c.bf16 %v16779_v17, %v16778_v11  ;;  %v11144_v27 = vpack.c.bf16 %v16782_v26, %v16781_v60  ;;  %v16787_v11 = vand.u32 4294901760, %v10964_v12  ;;  %v16788_v17 = vand.u32 4294901760, %v10972_v38  ;;  %v11219_v51 = vld [vmem:[#allocation2 + $0x50] sm:$0xff]  ;;  %v11287_v62 = vld [vmem:[#allocation2 + $0x98] sm:$0xff] }
  0x89   :  { %16777 = vst [vmem:[#allocation44_spill] sm:$0xff] %v11132_v40  ;;  %v11155_v40 = vpack.c.bf16 %v16785_v39, %v16784_v13  ;;  %v16790_v26 = vand.u32 4294901760, %v11068_v5  ;;  %v16792_v60 = vand.u32 4294901760, %v10635_v45  ;;  %v16794_v13 = vand.u32 4294901760, %v11089_v59  ;;  %v16809_v25 = vld [vmem:[#allocation16_spill] sm:$0xff] }
  0x8a   :  { %16780 = vst [vmem:[#allocation45_spill] sm:$0xff] %v11138_v1  ;;  %16783 = vst [vmem:[#allocation46_spill] sm:$0xff] %v11144_v27  ;;  %v11161_v1 = vpack.c.bf16 %v16788_v17, %v16787_v11  ;;  %v11174_v11 = vld [vmem:[#allocation2 + $0x20] sm:$0xff]  ;;  %v11176_v17 = vld [vmem:[#allocation2 + $0x30] sm:$0xff]  ;;  %v16797_v45 = vand.u32 4294901760, %v10655_v56  ;;  %v16810_v16 = vand.u32 4294901760, %v16809_v25  ;;  %v16830_v8 = vpack.c.bf16 %v10727_v31, %v10709_v52 }
  0x8b   :  { %16786 = vst [vmem:[#allocation47_spill] sm:$0xff] %v11155_v40  ;;  %v11169_v9 = vsub.f32 %v11068_v5, %v16790_v26  ;;  %v11189_v39 = vsub.f32 %v11089_v59, %v16794_v13  ;;  %v11194_v27 = vld [vmem:[#allocation2 + $0x58] sm:$0xff]  ;;  %v16800_v13 = vand.u32 4294901760, %v11118_v3  ;;  %v11221_v56 = vld [vmem:[#allocation2 + $0x68] sm:$0xff]  ;;  %v16836_v31 = vpack.c.bf16 %v10792_v0, %v10780_v47 }
  0x8c   :  { %16789 = vst [vmem:[#allocation48_spill] sm:$0xff] %v11161_v1  ;;  %v16793_v1 = vand.u32 4294901760, %v10643_v50  ;;  %v11202_v50 = vpack.c.bf16 %v16797_v45, %v16796_v57  ;;  %v16804_v45 = vand.u32 4294901760, %v11147_v30  ;;  %v16842_v0 = vld [vmem:[#allocation22_spill] sm:$0xff] }
  0x8d   :  { %16791 = vst [vmem:[#allocation49_spill] sm:$0xff] %v11169_v9  ;;  %16795 = vst [vmem:[#allocation50_spill] sm:$0xff] %v11189_v39  ;;  %v11192_v9 = vld [vmem:[#allocation2 + $0x48] sm:$0xff]  ;;  %v11212_v40 = vsub.f32 %v11118_v3, %v16800_v13  ;;  %v16802_v39 = vand.u32 4294901760, %v11120_v6  ;;  %v11265_v13 = vld [vmem:[#allocation2 + $0x70] sm:$0xff] }
  0x8e   :  { %v11184_v26 = vpack.c.bf16 %v16793_v1, %v16792_v60  ;;  %v16798_v1 = vand.u32 4294901760, %v11116_v20 }
  0x8f   :  { %16801 = vst [vmem:[#allocation52_spill] sm:$0xff] %v11212_v40  ;;  %v11217_v63 = vsub.f32 %v11120_v6, %v16802_v39  ;;  %v15824_v40 = vand.u32 4294901760, %v11176_v17  ;;  %v16806_v39 = vpack.c.bf16 %v10692_v44, %v10683_v36  ;;  %v16811_v36 = vpack.c.bf16 %v10703_v48, %v10697_v46  ;;  %v16815_v48 = vld [vmem:[#allocation17_spill] sm:$0xff]  ;;  %v11289_v46 = vld [vmem:[#allocation2 + $0x80] sm:$0xff] }
  0x90   :  { %v11207_v60 = vsub.f32 %v11116_v20, %v16798_v1  ;;  %8195 = vmatpush1.bf16.msra.mxu1 %v11184_v26  ;;  %v11229_v1 = vsub.f32 %v11147_v30, %v16804_v45  ;;  %v16812_v44 = vand.u32 4294901760, %v11174_v11 }
  0x91   :  { %16803 = vst [vmem:[#allocation53_spill] sm:$0xff] %v11217_v63  ;;  %8259 = vmatpush1.bf16.msra.mxu0 %v16806_v39  ;;  %v16807_v63 = vld [vmem:[#allocation15_spill] sm:$0xff]  ;;  %8197 = vmatprep.subr.bf16.mxu1 %v11202_v50 }
  0x92   :  { %16799 = vst [vmem:[#allocation51_spill] sm:$0xff] %v11207_v60  ;;  %16805 = vst [vmem:[#allocation54_spill] sm:$0xff] %v11229_v1  ;;  %v16808_v60 = vand.u32 4294901760, %v16807_v63  ;;  %v11246_v1 = vld [vmem:[#allocation2 + $0x78] sm:$0xff]  ;;  %8261 = vmatprep.subr.bf16.mxu0 %v16811_v36  ;;  %v11254_v25 = vsub.f32 %v11174_v11, %v16812_v44  ;;  %v11263_v39 = vld [vmem:[#allocation2 + $0x60] sm:$0xff]  ;;  %v16816_v36 = vand.u32 4294901760, %v16815_v48 }
  0x93   :  { %v16817_v44 = vld [vmem:[#allocation18_spill] sm:$0xff]  ;;  %v16837_v52 = vand.u32 4294901760, %v11246_v1 }
  0x94   :  { %v11240_v57 = vpack.c.bf16 %v16810_v16, %v16808_v60  ;;  %16813 = vst [vmem:[#allocation15_spill] sm:$0xff] %v11254_v25  ;;  %v11259_v16 = vsub.f32 %v11176_v17, %v15824_v40  ;;  %v16818_v45 = vand.u32 4294901760, %v16817_v44  ;;  %v16820_v40 = vand.u32 4294901760, %v11192_v9  ;;  %v11285_v25 = vld [vmem:[#allocation2 + $0x88] sm:$0xff] }
  0x95   :  { %v16822_v60 = vand.u32 4294901760, %v11194_v27  ;;  %v16828_v44 = vand.u32 4294901760, %v11221_v56  ;;  %8263 = vmatpush1.bf16.msra.mxu0 %v16830_v8 }
  0x96   :  { %16814 = vst [vmem:[#allocation16_spill] sm:$0xff] %v11259_v16  ;;  %v11273_v14 = vpack.c.bf16 %v16818_v45, %v16816_v36  ;;  %v11278_v16 = vsub.f32 %v11192_v9, %v16820_v40  ;;  %8199 = vmatpush1.bf16.msra.mxu1 %v11240_v57  ;;  %v16824_v45 = vand.u32 4294901760, %v11196_v33  ;;  %v16826_v40 = vand.u32 4294901760, %v11219_v51  ;;  %8265 = vmatprep.subr.bf16.mxu0 %v16836_v31 }
  0x97   :  { %v11283_v63 = vsub.f32 %v11194_v27, %v16822_v60  ;;  %v16843_v31 = vand.u32 4294901760, %v16842_v0 }
  0x98   :  { %16819 = vst [vmem:[#allocation17_spill] sm:$0xff] %v11273_v14  ;;  %16821 = vst [vmem:[#allocation18_spill] sm:$0xff] %v11278_v16  ;;  %v11295_v48 = vsub.f32 %v11196_v33, %v16824_v45  ;;  %v11300_v36 = vsub.f32 %v11219_v51, %v16826_v40  ;;  %v11308_v16 = vld [vmem:[#allocation2 + $0x90] sm:$0xff]  ;;  %v11315_v45 = vsub.f32 %v10988_v43, %v10993_v55  ;;  %8201 = vmatprep.subr.bf16.mxu1 %v11273_v14 }
  0x99   :  { %16823 = vst [vmem:[#allocation55_spill] sm:$0xff] %v11283_v63  ;;  %v11306_v63 = vsub.f32 %v11221_v56, %v16828_v44  ;;  %v11332_v43 = vsub.f32 %v11246_v1, %v16837_v52  ;;  %v16840_v44 = vld [vmem:[#allocation21_spill] sm:$0xff]  ;;  %v16845_v52 = vand.u32 4294901760, %v11263_v39 }
  0x9a   :  { %16825 = vst [vmem:[#allocation56_spill] sm:$0xff] %v11295_v48  ;;  %16827 = vst [vmem:[#allocation57_spill] sm:$0xff] %v11300_v36  ;;  %v16831_v48 = vld [vmem:[#allocation19_spill] sm:$0xff]  ;;  %v16833_v36 = vld [vmem:[#allocation20_spill] sm:$0xff]  ;;  %v16841_v47 = vand.u32 4294901760, %v16840_v44 }
  0x9b   :  { %16829 = vst [vmem:[#allocation58_spill] sm:$0xff] %v11306_v63  ;;  %v16832_v40 = vand.u32 4294901760, %v16831_v48  ;;  %v16834_v21 = vand.u32 4294901760, %v16833_v36  ;;  %16838 = vst [vmem:[#allocation20_spill] sm:$0xff] %v11332_v43  ;;  %v11337_v36 = vld [vmem:[#allocation2 + $0xa8] sm:$0xff]  ;;  %v11341_v63 = vld [vmem:[#allocation2 + $0xa0] sm:$0xff]  ;;  %v11352_v8 = vsub.f32 %v11263_v39, %v16845_v52 }
  0x9c   :  { %16839 = vst [vmem:[#allocation59_spill] sm:$0xff] %v11341_v63  ;;  %v11347_v55 = vpack.c.bf16 %v16843_v31, %v16841_v47  ;;  %v11364_v44 = vld [vmem:[#allocation2 + $0xd8] sm:$0xff]  ;;  %v16850_v47 = vld [vmem:[#allocation23_spill] sm:$0xff]  ;;  %v16852_v31 = vld [vmem:[#allocation24_spill] sm:$0xff]  ;;  %v16855_v52 = vand.u32 4294901760, %v11285_v25  ;;  %v16857_v43 = vand.u32 4294901760, %v11287_v62 }
  0x9d   :  { %v11321_v60 = vpack.c.bf16 %v16834_v21, %v16832_v40  ;;  %v11339_v40 = vld [vmem:[#allocation2 + $0xb8] sm:$0xff]  ;;  %16846 = vst [vmem:[#allocation22_spill] sm:$0xff] %v11352_v8  ;;  %v16847_v21 = vand.u32 4294901760, %v11265_v13  ;;  %16849 = vst [vmem:[#allocation61_spill] sm:$0xff] %v11364_v44  ;;  %v16851_v0 = vand.u32 4294901760, %v16850_v47  ;;  %v16853_v49 = vand.u32 4294901760, %v16852_v31 }
  0x9e   :  { %16844 = vst [vmem:[#allocation21_spill] sm:$0xff] %v11347_v55  ;;  %v16859_v8 = vand.u32 4294901760, %v11289_v46  ;;  %v11388_v31 = vld [vmem:[#allocation2 + $0xc0] sm:$0xff] }
  0x9f   :  { %16835 = vst [vmem:[#allocation19_spill] sm:$0xff] %v11321_v60  ;;  %v11357_v48 = vsub.f32 %v11265_v13, %v16847_v21  ;;  %v11370_v7 = vpack.c.bf16 %v16853_v49, %v16851_v0  ;;  %8203 = vmatpush1.bf16.msra.mxu1 %v11321_v60  ;;  %v11376_v21 = vsub.f32 %v11285_v25, %v16855_v52  ;;  %16861 = vst [vmem:[#allocation64_spill] sm:$0xff] %v11388_v31 }
  0xa0   :  { %v11386_v47 = vsub.f32 %v11289_v46, %v16859_v8  ;;  %v16862_v49 = vpack.c.bf16 %v10804_v28, %v10799_v41  ;;  %8205 = vmatprep.subr.bf16.mxu1 %v11347_v55  ;;  %v16863_v0 = vand.u32 4294901760, %v11308_v16  ;;  %v16868_v28 = vld [vmem:[#allocation26_spill] sm:$0xff]  ;;  %v16871_v8 = vand.u32 4294901760, %v11337_v36 }
  0xa1   :  { %16848 = vst [vmem:[#allocation60_spill] sm:$0xff] %v11357_v48  ;;  %16854 = vst [vmem:[#allocation23_spill] sm:$0xff] %v11370_v7  ;;  %v11381_v48 = vsub.f32 %v11287_v62, %v16857_v43  ;;  %v11436_v43 = vld [vmem:[#allocation2 + $0xe0] sm:$0xff] }
  0xa2   :  { %16856 = vst [vmem:[#allocation24_spill] sm:$0xff] %v11376_v21  ;;  %16860 = vst [vmem:[#allocation63_spill] sm:$0xff] %v11386_v47  ;;  %8267 = vmatpush1.bf16.msra.mxu0 %v16862_v49  ;;  %v11397_v52 = vsub.f32 %v11308_v16, %v16863_v0  ;;  %v16865_v47 = vpack.c.bf16 %v10827_v23, %v10816_v34  ;;  %v16866_v21 = vld [vmem:[#allocation25_spill] sm:$0xff]  ;;  %v16869_v49 = vand.u32 4294901760, %v16868_v28  ;;  %v16873_v23 = vand.u32 4294901760, %v11339_v40  ;;  %v16877_v0 = vld [vmem:[#allocation27_spill] sm:$0xff] }
  0xa3   :  { %16858 = vst [vmem:[#allocation62_spill] sm:$0xff] %v11381_v48  ;;  %v16867_v41 = vand.u32 4294901760, %v16866_v21  ;;  %v11416_v48 = vld [vmem:[#allocation2 + $0xe8] sm:$0xff]  ;;  %v11421_v34 = vsub.f32 %v11337_v36, %v16871_v8  ;;  %v16878_v60 = vand.u32 4294901760, %v16877_v0  ;;  %8207 = vmatpush1.bf16.msra.mxu1 %v11370_v7  ;;  %v16883_v28 = vand.u32 4294901760, %v11362_v2 }
  0xa4   :  { %16864 = vst [vmem:[#allocation65_spill] sm:$0xff] %v11397_v52  ;;  %8269 = vmatprep.subr.bf16.mxu0 %v16865_v47  ;;  %v11414_v52 = vld [vmem:[#allocation2 + $0xd0] sm:$0xff]  ;;  %v11426_v21 = vsub.f32 %v11339_v40, %v16873_v23  ;;  %v16875_v47 = vand.u32 4294901760, %v11341_v63  ;;  %v11458_v0 = vld [vmem:[#allocation2 + $0x108] sm:$0xff] }
  0xa5   :  { %v11409_v55 = vpack.c.bf16 %v16869_v49, %v16867_v41  ;;  %16872 = vst [vmem:[#allocation26_spill] sm:$0xff] %v11421_v34  ;;  %v11434_v49 = vld [vmem:[#allocation2 + $0xf8] sm:$0xff]  ;;  %v16879_v8 = vld [vmem:[#allocation28_spill] sm:$0xff] }
  0xa6   :  { %16874 = vst [vmem:[#allocation66_spill] sm:$0xff] %v11426_v21  ;;  %v11431_v41 = vsub.f32 %v11341_v63, %v16875_v47  ;;  %v16880_v34 = vand.u32 4294901760, %v16879_v8  ;;  %v16881_v21 = vand.u32 4294901760, %v11360_v19  ;;  %v11456_v63 = vld [vmem:[#allocation2 + $0xf0] sm:$0xff]  ;;  %v16896_v8 = vand.u32 4294901760, %v11315_v45 }
  0xa7   :  { %16870 = vst [vmem:[#allocation25_spill] sm:$0xff] %v11409_v55  ;;  %8209 = vmatprep.subr.bf16.mxu1 %v11409_v55  ;;  %v16893_v55 = vld [vmem:[#allocation30_spill] sm:$0xff] }
  0xa8   :  { %16876 = vst [vmem:[#allocation67_spill] sm:$0xff] %v11431_v41  ;;  %v11442_v14 = vpack.c.bf16 %v16880_v34, %v16878_v60  ;;  %v11449_v47 = vsub.f32 %v11360_v19, %v16881_v21  ;;  %v11454_v41 = vsub.f32 %v11362_v2, %v16883_v28  ;;  %v16885_v60 = vpack.c.bf16 %v10858_v35, %v10837_v37  ;;  %v16891_v35 = vld [vmem:[#allocation29_spill] sm:$0xff] }
  0xa9   :  { %v16886_v34 = vand.u32 4294901760, %v11364_v44  ;;  %v16888_v28 = vand.u32 4294901760, %v11388_v31  ;;  %v16890_v37 = vpack.c.bf16 %v10913_v24, %v10892_v10  ;;  %v251_v7 = vsub.f32 %v11315_v45, %v16896_v8 }
  0xaa   :  { %16882 = vst [vmem:[#allocation27_spill] sm:$0xff] %v11449_v47  ;;  %16884 = vst [vmem:[#allocation28_spill] sm:$0xff] %v11454_v41  ;;  %8271 = vmatpush1.bf16.msra.mxu0 %v16885_v60  ;;  %v11476_v47 = vld [vmem:[#allocation2 + $0x118] sm:$0xff]  ;;  %v16892_v60 = vand.u32 4294901760, %v16891_v35  ;;  %v16899_v24 = vand.u32 4294901760, %v11416_v48  ;;  %v11506_v35 = vld [vmem:[#allocation2 + $0x110] sm:$0xff]  ;;  %8211 = vmatpush1.bf16.msra.mxu1 %v11442_v14 }
  0xab   :  { %v11467_v21 = vsub.f32 %v11364_v44, %v16886_v34  ;;  %v11473_v23 = vsub.f32 %v11388_v31, %v16888_v28  ;;  %8273 = vmatprep.subr.bf16.mxu0 %v16890_v37  ;;  %v16894_v34 = vand.u32 4294901760, %v16893_v55  ;;  %v16897_v31 = vand.u32 4294901760, %v11414_v52 }
  0xac   :  { %v11502_v55 = vsub.f32 %v11416_v48, %v16899_v24  ;;  %v16903_v28 = vand.u32 4294901760, %v10930_v53  ;;  %v16906_v37 = vand.u32 4294901760, %v11436_v43  ;;  %v16908_v53 = vpack.c.bf16 %v10924_v29, %v10919_v54  ;;  %v11553_v29 = vld [vmem:[#allocation2 + $0x130] sm:$0xff] }
  0xad   :  { %16887 = vst [vmem:[#allocation68_spill] sm:$0xff] %v11467_v21  ;;  %16889 = vst [vmem:[#allocation69_spill] sm:$0xff] %v11473_v23  ;;  %v11485_v21 = vpack.c.bf16 %v16894_v34, %v16892_v60  ;;  %v11492_v23 = vld [vmem:[#allocation2 + $0x100] sm:$0xff]  ;;  %v11497_v10 = vsub.f32 %v11414_v52, %v16897_v31  ;;  %v11508_v60 = vld [vmem:[#allocation2 + $0x128] sm:$0xff]  ;;  %v16904_v31 = vand.u32 4294901760, %v11434_v49  ;;  %v16919_v54 = vand.u32 4294901760, %v11116_v20 }
  0xae   :  { %16900 = vst [vmem:[#allocation70_spill] sm:$0xff] %v11502_v55  ;;  %v16901_v34 = vld [vmem:[#allocation31_spill] sm:$0xff]  ;;  %v11525_v8 = vsub.f32 %v11436_v43, %v16906_v37  ;;  %8275 = vmatpush1.bf16.msra.mxu0 %v16908_v53  ;;  %v16912_v37 = vand.u32 4294901760, %v11456_v63 }
  0xaf   :  { %16895 = vst [vmem:[#allocation29_spill] sm:$0xff] %v11485_v21  ;;  %16898 = vst [vmem:[#allocation30_spill] sm:$0xff] %v11497_v10  ;;  %v16902_v41 = vand.u32 4294901760, %v16901_v34  ;;  %v11520_v24 = vsub.f32 %v11434_v49, %v16904_v31  ;;  %v11528_v10 = vld [vmem:[#allocation2 + $0x138] sm:$0xff]  ;;  %v11530_v34 = vld [vmem:[#allocation2 + $0x120] sm:$0xff]  ;;  %8213 = vmatprep.subr.bf16.mxu1 %v11485_v21 }
  0xb0   :  { %16907 = vst [vmem:[#allocation71_spill] sm:$0xff] %v11525_v8  ;;  %v11545_v55 = vsub.f32 %v11456_v63, %v16912_v37  ;;  %v16914_v8 = vand.u32 4294901760, %v11458_v0  ;;  %v11555_v53 = vld [vmem:[#allocation2 + $0x148] sm:$0xff]  ;;  %v15870_v37 = vand.u32 4294901760, %v11506_v35 }
  0xb1   :  { %v11514_v44 = vpack.c.bf16 %v16903_v28, %v16902_v41  ;;  %16905 = vst [vmem:[#allocation31_spill] sm:$0xff] %v11520_v24  ;;  %v16909_v41 = vand.u32 4294901760, %v11068_v5  ;;  %v16910_v28 = vand.u32 4294901760, %v11089_v59  ;;  %v16916_v5 = vpack.c.bf16 %v10947_v42, %v10939_v22 }
  0xb2   :  { %16913 = vst [vmem:[#allocation73_spill] sm:$0xff] %v11545_v55  ;;  %v11550_v24 = vsub.f32 %v11458_v0, %v16914_v8  ;;  %v252_v59 = vand.u32 4294901760, %v251_v7  ;;  %v16920_v55 = vand.u32 4294901760, %v11118_v3  ;;  %v16922_v42 = vand.u32 4294901760, %v11492_v23  ;;  %v11584_v8 = vld [vmem:[#allocation2 + $0x150] sm:$0xff]  ;;  %v11601_v7 = vld [vmem:[#allocation2 + $0x178] sm:$0xff] }
  0xb3   :  { %v11540_v31 = vpack.c.bf16 %v16910_v28, %v16909_v41  ;;  %8277 = vmatprep.subr.bf16.mxu0 %v16916_v5  ;;  %v16917_v41 = vand.u32 4294901760, %v11476_v47  ;;  %8215 = vmatpush1.bf16.msra.mxu1 %v11514_v44  ;;  %v11590_v20 = vsub.f32 %v11506_v35, %v15870_v37  ;;  %v16925_v3 = vand.u32 4294901760, %v11508_v60  ;;  %v11599_v5 = vld [vmem:[#allocation2 + $0x168] sm:$0xff] }
  0xb4   :  { %16915 = vst [vmem:[#allocation74_spill] sm:$0xff] %v11550_v24  ;;  %v11567_v24 = vld [vmem:[#allocation2 + $0x158] sm:$0xff]  ;;  %v11573_v21 = vpack.c.bf16 %v16920_v55, %v16919_v54  ;;  %v11578_v22 = vsub.f32 %v11492_v23, %v16922_v42  ;;  %v16928_v37 = vand.u32 4294901760, %v11120_v6  ;;  %v16931_v54 = vand.u32 4294901760, %v11528_v10 }
  0xb5   :  { %16911 = vst [vmem:[#allocation72_spill] sm:$0xff] %v11540_v31  ;;  %v11563_v28 = vsub.f32 %v11476_v47, %v16917_v41  ;;  %v11582_v41 = vld [vmem:[#allocation2 + $0x140] sm:$0xff]  ;;  %16924 = vst [vmem:[#allocation78_spill] sm:$0xff] %v11590_v20  ;;  %v11595_v55 = vsub.f32 %v11508_v60, %v16925_v3  ;;  %8377 = vmatprep.subr.bf16.mxu1 %v11540_v31  ;;  %v16929_v20 = vand.u32 4294901760, %v11147_v30  ;;  %v16935_v30 = vand.u32 4294901760, %v11555_v53 }
  0xb6   :  { %16921 = vst [vmem:[#allocation76_spill] sm:$0xff] %v11573_v21  ;;  %16923 = vst [vmem:[#allocation77_spill] sm:$0xff] %v11578_v22  ;;  %v16927_v22 = vpack.c.bf16 %v10972_v38, %v10964_v12  ;;  %v11616_v42 = vsub.f32 %v11528_v10, %v16931_v54  ;;  %v15876_v38 = vand.u32 4294901760, %v11567_v24  ;;  %v16934_v12 = vand.u32 4294901760, %v11553_v29  ;;  %253 = vmatmul.mubr.f32.vlgmr.msra.gmra.mrb[0].mxu1 %v252_v59 }
  0xb7   :  { %16918 = vst [vmem:[#allocation75_spill] sm:$0xff] %v11563_v28  ;;  %16926 = vst [vmem:[#allocation79_spill] sm:$0xff] %v11595_v55  ;;  %v11611_v3 = vpack.c.bf16 %v16929_v20, %v16928_v37  ;;  %v16933_v55 = vand.u32 4294901760, %v11530_v34  ;;  %v11633_v37 = vsub.f32 %v11555_v53, %v16935_v30  ;;  %8379 = vmatpush1.bf16.msra.mxu1 %v11573_v21  ;;  %v16936_v30 = vand.u32 4294901760, %v11174_v11  ;;  %v17067_v21 = vld [vmem:[#allocation22_spill] sm:$0xff] }
  0xb8   :  { %8279 = vmatpush1.bf16.msra.mxu0 %v16927_v22  ;;  %16932 = vst [vmem:[#allocation81_spill] sm:$0xff] %v11616_v42  ;;  %v11628_v6 = vsub.f32 %v11553_v29, %v16934_v12  ;;  %v15877_v12 = vand.u32 4294901760, %v11601_v7  ;;  %v16937_v22 = vand.u32 4294901760, %v11176_v17  ;;  %v16939_v59 = vand.u32 4294901760, %v11582_v41 }
  0xb9   :  { %16930 = vst [vmem:[#allocation80_spill] sm:$0xff] %v11611_v3  ;;  %v11621_v28 = vsub.f32 %v11530_v34, %v16933_v55  ;;  %8281 = vmatprep.subr.bf16.mxu0 %v11013_v4  ;;  %v11640_v55 = vsub.f32 %v11567_v24, %v15876_v38  ;;  %v16940_v38 = vand.u32 4294901760, %v11584_v8  ;;  %v16941_v11 = vand.u32 4294901760, %v11192_v9  ;;  %8381 = vmatprep.subr.bf16.mxu1 %v11611_v3  ;;  %v17070_v3 = vld [vmem:[#allocation60_spill] sm:$0xff] }
  0xba   :  { %v11650_v31 = vpack.c.bf16 %v16937_v22, %v16936_v30  ;;  %v11655_v20 = vsub.f32 %v11582_v41, %v16939_v59  ;;  %v16942_v17 = vand.u32 4294901760, %v11194_v27  ;;  %v16944_v30 = vand.u32 4294901760, %v11599_v5 }
  0xbb   :  { %622 = vmatmul.mubr.f32.vlgmr.msra.gmra.mrb[0].mxu0 %v11315_v45  ;;  %v11660_v54 = vsub.f32 %v11584_v8, %v16940_v38  ;;  %v11678_v38 = vsub.f32 %v11601_v7, %v15877_v12  ;;  %v16945_v27 = vand.u32 4294901760, %v11196_v33  ;;  %v16946_v9 = vand.u32 4294901760, %v11219_v51 }
  0xbc   :  { %16938 = vst [vmem:[#allocation82_spill] sm:$0xff] %v11650_v31  ;;  %8283 = vmatpush1.bf16.msra.mxu0 %v11025_v61  ;;  %724 = vmatprep.mubr.f32.mxu0 %v16750_v15  ;;  %v11668_v22 = vpack.c.bf16 %v16942_v17, %v16941_v11  ;;  %v11673_v59 = vsub.f32 %v11599_v5, %v16944_v30  ;;  %v16948_v17 = vand.u32 4294901760, %v11221_v56  ;;  %v16949_v30 = vand.u32 4294901760, %v11246_v1 }
  0xbd   :  { %8285 = vmatprep.subr.bf16.mxu0 %v11033_v18  ;;  %8383 = vmatpush1.bf16.msra.mxu1 %v11650_v31  ;;  %v11687_v11 = vpack.c.bf16 %v16946_v9, %v16945_v27  ;;  %v16951_v33 = vand.u32 4294901760, %v11263_v39  ;;  %v16952_v51 = vand.u32 4294901760, %v11265_v13  ;;  %v16954_v56 = vand.u32 4294901760, %v11285_v25 }
  0xbe   :  { %16943 = vst [vmem:[#allocation83_spill] sm:$0xff] %v11668_v22  ;;  %8385 = vmatprep.subr.bf16.mxu1 %v11668_v22  ;;  %v11695_v12 = vpack.c.bf16 %v16949_v30, %v16948_v17  ;;  %v16955_v1 = vand.u32 4294901760, %v11287_v62  ;;  %v16957_v39 = vand.u32 4294901760, %v11289_v46  ;;  %v16958_v13 = vand.u32 4294901760, %v11308_v16 }
  0xbf   :  { %16947 = vst [vmem:[#allocation84_spill] sm:$0xff] %v11687_v11  ;;  %v11703_v27 = vpack.c.bf16 %v16952_v51, %v16951_v33  ;;  %v16960_v25 = vand.u32 4294901760, %v11337_v36  ;;  %v16961_v62 = vand.u32 4294901760, %v11339_v40  ;;  %v16963_v33 = vld [vmem:[#allocation17_spill] sm:$0xff]  ;;  %v16964_v51 = vld [vmem:[#allocation59_spill] sm:$0xff]  ;;  %v16966_v16 = vand.u32 4294901760, %v11360_v19 }
  0xc0   :  { %8287 = vmatpush1.bf16.msra.mxu0 %v11039_v32  ;;  %16950 = vst [vmem:[#allocation85_spill] sm:$0xff] %v11695_v12  ;;  %v11711_v9 = vpack.c.bf16 %v16955_v1, %v16954_v56  ;;  %v11719_v17 = vpack.c.bf16 %v16958_v13, %v16957_v39  ;;  %v16965_v46 = vand.u32 4294901760, %v16964_v51  ;;  %v16968_v1 = vld [vmem:[#allocation19_spill] sm:$0xff]  ;;  %v16969_v36 = vand.u32 4294901760, %v11362_v2  ;;  %v16970_v39 = vld [vmem:[#allocation61_spill] sm:$0xff] }
  0xc1   :  { %8289 = vmatprep.subr.bf16.mxu0 %v11045_v58  ;;  %8387 = vmatpush1.bf16.msra.mxu1 %v11687_v11  ;;  %16953 = vst [vmem:[#allocation86_spill] sm:$0xff] %v11703_v27  ;;  %v11727_v30 = vpack.c.bf16 %v16961_v62, %v16960_v25  ;;  %v16971_v40 = vand.u32 4294901760, %v16970_v39  ;;  %v16973_v25 = vld [vmem:[#allocation21_spill] sm:$0xff]  ;;  %v16974_v62 = vld [vmem:[#allocation64_spill] sm:$0xff]  ;;  %v16976_v19 = vand.u32 4294901760, %v11414_v52  ;;  %v16979_v2 = vand.u32 4294901760, %v11416_v48 }
  0xc2   :  { %8389 = vmatprep.subr.bf16.mxu1 %v11695_v12  ;;  %16956 = vst [vmem:[#allocation87_spill] sm:$0xff] %v11711_v9  ;;  %16959 = vst [vmem:[#allocation88_spill] sm:$0xff] %v11719_v17  ;;  %v11735_v56 = vpack.c.bf16 %v16966_v16, %v16965_v46  ;;  %v16975_v51 = vand.u32 4294901760, %v16974_v62  ;;  %v16978_v16 = vld [vmem:[#allocation23_spill] sm:$0xff]  ;;  %v16980_v39 = vand.u32 4294901760, %v11434_v49  ;;  %v16983_v62 = vand.u32 4294901760, %v11436_v43 }
  0xc3   :  { %16962 = vst [vmem:[#allocation89_spill] sm:$0xff] %v11727_v30  ;;  %v11743_v13 = vpack.c.bf16 %v16971_v40, %v16969_v36  ;;  %v16982_v40 = vld [vmem:[#allocation25_spill] sm:$0xff]  ;;  %v16984_v52 = vand.u32 4294901760, %v11456_v63  ;;  %v16986_v48 = vand.u32 4294901760, %v11458_v0  ;;  %v16987_v49 = vand.u32 4294901760, %v11476_v47 }
  0xc4   :  { %8291 = vmatpush1.bf16.msra.mxu0 %v11184_v26  ;;  %16967 = vst [vmem:[#allocation17_spill] sm:$0xff] %v11735_v56  ;;  %v11751_v46 = vpack.c.bf16 %v16976_v19, %v16975_v51  ;;  %v11759_v36 = vpack.c.bf16 %v16980_v39, %v16979_v2  ;;  %v16989_v2 = vld [vmem:[#allocation29_spill] sm:$0xff]  ;;  %v16990_v43 = vand.u32 4294901760, %v11492_v23  ;;  %v16991_v63 = vand.u32 4294901760, %v11506_v35 }
  0xc5   :  { %8293 = vmatprep.subr.bf16.mxu0 %v11202_v50  ;;  %8391 = vmatpush1.bf16.msra.mxu1 %v11703_v27  ;;  %16972 = vst [vmem:[#allocation59_spill] sm:$0xff] %v11743_v13  ;;  %v11767_v51 = vpack.c.bf16 %v16984_v52, %v16983_v62  ;;  %v11775_v19 = vpack.c.bf16 %v16987_v49, %v16986_v48  ;;  %v16993_v62 = vld [vmem:[#allocation33_spill] sm:$0xff]  ;;  %v16994_v47 = vand.u32 4294901760, %v11508_v60  ;;  %v16995_v0 = vand.u32 4294901760, %v11528_v10 }
  0xc6   :  { %8393 = vmatprep.subr.bf16.mxu1 %v11711_v9  ;;  %16977 = vst [vmem:[#allocation19_spill] sm:$0xff] %v11751_v46  ;;  %16981 = vst [vmem:[#allocation61_spill] sm:$0xff] %v11759_v36  ;;  %v11783_v39 = vpack.c.bf16 %v16991_v63, %v16990_v43  ;;  %v16997_v48 = vand.u32 4294901760, %v11315_v45  ;;  %v16998_v23 = vand.u32 4294901760, %v11530_v34  ;;  %v16999_v35 = vand.u32 4294901760, %v11553_v29  ;;  %v17001_v43 = vld [vmem:[#allocation34_spill] sm:$0xff] }
  0xc7   :  { %16985 = vst [vmem:[#allocation21_spill] sm:$0xff] %v11767_v51  ;;  %16988 = vst [vmem:[#allocation64_spill] sm:$0xff] %v11775_v19  ;;  %v11792_v52 = vpack.c.bf16 %v16995_v0, %v16994_v47  ;;  %v17002_v60 = vand.u32 4294901760, %v11555_v53  ;;  %v17003_v10 = vand.u32 4294901760, %v11567_v24  ;;  %v17005_v45 = vld [vmem:[#allocation35_spill] sm:$0xff]  ;;  %v17006_v34 = vand.u32 4294901760, %v11582_v41 }
  0xc8   :  { %8295 = vmatpush1.bf16.msra.mxu0 %v11240_v57  ;;  %16992 = vst [vmem:[#allocation23_spill] sm:$0xff] %v11783_v39  ;;  %v11801_v49 = vpack.c.bf16 %v16999_v35, %v16998_v23  ;;  %v17007_v29 = vand.u32 4294901760, %v11584_v8  ;;  %v17009_v47 = vld [vmem:[#allocation36_spill] sm:$0xff]  ;;  %v17010_v24 = vand.u32 4294901760, %v11599_v5  ;;  %v17011_v53 = vand.u32 4294901760, %v11601_v7  ;;  %v17014_v23 = vld [vmem:[#allocation38_spill] sm:$0xff] }
  0xc9   :  { %8297 = vmatprep.subr.bf16.mxu0 %v16963_v33  ;;  %8395 = vmatpush1.bf16.msra.mxu1 %v11719_v17  ;;  %16996 = vst [vmem:[#allocation25_spill] sm:$0xff] %v11792_v52  ;;  %v11809_v63 = vpack.c.bf16 %v17003_v10, %v17002_v60  ;;  %v17015_v8 = vld [vmem:[#allocation39_spill] sm:$0xff]  ;;  %v17016_v41 = vld [vmem:[#allocation40_spill] sm:$0xff]  ;;  %v17017_v35 = vld [vmem:[#allocation41_spill] sm:$0xff] }
  0xca   :  { %8397 = vmatprep.subr.bf16.mxu1 %v11727_v30  ;;  %17000 = vst [vmem:[#allocation29_spill] sm:$0xff] %v11801_v49  ;;  %v11826_v0 = vpack.c.bf16 %v17011_v53, %v17010_v24  ;;  %v17019_v5 = vld [vmem:[#allocation43_spill] sm:$0xff]  ;;  %v17020_v7 = vld [vmem:[#allocation44_spill] sm:$0xff]  ;;  %v17021_v60 = vld [vmem:[#allocation45_spill] sm:$0xff] }
  0xcb   :  { %17004 = vst [vmem:[#allocation33_spill] sm:$0xff] %v11809_v63  ;;  %v17022_v10 = vld [vmem:[#allocation46_spill] sm:$0xff] }
  0xcc   :  { %8299 = vmatpush1.bf16.msra.mxu0 %v16968_v1  ;;  %17012 = vst [vmem:[#allocation35_spill] sm:$0xff] %v11826_v0 }
  0xcd   :  { %8301 = vmatprep.subr.bf16.mxu0 %v16973_v25  ;;  %8399 = vmatpush1.bf16.msra.mxu1 %v11735_v56 }
  0xce   :  { %8401 = vmatprep.subr.bf16.mxu1 %v11743_v13 }
  0xd0   :  { %8303 = vmatpush1.bf16.msra.mxu0 %v16978_v16 }
  0xd1   :  { %8305 = vmatprep.subr.bf16.mxu0 %v16982_v40  ;;  %8403 = vmatpush1.bf16.msra.mxu1 %v11751_v46 }
  0xd2   :  { %8405 = vmatprep.subr.bf16.mxu1 %v11759_v36 }
  0xd4   :  { %8307 = vmatpush1.bf16.msra.mxu0 %v11442_v14 }
  0xd5   :  { %8309 = vmatprep.subr.bf16.mxu0 %v16989_v2  ;;  %8407 = vmatpush1.bf16.msra.mxu1 %v11767_v51 }
  0xd6   :  { %8409 = vmatprep.subr.bf16.mxu1 %v11775_v19 }
  0xd8   :  { %8311 = vmatpush1.bf16.msra.mxu0 %v11514_v44 }
  0xd9   :  { %8313 = vmatprep.subr.bf16.mxu0 %v16993_v62  ;;  %8411 = vmatpush1.bf16.msra.mxu1 %v11783_v39  ;;  %v11818_v62 = vpack.c.bf16 %v17007_v29, %v17006_v34  ;;  %v17024_v34 = vld [vmem:[#allocation48_spill] sm:$0xff] }
  0xda   :  { %8413 = vmatprep.subr.bf16.mxu1 %v11792_v52  ;;  %v17025_v29 = vld [vmem:[#allocation32_spill] sm:$0xff]  ;;  %v17034_v52 = vld [vmem:[#allocation50_spill] sm:$0xff] }
  0xdb   :  { %728 = vmatmul.mubr.f32.vlgmr.msra.gmra.mrb[0].mxu0 %v16997_v48  ;;  %17008 = vst [vmem:[#allocation34_spill] sm:$0xff] %v11818_v62  ;;  %v17013_v48 = vld [vmem:[#allocation37_spill] sm:$0xff]  ;;  %v15928_v39 = vand.u32 4294901760, %v17034_v52 }
  0xdc   :  { %8315 = vmatpush1.bf16.msra.mxu0 %v17001_v43  ;;  %894 = vmatprep.mubr.f32.mxu0 %v16750_v15  ;;  %v17018_v43 = vld [vmem:[#allocation42_spill] sm:$0xff] }
  0xdd   :  { %8317 = vmatprep.subr.bf16.mxu0 %v17005_v45  ;;  %8415 = vmatpush1.bf16.msra.mxu1 %v11801_v49  ;;  %v17023_v45 = vld [vmem:[#allocation47_spill] sm:$0xff] }
  0xde   :  { %8417 = vmatprep.subr.bf16.mxu1 %v11809_v63  ;;  %v17033_v63 = vld [vmem:[#allocation49_spill] sm:$0xff] }
  0xdf   :  { %v15925_v49 = vand.u32 4294901760, %v17033_v63 }
  0xe0   :  { %8319 = vmatpush1.bf16.msra.mxu0 %v17009_v47 }
  0xe1   :  { %8321 = vmatprep.subr.bf16.mxu0 %v17013_v48  ;;  %8419 = vmatpush1.bf16.msra.mxu1 %v11818_v62  ;;  %v1068_v62 = vld [vmem:[#allocation2 + $0x1e0] sm:$0xff]  ;;  %v1232_v36 = vsub.f32 %v17033_v63, %v15925_v49 }
  0xe2   :  { %8421 = vmatprep.subr.bf16.mxu1 %v11826_v0 }
  0xe4   :  { %8323 = vmatpush1.bf16.msra.mxu0 %v17014_v23  ;;  %v1061_v23 = vld [vmem:[#allocation2 + $0x1a8] sm:$0xff] }
  0xe5   :  { %8325 = vmatprep.subr.bf16.mxu0 %v17015_v8  ;;  %v1060_v8 = vld [vmem:[#allocation2 + $0x1a0] sm:$0xff] }
  0xe8   :  { %8327 = vmatpush1.bf16.msra.mxu0 %v17016_v41  ;;  %v1062_v41 = vld [vmem:[#allocation2 + $0x1b0] sm:$0xff] }
  0xe9   :  { %8329 = vmatprep.subr.bf16.mxu0 %v17017_v35  ;;  %v1190_v35 = vand.u32 4294901760, %v1060_v8 }
  0xeb   :  { %v11908_v9 = vsub.f32 %v1060_v8, %v1190_v35 }
  0xec   :  { %8331 = vmatpush1.bf16.msra.mxu0 %v17018_v43  ;;  %v1194_v43 = vand.u32 4294901760, %v1062_v41 }
  0xed   :  { %8333 = vmatprep.subr.bf16.mxu0 %v17019_v5 }
  0xee   :  { %v11910_v27 = vsub.f32 %v1062_v41, %v1194_v43  ;;  %v141_v41 = vlaneseq }
  0xf0   :  { %8335 = vmatpush1.bf16.msra.mxu0 %v17020_v7  ;;  %v11876_v7 = vpack.c.bf16 %v1194_v43, %v1190_v35  ;;  %17036 = vst [vmem:[#allocation44_spill] sm:$0xff] %v11910_v27  ;;  %v142_v35 = vshrl.u32 %v141_v41, 7  ;;  %v17048_v43 = vld [vmem:[#allocation51_spill] sm:$0xff] }
  0xf1   :  { %8337 = vmatprep.subr.bf16.mxu0 %v17021_v60  ;;  %v1065_v60 = vld [vmem:[#allocation2 + $0x1c8] sm:$0xff] }
  0xf2   :  { %17030 = vst [vmem:[#allocation40_spill] sm:$0xff] %v11876_v7 }
  0xf4   :  { %8339 = vmatpush1.bf16.msra.mxu0 %v17022_v10  ;;  %v1067_v10 = vld [vmem:[#allocation2 + $0x1d8] sm:$0xff] }
  0xf5   :  { %8341 = vmatprep.subr.bf16.mxu0 %v17023_v45  ;;  %v1196_v45 = vand.u32 4294901760, %v1065_v60 }
  0xf7   :  { %v11913_v49 = vsub.f32 %v1065_v60, %v1196_v45 }
  0xf8   :  { %8343 = vmatpush1.bf16.msra.mxu0 %v17024_v34  ;;  %v1200_v34 = vand.u32 4294901760, %v1067_v10 }
  0xf9   :  { %8345 = vmatprep.subr.bf16.mxu0 %v11013_v4  ;;  %v1054_v4 = vld [vmem:[#allocation2 + $0x170] sm:$0xff]  ;;  %17037 = vst [vmem:[#allocation45_spill] sm:$0xff] %v11913_v49 }
  0xfb   :  { %896 = vmatmul.mubr.f32.vlgmr.msra.gmra.mrb[0].mxu0 %v17025_v29 }
  0xfc   :  { %8347 = vmatpush1.bf16.msra.mxu0 %v11025_v61  ;;  %998 = vmatprep.mubr.f32.mxu0 %v16750_v15  ;;  %v1052_v61 = vld [vmem:[#allocation2 + $0x160] sm:$0xff] }
  0xfd   :  { %8349 = vmatprep.subr.bf16.mxu0 %v11033_v18  ;;  %v1174_v47 = vand.u32 4294901760, %v1052_v61  ;;  %v1178_v18 = vand.u32 4294901760, %v1054_v4 }
 0x100   :  { %8351 = vmatpush1.bf16.msra.mxu0 %v11039_v32  ;;  %v11857_v32 = vpack.c.bf16 %v1178_v18, %v1174_v47 }
 0x101   :  { %8353 = vmatprep.subr.bf16.mxu0 %v11045_v58  ;;  %v11859_v58 = vsub.f32 %v1052_v61, %v1174_v47  ;;  %v1066_v61 = vld [vmem:[#allocation2 + $0x1d0] sm:$0xff] }
 0x102   :  { %17026 = vst [vmem:[#allocation36_spill] sm:$0xff] %v11857_v32  ;;  %8423 = vmatpush1.bf16.msra.mxu1 %v11857_v32  ;;  %v1202_v47 = vand.u32 4294901760, %v1066_v61 }
 0x104   :  { %8355 = vmatpush1.bf16.msra.mxu0 %v11184_v26  ;;  %v11861_v26 = vsub.f32 %v1054_v4, %v1178_v18  ;;  %v11880_v18 = vpack.c.bf16 %v1200_v34, %v1196_v45 }
 0x105   :  { %8357 = vmatprep.subr.bf16.mxu0 %v11202_v50  ;;  %v1057_v50 = vld [vmem:[#allocation2 + $0x188] sm:$0xff] }
 0x106   :  { %17031 = vst [vmem:[#allocation41_spill] sm:$0xff] %v11880_v18 }
 0x108   :  { %8359 = vmatpush1.bf16.msra.mxu0 %v11240_v57  ;;  %v1059_v57 = vld [vmem:[#allocation2 + $0x198] sm:$0xff] }
 0x109   :  { %8361 = vmatprep.subr.bf16.mxu0 %v16963_v33  ;;  %v1180_v33 = vand.u32 4294901760, %v1057_v50 }
 0x10b   :  { %v11896_v46 = vsub.f32 %v1057_v50, %v1180_v33  ;;  %v11915_v50 = vsub.f32 %v1067_v10, %v1200_v34 }
 0x10c   :  { %8363 = vmatpush1.bf16.msra.mxu0 %v16968_v1  ;;  %v1184_v1 = vand.u32 4294901760, %v1059_v57 }
 0x10d   :  { %8365 = vmatprep.subr.bf16.mxu0 %v16973_v25  ;;  %v1056_v25 = vld [vmem:[#allocation2 + $0x180] sm:$0xff]  ;;  %17038 = vst [vmem:[#allocation46_spill] sm:$0xff] %v11915_v50 }
 0x10e   :  { %v11868_v53 = vpack.c.bf16 %v1184_v1, %v1180_v33  ;;  %v11898_v13 = vsub.f32 %v1059_v57, %v1184_v1  ;;  %v11919_v33 = vsub.f32 %v1066_v61, %v1202_v47 }
 0x110   :  { %8367 = vmatpush1.bf16.msra.mxu0 %v16978_v16  ;;  %v1058_v16 = vld [vmem:[#allocation2 + $0x190] sm:$0xff]  ;;  %17027 = vst [vmem:[#allocation37_spill] sm:$0xff] %v11868_v53  ;;  %8425 = vmatprep.subr.bf16.mxu1 %v11868_v53  ;;  %v1071_v53 = vld [vmem:[#allocation2 + $0x1f8] sm:$0xff]  ;;  %17040 = vst [vmem:[#allocation48_spill] sm:$0xff] %v11919_v33 }
 0x111   :  { %8369 = vmatprep.subr.bf16.mxu0 %v16982_v40  ;;  %v1182_v40 = vand.u32 4294901760, %v1056_v25  ;;  %v1186_v24 = vand.u32 4294901760, %v1058_v16  ;;  %v1208_v0 = vand.u32 4294901760, %v1071_v53 }
 0x113   :  { %v11870_v48 = vpack.c.bf16 %v1186_v24, %v1182_v40  ;;  %v11900_v56 = vsub.f32 %v1056_v25, %v1182_v40  ;;  %v11902_v30 = vsub.f32 %v1058_v16, %v1186_v24  ;;  %v11923_v25 = vsub.f32 %v1071_v53, %v1208_v0 }
 0x114   :  { %8371 = vmatpush1.bf16.msra.mxu0 %v11442_v14  ;;  %v1063_v14 = vld [vmem:[#allocation2 + $0x1b8] sm:$0xff] }
 0x115   :  { %8373 = vmatprep.subr.bf16.mxu0 %v16989_v2  ;;  %17028 = vst [vmem:[#allocation38_spill] sm:$0xff] %v11870_v48  ;;  %v1188_v2 = vand.u32 4294901760, %v1061_v23  ;;  %8427 = vmatpush1.bf16.msra.mxu1 %v11870_v48  ;;  %v1069_v48 = vld [vmem:[#allocation2 + $0x1e8] sm:$0xff]  ;;  %17042 = vst [vmem:[#allocation49_spill] sm:$0xff] %v11923_v25 }
 0x116   :  { %v1204_v32 = vand.u32 4294901760, %v1069_v48 }
 0x118   :  { %8375 = vmatpush1.bf16.msra.mxu0 %v11514_v44  ;;  %v1192_v44 = vand.u32 4294901760, %v1063_v14  ;;  %v11888_v19 = vpack.c.bf16 %v1208_v0, %v1204_v32  ;;  %v11921_v1 = vsub.f32 %v1069_v48, %v1204_v32  ;;  %v11932_v32 = vsub.s32 0, %v142_v35  ;;  %v139_v0 = vld [vmem:[%s15726_s2] sm:$0x3] }
 0x11a   :  { %v11874_v5 = vpack.c.bf16 %v1192_v44, %v1188_v2  ;;  %17035 = vst [vmem:[#allocation43_spill] sm:$0xff] %v11888_v19  ;;  %v11906_v17 = vsub.f32 %v1063_v14, %v1192_v44  ;;  %17041 = vst [vmem:[#allocation32_spill] sm:$0xff] %v11921_v1 }
 0x11b   :  { %1000 = vmatmul.mubr.f32.vlgmr.msra.gmra.mrb[0].mxu0 %v17025_v29  ;;  %v1064_v29 = vld [vmem:[#allocation2 + $0x1c0] sm:$0xff]  ;;  %17046 = vst [vmem:[#allocation92_spill] sm:$0xff] %v11932_v32 }
 0x11c   :  { %17029 = vst [vmem:[#allocation39_spill] sm:$0xff] %v11874_v5  ;;  %8429 = vmatprep.subr.bf16.mxu1 %v11874_v5  ;;  %v1198_v4 = vand.u32 4294901760, %v1064_v29  ;;  %v1070_v5 = vld [vmem:[#allocation2 + $0x1f0] sm:$0xff] }
 0x11d   :  { %8431 = vmatpush1.bf16.msra.mxu1 %v11876_v7  ;;  %v1206_v7 = vand.u32 4294901760, %v1068_v62  ;;  %v1210_v51 = vand.u32 4294901760, %v1070_v5 }
 0x11e   :  { %v11882_v15 = vpack.c.bf16 %v1202_v47, %v1198_v4  ;;  %8433 = vmatprep.subr.bf16.mxu1 %v11880_v18  ;;  %v1244_v18 = vsub.f32 %v17034_v52, %v15928_v39  ;;  %v11917_v57 = vsub.f32 %v1064_v29, %v1198_v4  ;;  %v17050_v29 = vld [vmem:[#allocation53_spill] sm:$0xff]  ;;  %v17051_v4 = vld [vmem:[#allocation54_spill] sm:$0xff]  ;;  %v17058_v39 = vld [vmem:[#allocation55_spill] sm:$0xff] }
 0x11f   :  { %v11925_v16 = vpack.c.bf16 %v1210_v51, %v1206_v7  ;;  %v11927_v40 = vsub.f32 %v1068_v62, %v1206_v7  ;;  %v11929_v24 = vsub.f32 %v1070_v5, %v1210_v51  ;;  %v11937_v62 = vsub.s32 1, %v142_v35  ;;  %v17049_v7 = vld [vmem:[#allocation52_spill] sm:$0xff] }
 0x120   :  { %17032 = vst [vmem:[#allocation42_spill] sm:$0xff] %v11882_v15  ;;  %17039 = vst [vmem:[#allocation47_spill] sm:$0xff] %v11917_v57  ;;  %v1245_v14 = vand.u32 4294901760, %v1244_v18  ;;  %v144_v51 = vrot.slane %v139_v0, %v11932_v32  ;;  %v15927_v5 = vand.u32 4294901760, %v17048_v43  ;;  %v15926_v60 = vand.u32 4294901760, %v17049_v7  ;;  %v17053_v35 = vld [vmem:[#allocation16_spill] sm:$0xff] }
 0x121   :  { %8435 = vmatpush1.bf16.msra.mxu1 %v11882_v15  ;;  %v11904_v15 = vsub.f32 %v1061_v23, %v1188_v2  ;;  %17043 = vst [vmem:[#allocation50_spill] sm:$0xff] %v11925_v16  ;;  %17044 = vst [vmem:[#allocation90_spill] sm:$0xff] %v11927_v40  ;;  %v1233_v23 = vand.u32 4294901760, %v1232_v36  ;;  %v148_v36 = vrot.slane %v139_v0, %v11937_v62  ;;  %v15929_v61 = vand.u32 4294901760, %v17050_v29 }
 0x122   :  { %8437 = vmatprep.subr.bf16.mxu1 %v11888_v19  ;;  %17045 = vst [vmem:[#allocation91_spill] sm:$0xff] %v11929_v24  ;;  %17047 = vst [vmem:[#allocation93_spill] sm:$0xff] %v11937_v62  ;;  %v15930_v47 = vand.u32 4294901760, %v17051_v4 }
 0x123   :  { %v8440_v2 = vpack.c.bf16 %v1245_v14, %v1233_v23  ;;  %v1238_v23 = vsub.f32 %v17048_v43, %v15927_v5  ;;  %v1250_v14 = vsub.f32 %v17049_v7, %v15926_v60 }
 0x125   :  { %8439 = vmatpush1.bf16.msra.mxu1 %v11925_v16  ;;  %v1251_v60 = vand.u32 4294901760, %v1250_v14  ;;  %v17062_v14 = vld [vmem:[#allocation56_spill] sm:$0xff] }
 0x126   :  { %8441 = vmatprep.subr.bf16.mxu1 %v8440_v2 }
 0x189   :  { %v254_v44 = vpop.f32.mrb[0].mxu1 }
 0x18a   :  { %v256_v8 = vpop.f32.mrb[1].mxu1  ;;  %v255_v53 = vadd.f32 %v254_v44, %v144_v51  ;;  %v17052_v44 = vld [vmem:[#allocation15_spill] sm:$0xff]  ;;  %v17054_v51 = vld [vmem:[#allocation18_spill] sm:$0xff] }
 0x18b   :  { %v257_v48 = vadd.f32 %v256_v8, %v148_v36  ;;  %v15939_v8 = vand.u32 4294901760, %v17052_v44  ;;  %v17061_v62 = vand.u32 4294901760, %v17054_v51 }
 0x18d   :  { %v1262_v5 = vsub.f32 %v17052_v44, %v15939_v8  ;;  %v17063_v8 = vld [vmem:[#allocation57_spill] sm:$0xff]  ;;  %v17071_v44 = vld [vmem:[#allocation24_spill] sm:$0xff] }
 0x1ee   :  { %v1001_v10 = vpop.f32.mrb[0].mxu0 }
 0x1ef   :  { %v10141_v45 = vadd.f32 %v1001_v10, %v255_v53  ;;  %v1003_v34 = vpop.f32.mrb[1].mxu0  ;;  %v1268_v10 = vsub.f32 %v17051_v4, %v15930_v47  ;;  %v17078_v4 = vld [vmem:[#allocation66_spill] sm:$0xff] }
 0x1f0   :  { %v10143_v18 = vadd.f32 %v1003_v34, %v257_v48  ;;  %v1256_v48 = vsub.f32 %v17050_v29, %v15929_v61  ;;  %v17060_v61 = vand.u32 4294901760, %v17053_v35 }
 0x1f1   :  { %v1006_v2 = vmax.f32 %v10141_v45, 0.0  ;;  %v1239_v45 = vand.u32 4294901760, %v1238_v23  ;;  %v1280_v23 = vsub.f32 %v17054_v51, %v17061_v62  ;;  %v1269_v19 = vand.u32 4294901760, %v1268_v10  ;;  %v17065_v62 = vld [vmem:[#allocation58_spill] sm:$0xff] }
 0x1f2   :  { %v1007_v41 = vmax.f32 %v10143_v18, 0.0  ;;  %v1274_v47 = vsub.f32 %v17053_v35, %v17060_v61  ;;  %v1257_v16 = vand.u32 4294901760, %v1256_v48  ;;  %v17064_v61 = vand.u32 4294901760, %v17058_v39 }
 0x1f3   :  { %v11954_v53 = vand.u32 4294901760, %v1006_v2  ;;  %v1263_v10 = vand.u32 4294901760, %v1262_v5  ;;  %v1281_v51 = vand.u32 4294901760, %v1280_v23  ;;  %v17077_v5 = vld [vmem:[#allocation26_spill] sm:$0xff] }
 0x1f4   :  { %v11962_v34 = vand.u32 4294901760, %v1007_v41  ;;  %v1292_v22 = vsub.f32 %v17058_v39, %v17064_v61  ;;  %v1275_v12 = vand.u32 4294901760, %v1274_v47  ;;  %v17069_v61 = vand.u32 4294901760, %v17063_v8 }
 0x1f5   :  { %17055 = vst [vmem:[#allocation51_spill] sm:$0xff] %v11954_v53  ;;  %v11965_v18 = vsub.f32 %v1006_v2, %v11954_v53  ;;  %v17066_v2 = vld [vmem:[#allocation20_spill] sm:$0xff]  ;;  %v17076_v53 = vld [vmem:[#allocation65_spill] sm:$0xff] }
 0x1f6   :  { %17056 = vst [vmem:[#allocation94_spill] sm:$0xff] %v11962_v34  ;;  %v11972_v0 = vsub.f32 %v1007_v41, %v11962_v34  ;;  %v8442_v41 = vpack.c.bf16 %v1251_v60, %v1239_v45  ;;  %v15968_v60 = vand.u32 4294901760, %v17067_v21  ;;  %v8444_v45 = vpack.c.bf16 %v1269_v19, %v1257_v16 }
 0x1f7   :  { %17057 = vst [vmem:[#allocation95_spill] sm:$0xff] %v11965_v18  ;;  %v15953_v32 = vand.u32 4294901760, %v11965_v18  ;;  %v1298_v31 = vsub.f32 %v17063_v8, %v17069_v61  ;;  %v17073_v19 = vand.u32 4294901760, %v17065_v62  ;;  %v17074_v23 = vand.u32 4294901760, %v17066_v2  ;;  %v17075_v61 = vld [vmem:[#allocation63_spill] sm:$0xff] }
 0x1f8   :  { %17059 = vst [vmem:[#allocation96_spill] sm:$0xff] %v11972_v0  ;;  %v15961_v36 = vand.u32 4294901760, %v11972_v0  ;;  %v15974_v8 = vand.u32 4294901760, %v17076_v53 }
 0x1f9   :  { %v1221_v11 = vsub.f32 %v11965_v18, %v15953_v32  ;;  %v17068_v32 = vand.u32 4294901760, %v17062_v14  ;;  %v1304_v16 = vsub.f32 %v17065_v62, %v17073_v19  ;;  %v17089_v62 = vld [vmem:[#allocation69_spill] sm:$0xff] }
 0x1fa   :  { %v1215_v48 = vsub.f32 %v11972_v0, %v15961_v36  ;;  %v17072_v36 = vld [vmem:[#allocation62_spill] sm:$0xff]  ;;  %v1293_v0 = vand.u32 4294901760, %v1292_v22  ;;  %v15987_v29 = vand.u32 4294901760, %v17089_v62 }
 0x1fb   :  { %v1286_v18 = vsub.f32 %v17062_v14, %v17068_v32  ;;  %v1222_v47 = vand.u32 4294901760, %v1221_v11  ;;  %v1316_v32 = vsub.f32 %v17066_v2, %v17074_v23  ;;  %v8446_v11 = vpack.c.bf16 %v1275_v12, %v1263_v10 }
 0x1fc   :  { %v1216_v39 = vand.u32 4294901760, %v1215_v48  ;;  %v1310_v48 = vsub.f32 %v17067_v21, %v15968_v60  ;;  %v1299_v23 = vand.u32 4294901760, %v1298_v31  ;;  %v17080_v60 = vand.u32 4294901760, %v17071_v44 }
 0x1fd   :  { %v1287_v22 = vand.u32 4294901760, %v1286_v18  ;;  %v8448_v18 = vpack.c.bf16 %v1293_v0, %v1281_v51  ;;  %v1305_v10 = vand.u32 4294901760, %v1304_v16  ;;  %v1317_v19 = vand.u32 4294901760, %v1316_v32  ;;  %v17085_v0 = vld [vmem:[#allocation67_spill] sm:$0xff] }
 0x1fe   :  { %1217 = vmatprep.mubr.f32.mxu1 %v1216_v39  ;;  %v17079_v39 = vand.u32 4294901760, %v17070_v3  ;;  %v1328_v35 = vsub.f32 %v17071_v44, %v17080_v60  ;;  %v17082_v14 = vand.u32 4294901760, %v17075_v61  ;;  %v17084_v44 = vand.u32 4294901760, %v17078_v4  ;;  %v17086_v16 = vld [vmem:[#allocation27_spill] sm:$0xff] }
 0x1ff   :  { %1223 = vmatmul.mubr.f32.vlgmr.msra.gmra.mrb[2].mxu1 %v1222_v47  ;;  %v17081_v47 = vand.u32 4294901760, %v17072_v36  ;;  %v15985_v32 = vand.u32 4294901760, %v17086_v16 }
 0x200   :  { %8443 = vmatpush1.bf16.msra.mxu1 %v8442_v41  ;;  %1614 = vmatprep.mubr.f32.mxu1 %v11962_v34  ;;  %v1322_v2 = vsub.f32 %v17070_v3, %v17079_v39  ;;  %v1311_v41 = vand.u32 4294901760, %v1310_v48  ;;  %v1334_v31 = vsub.f32 %v17075_v61, %v17082_v14  ;;  %v1346_v39 = vsub.f32 %v17076_v53, %v15974_v8  ;;  %v17087_v8 = vld [vmem:[#allocation28_spill] sm:$0xff] }
 0x201   :  { %v1340_v12 = vsub.f32 %v17072_v36, %v17081_v47  ;;  %8445 = vmatprep.subr.bf16.mxu1 %v8444_v45  ;;  %v17083_v34 = vand.u32 4294901760, %v17077_v5  ;;  %v1364_v45 = vsub.f32 %v17078_v4, %v17084_v44  ;;  %v8450_v48 = vpack.c.bf16 %v1299_v23, %v1287_v22  ;;  %v17088_v3 = vld [vmem:[#allocation68_spill] sm:$0xff]  ;;  %v17090_v44 = vld [vmem:[#allocation30_spill] sm:$0xff] }
 0x202   :  { %v1323_v47 = vand.u32 4294901760, %v1322_v2  ;;  %v1329_v14 = vand.u32 4294901760, %v1328_v35  ;;  %v8452_v36 = vpack.c.bf16 %v1317_v19, %v1305_v10  ;;  %v15984_v53 = vand.u32 4294901760, %v17087_v8 }
 0x203   :  { %v1352_v60 = vsub.f32 %v17077_v5, %v17083_v34  ;;  %v1341_v61 = vand.u32 4294901760, %v1340_v12  ;;  %v15983_v21 = vand.u32 4294901760, %v17088_v3  ;;  %v1335_v34 = vand.u32 4294901760, %v1334_v31  ;;  %v17093_v31 = vld [vmem:[#allocation31_spill] sm:$0xff] }
 0x204   :  { %8447 = vmatpush1.bf16.msra.mxu1 %v8446_v11  ;;  %v1347_v5 = vand.u32 4294901760, %v1346_v39  ;;  %v15989_v4 = vand.u32 4294901760, %v17090_v44  ;;  %v1365_v7 = vand.u32 4294901760, %v1364_v45  ;;  %v17091_v11 = vand.u32 4294901760, %v17085_v0  ;;  %v17097_v39 = vld [vmem:[#allocation75_spill] sm:$0xff] }
 0x205   :  { %8449 = vmatprep.subr.bf16.mxu1 %v8448_v18  ;;  %v1353_v51 = vand.u32 4294901760, %v1352_v60  ;;  %v1370_v35 = vsub.f32 %v17086_v16, %v15985_v32  ;;  %v8454_v22 = vpack.c.bf16 %v1323_v47, %v1311_v41  ;;  %v8456_v19 = vpack.c.bf16 %v1341_v61, %v1329_v14  ;;  %v17092_v18 = vld [vmem:[#allocation70_spill] sm:$0xff]  ;;  %v17094_v47 = vld [vmem:[#allocation71_spill] sm:$0xff] }
 0x206   :  { %v1358_v2 = vsub.f32 %v17085_v0, %v17091_v11  ;;  %v1376_v23 = vsub.f32 %v17087_v8, %v15984_v53  ;;  %v1388_v12 = vsub.f32 %v17088_v3, %v15983_v21  ;;  %v1382_v60 = vsub.f32 %v17089_v62, %v15987_v29  ;;  %v17095_v11 = vld [vmem:[#allocation73_spill] sm:$0xff]  ;;  %v17096_v53 = vld [vmem:[#allocation74_spill] sm:$0xff]  ;;  %v17102_v14 = vld [vmem:[#allocation79_spill] sm:$0xff] }
 0x207   :  { %v8458_v61 = vpack.c.bf16 %v1347_v5, %v1335_v34  ;;  %v8460_v41 = vpack.c.bf16 %v1365_v7, %v1353_v51  ;;  %v17098_v62 = vand.u32 4294901760, %v17092_v18  ;;  %v17099_v7 = vand.u32 4294901760, %v17093_v31 }
 0x208   :  { %8451 = vmatpush1.bf16.msra.mxu1 %v8450_v48  ;;  %v1359_v45 = vand.u32 4294901760, %v1358_v2  ;;  %v1371_v48 = vand.u32 4294901760, %v1370_v35  ;;  %v1377_v3 = vand.u32 4294901760, %v1376_v23  ;;  %v1389_v29 = vand.u32 4294901760, %v1388_v12  ;;  %v17100_v2 = vld [vmem:[#allocation77_spill] sm:$0xff] }
 0x209   :  { %8453 = vmatprep.subr.bf16.mxu1 %v8452_v36  ;;  %v1394_v36 = vsub.f32 %v17090_v44, %v15989_v4  ;;  %v1400_v4 = vsub.f32 %v17092_v18, %v17098_v62  ;;  %v1412_v5 = vsub.f32 %v17093_v31, %v17099_v7  ;;  %v1383_v51 = vand.u32 4294901760, %v1382_v60 }
 0x20a   :  { %v15993_v35 = vand.u32 4294901760, %v17100_v2  ;;  %v8462_v32 = vpack.c.bf16 %v1371_v48, %v1359_v45  ;;  %v17103_v23 = vand.u32 4294901760, %v17094_v47  ;;  %v17104_v12 = vand.u32 4294901760, %v17095_v11 }
 0x20b   :  { %v1395_v34 = vand.u32 4294901760, %v1394_v36  ;;  %v17105_v60 = vand.u32 4294901760, %v17096_v53  ;;  %v17106_v21 = vand.u32 4294901760, %v17097_v39  ;;  %v8464_v48 = vpack.c.bf16 %v1389_v29, %v1377_v3 }
 0x20c   :  { %8455 = vmatpush1.bf16.msra.mxu1 %v8454_v22  ;;  %v17101_v22 = vld [vmem:[#allocation78_spill] sm:$0xff]  ;;  %v1406_v62 = vsub.f32 %v17094_v47, %v17103_v23  ;;  %v1418_v7 = vsub.f32 %v17095_v11, %v17104_v12  ;;  %v1430_v23 = vsub.f32 %v17100_v2, %v15993_v35  ;;  %v17108_v11 = vand.u32 4294901760, %v17102_v14 }
 0x20d   :  { %8457 = vmatprep.subr.bf16.mxu1 %v8456_v19  ;;  %v1424_v36 = vsub.f32 %v17096_v53, %v17105_v60  ;;  %v1436_v45 = vsub.f32 %v17097_v39, %v17106_v21  ;;  %v1401_v19 = vand.u32 4294901760, %v1400_v4  ;;  %v8466_v10 = vpack.c.bf16 %v1395_v34, %v1383_v51 }
 0x20e   :  { %v17107_v47 = vand.u32 4294901760, %v17101_v22  ;;  %v1448_v60 = vsub.f32 %v17102_v14, %v17108_v11  ;;  %v17109_v53 = vand.u32 4294901760, %v11616_v42  ;;  %v16011_v29 = vand.u32 4294901760, %v11628_v6 }
 0x20f   :  { %v1407_v4 = vand.u32 4294901760, %v1406_v62  ;;  %v1437_v51 = vand.u32 4294901760, %v1436_v45  ;;  %v15998_v35 = vand.u32 4294901760, %v11640_v55  ;;  %v1431_v11 = vand.u32 4294901760, %v1430_v23 }
 0x210   :  { %8459 = vmatpush1.bf16.msra.mxu1 %v8458_v61  ;;  %v1413_v61 = vand.u32 4294901760, %v1412_v5  ;;  %v1442_v12 = vsub.f32 %v17101_v22, %v17107_v47  ;;  %v1460_v21 = vsub.f32 %v11616_v42, %v17109_v53  ;;  %v1425_v5 = vand.u32 4294901760, %v1424_v36 }
 0x211   :  { %8461 = vmatprep.subr.bf16.mxu1 %v8460_v41  ;;  %v1419_v41 = vand.u32 4294901760, %v1418_v7  ;;  %v16010_v47 = vand.u32 4294901760, %v11633_v37  ;;  %v15999_v22 = vand.u32 4294901760, %v11655_v20  ;;  %v16000_v53 = vand.u32 4294901760, %v11660_v54 }
 0x212   :  { %v8468_v34 = vpack.c.bf16 %v1413_v61, %v1401_v19  ;;  %v1443_v14 = vand.u32 4294901760, %v1442_v12  ;;  %v1449_v3 = vand.u32 4294901760, %v1448_v60  ;;  %v1461_v42 = vand.u32 4294901760, %v1460_v21 }
 0x213   :  { %v1466_v19 = vsub.f32 %v11628_v6, %v16011_v29  ;;  %v8470_v7 = vpack.c.bf16 %v1419_v41, %v1407_v4  ;;  %v8472_v36 = vpack.c.bf16 %v1437_v51, %v1425_v5  ;;  %v1472_v45 = vsub.f32 %v11633_v37, %v16010_v47 }
 0x214   :  { %8463 = vmatpush1.bf16.msra.mxu1 %v8462_v32  ;;  %v17110_v32 = vand.u32 4294901760, %v11621_v28  ;;  %v16009_v61 = vand.u32 4294901760, %v11673_v59  ;;  %v16001_v23 = vand.u32 4294901760, %v11678_v38  ;;  %v1478_v12 = vsub.f32 %v11655_v20, %v15999_v22 }
 0x215   :  { %8465 = vmatprep.subr.bf16.mxu1 %v8464_v48  ;;  %v1484_v48 = vsub.f32 %v11640_v55, %v15998_v35  ;;  %v8474_v60 = vpack.c.bf16 %v1443_v14, %v1431_v11  ;;  %v8476_v21 = vpack.c.bf16 %v1461_v42, %v1449_v3  ;;  %v1467_v41 = vand.u32 4294901760, %v1466_v19 }
 0x216   :  { %v1454_v62 = vsub.f32 %v11621_v28, %v17110_v32  ;;  %v16002_v5 = vand.u32 4294901760, %v11859_v58  ;;  %v16003_v51 = vand.u32 4294901760, %v11861_v26  ;;  %v16007_v32 = vand.u32 4294901760, %v11898_v13 }
 0x217   :  { %v1473_v35 = vand.u32 4294901760, %v1472_v45  ;;  %v1485_v22 = vand.u32 4294901760, %v1484_v48  ;;  %v1508_v42 = vsub.f32 %v11678_v38, %v16001_v23  ;;  %v1479_v14 = vand.u32 4294901760, %v1478_v12 }
 0x218   :  { %8467 = vmatpush1.bf16.msra.mxu1 %v8466_v10  ;;  %v1490_v10 = vsub.f32 %v11660_v54, %v16000_v53  ;;  %v1455_v4 = vand.u32 4294901760, %v1454_v62  ;;  %v1496_v53 = vsub.f32 %v11673_v59, %v16009_v61  ;;  %v16005_v11 = vand.u32 4294901760, %v11900_v56 }
 0x219   :  { %8469 = vmatprep.subr.bf16.mxu1 %v8468_v34  ;;  %v16004_v34 = vand.u32 4294901760, %v11896_v46  ;;  %v16006_v62 = vand.u32 4294901760, %v11902_v30  ;;  %v1502_v45 = vsub.f32 %v11859_v58, %v16002_v5  ;;  %v1514_v48 = vsub.f32 %v11861_v26, %v16003_v51 }
 0x21a   :  { %v1491_v3 = vand.u32 4294901760, %v1490_v10  ;;  %v8478_v19 = vpack.c.bf16 %v1467_v41, %v1455_v4  ;;  %v1532_v10 = vsub.f32 %v11898_v13, %v16007_v32  ;;  %v8480_v4 = vpack.c.bf16 %v1485_v22, %v1473_v35 }
 0x21b   :  { %v1520_v12 = vsub.f32 %v11896_v46, %v16004_v34  ;;  %v1497_v41 = vand.u32 4294901760, %v1496_v53  ;;  %v1526_v5 = vsub.f32 %v11900_v56, %v16005_v11  ;;  %v1538_v51 = vsub.f32 %v11902_v30, %v16006_v62 }
 0x21c   :  { %8471 = vmatpush1.bf16.msra.mxu1 %v8470_v7  ;;  %v16008_v7 = vand.u32 4294901760, %v11904_v15  ;;  %v8482_v23 = vpack.c.bf16 %v1491_v3, %v1479_v14  ;;  %v16022_v35 = vand.u32 4294901760, %v11908_v9  ;;  %v16021_v22 = vand.u32 4294901760, %v11910_v27 }
 0x21d   :  { %8473 = vmatprep.subr.bf16.mxu1 %v8472_v36  ;;  %v16012_v36 = vand.u32 4294901760, %v11906_v17  ;;  %v1503_v53 = vand.u32 4294901760, %v1502_v45  ;;  %v1521_v14 = vand.u32 4294901760, %v1520_v12  ;;  %v1533_v3 = vand.u32 4294901760, %v1532_v10 }
 0x21e   :  { %v1544_v34 = vsub.f32 %v11904_v15, %v16008_v7  ;;  %v16020_v62 = vand.u32 4294901760, %v11913_v49  ;;  %v16013_v32 = vand.u32 4294901760, %v11915_v50  ;;  %v1527_v7 = vand.u32 4294901760, %v1526_v5 }
 0x21f   :  { %v1539_v61 = vand.u32 4294901760, %v1538_v51  ;;  %v16019_v12 = vand.u32 4294901760, %v11917_v57  ;;  %v16015_v10 = vand.u32 4294901760, %v11919_v33 }
 0x220   :  { %8475 = vmatpush1.bf16.msra.mxu1 %v8474_v60  ;;  %v1509_v60 = vand.u32 4294901760, %v1508_v42  ;;  %v1515_v42 = vand.u32 4294901760, %v1514_v48  ;;  %v1545_v47 = vand.u32 4294901760, %v1544_v34  ;;  %v8488_v48 = vpack.c.bf16 %v1533_v3, %v1521_v14 }
 0x221   :  { %8477 = vmatprep.subr.bf16.mxu1 %v8476_v21  ;;  %v1556_v21 = vsub.f32 %v11906_v17, %v16012_v36  ;;  %v1550_v36 = vsub.f32 %v11908_v9, %v16022_v35  ;;  %v1568_v5 = vsub.f32 %v11913_v49, %v16020_v62  ;;  %v1580_v51 = vsub.f32 %v11915_v50, %v16013_v32  ;;  %v17129_v62 = vld [vmem:[#allocation65_spill] sm:$0xff]  ;;  %v17131_v35 = vld [vmem:[#allocation66_spill] sm:$0xff] }
 0x222   :  { %v8484_v11 = vpack.c.bf16 %v1509_v60, %v1497_v41  ;;  %v8486_v45 = vpack.c.bf16 %v1515_v42, %v1503_v53  ;;  %v16014_v34 = vand.u32 4294901760, %v11921_v1  ;;  %v1586_v53 = vsub.f32 %v11919_v33, %v16015_v10 }
 0x223   :  { %v1557_v29 = vand.u32 4294901760, %v1556_v21  ;;  %v1551_v60 = vand.u32 4294901760, %v1550_v36  ;;  %v16018_v42 = vand.u32 4294901760, %v11927_v40  ;;  %v16017_v14 = vand.u32 4294901760, %v11929_v24 }
 0x224   :  { %8479 = vmatpush1.bf16.msra.mxu1 %v8478_v19  ;;  %v1562_v19 = vsub.f32 %v11910_v27, %v16021_v22  ;;  %v1569_v3 = vand.u32 4294901760, %v1568_v5  ;;  %v1581_v32 = vand.u32 4294901760, %v1580_v51  ;;  %v1587_v36 = vand.u32 4294901760, %v1586_v53 }
 0x225   :  { %8481 = vmatprep.subr.bf16.mxu1 %v8480_v4  ;;  %v16016_v4 = vand.u32 4294901760, %v11923_v25  ;;  %v8492_v41 = vpack.c.bf16 %v1557_v29, %v1545_v47  ;;  %v1592_v29 = vsub.f32 %v11921_v1, %v16014_v34 }
 0x226   :  { %v1563_v21 = vand.u32 4294901760, %v1562_v19  ;;  %v1598_v19 = vsub.f32 %v11927_v40, %v16018_v42  ;;  %v17127_v42 = vld [vmem:[#allocation62_spill] sm:$0xff] }
 0x227   :  { %v1604_v47 = vsub.f32 %v11923_v25, %v16016_v4  ;;  %v1593_v5 = vand.u32 4294901760, %v1592_v29  ;;  %v17114_v29 = vld [vmem:[#allocation51_spill] sm:$0xff] }
 0x228   :  { %8483 = vmatpush1.bf16.msra.mxu1 %v8482_v23  ;;  %v8490_v23 = vpack.c.bf16 %v1539_v61, %v1527_v7  ;;  %v8494_v61 = vpack.c.bf16 %v1563_v21, %v1551_v60  ;;  %v1599_v10 = vand.u32 4294901760, %v1598_v19  ;;  %v8504_v21 = vpack.c.bf16 %v17034_v52, %v17033_v63  ;;  %v17120_v19 = vld [vmem:[#allocation56_spill] sm:$0xff] }
 0x229   :  { %8485 = vmatprep.subr.bf16.mxu1 %v8484_v11  ;;  %v1574_v11 = vsub.f32 %v11917_v57, %v16019_v12  ;;  %v1605_v51 = vand.u32 4294901760, %v1604_v47  ;;  %v17115_v47 = vld [vmem:[#allocation96_spill] sm:$0xff] }
 0x22b   :  { %v1575_v7 = vand.u32 4294901760, %v1574_v11  ;;  %v17111_v11 = vld [vmem:[#allocation52_spill] sm:$0xff] }
 0x22c   :  { %8487 = vmatpush1.bf16.msra.mxu1 %v8486_v45  ;;  %v1610_v45 = vsub.f32 %v11929_v24, %v16017_v14  ;;  %v8506_v53 = vpack.c.bf16 %v17111_v11, %v17048_v43  ;;  %v17126_v14 = vld [vmem:[#allocation24_spill] sm:$0xff] }
 0x22d   :  { %8489 = vmatprep.subr.bf16.mxu1 %v8488_v48  ;;  %v8496_v48 = vpack.c.bf16 %v1581_v32, %v1569_v3  ;;  %v8498_v34 = vpack.c.bf16 %v1587_v36, %v1575_v7  ;;  %v17112_v32 = vld [vmem:[#allocation53_spill] sm:$0xff]  ;;  %v17119_v7 = vld [vmem:[#allocation55_spill] sm:$0xff]  ;;  %v8520_v12 = vpack.c.bf16 %v17127_v42, %v17126_v14 }
 0x22e   :  { %v1611_v4 = vand.u32 4294901760, %v1610_v45  ;;  %v17121_v45 = vld [vmem:[#allocation57_spill] sm:$0xff] }
 0x230   :  { %8491 = vmatpush1.bf16.msra.mxu1 %v8490_v23  ;;  %v8500_v23 = vpack.c.bf16 %v1605_v51, %v1593_v5  ;;  %v8502_v60 = vpack.c.bf16 %v1611_v4, %v1599_v10  ;;  %v17118_v4 = vld [vmem:[#allocation18_spill] sm:$0xff]  ;;  %v17123_v51 = vld [vmem:[#allocation20_spill] sm:$0xff] }
 0x231   :  { %8493 = vmatprep.subr.bf16.mxu1 %v8492_v41  ;;  %v17113_v41 = vld [vmem:[#allocation54_spill] sm:$0xff]  ;;  %v8512_v36 = vpack.c.bf16 %v17119_v7, %v17118_v4 }
 0x232   :  { %v8508_v3 = vpack.c.bf16 %v17113_v41, %v17112_v32  ;;  %v17122_v5 = vld [vmem:[#allocation58_spill] sm:$0xff] }
 0x234   :  { %8495 = vmatpush1.bf16.msra.mxu1 %v8494_v61  ;;  %v17116_v61 = vld [vmem:[#allocation15_spill] sm:$0xff] }
 0x235   :  { %8497 = vmatprep.subr.bf16.mxu1 %v8496_v48  ;;  %v8514_v48 = vpack.c.bf16 %v17121_v45, %v17120_v19 }
 0x238   :  { %8499 = vmatpush1.bf16.msra.mxu1 %v8498_v34  ;;  %v17117_v34 = vld [vmem:[#allocation16_spill] sm:$0xff] }
 0x239   :  { %8501 = vmatprep.subr.bf16.mxu1 %v8500_v23  ;;  %v8510_v10 = vpack.c.bf16 %v17117_v34, %v17116_v61  ;;  %v8516_v23 = vpack.c.bf16 %v17123_v51, %v17122_v5 }
 0x23c   :  { %8503 = vmatpush1.bf16.msra.mxu1 %v8502_v60  ;;  %v17124_v60 = vld [vmem:[#allocation22_spill] sm:$0xff] }
 0x23d   :  { %8505 = vmatprep.subr.bf16.mxu1 %v8504_v21  ;;  %v17125_v21 = vld [vmem:[#allocation60_spill] sm:$0xff] }
 0x23f   :  { %1616 = vmatmul.mubr.f32.vlgmr.msra.gmra.mrb[2].mxu1 %v17114_v29 }
 0x240   :  { %8507 = vmatpush1.bf16.msra.mxu1 %v8506_v53  ;;  %1816 = vmatprep.mubr.f32.mxu1 %v17115_v47  ;;  %v8518_v53 = vpack.c.bf16 %v17125_v21, %v17124_v60 }
 0x241   :  { %8509 = vmatprep.subr.bf16.mxu1 %v8508_v3  ;;  %v17128_v3 = vld [vmem:[#allocation63_spill] sm:$0xff] }
 0x242   :  { %v8522_v22 = vpack.c.bf16 %v17129_v62, %v17128_v3  ;;  %v17135_v62 = vld [vmem:[#allocation73_spill] sm:$0xff] }
 0x244   :  { %8511 = vmatpush1.bf16.msra.mxu1 %v8510_v10  ;;  %v17130_v10 = vld [vmem:[#allocation26_spill] sm:$0xff] }
 0x245   :  { %8513 = vmatprep.subr.bf16.mxu1 %v8512_v36  ;;  %v8524_v29 = vpack.c.bf16 %v17131_v35, %v17130_v10  ;;  %v8526_v36 = vpack.c.bf16 %v17086_v16, %v17085_v0 }
 0x248   :  { %8515 = vmatpush1.bf16.msra.mxu1 %v8514_v48  ;;  %v17132_v48 = vld [vmem:[#allocation68_spill] sm:$0xff] }
 0x249   :  { %8517 = vmatprep.subr.bf16.mxu1 %v8516_v23  ;;  %v8528_v21 = vpack.c.bf16 %v17132_v48, %v17087_v8  ;;  %v17133_v23 = vld [vmem:[#allocation69_spill] sm:$0xff] }
 0x24a   :  { %v8530_v42 = vpack.c.bf16 %v17090_v44, %v17133_v23  ;;  %v17139_v8 = vld [vmem:[#allocation81_spill] sm:$0xff] }
 0x24c   :  { %8519 = vmatpush1.bf16.msra.mxu1 %v8518_v53  ;;  %v8532_v53 = vpack.c.bf16 %v17093_v31, %v17092_v18 }
 0x24d   :  { %8521 = vmatprep.subr.bf16.mxu1 %v8520_v12  ;;  %v17134_v12 = vld [vmem:[#allocation71_spill] sm:$0xff] }
 0x24e   :  { %v8534_v35 = vpack.c.bf16 %v17135_v62, %v17134_v12 }
 0x250   :  { %8523 = vmatpush1.bf16.msra.mxu1 %v8522_v22  ;;  %v17136_v22 = vld [vmem:[#allocation74_spill] sm:$0xff] }
 0x251   :  { %8525 = vmatprep.subr.bf16.mxu1 %v8524_v29  ;;  %v8536_v16 = vpack.c.bf16 %v17097_v39, %v17136_v22  ;;  %v17137_v29 = vld [vmem:[#allocation78_spill] sm:$0xff] }
 0x252   :  { %v8538_v48 = vpack.c.bf16 %v17137_v29, %v17100_v2 }
 0x254   :  { %8527 = vmatpush1.bf16.msra.mxu1 %v8526_v36  ;;  %v17138_v36 = vld [vmem:[#allocation79_spill] sm:$0xff] }
 0x255   :  { %8529 = vmatprep.subr.bf16.mxu1 %v8528_v21  ;;  %v8540_v44 = vpack.c.bf16 %v17139_v8, %v17138_v36  ;;  %v8542_v21 = vpack.c.bf16 %v11628_v6, %v11621_v28 }
 0x258   :  { %8531 = vmatpush1.bf16.msra.mxu1 %v8530_v42  ;;  %v8544_v42 = vpack.c.bf16 %v11640_v55, %v11633_v37 }
 0x259   :  { %8533 = vmatprep.subr.bf16.mxu1 %v8532_v53  ;;  %v8546_v53 = vpack.c.bf16 %v11660_v54, %v11655_v20 }
 0x25c   :  { %8535 = vmatpush1.bf16.msra.mxu1 %v8534_v35  ;;  %v8548_v35 = vpack.c.bf16 %v11678_v38, %v11673_v59 }
 0x25d   :  { %8537 = vmatprep.subr.bf16.mxu1 %v8536_v16  ;;  %v8550_v16 = vpack.c.bf16 %v11861_v26, %v11859_v58 }
 0x260   :  { %8539 = vmatpush1.bf16.msra.mxu1 %v8538_v48  ;;  %v8552_v48 = vpack.c.bf16 %v11898_v13, %v11896_v46 }
 0x261   :  { %8541 = vmatprep.subr.bf16.mxu1 %v8540_v44  ;;  %v8554_v44 = vpack.c.bf16 %v11902_v30, %v11900_v56 }
 0x264   :  { %8543 = vmatpush1.bf16.msra.mxu1 %v8542_v21  ;;  %v8556_v21 = vpack.c.bf16 %v11906_v17, %v11904_v15 }
 0x265   :  { %8545 = vmatprep.subr.bf16.mxu1 %v8544_v42  ;;  %v8558_v42 = vpack.c.bf16 %v11910_v27, %v11908_v9  ;;  %v17142_v27 = vld [vmem:[#allocation76_spill] sm:$0xff] }
 0x268   :  { %8547 = vmatpush1.bf16.msra.mxu1 %v8546_v53  ;;  %v8560_v53 = vpack.c.bf16 %v11915_v50, %v11913_v49  ;;  %v2383_v49 = vld [vmem:[#allocation5 + $0x68] sm:$0xff] }
 0x269   :  { %8549 = vmatprep.subr.bf16.mxu1 %v8548_v35  ;;  %v8562_v35 = vpack.c.bf16 %v11919_v33, %v11917_v57  ;;  %v17144_v33 = vld [vmem:[#allocation80_spill] sm:$0xff] }
 0x26a   :  { %v2380_v57 = vld [vmem:[#allocation5 + $0x50] sm:$0xff] }
 0x26c   :  { %8551 = vmatpush1.bf16.msra.mxu1 %v8550_v16  ;;  %v8564_v16 = vpack.c.bf16 %v11923_v25, %v11921_v1  ;;  %v17146_v25 = vld [vmem:[#allocation83_spill] sm:$0xff] }
 0x26d   :  { %8553 = vmatprep.subr.bf16.mxu1 %v8552_v48  ;;  %v8566_v48 = vpack.c.bf16 %v11929_v24, %v11927_v40  ;;  %v17148_v24 = vld [vmem:[#allocation85_spill] sm:$0xff] }
 0x270   :  { %8555 = vmatpush1.bf16.msra.mxu1 %v8554_v44  ;;  %v17140_v44 = vld [vmem:[#allocation72_spill] sm:$0xff] }
 0x271   :  { %8557 = vmatprep.subr.bf16.mxu1 %v8556_v21  ;;  %v17141_v21 = vld [vmem:[#allocation95_spill] sm:$0xff] }
 0x274   :  { %8559 = vmatpush1.bf16.msra.mxu1 %v8558_v42  ;;  %v17143_v42 = vand.u32 4294901760, %v17115_v47  ;;  %v17153_v47 = vld [vmem:[#allocation17_spill] sm:$0xff] }
 0x275   :  { %8561 = vmatprep.subr.bf16.mxu1 %v8560_v53  ;;  %v17145_v53 = vld [vmem:[#allocation82_spill] sm:$0xff] }
 0x278   :  { %8563 = vmatpush1.bf16.msra.mxu1 %v8562_v35  ;;  %v17147_v35 = vld [vmem:[#allocation84_spill] sm:$0xff] }
 0x279   :  { %8565 = vmatprep.subr.bf16.mxu1 %v8564_v16  ;;  %v17149_v16 = vld [vmem:[#allocation86_spill] sm:$0xff] }
 0x27c   :  { %8567 = vmatpush1.bf16.msra.mxu1 %v8566_v48  ;;  %v17150_v48 = vld [vmem:[#allocation87_spill] sm:$0xff] }
 0x27d   :  { %8569 = vmatprep.subr.bf16.mxu1 %v17140_v44  ;;  %v17151_v44 = vld [vmem:[#allocation88_spill] sm:$0xff] }
 0x27f   :  { %1819 = vmatmul.mubr.f32.vlgmr.msra.gmra.mrb[2].mxu1 %v17141_v21 }
 0x280   :  { %8571 = vmatpush1.bf16.msra.mxu1 %v17142_v27  ;;  %1956 = vmatprep.mubr.f32.mxu1 %v17143_v42  ;;  %v17152_v27 = vld [vmem:[#allocation89_spill] sm:$0xff]  ;;  %v17154_v42 = vld [vmem:[#allocation59_spill] sm:$0xff] }
 0x281   :  { %8573 = vmatprep.subr.bf16.mxu1 %v17144_v33  ;;  %v17155_v33 = vld [vmem:[#allocation19_spill] sm:$0xff] }
 0x284   :  { %8575 = vmatpush1.bf16.msra.mxu1 %v17145_v53  ;;  %v17156_v53 = vld [vmem:[#allocation61_spill] sm:$0xff] }
 0x285   :  { %8577 = vmatprep.subr.bf16.mxu1 %v17146_v25  ;;  %v17157_v25 = vld [vmem:[#allocation21_spill] sm:$0xff] }
 0x288   :  { %8579 = vmatpush1.bf16.msra.mxu1 %v17147_v35  ;;  %v17158_v35 = vld [vmem:[#allocation64_spill] sm:$0xff] }
 0x289   :  { %8581 = vmatprep.subr.bf16.mxu1 %v17148_v24  ;;  %v17159_v24 = vld [vmem:[#allocation23_spill] sm:$0xff] }
 0x28c   :  { %8583 = vmatpush1.bf16.msra.mxu1 %v17149_v16  ;;  %v17160_v16 = vld [vmem:[#allocation25_spill] sm:$0xff] }
 0x28d   :  { %8585 = vmatprep.subr.bf16.mxu1 %v17150_v48  ;;  %v17161_v48 = vld [vmem:[#allocation29_spill] sm:$0xff] }
 0x290   :  { %8587 = vmatpush1.bf16.msra.mxu1 %v17151_v44  ;;  %v17162_v44 = vld [vmem:[#allocation33_spill] sm:$0xff] }
 0x291   :  { %8589 = vmatprep.subr.bf16.mxu1 %v17152_v27  ;;  %v17163_v27 = vld [vmem:[#allocation34_spill] sm:$0xff] }
 0x294   :  { %8591 = vmatpush1.bf16.msra.mxu1 %v17153_v47  ;;  %v17164_v47 = vld [vmem:[#allocation35_spill] sm:$0xff] }
 0x295   :  { %8593 = vmatprep.subr.bf16.mxu1 %v17154_v42  ;;  %v17165_v42 = vld [vmem:[#allocation36_spill] sm:$0xff] }
 0x298   :  { %8595 = vmatpush1.bf16.msra.mxu1 %v17155_v33  ;;  %v17166_v33 = vld [vmem:[#allocation37_spill] sm:$0xff] }
 0x299   :  { %8597 = vmatprep.subr.bf16.mxu1 %v17156_v53  ;;  %v17167_v53 = vld [vmem:[#allocation38_spill] sm:$0xff] }
 0x29c   :  { %8599 = vmatpush1.bf16.msra.mxu1 %v17157_v25  ;;  %v17168_v25 = vld [vmem:[#allocation39_spill] sm:$0xff] }
 0x29d   :  { %8601 = vmatprep.subr.bf16.mxu1 %v17158_v35  ;;  %v17169_v35 = vld [vmem:[#allocation40_spill] sm:$0xff] }
 0x2a0   :  { %8603 = vmatpush1.bf16.msra.mxu1 %v17159_v24  ;;  %v17170_v24 = vld [vmem:[#allocation41_spill] sm:$0xff] }
 0x2a1   :  { %8605 = vmatprep.subr.bf16.mxu1 %v17160_v16  ;;  %v17171_v16 = vld [vmem:[#allocation42_spill] sm:$0xff] }
 0x2a4   :  { %8607 = vmatpush1.bf16.msra.mxu1 %v17161_v48  ;;  %v17172_v48 = vld [vmem:[#allocation43_spill] sm:$0xff] }
 0x2a5   :  { %8609 = vmatprep.subr.bf16.mxu1 %v17162_v44 }
 0x2a8   :  { %8611 = vmatpush1.bf16.msra.mxu1 %v17163_v27  ;;  %v17173_v27 = vand.u32 4294901760, %v17033_v63  ;;  %v17181_v63 = vand.u32 4294901760, %v17117_v34  ;;  %v17189_v34 = vand.u32 4294901760, %v17124_v60  ;;  %v17198_v60 = vld [vmem:[#allocation94_spill] sm:$0xff] }
 0x2a9   :  { %8613 = vmatprep.subr.bf16.mxu1 %v17164_v47  ;;  %v17174_v47 = vand.u32 4294901760, %v17034_v52  ;;  %v17183_v52 = vand.u32 4294901760, %v17119_v7 }
 0x2ab   :  { %v8632_v44 = vpack.c.bf16 %v17174_v47, %v17173_v27  ;;  %v17182_v27 = vand.u32 4294901760, %v17118_v4  ;;  %v17190_v4 = vld [vmem:[#allocation60_spill] sm:$0xff] }
 0x2ac   :  { %8615 = vmatpush1.bf16.msra.mxu1 %v17165_v42  ;;  %v17175_v42 = vld [vmem:[#allocation50_spill] sm:$0xff]  ;;  %v17191_v7 = vand.u32 4294901760, %v17190_v4  ;;  %v2375_v4 = vld [vmem:[#allocation5 + $0x28] sm:$0xff] }
 0x2ad   :  { %8617 = vmatprep.subr.bf16.mxu1 %v17166_v33  ;;  %v17176_v33 = vand.u32 4294901760, %v17048_v43  ;;  %v8640_v47 = vpack.c.bf16 %v17183_v52, %v17182_v27  ;;  %v17184_v43 = vand.u32 4294901760, %v17120_v19  ;;  %v17192_v19 = vand.u32 4294901760, %v17126_v14  ;;  %v2373_v27 = vld [vmem:[#allocation5 + $0x18] sm:$0xff]  ;;  %v2370_v52 = vld [vmem:[#allocation5] sm:$0xff] }
 0x2b0   :  { %8619 = vmatpush1.bf16.msra.mxu1 %v17167_v53  ;;  %v17177_v53 = vand.u32 4294901760, %v17111_v11 }
 0x2b1   :  { %8621 = vmatprep.subr.bf16.mxu1 %v17168_v25 }
 0x2b2   :  { %v8634_v25 = vpack.c.bf16 %v17177_v53, %v17176_v33  ;;  %v17185_v33 = vand.u32 4294901760, %v17121_v45  ;;  %v17193_v45 = vld [vmem:[#allocation62_spill] sm:$0xff] }
 0x2b3   :  { %v17194_v53 = vand.u32 4294901760, %v17193_v45  ;;  %v17203_v45 = vld [vmem:[#allocation27_spill] sm:$0xff] }
 0x2b4   :  { %8623 = vmatpush1.bf16.msra.mxu1 %v17169_v35  ;;  %v17178_v35 = vand.u32 4294901760, %v17112_v32  ;;  %v12333_v11 = vpack.c.bf16 %v17185_v33, %v17184_v43  ;;  %v17186_v32 = vand.u32 4294901760, %v17141_v21  ;;  %v17195_v21 = vand.u32 4294901760, %v17128_v3  ;;  %v17200_v33 = vld [vmem:[#allocation66_spill] sm:$0xff] }
 0x2b5   :  { %8625 = vmatprep.subr.bf16.mxu1 %v17170_v24  ;;  %v17179_v24 = vand.u32 4294901760, %v17113_v41  ;;  %v17188_v41 = vand.u32 4294901760, %v17123_v51  ;;  %v2371_v51 = vld [vmem:[#allocation5 + $0x8] sm:$0xff]  ;;  %v17199_v43 = vand.u32 4294901760, %v17130_v10  ;;  %v17201_v14 = vand.u32 4294901760, %v17200_v33  ;;  %v2376_v33 = vld [vmem:[#allocation5 + $0x30] sm:$0xff] }
 0x2b6   :  { %v2448_v3 = vand.u32 4294901760, %v2370_v52 }
 0x2b8   :  { %8627 = vmatpush1.bf16.msra.mxu1 %v17171_v16  ;;  %v8636_v16 = vpack.c.bf16 %v17179_v24, %v17178_v35  ;;  %v17187_v24 = vand.u32 4294901760, %v17122_v5  ;;  %v12353_v35 = vpack.c.bf16 %v17194_v53, %v17192_v19  ;;  %v17202_v19 = vand.u32 4294901760, %v17085_v0  ;;  %v2378_v0 = vld [vmem:[#allocation5 + $0x40] sm:$0xff] }
 0x2b9   :  { %8629 = vmatprep.subr.bf16.mxu1 %v17172_v48  ;;  %v17180_v48 = vand.u32 4294901760, %v17116_v61  ;;  %v17204_v53 = vand.u32 4294901760, %v17203_v45  ;;  %v12380_v1 = vsub.f32 %v2370_v52, %v2448_v3  ;;  %v2460_v52 = vand.u32 4294901760, %v2376_v33 }
 0x2ba   :  { %v12341_v61 = vpack.c.bf16 %v17188_v41, %v17187_v24  ;;  %v2446_v24 = vand.u32 4294901760, %v2371_v51  ;;  %v2450_v41 = vand.u32 4294901760, %v2373_v27 }
 0x2bb   :  { %v8638_v40 = vpack.c.bf16 %v17181_v63, %v17180_v48  ;;  %v17196_v48 = vld [vmem:[#allocation65_spill] sm:$0xff]  ;;  %17208 = vst [vmem:[#allocation75_spill] sm:$0xff] %v12380_v1  ;;  %v2382_v1 = vld [vmem:[#allocation5 + $0x60] sm:$0xff] }
 0x2bc   :  { %8631 = vmatpush1.bf16.msra.mxu1 %v17175_v42  ;;  %v17197_v5 = vand.u32 4294901760, %v17196_v48  ;;  %v2454_v48 = vand.u32 4294901760, %v2375_v4  ;;  %v12376_v42 = vsub.f32 %v2371_v51, %v2446_v24 }
 0x2bd   :  { %8633 = vmatprep.subr.bf16.mxu1 %v8632_v44  ;;  %v12347_v44 = vpack.c.bf16 %v17191_v7, %v17189_v34  ;;  %v2372_v34 = vld [vmem:[#allocation5 + $0x10] sm:$0xff]  ;;  %v2377_v7 = vld [vmem:[#allocation5 + $0x38] sm:$0xff] }
 0x2be   :  { %v12359_v63 = vpack.c.bf16 %v17197_v5, %v17195_v21  ;;  %v2452_v21 = vand.u32 4294901760, %v2372_v34  ;;  %v2458_v10 = vand.u32 4294901760, %v2377_v7  ;;  %v2374_v5 = vld [vmem:[#allocation5 + $0x20] sm:$0xff]  ;;  %17206 = vst [vmem:[#allocation70_spill] sm:$0xff] %v12376_v42  ;;  %v12388_v50 = vsub.f32 %v2375_v4, %v2454_v48  ;;  %v2384_v4 = vld [vmem:[#allocation5 + $0x70] sm:$0xff] }
 0x2bf   :  { %1960 = vmatmul.mubr.f32.vlgmr.msra.gmra.mrb[2].mxu1 %v17186_v32  ;;  %v12366_v32 = vpack.c.bf16 %v17201_v14, %v17199_v43  ;;  %v2379_v43 = vld [vmem:[#allocation5 + $0x48] sm:$0xff]  ;;  %v12374_v14 = vpack.c.bf16 %v2450_v41, %v2446_v24 }
 0x2c0   :  { %8635 = vmatpush1.bf16.msra.mxu1 %v8634_v25  ;;  %2223 = vmatprep.mubr.f32.mxu1 %v17198_v60  ;;  %v12372_v25 = vpack.c.bf16 %v17204_v53, %v17202_v19  ;;  %v12378_v60 = vsub.f32 %v2373_v27, %v2450_v41  ;;  %v12382_v45 = vpack.c.bf16 %v2452_v21, %v2448_v3  ;;  %v2456_v27 = vand.u32 4294901760, %v2374_v5  ;;  %v2385_v41 = vld [vmem:[#allocation5 + $0x78] sm:$0xff] }
 0x2c1   :  { %8637 = vmatprep.subr.bf16.mxu1 %v8636_v16  ;;  %17205 = vst [vmem:[#allocation67_spill] sm:$0xff] %v12374_v14  ;;  %v2381_v16 = vld [vmem:[#allocation5 + $0x58] sm:$0xff]  ;;  %v12384_v19 = vsub.f32 %v2372_v34, %v2452_v21  ;;  %v12386_v53 = vpack.c.bf16 %v2458_v10, %v2454_v48  ;;  %17212 = vst [vmem:[#allocation54_spill] sm:$0xff] %v12388_v50  ;;  %8761 = vmatprep.subr.bf16.mxu0 %v12374_v14  ;;  %v2462_v24 = vand.u32 4294901760, %v2379_v43  ;;  %v2387_v14 = vld [vmem:[#allocation5 + $0x88] sm:$0xff] }
 0x2c2   :  { %17207 = vst [vmem:[#allocation31_spill] sm:$0xff] %v12378_v60  ;;  %17209 = vst [vmem:[#allocation77_spill] sm:$0xff] %v12382_v45  ;;  %v12391_v51 = vsub.f32 %v2377_v7, %v2458_v10  ;;  %8763 = vmatpush1.bf16.msra.mxu0 %v12382_v45  ;;  %v2466_v3 = vand.u32 4294901760, %v2381_v16  ;;  %v2464_v34 = vand.u32 4294901760, %v2378_v0  ;;  %v2468_v21 = vand.u32 4294901760, %v2380_v57 }
 0x2c3   :  { %17210 = vst [vmem:[#allocation52_spill] sm:$0xff] %v12384_v19  ;;  %17211 = vst [vmem:[#allocation53_spill] sm:$0xff] %v12386_v53  ;;  %v2470_v19 = vand.u32 4294901760, %v2383_v49  ;;  %8765 = vmatprep.subr.bf16.mxu0 %v12386_v53  ;;  %v12397_v48 = vsub.f32 %v2374_v5, %v2456_v27  ;;  %v12399_v7 = vsub.f32 %v2376_v33, %v2460_v52  ;;  %v2388_v53 = vld [vmem:[#allocation5 + $0x90] sm:$0xff]  ;;  %v2474_v33 = vand.u32 4294901760, %v2385_v41 }
 0x2c4   :  { %8639 = vmatpush1.bf16.msra.mxu1 %v8638_v40  ;;  %17213 = vst [vmem:[#allocation96_spill] sm:$0xff] %v12391_v51  ;;  %v12395_v40 = vpack.c.bf16 %v2460_v52, %v2456_v27  ;;  %v12401_v10 = vsub.f32 %v2379_v43, %v2462_v24  ;;  %v12403_v51 = vld [vmem:[#allocation5 + $0x80] sm:$0xff]  ;;  %v12405_v45 = vpack.c.bf16 %v2466_v3, %v2462_v24  ;;  %v2472_v27 = vand.u32 4294901760, %v2382_v1 }
 0x2c5   :  { %8641 = vmatprep.subr.bf16.mxu1 %v8640_v47  ;;  %17215 = vst [vmem:[#allocation16_spill] sm:$0xff] %v12397_v48  ;;  %17216 = vst [vmem:[#allocation18_spill] sm:$0xff] %v12399_v7  ;;  %v2389_v47 = vld [vmem:[#allocation5 + $0x98] sm:$0xff]  ;;  %v12407_v50 = vsub.f32 %v2381_v16, %v2466_v3  ;;  %v12409_v60 = vpack.c.bf16 %v2468_v21, %v2464_v34  ;;  %v12411_v42 = vsub.f32 %v2378_v0, %v2464_v34  ;;  %v2391_v34 = vld [vmem:[#allocation5 + $0xa8] sm:$0xff] }
 0x2c6   :  { %17214 = vst [vmem:[#allocation15_spill] sm:$0xff] %v12395_v40  ;;  %17217 = vst [vmem:[#allocation55_spill] sm:$0xff] %v12401_v10  ;;  %v12414_v5 = vsub.f32 %v2380_v57, %v2468_v21  ;;  %v12416_v43 = vsub.f32 %v2383_v49, %v2470_v19  ;;  %8767 = vmatpush1.bf16.msra.mxu0 %v12395_v40  ;;  %v2476_v52 = vand.u32 4294901760, %v2384_v4  ;;  %v2478_v16 = vand.u32 4294901760, %v2387_v14  ;;  %v2393_v21 = vld [vmem:[#allocation5 + $0xb8] sm:$0xff] }
 0x2c7   :  { %17218 = vst [vmem:[#allocation56_spill] sm:$0xff] %v12405_v45  ;;  %17219 = vst [vmem:[#allocation57_spill] sm:$0xff] %v12407_v50  ;;  %v2482_v24 = vand.u32 4294901760, %v2389_v47  ;;  %v2480_v3 = vand.u32 4294901760, %v12403_v51  ;;  %8769 = vmatprep.subr.bf16.mxu0 %v12405_v45  ;;  %v12422_v0 = vpack.c.bf16 %v2474_v33, %v2470_v19  ;;  %v12426_v57 = vsub.f32 %v2382_v1, %v2472_v27  ;;  %v17232_v10 = vld [vmem:[#allocation30_spill] sm:$0xff] }
 0x2c8   :  { %17220 = vst [vmem:[#allocation58_spill] sm:$0xff] %v12409_v60  ;;  %17221 = vst [vmem:[#allocation20_spill] sm:$0xff] %v12411_v42  ;;  %8643 = vmatpush1.bf16.msra.mxu1 %v12333_v11  ;;  %v12424_v11 = vsub.f32 %v2385_v41, %v2474_v33  ;;  %v2484_v49 = vand.u32 4294901760, %v2388_v53  ;;  %v17231_v50 = vand.u32 4294901760, %v17133_v23  ;;  %v17233_v7 = vand.u32 4294901760, %v17232_v10  ;;  %v2390_v1 = vld [vmem:[#allocation5 + $0xa0] sm:$0xff] }
 0x2c9   :  { %17222 = vst [vmem:[#allocation22_spill] sm:$0xff] %v12414_v5  ;;  %17223 = vst [vmem:[#allocation24_spill] sm:$0xff] %v12416_v43  ;;  %8645 = vmatprep.subr.bf16.mxu1 %v12341_v61  ;;  %v17227_v43 = vld [vmem:[#allocation28_spill] sm:$0xff]  ;;  %v12440_v19 = vsub.f32 %v2384_v4, %v2476_v52  ;;  %v12442_v41 = vsub.f32 %v2387_v14, %v2478_v16  ;;  %v12453_v23 = vsub.f32 %v2389_v47, %v2482_v24  ;;  %v2397_v14 = vld [vmem:[#allocation5 + $0xd8] sm:$0xff] }
 0x2ca   :  { %17224 = vst [vmem:[#allocation63_spill] sm:$0xff] %v12422_v0  ;;  %17225 = vst [vmem:[#allocation26_spill] sm:$0xff] %v12424_v11  ;;  %v17228_v61 = vand.u32 4294901760, %v17227_v43  ;;  %v17229_v5 = vld [vmem:[#allocation68_spill] sm:$0xff]  ;;  %v12438_v45 = vpack.c.bf16 %v17233_v7, %v17231_v50  ;;  %v12456_v50 = vsub.f32 %v12403_v51, %v2480_v3  ;;  %v12458_v4 = vsub.f32 %v2388_v53, %v2484_v49  ;;  %v12460_v7 = vld [vmem:[#allocation5 + $0xc0] sm:$0xff] }
 0x2cb   :  { %17226 = vst [vmem:[#allocation69_spill] sm:$0xff] %v12426_v57  ;;  %v17230_v40 = vand.u32 4294901760, %v17229_v5  ;;  %17234 = vst [vmem:[#allocation71_spill] sm:$0xff] %v12440_v19  ;;  %v2392_v33 = vld [vmem:[#allocation5 + $0xb0] sm:$0xff]  ;;  %v12444_v57 = vld [vmem:[#allocation5 + $0xc8] sm:$0xff]  ;;  %v17236_v5 = vand.u32 4294901760, %v17092_v18  ;;  %8771 = vmatpush1.bf16.msra.mxu0 %v12409_v60  ;;  %v12475_v53 = vpack.c.bf16 %v2482_v24, %v2478_v16 }
 0x2cc   :  { %17235 = vst [vmem:[#allocation73_spill] sm:$0xff] %v12442_v41  ;;  %8647 = vmatpush1.bf16.msra.mxu1 %v12347_v44  ;;  %17238 = vst [vmem:[#allocation74_spill] sm:$0xff] %v12453_v23  ;;  %v17241_v44 = vand.u32 4294901760, %v17134_v12  ;;  %v17242_v18 = vand.u32 4294901760, %v17135_v62  ;;  %v2486_v47 = vand.u32 4294901760, %v2391_v34  ;;  %v2490_v51 = vand.u32 4294901760, %v2393_v21  ;;  %8773 = vmatprep.subr.bf16.mxu0 %v12422_v0 }
 0x2cd   :  { %v12432_v42 = vpack.c.bf16 %v17230_v40, %v17228_v61  ;;  %v17237_v40 = vand.u32 4294901760, %v17093_v31  ;;  %17239 = vst [vmem:[#allocation78_spill] sm:$0xff] %v12456_v50  ;;  %17240 = vst [vmem:[#allocation79_spill] sm:$0xff] %v12458_v4  ;;  %8649 = vmatprep.subr.bf16.mxu1 %v12353_v35  ;;  %v12470_v31 = vpack.c.bf16 %v2476_v52, %v2472_v27  ;;  %v12472_v61 = vld [vmem:[#allocation5 + $0xd0] sm:$0xff]  ;;  %v2492_v35 = vand.u32 4294901760, %v2392_v33  ;;  %v12487_v60 = vld [vmem:[#allocation5 + $0xe0] sm:$0xff] }
 0x2ce   :  { %v12467_v10 = vpack.c.bf16 %v17242_v18, %v17241_v44  ;;  %17244 = vst [vmem:[#allocation95_spill] sm:$0xff] %v12475_v53  ;;  %v2494_v12 = vand.u32 4294901760, %v12444_v57  ;;  %v12480_v62 = vsub.f32 %v2391_v34, %v2486_v47  ;;  %v12482_v44 = vsub.f32 %v2393_v21, %v2490_v51  ;;  %v12485_v18 = vld [vmem:[#allocation5 + $0xf8] sm:$0xff]  ;;  %v12498_v21 = vld [vmem:[#allocation5 + $0xf0] sm:$0xff] }
 0x2cf   :  { %v12451_v43 = vpack.c.bf16 %v17237_v40, %v17236_v5  ;;  %17243 = vst [vmem:[#allocation81_spill] sm:$0xff] %v12470_v31  ;;  %v2488_v5 = vand.u32 4294901760, %v2390_v1  ;;  %v12478_v40 = vld [vmem:[#allocation5 + $0xe8] sm:$0xff]  ;;  %v2498_v27 = vand.u32 4294901760, %v2397_v14  ;;  %v2496_v52 = vand.u32 4294901760, %v12460_v7  ;;  %8775 = vmatpush1.bf16.msra.mxu0 %v12470_v31 }
 0x2d0   :  { %17245 = vst [vmem:[#allocation60_spill] sm:$0xff] %v12480_v62  ;;  %17246 = vst [vmem:[#allocation62_spill] sm:$0xff] %v12482_v44  ;;  %8651 = vmatpush1.bf16.msra.mxu1 %v12359_v63  ;;  %v12492_v24 = vsub.f32 %v2392_v33, %v2492_v35  ;;  %v12495_v0 = vsub.f32 %v12444_v57, %v2494_v12  ;;  %v2500_v34 = vand.u32 4294901760, %v12472_v61  ;;  %v12500_v44 = vld [vmem:[#allocation5 + $0x108] sm:$0xff]  ;;  %v2502_v57 = vand.u32 4294901760, %v12478_v40  ;;  %v12512_v33 = vld [vmem:[#allocation5 + $0x118] sm:$0xff] }
 0x2d1   :  { %v12490_v16 = vsub.f32 %v2390_v1, %v2488_v5  ;;  %8653 = vmatprep.subr.bf16.mxu1 %v12366_v32  ;;  %v12504_v62 = vpack.c.bf16 %v2484_v49, %v2480_v3  ;;  %v12506_v63 = vsub.f32 %v2397_v14, %v2498_v27  ;;  %v12509_v1 = vsub.f32 %v12460_v7, %v2496_v52  ;;  %v12524_v14 = vld [vmem:[#allocation5 + $0x110] sm:$0xff] }
 0x2d2   :  { %17248 = vst [vmem:[#allocation66_spill] sm:$0xff] %v12492_v24  ;;  %17249 = vst [vmem:[#allocation27_spill] sm:$0xff] %v12495_v0  ;;  %v12514_v0 = vld [vmem:[#allocation5 + $0x100] sm:$0xff]  ;;  %8777 = vmatprep.subr.bf16.mxu0 %v12475_v53  ;;  %v12517_v24 = vpack.c.bf16 %v2490_v51, %v2486_v47  ;;  %v12520_v32 = vsub.f32 %v12472_v61, %v2500_v34  ;;  %v2506_v3 = vand.u32 4294901760, %v12485_v18  ;;  %v16072_v49 = vand.u32 4294901760, %v12487_v60  ;;  %v12533_v47 = vld [vmem:[#allocation5 + $0x128] sm:$0xff] }
 0x2d3   :  { %17247 = vst [vmem:[#allocation65_spill] sm:$0xff] %v12490_v16  ;;  %17250 = vst [vmem:[#allocation28_spill] sm:$0xff] %v12504_v62  ;;  %v12526_v7 = vpack.c.bf16 %v2492_v35, %v2488_v5  ;;  %v12529_v31 = vsub.f32 %v12478_v40, %v2502_v57  ;;  %v12535_v51 = vld [vmem:[#allocation5 + $0x138] sm:$0xff]  ;;  %v2514_v35 = vand.u32 4294901760, %v12512_v33  ;;  %v12550_v53 = vld [vmem:[#allocation5 + $0x130] sm:$0xff]  ;;  %8779 = vmatpush1.bf16.msra.mxu0 %v12504_v62  ;;  %v2516_v40 = vand.u32 4294901760, %v12524_v14 }
 0x2d4   :  { %17251 = vst [vmem:[#allocation68_spill] sm:$0xff] %v12506_v63  ;;  %17252 = vst [vmem:[#allocation30_spill] sm:$0xff] %v12509_v1  ;;  %v2508_v1 = vand.u32 4294901760, %v12498_v21  ;;  %8655 = vmatpush1.bf16.msra.mxu1 %v12372_v25  ;;  %v12539_v61 = vsub.f32 %v12485_v18, %v2506_v3  ;;  %v12544_v5 = vsub.f32 %v12487_v60, %v16072_v49  ;;  %v17261_v49 = vand.u32 4294901760, %v12500_v44  ;;  %v2410_v63 = vld [vmem:[#allocation5 + $0x140] sm:$0xff] }
 0x2d5   :  { %17253 = vst [vmem:[#allocation97_spill] sm:$0xff] %v12517_v24  ;;  %17254 = vst [vmem:[#allocation98_spill] sm:$0xff] %v12520_v32  ;;  %8657 = vmatprep.subr.bf16.mxu1 %v12432_v42  ;;  %v12554_v25 = vpack.c.bf16 %v2498_v27, %v2494_v12  ;;  %8781 = vmatprep.subr.bf16.mxu0 %v12517_v24  ;;  %v12569_v42 = vsub.f32 %v12512_v33, %v2514_v35  ;;  %v17264_v12 = vand.u32 4294901760, %v12514_v0 }
 0x2d6   :  { %17255 = vst [vmem:[#allocation99_spill] sm:$0xff] %v12526_v7  ;;  %17256 = vst [vmem:[#allocation100_spill] sm:$0xff] %v12529_v31  ;;  %v12548_v31 = vld [vmem:[#allocation5 + $0x120] sm:$0xff]  ;;  %v12557_v18 = vsub.f32 %v12498_v21, %v2508_v1  ;;  %v2518_v21 = vand.u32 4294901760, %v12533_v47  ;;  %v2522_v62 = vand.u32 4294901760, %v12535_v51  ;;  %v12583_v24 = vsub.f32 %v12524_v14, %v2516_v40  ;;  %v2417_v14 = vld [vmem:[#allocation5 + $0x178] sm:$0xff] }
 0x2d7   :  { %17257 = vst [vmem:[#allocation101_spill] sm:$0xff] %v12539_v61  ;;  %17258 = vst [vmem:[#allocation102_spill] sm:$0xff] %v12544_v5  ;;  %v12562_v5 = vsub.f32 %v12500_v44, %v17261_v49  ;;  %v12565_v61 = vld [vmem:[#allocation5 + $0x148] sm:$0xff]  ;;  %v12574_v27 = vsub.f32 %v12514_v0, %v17264_v12  ;;  %v2413_v49 = vld [vmem:[#allocation5 + $0x158] sm:$0xff]  ;;  %v2520_v33 = vand.u32 4294901760, %v12548_v31  ;;  %v12588_v16 = vpack.c.bf16 %v2500_v34, %v2496_v52 }
 0x2d8   :  { %17259 = vst [vmem:[#allocation103_spill] sm:$0xff] %v12554_v25  ;;  %17260 = vst [vmem:[#allocation104_spill] sm:$0xff] %v12557_v18  ;;  %v17267_v18 = vand.u32 4294901760, %v17097_v39  ;;  %v2412_v12 = vld [vmem:[#allocation5 + $0x150] sm:$0xff]  ;;  %8659 = vmatpush1.bf16.msra.mxu1 %v12438_v45  ;;  %v12591_v4 = vsub.f32 %v12533_v47, %v2518_v21  ;;  %v12594_v39 = vsub.f32 %v12535_v51, %v2522_v62  ;;  %8783 = vmatpush1.bf16.msra.mxu0 %v12526_v7 }
 0x2d9   :  { %17262 = vst [vmem:[#allocation105_spill] sm:$0xff] %v12562_v5  ;;  %17263 = vst [vmem:[#allocation106_spill] sm:$0xff] %v12569_v42  ;;  %v17266_v5 = vand.u32 4294901760, %v17136_v22  ;;  %v2524_v42 = vand.u32 4294901760, %v12550_v53  ;;  %v2526_v22 = vand.u32 4294901760, %v12565_v61  ;;  %8661 = vmatprep.subr.bf16.mxu1 %v12451_v43  ;;  %v12602_v45 = vsub.f32 %v12548_v31, %v2520_v33  ;;  %8785 = vmatprep.subr.bf16.mxu0 %v12554_v25  ;;  %v2416_v43 = vld [vmem:[#allocation5 + $0x170] sm:$0xff] }
 0x2da   :  { %17265 = vst [vmem:[#allocation107_spill] sm:$0xff] %v12574_v27  ;;  %17268 = vst [vmem:[#allocation108_spill] sm:$0xff] %v12583_v24  ;;  %v2415_v27 = vld [vmem:[#allocation5 + $0x168] sm:$0xff]  ;;  %v2530_v34 = vand.u32 4294901760, %v2413_v49  ;;  %v2528_v51 = vand.u32 4294901760, %v2410_v63  ;;  %v17276_v7 = vand.u32 4294901760, %v17100_v2 }
 0x2db   :  { %v8664_v32 = vpack.c.bf16 %v17267_v18, %v17266_v5  ;;  %17269 = vst [vmem:[#allocation109_spill] sm:$0xff] %v12588_v16  ;;  %17270 = vst [vmem:[#allocation110_spill] sm:$0xff] %v12591_v4  ;;  %v2414_v5 = vld [vmem:[#allocation5 + $0x160] sm:$0xff]  ;;  %v12599_v18 = vpack.c.bf16 %v2506_v3, %v2502_v57  ;;  %v12605_v52 = vsub.f32 %v12550_v53, %v2524_v42  ;;  %v2534_v4 = vand.u32 4294901760, %v2415_v27 }
 0x2dc   :  { %17271 = vst [vmem:[#allocation111_spill] sm:$0xff] %v12594_v39  ;;  %17273 = vst [vmem:[#allocation113_spill] sm:$0xff] %v12602_v45  ;;  %v12609_v47 = vsub.f32 %v12565_v61, %v2526_v22  ;;  %v2532_v39 = vand.u32 4294901760, %v2412_v12  ;;  %v17277_v57 = vand.u32 4294901760, %v17137_v29  ;;  %v12615_v31 = vsub.f32 %v2413_v49, %v2530_v34  ;;  %8663 = vmatpush1.bf16.msra.mxu1 %v12467_v10 }
 0x2dd   :  { %17272 = vst [vmem:[#allocation112_spill] sm:$0xff] %v12599_v18  ;;  %17274 = vst [vmem:[#allocation114_spill] sm:$0xff] %v12605_v52  ;;  %v2538_v45 = vand.u32 4294901760, %v2417_v14  ;;  %v2536_v53 = vand.u32 4294901760, %v2414_v5  ;;  %v17278_v25 = vand.u32 4294901760, %v17138_v36  ;;  %v17279_v61 = vand.u32 4294901760, %v17139_v8  ;;  %8665 = vmatprep.subr.bf16.mxu1 %v8664_v32  ;;  %8787 = vmatpush1.bf16.msra.mxu0 %v12588_v16 }
 0x2de   :  { %17275 = vst [vmem:[#allocation115_spill] sm:$0xff] %v12609_v47  ;;  %v8666_v3 = vpack.c.bf16 %v17277_v57, %v17276_v7  ;;  %v12622_v52 = vsub.f32 %v2410_v63, %v2528_v51  ;;  %v12624_v24 = vsub.f32 %v2412_v12, %v2532_v39  ;;  %v12626_v50 = vsub.f32 %v2415_v27, %v2534_v4  ;;  %v17313_v57 = vld [vmem:[#allocation46_spill] sm:$0xff] }
 0x2df   :  { %v8668_v47 = vpack.c.bf16 %v17279_v61, %v17278_v25  ;;  %v17280_v2 = vand.u32 4294901760, %v12487_v60  ;;  %v12633_v7 = vsub.f32 %v2417_v14, %v2538_v45  ;;  %v2540_v10 = vand.u32 4294901760, %v2416_v43  ;;  %8789 = vmatprep.subr.bf16.mxu0 %v12599_v18  ;;  %v17317_v61 = vld [vmem:[#allocation48_spill] sm:$0xff]  ;;  %v17398_v18 = vld [vmem:[#allocation69_spill] sm:$0xff] }
 0x2e0   :  { %v12635_v36 = vsub.f32 %v2414_v5, %v2536_v53  ;;  %v17282_v8 = vand.u32 4294901760, %v12500_v44  ;;  %8667 = vmatpush1.bf16.msra.mxu1 %v8666_v3  ;;  %v17284_v32 = vand.u32 4294901760, %v11621_v28  ;;  %v17285_v60 = vand.u32 4294901760, %v11628_v6 }
 0x2e1   :  { %v12631_v29 = vpack.c.bf16 %v2508_v1, %v17280_v2  ;;  %v12642_v25 = vsub.f32 %v2416_v43, %v2540_v10  ;;  %8669 = vmatprep.subr.bf16.mxu1 %v8668_v47  ;;  %v17286_v27 = vand.u32 4294901760, %v11633_v37  ;;  %v17287_v49 = vand.u32 4294901760, %v11640_v55 }
 0x2e2   :  { %v12640_v63 = vpack.c.bf16 %v2514_v35, %v17282_v8  ;;  %v8670_v1 = vpack.c.bf16 %v17285_v60, %v17284_v32  ;;  %v17288_v44 = vand.u32 4294901760, %v12514_v0  ;;  %v12658_v14 = vpack.c.bf16 %v2522_v62, %v2518_v21  ;;  %v17319_v8 = vld [vmem:[#allocation32_spill] sm:$0xff]  ;;  %v17321_v32 = vld [vmem:[#allocation49_spill] sm:$0xff] }
 0x2e3   :  { %17281 = vst [vmem:[#allocation116_spill] sm:$0xff] %v12631_v29  ;;  %v8672_v12 = vpack.c.bf16 %v17287_v49, %v17286_v27  ;;  %8791 = vmatpush1.bf16.msra.mxu0 %v12631_v29  ;;  %v17291_v28 = vand.u32 4294901760, %v11655_v20  ;;  %v17292_v6 = vand.u32 4294901760, %v11660_v54  ;;  %v17293_v37 = vand.u32 4294901760, %v11673_v59  ;;  %v17323_v27 = vld [vmem:[#allocation90_spill] sm:$0xff] }
 0x2e4   :  { %17283 = vst [vmem:[#allocation117_spill] sm:$0xff] %v12640_v63  ;;  %v12655_v35 = vpack.c.bf16 %v2516_v40, %v17288_v44  ;;  %8793 = vmatprep.subr.bf16.mxu0 %v12640_v63  ;;  %17290 = vst [vmem:[#allocation119_spill] sm:$0xff] %v12658_v14  ;;  %8671 = vmatpush1.bf16.msra.mxu1 %v8670_v1  ;;  %v17294_v55 = vand.u32 4294901760, %v11678_v38  ;;  %v12669_v0 = vpack.c.bf16 %v2524_v42, %v2520_v33 }
 0x2e5   :  { %v8674_v5 = vpack.c.bf16 %v17292_v6, %v17291_v28  ;;  %8673 = vmatprep.subr.bf16.mxu1 %v8672_v12  ;;  %v12672_v62 = vpack.c.bf16 %v2530_v34, %v2526_v22  ;;  %v17297_v20 = vand.u32 4294901760, %v11859_v58  ;;  %v17298_v54 = vand.u32 4294901760, %v11861_v26  ;;  %v17325_v12 = vld [vmem:[#allocation91_spill] sm:$0xff]  ;;  %v17327_v6 = vld [vmem:[#allocation72_spill] sm:$0xff] }
 0x2e6   :  { %17289 = vst [vmem:[#allocation118_spill] sm:$0xff] %v12655_v35  ;;  %v8676_v47 = vpack.c.bf16 %v17294_v55, %v17293_v37  ;;  %17295 = vst [vmem:[#allocation120_spill] sm:$0xff] %v12669_v0  ;;  %v17299_v59 = vand.u32 4294901760, %v11896_v46  ;;  %v17300_v38 = vand.u32 4294901760, %v11898_v13  ;;  %v12683_v42 = vpack.c.bf16 %v2532_v39, %v2528_v51  ;;  %v17329_v37 = vld [vmem:[#allocation76_spill] sm:$0xff]  ;;  %v17330_v55 = vld [vmem:[#allocation94_spill] sm:$0xff] }
 0x2e7   :  { %8795 = vmatpush1.bf16.msra.mxu0 %v12655_v35  ;;  %17296 = vst [vmem:[#allocation121_spill] sm:$0xff] %v12672_v62  ;;  %v8678_v40 = vpack.c.bf16 %v17298_v54, %v17297_v20  ;;  %v12686_v33 = vpack.c.bf16 %v2538_v45, %v2534_v4  ;;  %v17303_v58 = vand.u32 4294901760, %v11900_v56  ;;  %v17304_v26 = vand.u32 4294901760, %v11902_v30  ;;  %v17309_v45 = vld [vmem:[#allocation44_spill] sm:$0xff]  ;;  %v17311_v30 = vld [vmem:[#allocation45_spill] sm:$0xff]  ;;  %v17332_v20 = vld [vmem:[#allocation82_spill] sm:$0xff] }
 0x2e8   :  { %8797 = vmatprep.subr.bf16.mxu0 %v12658_v14  ;;  %8675 = vmatpush1.bf16.msra.mxu1 %v8674_v5  ;;  %v8680_v21 = vpack.c.bf16 %v17300_v38, %v17299_v59  ;;  %17301 = vst [vmem:[#allocation122_spill] sm:$0xff] %v12683_v42  ;;  %v17305_v46 = vand.u32 4294901760, %v11904_v15  ;;  %v17306_v13 = vand.u32 4294901760, %v11906_v17  ;;  %v12697_v39 = vpack.c.bf16 %v2540_v10, %v2536_v53  ;;  %v17315_v17 = vld [vmem:[#allocation47_spill] sm:$0xff]  ;;  %v17335_v59 = vld [vmem:[#allocation85_spill] sm:$0xff]  ;;  %v17336_v38 = vld [vmem:[#allocation86_spill] sm:$0xff] }
 0x2e9   :  { %8677 = vmatprep.subr.bf16.mxu1 %v8676_v47  ;;  %17302 = vst [vmem:[#allocation123_spill] sm:$0xff] %v12686_v33  ;;  %v8682_v22 = vpack.c.bf16 %v17304_v26, %v17303_v58  ;;  %v17308_v4 = vand.u32 4294901760, %v11908_v9  ;;  %v17310_v56 = vand.u32 4294901760, %v17309_v45  ;;  %v17312_v43 = vand.u32 4294901760, %v17311_v30  ;;  %v17328_v5 = vld [vmem:[#allocation51_spill] sm:$0xff]  ;;  %v17331_v47 = vld [vmem:[#allocation80_spill] sm:$0xff] }
 0x2ea   :  { %v8684_v34 = vpack.c.bf16 %v17306_v13, %v17305_v46  ;;  %17307 = vst [vmem:[#allocation124_spill] sm:$0xff] %v12697_v39  ;;  %v17314_v15 = vand.u32 4294901760, %v17313_v57  ;;  %v17316_v53 = vand.u32 4294901760, %v17315_v17  ;;  %v17318_v2 = vand.u32 4294901760, %v17317_v61  ;;  %v17333_v54 = vld [vmem:[#allocation83_spill] sm:$0xff]  ;;  %v17338_v58 = vld [vmem:[#allocation88_spill] sm:$0xff] }
 0x2eb   :  { %8799 = vmatpush1.bf16.msra.mxu0 %v12669_v0  ;;  %v8686_v51 = vpack.c.bf16 %v17310_v56, %v17308_v4  ;;  %v17320_v9 = vand.u32 4294901760, %v17319_v8  ;;  %v17322_v60 = vand.u32 4294901760, %v17321_v32  ;;  %v17324_v49 = vand.u32 4294901760, %v17323_v27  ;;  %v17339_v26 = vld [vmem:[#allocation89_spill] sm:$0xff]  ;;  %v17341_v46 = vld [vmem:[#allocation59_spill] sm:$0xff]  ;;  %v17345_v45 = vld [vmem:[#allocation64_spill] sm:$0xff] }
 0x2ec   :  { %8801 = vmatprep.subr.bf16.mxu0 %v12672_v62  ;;  %8679 = vmatpush1.bf16.msra.mxu1 %v8678_v40  ;;  %v8688_v3 = vpack.c.bf16 %v17314_v15, %v17312_v43  ;;  %v8690_v10 = vpack.c.bf16 %v17318_v2, %v17316_v53  ;;  %v17326_v44 = vand.u32 4294901760, %v17325_v12  ;;  %v17334_v40 = vld [vmem:[#allocation84_spill] sm:$0xff]  ;;  %v17342_v13 = vld [vmem:[#allocation19_spill] sm:$0xff]  ;;  %v17344_v4 = vld [vmem:[#allocation21_spill] sm:$0xff] }
 0x2ed   :  { %8681 = vmatprep.subr.bf16.mxu1 %v8680_v21  ;;  %v8692_v1 = vpack.c.bf16 %v17322_v60, %v17320_v9  ;;  %v17337_v21 = vld [vmem:[#allocation87_spill] sm:$0xff]  ;;  %v17348_v30 = vld [vmem:[#allocation29_spill] sm:$0xff]  ;;  %v17350_v57 = vld [vmem:[#allocation34_spill] sm:$0xff] }
 0x2ee   :  { %v8694_v28 = vpack.c.bf16 %v17326_v44, %v17324_v49  ;;  %v17346_v56 = vld [vmem:[#allocation23_spill] sm:$0xff]  ;;  %v17349_v43 = vld [vmem:[#allocation33_spill] sm:$0xff]  ;;  %v17354_v53 = vld [vmem:[#allocation38_spill] sm:$0xff] }
 0x2ef   :  { %8803 = vmatpush1.bf16.msra.mxu0 %v12683_v42  ;;  %v17351_v15 = vld [vmem:[#allocation35_spill] sm:$0xff]  ;;  %v17353_v17 = vld [vmem:[#allocation37_spill] sm:$0xff]  ;;  %v17356_v2 = vld [vmem:[#allocation40_spill] sm:$0xff] }
 0x2f0   :  { %8805 = vmatprep.subr.bf16.mxu0 %v12686_v33  ;;  %8683 = vmatpush1.bf16.msra.mxu1 %v8682_v22  ;;  %v17340_v22 = vld [vmem:[#allocation17_spill] sm:$0xff]  ;;  %v17355_v61 = vld [vmem:[#allocation39_spill] sm:$0xff]  ;;  %v17358_v8 = vld [vmem:[#allocation42_spill] sm:$0xff] }
 0x2f1   :  { %8685 = vmatprep.subr.bf16.mxu1 %v8684_v34  ;;  %v17343_v34 = vld [vmem:[#allocation61_spill] sm:$0xff]  ;;  %v17359_v9 = vld [vmem:[#allocation43_spill] sm:$0xff]  ;;  %v17360_v32 = vld [vmem:[#allocation50_spill] sm:$0xff] }
 0x2f2   :  { %v2419_v60 = vld [vmem:[#allocation5 + $0x188] sm:$0xff]  ;;  %v2418_v12 = vld [vmem:[#allocation5 + $0x180] sm:$0xff]  ;;  %v2420_v44 = vld [vmem:[#allocation5 + $0x190] sm:$0xff] }
 0x2f3   :  { %8807 = vmatpush1.bf16.msra.mxu0 %v12697_v39  ;;  %v2542_v27 = vand.u32 4294901760, %v2419_v60 }
 0x2f4   :  { %8687 = vmatpush1.bf16.msra.mxu1 %v8686_v51  ;;  %v17347_v51 = vld [vmem:[#allocation25_spill] sm:$0xff] }
 0x2f5   :  { %8689 = vmatprep.subr.bf16.mxu1 %v8688_v3  ;;  %v17352_v3 = vld [vmem:[#allocation36_spill] sm:$0xff] }
 0x2f8   :  { %8691 = vmatpush1.bf16.msra.mxu1 %v8690_v10  ;;  %v17357_v10 = vld [vmem:[#allocation41_spill] sm:$0xff] }
 0x2f9   :  { %8693 = vmatprep.subr.bf16.mxu1 %v8692_v1  ;;  %v2421_v1 = vld [vmem:[#allocation5 + $0x198] sm:$0xff] }
 0x2fa   :  { %v2546_v49 = vand.u32 4294901760, %v2421_v1 }
 0x2fc   :  { %8695 = vmatpush1.bf16.msra.mxu1 %v8694_v28  ;;  %v2544_v28 = vand.u32 4294901760, %v2418_v12  ;;  %v12786_v39 = vsub.f32 %v2421_v1, %v2546_v49 }
 0x2fd   :  { %8697 = vmatprep.subr.bf16.mxu1 %v17327_v6  ;;  %v2548_v6 = vand.u32 4294901760, %v2420_v44 }
 0x2fe   :  { %v12788_v33 = vsub.f32 %v2418_v12, %v2544_v28 }
 0x2ff   :  { %2225 = vmatmul.mubr.f32.vlgmr.msra.gmra.mrb[2].mxu1 %v17328_v5  ;;  %v12790_v42 = vsub.f32 %v2420_v44, %v2548_v6 }
 0x300   :  { %8699 = vmatpush1.bf16.msra.mxu1 %v17329_v37  ;;  %2360 = vmatprep.mubr.f32.mxu1 %v17330_v55  ;;  %v12756_v37 = vpack.c.bf16 %v2546_v49, %v2542_v27  ;;  %v12758_v55 = vpack.c.bf16 %v2548_v6, %v2544_v28 }
 0x301   :  { %8701 = vmatprep.subr.bf16.mxu1 %v17331_v47  ;;  %v2423_v47 = vld [vmem:[#allocation5 + $0x1a8] sm:$0xff] }
 0x302   :  { %17361 = vst [vmem:[#allocation44_spill] sm:$0xff] %v12756_v37  ;;  %17362 = vst [vmem:[#allocation45_spill] sm:$0xff] %v12758_v55  ;;  %8809 = vmatprep.subr.bf16.mxu0 %v12756_v37  ;;  %v12784_v37 = vsub.f32 %v2419_v60, %v2542_v27 }
 0x303   :  { %8811 = vmatpush1.bf16.msra.mxu0 %v12758_v55 }
 0x304   :  { %8703 = vmatpush1.bf16.msra.mxu1 %v17332_v20  ;;  %v2425_v20 = vld [vmem:[#allocation5 + $0x1b8] sm:$0xff] }
 0x305   :  { %8705 = vmatprep.subr.bf16.mxu1 %v17333_v54  ;;  %v2550_v54 = vand.u32 4294901760, %v2423_v47 }
 0x308   :  { %8707 = vmatpush1.bf16.msra.mxu1 %v17334_v40  ;;  %v2554_v40 = vand.u32 4294901760, %v2425_v20 }
 0x309   :  { %8709 = vmatprep.subr.bf16.mxu1 %v17335_v59  ;;  %v2422_v59 = vld [vmem:[#allocation5 + $0x1a0] sm:$0xff] }
 0x30a   :  { %v12794_v62 = vsub.f32 %v2425_v20, %v2554_v40 }
 0x30c   :  { %8711 = vmatpush1.bf16.msra.mxu1 %v17336_v38  ;;  %v2552_v38 = vand.u32 4294901760, %v2422_v59 }
 0x30d   :  { %8713 = vmatprep.subr.bf16.mxu1 %v17337_v21 }
 0x30e   :  { %v12796_v0 = vsub.f32 %v2422_v59, %v2552_v38  ;;  %v17380_v59 = vld [vmem:[#allocation92_spill] sm:$0xff] }
 0x310   :  { %8715 = vmatpush1.bf16.msra.mxu1 %v17338_v58  ;;  %v12762_v58 = vpack.c.bf16 %v2554_v40, %v2550_v54  ;;  %v1072_v40 = vld [vmem:[%s15728_s4] sm:$0x3] }
 0x311   :  { %8717 = vmatprep.subr.bf16.mxu1 %v17339_v26 }
 0x312   :  { %17363 = vst [vmem:[#allocation46_spill] sm:$0xff] %v12762_v58  ;;  %8813 = vmatprep.subr.bf16.mxu0 %v12762_v58 }
 0x314   :  { %8719 = vmatpush1.bf16.msra.mxu1 %v17340_v22  ;;  %v2427_v22 = vld [vmem:[#allocation5 + $0x1c8] sm:$0xff] }
 0x315   :  { %8721 = vmatprep.subr.bf16.mxu1 %v17341_v46  ;;  %v2429_v46 = vld [vmem:[#allocation5 + $0x1d8] sm:$0xff] }
 0x318   :  { %8723 = vmatpush1.bf16.msra.mxu1 %v17342_v13  ;;  %v2558_v13 = vand.u32 4294901760, %v2427_v22 }
 0x319   :  { %8725 = vmatprep.subr.bf16.mxu1 %v17343_v34  ;;  %v2562_v34 = vand.u32 4294901760, %v2429_v46 }
 0x31b   :  { %v12803_v60 = vsub.f32 %v2429_v46, %v2562_v34 }
 0x31c   :  { %8727 = vmatpush1.bf16.msra.mxu1 %v17344_v4  ;;  %v2426_v4 = vld [vmem:[#allocation5 + $0x1c0] sm:$0xff] }
 0x31d   :  { %8729 = vmatprep.subr.bf16.mxu1 %v17345_v45  ;;  %v2428_v45 = vld [vmem:[#allocation5 + $0x1d0] sm:$0xff]  ;;  %17372 = vst [vmem:[#allocation72_spill] sm:$0xff] %v12803_v60 }
 0x320   :  { %8731 = vmatpush1.bf16.msra.mxu1 %v17346_v56  ;;  %v2560_v56 = vand.u32 4294901760, %v2426_v4 }
 0x321   :  { %8733 = vmatprep.subr.bf16.mxu1 %v17347_v51  ;;  %v2564_v51 = vand.u32 4294901760, %v2428_v45 }
 0x322   :  { %v12805_v1 = vsub.f32 %v2426_v4, %v2560_v56 }
 0x323   :  { %v12807_v27 = vsub.f32 %v2428_v45, %v2564_v51  ;;  %v17384_v45 = vld [vmem:[#allocation54_spill] sm:$0xff] }
 0x324   :  { %8735 = vmatpush1.bf16.msra.mxu1 %v17348_v30  ;;  %v12768_v30 = vpack.c.bf16 %v2562_v34, %v2558_v13  ;;  %17373 = vst [vmem:[#allocation51_spill] sm:$0xff] %v12805_v1 }
 0x325   :  { %8737 = vmatprep.subr.bf16.mxu1 %v17349_v43  ;;  %v12770_v43 = vpack.c.bf16 %v2564_v51, %v2560_v56  ;;  %17374 = vst [vmem:[#allocation76_spill] sm:$0xff] %v12807_v27  ;;  %v16127_v56 = vand.u32 4294901760, %v17384_v45  ;;  %v17385_v51 = vld [vmem:[#allocation96_spill] sm:$0xff] }
 0x326   :  { %17365 = vst [vmem:[#allocation48_spill] sm:$0xff] %v12768_v30 }
 0x327   :  { %17366 = vst [vmem:[#allocation32_spill] sm:$0xff] %v12770_v43 }
 0x328   :  { %8739 = vmatpush1.bf16.msra.mxu1 %v17350_v57  ;;  %v2431_v57 = vld [vmem:[#allocation5 + $0x1e8] sm:$0xff] }
 0x329   :  { %8741 = vmatprep.subr.bf16.mxu1 %v17351_v15  ;;  %v2433_v15 = vld [vmem:[#allocation5 + $0x1f8] sm:$0xff] }
 0x32c   :  { %8743 = vmatpush1.bf16.msra.mxu1 %v17352_v3  ;;  %v2566_v3 = vand.u32 4294901760, %v2431_v57 }
 0x32d   :  { %8745 = vmatprep.subr.bf16.mxu1 %v17353_v17  ;;  %v2570_v17 = vand.u32 4294901760, %v2433_v15 }
 0x32e   :  { %v12809_v49 = vsub.f32 %v2431_v57, %v2566_v3 }
 0x32f   :  { %v12811_v12 = vsub.f32 %v2433_v15, %v2570_v17 }
 0x330   :  { %8747 = vmatpush1.bf16.msra.mxu1 %v17354_v53  ;;  %v2430_v53 = vld [vmem:[#allocation5 + $0x1e0] sm:$0xff]  ;;  %17375 = vst [vmem:[#allocation94_spill] sm:$0xff] %v12809_v49 }
 0x331   :  { %8749 = vmatprep.subr.bf16.mxu1 %v17355_v61  ;;  %v2432_v61 = vld [vmem:[#allocation5 + $0x1f0] sm:$0xff]  ;;  %17376 = vst [vmem:[#allocation80_spill] sm:$0xff] %v12811_v12 }
 0x332   :  { %v2572_v58 = vand.u32 4294901760, %v2432_v61 }
 0x334   :  { %8751 = vmatpush1.bf16.msra.mxu1 %v17356_v2  ;;  %v17367_v2 = vld [vmem:[#allocation70_spill] sm:$0xff]  ;;  %v12817_v6 = vsub.f32 %v2432_v61, %v2572_v58 }
 0x335   :  { %8753 = vmatprep.subr.bf16.mxu1 %v17357_v10  ;;  %v16122_v10 = vand.u32 4294901760, %v17367_v2 }
 0x336   :  { %17379 = vst [vmem:[#allocation84_spill] sm:$0xff] %v12817_v6 }
 0x337   :  { %v2594_v55 = vsub.f32 %v17367_v2, %v16122_v10  ;;  %v12801_v10 = vsub.f32 %v2427_v22, %v2558_v13  ;;  %v17382_v22 = vld [vmem:[#allocation75_spill] sm:$0xff]  ;;  %v17383_v13 = vld [vmem:[#allocation52_spill] sm:$0xff] }
 0x338   :  { %8755 = vmatpush1.bf16.msra.mxu1 %v17358_v8  ;;  %v17368_v8 = vld [vmem:[#allocation31_spill] sm:$0xff]  ;;  %v16124_v46 = vand.u32 4294901760, %v17382_v22  ;;  %v16123_v34 = vand.u32 4294901760, %v17383_v13 }
 0x339   :  { %8757 = vmatprep.subr.bf16.mxu1 %v17359_v9  ;;  %v16125_v9 = vand.u32 4294901760, %v17368_v8  ;;  %17371 = vst [vmem:[#allocation91_spill] sm:$0xff] %v12801_v10 }
 0x33a   :  { %v2600_v15 = vsub.f32 %v17382_v22, %v16124_v46  ;;  %v17391_v46 = vld [vmem:[#allocation57_spill] sm:$0xff] }
 0x33c   :  { %8759 = vmatpush1.bf16.msra.mxu1 %v17360_v32  ;;  %v2568_v32 = vand.u32 4294901760, %v2430_v53 }
 0x33e   :  { %v12813_v44 = vpack.c.bf16 %v2572_v58, %v2568_v32  ;;  %v12815_v28 = vsub.f32 %v2430_v53, %v2568_v32  ;;  %v16130_v53 = vand.u32 4294901760, %v12397_v48  ;;  %v17386_v32 = vld [vmem:[#allocation18_spill] sm:$0xff] }
 0x33f   :  { %2362 = vmatmul.mubr.f32.vlgmr.msra.gmra.mrb[2].mxu1 %v17328_v5  ;;  %v2424_v5 = vld [vmem:[#allocation5 + $0x1b0] sm:$0xff] }
 0x340   :  { %v2556_v21 = vand.u32 4294901760, %v2424_v5  ;;  %17377 = vst [vmem:[#allocation82_spill] sm:$0xff] %v12813_v44  ;;  %17378 = vst [vmem:[#allocation83_spill] sm:$0xff] %v12815_v28 }
 0x342   :  { %v12764_v26 = vpack.c.bf16 %v2556_v21, %v2552_v38  ;;  %v12798_v14 = vsub.f32 %v2424_v5, %v2556_v21  ;;  %v1077_v5 = vrot.slane %v1072_v40, %v17380_v59  ;;  %v17381_v38 = vld [vmem:[#allocation93_spill] sm:$0xff] }
 0x343   :  { %v1081_v21 = vrot.slane %v1072_v40, %v17381_v38 }
 0x344   :  { %17364 = vst [vmem:[#allocation47_spill] sm:$0xff] %v12764_v26  ;;  %8815 = vmatpush1.bf16.msra.mxu0 %v12764_v26  ;;  %v12776_v26 = vpack.c.bf16 %v2570_v17, %v2566_v3  ;;  %17370 = vst [vmem:[#allocation90_spill] sm:$0xff] %v12798_v14  ;;  %v2612_v3 = vsub.f32 %v17383_v13, %v16123_v34  ;;  %v2624_v34 = vsub.f32 %v12397_v48, %v16130_v53  ;;  %v17395_v53 = vld [vmem:[#allocation22_spill] sm:$0xff] }
 0x345   :  { %8817 = vmatprep.subr.bf16.mxu0 %v12768_v30  ;;  %v2606_v30 = vsub.f32 %v17368_v8, %v16125_v9 }
 0x346   :  { %17369 = vst [vmem:[#allocation49_spill] sm:$0xff] %v12776_v26 }
 0x347   :  { %v2607_v20 = vand.u32 4294901760, %v2606_v30  ;;  %v16126_v30 = vand.u32 4294901760, %v17385_v51 }
 0x348   :  { %8819 = vmatpush1.bf16.msra.mxu0 %v12770_v43  ;;  %v12792_v43 = vsub.f32 %v2423_v47, %v2550_v54  ;;  %v2595_v47 = vand.u32 4294901760, %v2594_v55 }
 0x349   :  { %8821 = vmatprep.subr.bf16.mxu0 %v12776_v26 }
 0x34a   :  { %v8824_v54 = vpack.c.bf16 %v2607_v20, %v2595_v47  ;;  %v16135_v47 = vand.u32 4294901760, %v17386_v32  ;;  %v17387_v20 = vld [vmem:[#allocation55_spill] sm:$0xff] }
 0x34c   :  { %8823 = vmatpush1.bf16.msra.mxu0 %v12813_v44 }
 0x34d   :  { %8825 = vmatprep.subr.bf16.mxu0 %v8824_v54 }
 0x412   :  { %v2363_v58 = vpop.f32.mrb[2].mxu1 }
 0x413   :  { %v10144_v4 = vadd.f32 %v2363_v58, %v1077_v5  ;;  %v2365_v55 = vpop.f32.mrb[3].mxu1  ;;  %v2618_v5 = vsub.f32 %v17384_v45, %v16127_v56  ;;  %v17393_v56 = vand.u32 4294901760, %v17387_v20 }
 0x414   :  { %v10145_v57 = vadd.f32 %v2365_v55, %v1081_v21  ;;  %v2630_v21 = vsub.f32 %v17385_v51, %v16126_v30  ;;  %v2613_v55 = vand.u32 4294901760, %v2612_v3  ;;  %v2636_v30 = vsub.f32 %v17386_v32, %v16135_v47  ;;  %v17394_v3 = vld [vmem:[#allocation20_spill] sm:$0xff]  ;;  %v17406_v32 = vld [vmem:[#allocation62_spill] sm:$0xff] }
 0x415   :  { %v2368_v17 = vmax.f32 %v10144_v4, 0.0  ;;  %v2601_v4 = vand.u32 4294901760, %v2600_v15  ;;  %v2642_v15 = vsub.f32 %v17387_v20, %v17393_v56  ;;  %v2619_v59 = vand.u32 4294901760, %v2618_v5  ;;  %v17397_v56 = vld [vmem:[#allocation24_spill] sm:$0xff]  ;;  %v17404_v20 = vld [vmem:[#allocation79_spill] sm:$0xff] }
 0x416   :  { %v2369_v61 = vmax.f32 %v10145_v57, 0.0  ;;  %v2631_v44 = vand.u32 4294901760, %v2630_v21  ;;  %v17396_v47 = vand.u32 4294901760, %v17391_v46  ;;  %v2625_v21 = vand.u32 4294901760, %v2624_v34  ;;  %v17405_v34 = vld [vmem:[#allocation60_spill] sm:$0xff] }
 0x417   :  { %v12838_v40 = vand.u32 4294901760, %v2368_v17  ;;  %v2637_v26 = vand.u32 4294901760, %v2636_v30  ;;  %v2643_v16 = vand.u32 4294901760, %v2642_v15  ;;  %v17402_v15 = vand.u32 4294901760, %v12424_v11 }
 0x418   :  { %v12846_v58 = vand.u32 4294901760, %v2369_v61  ;;  %v2654_v63 = vsub.f32 %v17391_v46, %v17396_v47  ;;  %v17400_v47 = vand.u32 4294901760, %v17395_v53 }
 0x419   :  { %17388 = vst [vmem:[#allocation85_spill] sm:$0xff] %v12838_v40  ;;  %v12849_v57 = vsub.f32 %v2368_v17, %v12838_v40 }
 0x41a   :  { %17389 = vst [vmem:[#allocation86_spill] sm:$0xff] %v12846_v58  ;;  %v12856_v54 = vsub.f32 %v2369_v61, %v12846_v58  ;;  %v8826_v61 = vpack.c.bf16 %v2613_v55, %v2601_v4  ;;  %v16155_v4 = vand.u32 4294901760, %v17398_v18  ;;  %v8828_v55 = vpack.c.bf16 %v2631_v44, %v2619_v59 }
 0x41b   :  { %17390 = vst [vmem:[#allocation87_spill] sm:$0xff] %v12849_v57  ;;  %v16144_v38 = vand.u32 4294901760, %v12849_v57  ;;  %v2660_v29 = vsub.f32 %v17395_v53, %v17400_v47  ;;  %v17401_v44 = vand.u32 4294901760, %v17397_v56  ;;  %v17403_v47 = vld [vmem:[#allocation78_spill] sm:$0xff]  ;;  %v16163_v53 = vand.u32 4294901760, %v17404_v20 }
 0x41c   :  { %17392 = vst [vmem:[#allocation88_spill] sm:$0xff] %v12856_v54  ;;  %v16149_v9 = vand.u32 4294901760, %v12856_v54 }
 0x41d   :  { %v2583_v35 = vsub.f32 %v12849_v57, %v16144_v38  ;;  %v17399_v38 = vand.u32 4294901760, %v17394_v3  ;;  %v2666_v59 = vsub.f32 %v17397_v56, %v17401_v44  ;;  %v17417_v56 = vld [vmem:[#allocation30_spill] sm:$0xff] }
 0x41e   :  { %v2577_v5 = vsub.f32 %v12856_v54, %v16149_v9  ;;  %v2655_v9 = vand.u32 4294901760, %v2654_v63  ;;  %v16179_v48 = vand.u32 4294901760, %v17417_v56 }
 0x41f   :  { %v2648_v57 = vsub.f32 %v17394_v3, %v17399_v38  ;;  %v2584_v30 = vand.u32 4294901760, %v2583_v35  ;;  %v2678_v38 = vsub.f32 %v12424_v11, %v17402_v15  ;;  %v8830_v35 = vpack.c.bf16 %v2637_v26, %v2625_v21 }
 0x420   :  { %v2578_v46 = vand.u32 4294901760, %v2577_v5  ;;  %v2672_v5 = vsub.f32 %v17398_v18, %v16155_v4  ;;  %v2661_v15 = vand.u32 4294901760, %v2660_v29  ;;  %v17408_v4 = vand.u32 4294901760, %v12442_v41 }
 0x421   :  { %v2649_v63 = vand.u32 4294901760, %v2648_v57  ;;  %v8832_v57 = vpack.c.bf16 %v2655_v9, %v2643_v16  ;;  %v2667_v21 = vand.u32 4294901760, %v2666_v59  ;;  %v2679_v44 = vand.u32 4294901760, %v2678_v38  ;;  %v17413_v16 = vld [vmem:[#allocation65_spill] sm:$0xff]  ;;  %v17414_v59 = vld [vmem:[#allocation66_spill] sm:$0xff] }
 0x422   :  { %2579 = vmatprep.mubr.f32.mxu0 %v2578_v46  ;;  %v17407_v46 = vand.u32 4294901760, %v12440_v19  ;;  %v2690_v17 = vsub.f32 %v12442_v41, %v17408_v4  ;;  %v17410_v3 = vand.u32 4294901760, %v17403_v47  ;;  %v17412_v41 = vand.u32 4294901760, %v17406_v32 }
 0x423   :  { %2585 = vmatmul.mubr.f32.vlgmr.msra.gmra.mrb[2].mxu0 %v2584_v30  ;;  %v17409_v30 = vand.u32 4294901760, %v12453_v23  ;;  %v16177_v38 = vand.u32 4294901760, %v17414_v59 }
 0x424   :  { %8827 = vmatpush1.bf16.msra.mxu0 %v8826_v61  ;;  %2976 = vmatprep.mubr.f32.mxu0 %v12846_v58  ;;  %v2684_v11 = vsub.f32 %v12440_v19, %v17407_v46  ;;  %v2673_v61 = vand.u32 4294901760, %v2672_v5  ;;  %v2696_v29 = vsub.f32 %v17403_v47, %v17410_v3  ;;  %v2708_v46 = vsub.f32 %v17404_v20, %v16163_v53  ;;  %v17415_v53 = vld [vmem:[#allocation27_spill] sm:$0xff]  ;;  %v17416_v19 = vld [vmem:[#allocation68_spill] sm:$0xff] }
 0x425   :  { %v2702_v26 = vsub.f32 %v12453_v23, %v17409_v30  ;;  %8829 = vmatprep.subr.bf16.mxu0 %v8828_v55  ;;  %v17411_v58 = vand.u32 4294901760, %v17405_v34  ;;  %v2726_v55 = vsub.f32 %v17406_v32, %v17412_v41  ;;  %v8834_v5 = vpack.c.bf16 %v2661_v15, %v2649_v63  ;;  %v17418_v41 = vld [vmem:[#allocation98_spill] sm:$0xff] }
 0x426   :  { %v2685_v30 = vand.u32 4294901760, %v2684_v11  ;;  %v2691_v3 = vand.u32 4294901760, %v2690_v17  ;;  %v8836_v23 = vpack.c.bf16 %v2679_v44, %v2667_v21  ;;  %v16176_v20 = vand.u32 4294901760, %v17415_v53 }
 0x427   :  { %v2714_v4 = vsub.f32 %v17405_v34, %v17411_v58  ;;  %v2703_v47 = vand.u32 4294901760, %v2702_v26  ;;  %v16175_v18 = vand.u32 4294901760, %v17416_v19  ;;  %v2697_v58 = vand.u32 4294901760, %v2696_v29  ;;  %v17421_v29 = vld [vmem:[#allocation101_spill] sm:$0xff] }
 0x428   :  { %8831 = vmatpush1.bf16.msra.mxu0 %v8830_v35  ;;  %v2709_v34 = vand.u32 4294901760, %v2708_v46  ;;  %v16181_v32 = vand.u32 4294901760, %v17418_v41  ;;  %v2727_v54 = vand.u32 4294901760, %v2726_v55  ;;  %v17419_v35 = vand.u32 4294901760, %v17413_v16  ;;  %v17425_v46 = vld [vmem:[#allocation106_spill] sm:$0xff] }
 0x429   :  { %8833 = vmatprep.subr.bf16.mxu0 %v8832_v57  ;;  %v2715_v9 = vand.u32 4294901760, %v2714_v4  ;;  %v2732_v17 = vsub.f32 %v17414_v59, %v16177_v38  ;;  %v8838_v63 = vpack.c.bf16 %v2685_v30, %v2673_v61  ;;  %v8840_v44 = vpack.c.bf16 %v2703_v47, %v2691_v3  ;;  %v17420_v57 = vld [vmem:[#allocation100_spill] sm:$0xff]  ;;  %v17422_v30 = vld [vmem:[#allocation102_spill] sm:$0xff] }
 0x42a   :  { %v2720_v11 = vsub.f32 %v17413_v16, %v17419_v35  ;;  %v2738_v15 = vsub.f32 %v17415_v53, %v16176_v20  ;;  %v2750_v26 = vsub.f32 %v17416_v19, %v16175_v18  ;;  %v2744_v4 = vsub.f32 %v17417_v56, %v16179_v48  ;;  %v17423_v35 = vld [vmem:[#allocation104_spill] sm:$0xff]  ;;  %v17424_v20 = vld [vmem:[#allocation105_spill] sm:$0xff]  ;;  %v17430_v3 = vld [vmem:[#allocation110_spill] sm:$0xff] }
 0x42b   :  { %v8842_v47 = vpack.c.bf16 %v2709_v34, %v2697_v58  ;;  %v8844_v61 = vpack.c.bf16 %v2727_v54, %v2715_v9  ;;  %v17426_v56 = vand.u32 4294901760, %v17420_v57  ;;  %v17427_v54 = vand.u32 4294901760, %v17421_v29 }
 0x42c   :  { %8835 = vmatpush1.bf16.msra.mxu0 %v8834_v5  ;;  %v2721_v55 = vand.u32 4294901760, %v2720_v11  ;;  %v2733_v5 = vand.u32 4294901760, %v2732_v17  ;;  %v2739_v19 = vand.u32 4294901760, %v2738_v15  ;;  %v2751_v48 = vand.u32 4294901760, %v2750_v26  ;;  %v17428_v11 = vld [vmem:[#allocation107_spill] sm:$0xff] }
 0x42d   :  { %8837 = vmatprep.subr.bf16.mxu0 %v8836_v23  ;;  %v2756_v23 = vsub.f32 %v17418_v41, %v16181_v32  ;;  %v2762_v32 = vsub.f32 %v17420_v57, %v17426_v56  ;;  %v2774_v34 = vsub.f32 %v17421_v29, %v17427_v54  ;;  %v2745_v9 = vand.u32 4294901760, %v2744_v4 }
 0x42e   :  { %v16186_v17 = vand.u32 4294901760, %v17428_v11  ;;  %v8846_v38 = vpack.c.bf16 %v2733_v5, %v2721_v55  ;;  %v17432_v26 = vand.u32 4294901760, %v17422_v30  ;;  %v17433_v57 = vand.u32 4294901760, %v17423_v35 }
 0x42f   :  { %v2757_v58 = vand.u32 4294901760, %v2756_v23  ;;  %v17434_v4 = vand.u32 4294901760, %v17424_v20  ;;  %v17435_v18 = vand.u32 4294901760, %v17425_v46  ;;  %v8848_v5 = vpack.c.bf16 %v2751_v48, %v2739_v19  ;;  %v17439_v48 = vld [vmem:[#allocation113_spill] sm:$0xff] }
 0x430   :  { %8839 = vmatpush1.bf16.msra.mxu0 %v8838_v63  ;;  %v17429_v63 = vld [vmem:[#allocation108_spill] sm:$0xff]  ;;  %v2768_v56 = vsub.f32 %v17422_v30, %v17432_v26  ;;  %v2780_v54 = vsub.f32 %v17423_v35, %v17433_v57  ;;  %v2763_v15 = vand.u32 4294901760, %v2762_v32  ;;  %v2792_v26 = vsub.f32 %v17428_v11, %v16186_v17  ;;  %v17440_v32 = vld [vmem:[#allocation114_spill] sm:$0xff] }
 0x431   :  { %8841 = vmatprep.subr.bf16.mxu0 %v8840_v44  ;;  %v17431_v44 = vld [vmem:[#allocation111_spill] sm:$0xff]  ;;  %v2786_v23 = vsub.f32 %v17424_v20, %v17434_v4  ;;  %v2798_v55 = vsub.f32 %v17425_v46, %v17435_v18  ;;  %v8850_v21 = vpack.c.bf16 %v2757_v58, %v2745_v9  ;;  %v17436_v30 = vand.u32 4294901760, %v17429_v63 }
 0x432   :  { %v17437_v35 = vand.u32 4294901760, %v17430_v3  ;;  %v17438_v20 = vand.u32 4294901760, %v17431_v44  ;;  %v2781_v9 = vand.u32 4294901760, %v2780_v54  ;;  %v16193_v46 = vand.u32 4294901760, %v12615_v31 }
 0x433   :  { %v2804_v57 = vsub.f32 %v17429_v63, %v17436_v30  ;;  %v2787_v58 = vand.u32 4294901760, %v2786_v23  ;;  %v2799_v17 = vand.u32 4294901760, %v2798_v55  ;;  %v17441_v30 = vld [vmem:[#allocation115_spill] sm:$0xff]  ;;  %v16194_v29 = vand.u32 4294901760, %v12622_v52 }
 0x434   :  { %8843 = vmatpush1.bf16.msra.mxu0 %v8842_v47  ;;  %v2775_v47 = vand.u32 4294901760, %v2774_v34  ;;  %v2810_v4 = vsub.f32 %v17430_v3, %v17437_v35  ;;  %v2822_v18 = vsub.f32 %v17431_v44, %v17438_v20  ;;  %v2769_v34 = vand.u32 4294901760, %v2768_v56 }
 0x435   :  { %8845 = vmatprep.subr.bf16.mxu0 %v8844_v61  ;;  %v16206_v61 = vand.u32 4294901760, %v17440_v32  ;;  %v16205_v63 = vand.u32 4294901760, %v17441_v30  ;;  %v2793_v35 = vand.u32 4294901760, %v2792_v26  ;;  %v2805_v3 = vand.u32 4294901760, %v2804_v57 }
 0x436   :  { %v8852_v11 = vpack.c.bf16 %v2775_v47, %v2763_v15  ;;  %v16195_v20 = vand.u32 4294901760, %v12624_v24  ;;  %v2811_v19 = vand.u32 4294901760, %v2810_v4  ;;  %v2823_v44 = vand.u32 4294901760, %v2822_v18 }
 0x437   :  { %v2828_v15 = vsub.f32 %v17440_v32, %v16206_v61  ;;  %v8854_v54 = vpack.c.bf16 %v2781_v9, %v2769_v34  ;;  %v8856_v23 = vpack.c.bf16 %v2799_v17, %v2787_v58  ;;  %v2834_v55 = vsub.f32 %v17441_v30, %v16205_v63 }
 0x438   :  { %8847 = vmatpush1.bf16.msra.mxu0 %v8846_v38  ;;  %v17442_v38 = vand.u32 4294901760, %v17439_v48  ;;  %v16204_v47 = vand.u32 4294901760, %v12626_v50  ;;  %v16196_v26 = vand.u32 4294901760, %v12633_v7  ;;  %v2840_v57 = vsub.f32 %v12622_v52, %v16194_v29 }
 0x439   :  { %8849 = vmatprep.subr.bf16.mxu0 %v8848_v5  ;;  %v2846_v5 = vsub.f32 %v12615_v31, %v16193_v46  ;;  %v8860_v17 = vpack.c.bf16 %v2823_v44, %v2811_v19  ;;  %v2829_v18 = vand.u32 4294901760, %v2828_v15  ;;  %v16197_v34 = vand.u32 4294901760, %v12635_v36 }
 0x43a   :  { %v2816_v56 = vsub.f32 %v17439_v48, %v17442_v38  ;;  %v16198_v9 = vand.u32 4294901760, %v12642_v25  ;;  %v16199_v58 = vand.u32 4294901760, %v12784_v37  ;;  %v16202_v38 = vand.u32 4294901760, %v12786_v39 }
 0x43b   :  { %v2835_v46 = vand.u32 4294901760, %v2834_v55  ;;  %v2847_v29 = vand.u32 4294901760, %v2846_v5  ;;  %v2841_v44 = vand.u32 4294901760, %v2840_v57  ;;  %v2864_v55 = vsub.f32 %v12635_v36, %v16197_v34 }
 0x43c   :  { %8851 = vmatpush1.bf16.msra.mxu0 %v8850_v21  ;;  %v2852_v21 = vsub.f32 %v12624_v24, %v16195_v20  ;;  %v2817_v4 = vand.u32 4294901760, %v2816_v56  ;;  %v2858_v20 = vsub.f32 %v12626_v50, %v16204_v47  ;;  %v16201_v56 = vand.u32 4294901760, %v12790_v42 }
 0x43d   :  { %8853 = vmatprep.subr.bf16.mxu0 %v8852_v11  ;;  %v8858_v11 = vpack.c.bf16 %v2805_v3, %v2793_v35  ;;  %v2870_v3 = vsub.f32 %v12633_v7, %v16196_v26  ;;  %v16200_v35 = vand.u32 4294901760, %v12788_v33  ;;  %v2876_v5 = vsub.f32 %v12642_v25, %v16198_v9 }
 0x43e   :  { %v2853_v19 = vand.u32 4294901760, %v2852_v21  ;;  %v8862_v15 = vpack.c.bf16 %v2829_v18, %v2817_v4  ;;  %v2882_v57 = vsub.f32 %v12784_v37, %v16199_v58  ;;  %v2894_v21 = vsub.f32 %v12786_v39, %v16202_v38 }
 0x43f   :  { %v8864_v4 = vpack.c.bf16 %v2847_v29, %v2835_v46  ;;  %v2859_v18 = vand.u32 4294901760, %v2858_v20  ;;  %v2888_v34 = vsub.f32 %v12788_v33, %v16200_v35  ;;  %v2900_v9 = vsub.f32 %v12790_v42, %v16201_v56 }
 0x440   :  { %8855 = vmatpush1.bf16.msra.mxu0 %v8854_v54  ;;  %v16203_v54 = vand.u32 4294901760, %v12792_v43  ;;  %v8866_v26 = vpack.c.bf16 %v2853_v19, %v2841_v44  ;;  %v16217_v29 = vand.u32 4294901760, %v12796_v0  ;;  %v16216_v46 = vand.u32 4294901760, %v12798_v14 }
 0x441   :  { %8857 = vmatprep.subr.bf16.mxu0 %v8856_v23  ;;  %v16207_v23 = vand.u32 4294901760, %v12794_v62  ;;  %v2865_v20 = vand.u32 4294901760, %v2864_v55  ;;  %v2883_v44 = vand.u32 4294901760, %v2882_v57  ;;  %v2895_v19 = vand.u32 4294901760, %v2894_v21 }
 0x442   :  { %v2906_v58 = vsub.f32 %v12792_v43, %v16203_v54  ;;  %v16215_v56 = vand.u32 4294901760, %v12801_v10  ;;  %v16208_v38 = vand.u32 4294901760, %v12803_v60  ;;  %v2889_v54 = vand.u32 4294901760, %v2888_v34 }
 0x443   :  { %v2901_v47 = vand.u32 4294901760, %v2900_v9  ;;  %v16214_v57 = vand.u32 4294901760, %v12805_v1  ;;  %v16210_v21 = vand.u32 4294901760, %v12807_v27 }
 0x444   :  { %8859 = vmatpush1.bf16.msra.mxu0 %v8858_v11  ;;  %v2871_v11 = vand.u32 4294901760, %v2870_v3  ;;  %v2877_v3 = vand.u32 4294901760, %v2876_v5  ;;  %v2907_v63 = vand.u32 4294901760, %v2906_v58  ;;  %v8872_v5 = vpack.c.bf16 %v2895_v19, %v2883_v44 }
 0x445   :  { %8861 = vmatprep.subr.bf16.mxu0 %v8860_v17  ;;  %v2918_v17 = vsub.f32 %v12794_v62, %v16207_v23  ;;  %v2912_v23 = vsub.f32 %v12796_v0, %v16217_v29  ;;  %v2930_v34 = vsub.f32 %v12801_v10, %v16215_v56  ;;  %v2942_v9 = vsub.f32 %v12803_v60, %v16208_v38  ;;  %v17463_v29 = vld [vmem:[#allocation101_spill] sm:$0xff] }
 0x446   :  { %v8868_v35 = vpack.c.bf16 %v2871_v11, %v2859_v18  ;;  %v8870_v55 = vpack.c.bf16 %v2877_v3, %v2865_v20  ;;  %v16209_v58 = vand.u32 4294901760, %v12809_v49  ;;  %v2948_v20 = vsub.f32 %v12807_v27, %v16210_v21 }
 0x447   :  { %v2919_v61 = vand.u32 4294901760, %v2918_v17  ;;  %v2913_v11 = vand.u32 4294901760, %v2912_v23  ;;  %v16213_v3 = vand.u32 4294901760, %v12815_v28  ;;  %v16212_v44 = vand.u32 4294901760, %v12817_v6 }
 0x448   :  { %8863 = vmatpush1.bf16.msra.mxu0 %v8862_v15  ;;  %v2924_v15 = vsub.f32 %v12798_v14, %v16216_v46  ;;  %v2931_v19 = vand.u32 4294901760, %v2930_v34  ;;  %v2943_v38 = vand.u32 4294901760, %v2942_v9  ;;  %v2949_v23 = vand.u32 4294901760, %v2948_v20  ;;  %v17444_v20 = vld [vmem:[#allocation16_spill] sm:$0xff] }
 0x449   :  { %8865 = vmatprep.subr.bf16.mxu0 %v8864_v4  ;;  %v16211_v4 = vand.u32 4294901760, %v12811_v12  ;;  %v8876_v18 = vpack.c.bf16 %v2919_v61, %v2907_v63  ;;  %v2954_v63 = vsub.f32 %v12809_v49, %v16209_v58 }
 0x44a   :  { %v2925_v17 = vand.u32 4294901760, %v2924_v15  ;;  %v2960_v15 = vsub.f32 %v12815_v28, %v16213_v3  ;;  %v17459_v3 = vld [vmem:[#allocation62_spill] sm:$0xff] }
 0x44b   :  { %v2966_v61 = vsub.f32 %v12811_v12, %v16211_v4  ;;  %v2955_v34 = vand.u32 4294901760, %v2954_v63 }
 0x44c   :  { %8867 = vmatpush1.bf16.msra.mxu0 %v8866_v26  ;;  %v8874_v26 = vpack.c.bf16 %v2901_v47, %v2889_v54  ;;  %v8878_v47 = vpack.c.bf16 %v2925_v17, %v2913_v11  ;;  %v2961_v21 = vand.u32 4294901760, %v2960_v15  ;;  %v8888_v17 = vpack.c.bf16 %v17368_v8, %v17367_v2  ;;  %v17451_v15 = vld [vmem:[#allocation26_spill] sm:$0xff] }
 0x44d   :  { %8869 = vmatprep.subr.bf16.mxu0 %v8868_v35  ;;  %v2936_v35 = vsub.f32 %v12805_v1, %v16214_v57  ;;  %v2967_v9 = vand.u32 4294901760, %v2966_v61  ;;  %v17448_v61 = vld [vmem:[#allocation20_spill] sm:$0xff] }
 0x44f   :  { %v2937_v54 = vand.u32 4294901760, %v2936_v35  ;;  %v8890_v35 = vpack.c.bf16 %v17383_v13, %v17382_v22 }
 0x450   :  { %8871 = vmatpush1.bf16.msra.mxu0 %v8870_v55  ;;  %v2972_v55 = vsub.f32 %v12817_v6, %v16212_v44 }
 0x451   :  { %8873 = vmatprep.subr.bf16.mxu0 %v8872_v5  ;;  %v8880_v5 = vpack.c.bf16 %v2943_v38, %v2931_v19  ;;  %v8882_v58 = vpack.c.bf16 %v2949_v23, %v2937_v54  ;;  %v8892_v38 = vpack.c.bf16 %v17385_v51, %v17384_v45  ;;  %v17447_v19 = vld [vmem:[#allocation57_spill] sm:$0xff]  ;;  %v17450_v23 = vld [vmem:[#allocation24_spill] sm:$0xff] }
 0x452   :  { %v2973_v4 = vand.u32 4294901760, %v2972_v55  ;;  %v8900_v55 = vpack.c.bf16 %v17451_v15, %v17450_v23 }
 0x454   :  { %8875 = vmatpush1.bf16.msra.mxu0 %v8874_v26  ;;  %v8884_v26 = vpack.c.bf16 %v2967_v9, %v2955_v34  ;;  %v8886_v11 = vpack.c.bf16 %v2973_v4, %v2961_v21  ;;  %v17446_v4 = vld [vmem:[#allocation55_spill] sm:$0xff] }
 0x455   :  { %8877 = vmatprep.subr.bf16.mxu0 %v8876_v18  ;;  %v17443_v18 = vld [vmem:[#allocation88_spill] sm:$0xff]  ;;  %v8896_v63 = vpack.c.bf16 %v17447_v19, %v17446_v4  ;;  %v17453_v34 = vld [vmem:[#allocation71_spill] sm:$0xff] }
 0x458   :  { %8879 = vmatpush1.bf16.msra.mxu0 %v8878_v47  ;;  %v17449_v47 = vld [vmem:[#allocation22_spill] sm:$0xff] }
 0x459   :  { %8881 = vmatprep.subr.bf16.mxu0 %v8880_v5  ;;  %v8898_v54 = vpack.c.bf16 %v17449_v47, %v17448_v61  ;;  %v17452_v5 = vld [vmem:[#allocation69_spill] sm:$0xff] }
 0x45a   :  { %v8902_v9 = vpack.c.bf16 %v17453_v34, %v17452_v5 }
 0x45c   :  { %8883 = vmatpush1.bf16.msra.mxu0 %v8882_v58  ;;  %v17445_v58 = vld [vmem:[#allocation18_spill] sm:$0xff] }
 0x45d   :  { %8885 = vmatprep.subr.bf16.mxu0 %v8884_v26  ;;  %v8894_v21 = vpack.c.bf16 %v17445_v58, %v17444_v20  ;;  %v17454_v26 = vld [vmem:[#allocation73_spill] sm:$0xff] }
 0x460   :  { %8887 = vmatpush1.bf16.msra.mxu0 %v8886_v11  ;;  %v17455_v11 = vld [vmem:[#allocation74_spill] sm:$0xff] }
 0x461   :  { %8889 = vmatprep.subr.bf16.mxu0 %v8888_v17  ;;  %v8904_v17 = vpack.c.bf16 %v17455_v11, %v17454_v26 }
 0x463   :  { %2978 = vmatmul.mubr.f32.vlgmr.msra.gmra.mrb[2].mxu0 %v12838_v40 }
 0x464   :  { %8891 = vmatpush1.bf16.msra.mxu0 %v8890_v35  ;;  %3178 = vmatprep.mubr.f32.mxu0 %v17443_v18  ;;  %v17456_v35 = vld [vmem:[#allocation78_spill] sm:$0xff] }
 0x465   :  { %8893 = vmatprep.subr.bf16.mxu0 %v8892_v38  ;;  %v17457_v38 = vld [vmem:[#allocation79_spill] sm:$0xff] }
 0x466   :  { %v8906_v44 = vpack.c.bf16 %v17457_v38, %v17456_v35  ;;  %v17465_v38 = vld [vmem:[#allocation104_spill] sm:$0xff] }
 0x468   :  { %8895 = vmatpush1.bf16.msra.mxu0 %v8894_v21  ;;  %v17458_v21 = vld [vmem:[#allocation60_spill] sm:$0xff] }
 0x469   :  { %8897 = vmatprep.subr.bf16.mxu0 %v8896_v63  ;;  %v8908_v57 = vpack.c.bf16 %v17459_v3, %v17458_v21  ;;  %v8910_v63 = vpack.c.bf16 %v17414_v59, %v17413_v16  ;;  %v17467_v21 = vld [vmem:[#allocation106_spill] sm:$0xff]  ;;  %v17469_v16 = vld [vmem:[#allocation108_spill] sm:$0xff] }
 0x46c   :  { %8899 = vmatpush1.bf16.msra.mxu0 %v8898_v54  ;;  %v17460_v54 = vld [vmem:[#allocation68_spill] sm:$0xff] }
 0x46d   :  { %8901 = vmatprep.subr.bf16.mxu0 %v8900_v55  ;;  %v8912_v56 = vpack.c.bf16 %v17460_v54, %v17415_v53  ;;  %v17461_v55 = vld [vmem:[#allocation30_spill] sm:$0xff]  ;;  %v17471_v53 = vld [vmem:[#allocation111_spill] sm:$0xff] }
 0x46e   :  { %v8914_v46 = vpack.c.bf16 %v17418_v41, %v17461_v55 }
 0x470   :  { %8903 = vmatpush1.bf16.msra.mxu0 %v8902_v9  ;;  %v17462_v9 = vld [vmem:[#allocation100_spill] sm:$0xff] }
 0x471   :  { %8905 = vmatprep.subr.bf16.mxu0 %v8904_v17  ;;  %v8916_v40 = vpack.c.bf16 %v17463_v29, %v17462_v9  ;;  %v17464_v17 = vld [vmem:[#allocation102_spill] sm:$0xff] }
 0x472   :  { %v8918_v3 = vpack.c.bf16 %v17465_v38, %v17464_v17 }
 0x474   :  { %8907 = vmatpush1.bf16.msra.mxu0 %v8906_v44  ;;  %v17466_v44 = vld [vmem:[#allocation105_spill] sm:$0xff] }
 0x475   :  { %8909 = vmatprep.subr.bf16.mxu0 %v8908_v57  ;;  %v8920_v59 = vpack.c.bf16 %v17467_v21, %v17466_v44  ;;  %v17468_v57 = vld [vmem:[#allocation107_spill] sm:$0xff] }
 0x476   :  { %v8922_v54 = vpack.c.bf16 %v17469_v16, %v17468_v57 }
 0x478   :  { %8911 = vmatpush1.bf16.msra.mxu0 %v8910_v63  ;;  %v17470_v63 = vld [vmem:[#allocation110_spill] sm:$0xff] }
 0x479   :  { %8913 = vmatprep.subr.bf16.mxu0 %v8912_v56  ;;  %v8924_v41 = vpack.c.bf16 %v17471_v53, %v17470_v63  ;;  %v8926_v56 = vpack.c.bf16 %v17440_v32, %v17439_v48 }
 0x47c   :  { %8915 = vmatpush1.bf16.msra.mxu0 %v8914_v46  ;;  %v8928_v46 = vpack.c.bf16 %v12615_v31, %v17441_v30 }
 0x47d   :  { %8917 = vmatprep.subr.bf16.mxu0 %v8916_v40  ;;  %v8930_v40 = vpack.c.bf16 %v12624_v24, %v12622_v52 }
 0x480   :  { %8919 = vmatpush1.bf16.msra.mxu0 %v8918_v3  ;;  %v8932_v3 = vpack.c.bf16 %v12633_v7, %v12626_v50 }
 0x481   :  { %8921 = vmatprep.subr.bf16.mxu0 %v8920_v59  ;;  %v8934_v59 = vpack.c.bf16 %v12642_v25, %v12635_v36 }
 0x484   :  { %8923 = vmatpush1.bf16.msra.mxu0 %v8922_v54  ;;  %v8936_v54 = vpack.c.bf16 %v12786_v39, %v12784_v37 }
 0x485   :  { %8925 = vmatprep.subr.bf16.mxu0 %v8924_v41  ;;  %v8938_v41 = vpack.c.bf16 %v12790_v42, %v12788_v33 }
 0x488   :  { %8927 = vmatpush1.bf16.msra.mxu0 %v8926_v56  ;;  %v8940_v56 = vpack.c.bf16 %v12794_v62, %v12792_v43 }
 0x489   :  { %8929 = vmatprep.subr.bf16.mxu0 %v8928_v46  ;;  %v8942_v46 = vpack.c.bf16 %v12798_v14, %v12796_v0  ;;  %v17474_v14 = vld [vmem:[#allocation77_spill] sm:$0xff] }
 0x48c   :  { %8931 = vmatpush1.bf16.msra.mxu0 %v8930_v40  ;;  %v8944_v40 = vpack.c.bf16 %v12803_v60, %v12801_v10  ;;  %v3745_v10 = vld [vmem:[#allocation7 + $0x68] sm:$0xff] }
 0x48d   :  { %8933 = vmatprep.subr.bf16.mxu0 %v8932_v3  ;;  %v8946_v3 = vpack.c.bf16 %v12807_v27, %v12805_v1  ;;  %v17476_v27 = vld [vmem:[#allocation53_spill] sm:$0xff] }
 0x48e   :  { %v3742_v1 = vld [vmem:[#allocation7 + $0x50] sm:$0xff] }
 0x490   :  { %8935 = vmatpush1.bf16.msra.mxu0 %v8934_v59  ;;  %v8948_v59 = vpack.c.bf16 %v12811_v12, %v12809_v49  ;;  %v17478_v12 = vld [vmem:[#allocation56_spill] sm:$0xff] }
 0x491   :  { %8937 = vmatprep.subr.bf16.mxu0 %v8936_v54  ;;  %v8950_v54 = vpack.c.bf16 %v12817_v6, %v12815_v28  ;;  %v17480_v6 = vld [vmem:[#allocation63_spill] sm:$0xff] }
 0x494   :  { %8939 = vmatpush1.bf16.msra.mxu0 %v8938_v41  ;;  %v17472_v41 = vld [vmem:[#allocation67_spill] sm:$0xff] }
 0x495   :  { %8941 = vmatprep.subr.bf16.mxu0 %v8940_v56  ;;  %v17473_v56 = vld [vmem:[#allocation87_spill] sm:$0xff] }
 0x498   :  { %8943 = vmatpush1.bf16.msra.mxu0 %v8942_v46  ;;  %v17475_v46 = vand.u32 4294901760, %v17443_v18  ;;  %v17485_v18 = vld [vmem:[#allocation99_spill] sm:$0xff] }
 0x499   :  { %8945 = vmatprep.subr.bf16.mxu0 %v8944_v40  ;;  %v17477_v40 = vld [vmem:[#allocation15_spill] sm:$0xff] }
 0x49c   :  { %8947 = vmatpush1.bf16.msra.mxu0 %v8946_v3  ;;  %v17479_v3 = vld [vmem:[#allocation58_spill] sm:$0xff] }
 0x49d   :  { %8949 = vmatprep.subr.bf16.mxu0 %v8948_v59  ;;  %v17481_v59 = vld [vmem:[#allocation81_spill] sm:$0xff] }
 0x4a0   :  { %8951 = vmatpush1.bf16.msra.mxu0 %v8950_v54  ;;  %v17482_v54 = vld [vmem:[#allocation95_spill] sm:$0xff] }
 0x4a1   :  { %8953 = vmatprep.subr.bf16.mxu0 %v17472_v41  ;;  %v17483_v41 = vld [vmem:[#allocation28_spill] sm:$0xff] }
 0x4a3   :  { %3181 = vmatmul.mubr.f32.vlgmr.msra.gmra.mrb[2].mxu0 %v17473_v56 }
 0x4a4   :  { %8955 = vmatpush1.bf16.msra.mxu0 %v17474_v14  ;;  %3318 = vmatprep.mubr.f32.mxu0 %v17475_v46  ;;  %v17484_v14 = vld [vmem:[#allocation97_spill] sm:$0xff]  ;;  %v17486_v46 = vld [vmem:[#allocation103_spill] sm:$0xff] }
 0x4a5   :  { %8957 = vmatprep.subr.bf16.mxu0 %v17476_v27  ;;  %v17487_v27 = vld [vmem:[#allocation109_spill] sm:$0xff] }
 0x4a8   :  { %8959 = vmatpush1.bf16.msra.mxu0 %v17477_v40  ;;  %v17488_v40 = vld [vmem:[#allocation112_spill] sm:$0xff] }
 0x4a9   :  { %8961 = vmatprep.subr.bf16.mxu0 %v17478_v12  ;;  %v17489_v12 = vld [vmem:[#allocation116_spill] sm:$0xff] }
 0x4ac   :  { %8963 = vmatpush1.bf16.msra.mxu0 %v17479_v3  ;;  %v17490_v3 = vld [vmem:[#allocation117_spill] sm:$0xff] }
 0x4ad   :  { %8965 = vmatprep.subr.bf16.mxu0 %v17480_v6  ;;  %v17491_v6 = vld [vmem:[#allocation118_spill] sm:$0xff] }
 0x4b0   :  { %8967 = vmatpush1.bf16.msra.mxu0 %v17481_v59  ;;  %v17492_v59 = vld [vmem:[#allocation119_spill] sm:$0xff] }
 0x4b1   :  { %8969 = vmatprep.subr.bf16.mxu0 %v17482_v54  ;;  %v17493_v54 = vld [vmem:[#allocation120_spill] sm:$0xff] }
 0x4b4   :  { %8971 = vmatpush1.bf16.msra.mxu0 %v17483_v41  ;;  %v17494_v41 = vld [vmem:[#allocation121_spill] sm:$0xff] }
 0x4b5   :  { %8973 = vmatprep.subr.bf16.mxu0 %v17484_v14  ;;  %v17495_v14 = vld [vmem:[#allocation122_spill] sm:$0xff] }
 0x4b8   :  { %8975 = vmatpush1.bf16.msra.mxu0 %v17485_v18  ;;  %v17496_v18 = vld [vmem:[#allocation123_spill] sm:$0xff] }
 0x4b9   :  { %8977 = vmatprep.subr.bf16.mxu0 %v17486_v46  ;;  %v17497_v46 = vld [vmem:[#allocation124_spill] sm:$0xff] }
 0x4bc   :  { %8979 = vmatpush1.bf16.msra.mxu0 %v17487_v27  ;;  %v17498_v27 = vld [vmem:[#allocation44_spill] sm:$0xff] }
 0x4bd   :  { %8981 = vmatprep.subr.bf16.mxu0 %v17488_v40  ;;  %v17499_v40 = vld [vmem:[#allocation45_spill] sm:$0xff] }
 0x4c0   :  { %8983 = vmatpush1.bf16.msra.mxu0 %v17489_v12  ;;  %v17500_v12 = vld [vmem:[#allocation46_spill] sm:$0xff] }
 0x4c1   :  { %8985 = vmatprep.subr.bf16.mxu0 %v17490_v3  ;;  %v17501_v3 = vld [vmem:[#allocation47_spill] sm:$0xff] }
 0x4c4   :  { %8987 = vmatpush1.bf16.msra.mxu0 %v17491_v6  ;;  %v17502_v6 = vld [vmem:[#allocation48_spill] sm:$0xff] }
 0x4c5   :  { %8989 = vmatprep.subr.bf16.mxu0 %v17492_v59  ;;  %v17503_v59 = vld [vmem:[#allocation32_spill] sm:$0xff] }
 0x4c8   :  { %8991 = vmatpush1.bf16.msra.mxu0 %v17493_v54  ;;  %v17504_v54 = vld [vmem:[#allocation49_spill] sm:$0xff] }
 0x4c9   :  { %8993 = vmatprep.subr.bf16.mxu0 %v17494_v41 }
 0x4cc   :  { %8995 = vmatpush1.bf16.msra.mxu0 %v17495_v14  ;;  %v17505_v14 = vand.u32 4294901760, %v17367_v2  ;;  %v17513_v2 = vand.u32 4294901760, %v17445_v58  ;;  %v17521_v58 = vand.u32 4294901760, %v17452_v5  ;;  %v17528_v5 = vld [vmem:[#allocation86_spill] sm:$0xff] }
 0x4cd   :  { %8997 = vmatprep.subr.bf16.mxu0 %v17496_v18  ;;  %v17506_v18 = vand.u32 4294901760, %v17368_v8  ;;  %v17515_v8 = vand.u32 4294901760, %v17447_v19 }
 0x4cf   :  { %v9016_v41 = vpack.c.bf16 %v17506_v18, %v17505_v14  ;;  %v17514_v14 = vand.u32 4294901760, %v17446_v4  ;;  %v17522_v4 = vand.u32 4294901760, %v17453_v34  ;;  %v17529_v34 = vld [vmem:[#allocation60_spill] sm:$0xff] }
 0x4d0   :  { %8999 = vmatpush1.bf16.msra.mxu0 %v17497_v46  ;;  %v17507_v46 = vld [vmem:[#allocation82_spill] sm:$0xff] }
 0x4d1   :  { %9001 = vmatprep.subr.bf16.mxu0 %v17498_v27  ;;  %v17508_v27 = vand.u32 4294901760, %v17382_v22  ;;  %v9024_v18 = vpack.c.bf16 %v17515_v8, %v17514_v14  ;;  %v17516_v22 = vand.u32 4294901760, %v17448_v61  ;;  %v13231_v19 = vpack.c.bf16 %v17522_v4, %v17521_v58  ;;  %v17531_v8 = vld [vmem:[#allocation62_spill] sm:$0xff]  ;;  %v17533_v58 = vld [vmem:[#allocation65_spill] sm:$0xff] }
 0x4d2   :  { %v17523_v61 = vand.u32 4294901760, %v17454_v26  ;;  %v17530_v14 = vand.u32 4294901760, %v17529_v34  ;;  %v17532_v26 = vand.u32 4294901760, %v17531_v8  ;;  %v17534_v4 = vand.u32 4294901760, %v17533_v58  ;;  %v3736_v34 = vld [vmem:[#allocation7 + $0x20] sm:$0xff]  ;;  %v3738_v8 = vld [vmem:[#allocation7 + $0x30] sm:$0xff] }
 0x4d3   :  { %v3740_v58 = vld [vmem:[#allocation7 + $0x40] sm:$0xff] }
 0x4d4   :  { %9003 = vmatpush1.bf16.msra.mxu0 %v17499_v40  ;;  %v17509_v40 = vand.u32 4294901760, %v17383_v13 }
 0x4d5   :  { %9005 = vmatprep.subr.bf16.mxu0 %v17500_v12 }
 0x4d6   :  { %v9018_v12 = vpack.c.bf16 %v17509_v40, %v17508_v27  ;;  %v17517_v27 = vand.u32 4294901760, %v17449_v47  ;;  %v17524_v47 = vand.u32 4294901760, %v17455_v11  ;;  %v17526_v40 = vld [vmem:[#allocation79_spill] sm:$0xff] }
 0x4d8   :  { %9007 = vmatpush1.bf16.msra.mxu0 %v17501_v3  ;;  %v17510_v3 = vand.u32 4294901760, %v17384_v45  ;;  %v13217_v13 = vpack.c.bf16 %v17517_v27, %v17516_v22  ;;  %v17518_v45 = vand.u32 4294901760, %v17473_v56  ;;  %v17525_v56 = vand.u32 4294901760, %v17456_v35 }
 0x4d9   :  { %9009 = vmatprep.subr.bf16.mxu0 %v17502_v6  ;;  %v17511_v6 = vand.u32 4294901760, %v17385_v51  ;;  %v17520_v51 = vand.u32 4294901760, %v17451_v15  ;;  %v3733_v15 = vld [vmem:[#allocation7 + $0x8] sm:$0xff]  ;;  %v13250_v22 = vpack.c.bf16 %v17532_v26, %v17530_v14 }
 0x4da   :  { %v3808_v11 = vand.u32 4294901760, %v3733_v15  ;;  %v3741_v14 = vld [vmem:[#allocation7 + $0x48] sm:$0xff] }
 0x4dc   :  { %9011 = vmatpush1.bf16.msra.mxu0 %v17503_v59  ;;  %v9020_v59 = vpack.c.bf16 %v17511_v6, %v17510_v3  ;;  %v17519_v6 = vand.u32 4294901760, %v17450_v23  ;;  %v17527_v23 = vand.u32 4294901760, %v17526_v40 }
 0x4dd   :  { %9013 = vmatprep.subr.bf16.mxu0 %v17504_v54  ;;  %v17512_v54 = vand.u32 4294901760, %v17444_v20 }
 0x4de   :  { %v13225_v20 = vpack.c.bf16 %v17520_v51, %v17519_v6  ;;  %v13243_v3 = vpack.c.bf16 %v17527_v23, %v17525_v56  ;;  %v3737_v6 = vld [vmem:[#allocation7 + $0x28] sm:$0xff]  ;;  %v3739_v51 = vld [vmem:[#allocation7 + $0x38] sm:$0xff] }
 0x4df   :  { %v9022_v28 = vpack.c.bf16 %v17513_v2, %v17512_v54  ;;  %v3735_v54 = vld [vmem:[#allocation7 + $0x18] sm:$0xff]  ;;  %v3732_v2 = vld [vmem:[#allocation7] sm:$0xff]  ;;  %v3816_v40 = vand.u32 4294901760, %v3737_v6  ;;  %v3820_v23 = vand.u32 4294901760, %v3739_v51 }
 0x4e0   :  { %9015 = vmatpush1.bf16.msra.mxu0 %v17507_v46  ;;  %v3812_v27 = vand.u32 4294901760, %v3735_v54  ;;  %v3810_v35 = vand.u32 4294901760, %v3732_v2  ;;  %v13260_v46 = vsub.f32 %v3733_v15, %v3808_v11 }
 0x4e1   :  { %9017 = vmatprep.subr.bf16.mxu0 %v9016_v41  ;;  %v13237_v41 = vpack.c.bf16 %v17524_v47, %v17523_v61  ;;  %v17535_v61 = vld [vmem:[#allocation66_spill] sm:$0xff]  ;;  %v13272_v60 = vsub.f32 %v3737_v6, %v3816_v40  ;;  %v13275_v15 = vsub.f32 %v3739_v51, %v3820_v23  ;;  %v3746_v6 = vld [vmem:[#allocation7 + $0x70] sm:$0xff] }
 0x4e2   :  { %v17536_v47 = vand.u32 4294901760, %v17535_v61  ;;  %v13258_v26 = vpack.c.bf16 %v3812_v27, %v3808_v11  ;;  %17538 = vst [vmem:[#allocation17_spill] sm:$0xff] %v13260_v46  ;;  %v13264_v49 = vsub.f32 %v3732_v2, %v3810_v35  ;;  %v3822_v2 = vand.u32 4294901760, %v3738_v8 }
 0x4e3   :  { %3322 = vmatmul.mubr.f32.vlgmr.msra.gmra.mrb[2].mxu0 %v17518_v45  ;;  %v3734_v45 = vld [vmem:[#allocation7 + $0x10] sm:$0xff]  ;;  %17544 = vst [vmem:[#allocation23_spill] sm:$0xff] %v13272_v60  ;;  %17545 = vst [vmem:[#allocation25_spill] sm:$0xff] %v13275_v15  ;;  %v3824_v11 = vand.u32 4294901760, %v3741_v14  ;;  %v13287_v15 = vld [vmem:[#allocation7 + $0x80] sm:$0xff] }
 0x4e4   :  { %9019 = vmatpush1.bf16.msra.mxu0 %v9018_v12  ;;  %3585 = vmatprep.mubr.f32.mxu0 %v17528_v5  ;;  %v13256_v12 = vpack.c.bf16 %v17536_v47, %v17534_v4  ;;  %v3814_v56 = vand.u32 4294901760, %v3734_v45  ;;  %17537 = vst [vmem:[#allocation89_spill] sm:$0xff] %v13258_v26  ;;  %v13262_v5 = vsub.f32 %v3735_v54, %v3812_v27  ;;  %17540 = vst [vmem:[#allocation19_spill] sm:$0xff] %v13264_v49  ;;  %v3747_v27 = vld [vmem:[#allocation7 + $0x78] sm:$0xff]  ;;  %v3744_v49 = vld [vmem:[#allocation7 + $0x60] sm:$0xff] }
 0x4e5   :  { %9021 = vmatprep.subr.bf16.mxu0 %v9020_v59  ;;  %v3743_v59 = vld [vmem:[#allocation7 + $0x58] sm:$0xff]  ;;  %v13270_v47 = vpack.c.bf16 %v3820_v23, %v3816_v40  ;;  %9145 = vmatprep.subr.bf16.mxu1 %v13258_v26  ;;  %v3818_v54 = vand.u32 4294901760, %v3736_v34  ;;  %v13283_v51 = vsub.f32 %v3738_v8, %v3822_v2  ;;  %v13285_v23 = vsub.f32 %v3741_v14, %v3824_v11  ;;  %v3749_v26 = vld [vmem:[#allocation7 + $0x88] sm:$0xff] }
 0x4e6   :  { %17539 = vst [vmem:[#allocation59_spill] sm:$0xff] %v13262_v5  ;;  %v13266_v61 = vpack.c.bf16 %v3814_v56, %v3810_v35  ;;  %v13268_v4 = vsub.f32 %v3734_v45, %v3814_v56  ;;  %v3828_v35 = vand.u32 4294901760, %v3743_v59  ;;  %v3826_v45 = vand.u32 4294901760, %v3740_v58 }
 0x4e7   :  { %17543 = vst [vmem:[#allocation64_spill] sm:$0xff] %v13270_v47  ;;  %v3830_v56 = vand.u32 4294901760, %v3742_v1  ;;  %v13281_v40 = vsub.f32 %v3736_v34, %v3818_v54  ;;  %17548 = vst [vmem:[#allocation34_spill] sm:$0xff] %v13283_v51  ;;  %v3836_v8 = vand.u32 4294901760, %v3747_v27 }
 0x4e8   :  { %17541 = vst [vmem:[#allocation61_spill] sm:$0xff] %v13266_v61  ;;  %17542 = vst [vmem:[#allocation21_spill] sm:$0xff] %v13268_v4  ;;  %9023 = vmatpush1.bf16.msra.mxu0 %v9022_v28  ;;  %9147 = vmatpush1.bf16.msra.mxu1 %v13266_v61  ;;  %v3832_v4 = vand.u32 4294901760, %v3745_v10  ;;  %v13279_v28 = vpack.c.bf16 %v3822_v2, %v3818_v54  ;;  %v13289_v61 = vpack.c.bf16 %v3828_v35, %v3824_v11 }
 0x4e9   :  { %9025 = vmatprep.subr.bf16.mxu0 %v9024_v18  ;;  %9149 = vmatprep.subr.bf16.mxu1 %v13270_v47  ;;  %17547 = vst [vmem:[#allocation33_spill] sm:$0xff] %v13281_v40  ;;  %17549 = vst [vmem:[#allocation35_spill] sm:$0xff] %v13285_v23  ;;  %v3751_v18 = vld [vmem:[#allocation7 + $0x98] sm:$0xff]  ;;  %v13291_v60 = vsub.f32 %v3743_v59, %v3828_v35  ;;  %v13293_v5 = vpack.c.bf16 %v3830_v56, %v3826_v45  ;;  %v3750_v47 = vld [vmem:[#allocation7 + $0x90] sm:$0xff]  ;;  %v3834_v54 = vand.u32 4294901760, %v3744_v49 }
 0x4ea   :  { %17546 = vst [vmem:[#allocation29_spill] sm:$0xff] %v13279_v28  ;;  %17550 = vst [vmem:[#allocation36_spill] sm:$0xff] %v13289_v61  ;;  %v13295_v46 = vsub.f32 %v3740_v58, %v3826_v45  ;;  %v13298_v34 = vsub.f32 %v3742_v1, %v3830_v56  ;;  %v13300_v14 = vsub.f32 %v3745_v10, %v3832_v4  ;;  %v3838_v2 = vand.u32 4294901760, %v3746_v6  ;;  %v3753_v45 = vld [vmem:[#allocation7 + $0xa8] sm:$0xff]  ;;  %v3755_v56 = vld [vmem:[#allocation7 + $0xb8] sm:$0xff] }
 0x4eb   :  { %17551 = vst [vmem:[#allocation37_spill] sm:$0xff] %v13291_v60  ;;  %17552 = vst [vmem:[#allocation38_spill] sm:$0xff] %v13293_v5  ;;  %v3840_v59 = vand.u32 4294901760, %v3749_v26  ;;  %v3844_v11 = vand.u32 4294901760, %v3751_v18  ;;  %v3842_v35 = vand.u32 4294901760, %v13287_v15  ;;  %v13306_v58 = vpack.c.bf16 %v3836_v8, %v3832_v4  ;;  %v17564_v23 = vld [vmem:[#allocation98_spill] sm:$0xff] }
 0x4ec   :  { %17553 = vst [vmem:[#allocation39_spill] sm:$0xff] %v13295_v46  ;;  %9027 = vmatpush1.bf16.msra.mxu0 %v13217_v13  ;;  %17554 = vst [vmem:[#allocation40_spill] sm:$0xff] %v13298_v34  ;;  %9151 = vmatpush1.bf16.msra.mxu1 %v13279_v28  ;;  %v13308_v13 = vsub.f32 %v3747_v27, %v3836_v8  ;;  %v13310_v1 = vsub.f32 %v3744_v49, %v3834_v54  ;;  %v3846_v10 = vand.u32 4294901760, %v3750_v47  ;;  %v17561_v34 = vld [vmem:[#allocation68_spill] sm:$0xff]  ;;  %v3752_v49 = vld [vmem:[#allocation7 + $0xa0] sm:$0xff] }
 0x4ed   :  { %17555 = vst [vmem:[#allocation41_spill] sm:$0xff] %v13300_v14  ;;  %9029 = vmatprep.subr.bf16.mxu0 %v13225_v20  ;;  %9153 = vmatprep.subr.bf16.mxu1 %v13289_v61  ;;  %17556 = vst [vmem:[#allocation42_spill] sm:$0xff] %v13306_v58  ;;  %v17559_v14 = vld [vmem:[#allocation27_spill] sm:$0xff]  ;;  %v17562_v28 = vand.u32 4294901760, %v17561_v34  ;;  %v17563_v60 = vand.u32 4294901760, %v17461_v55  ;;  %v17565_v51 = vand.u32 4294901760, %v17564_v23  ;;  %v13324_v4 = vsub.f32 %v3746_v6, %v3838_v2 }
 0x4ee   :  { %17557 = vst [vmem:[#allocation43_spill] sm:$0xff] %v13308_v13  ;;  %17558 = vst [vmem:[#allocation50_spill] sm:$0xff] %v13310_v1  ;;  %v17560_v20 = vand.u32 4294901760, %v17559_v14  ;;  %v13326_v27 = vsub.f32 %v3749_v26, %v3840_v59  ;;  %v3754_v8 = vld [vmem:[#allocation7 + $0xb0] sm:$0xff]  ;;  %v13328_v1 = vld [vmem:[#allocation7 + $0xc8] sm:$0xff]  ;;  %v17568_v34 = vand.u32 4294901760, %v17462_v9  ;;  %v13337_v55 = vsub.f32 %v3751_v18, %v3844_v11 }
 0x4ef   :  { %v13322_v61 = vpack.c.bf16 %v17565_v51, %v17563_v60  ;;  %17566 = vst [vmem:[#allocation70_spill] sm:$0xff] %v13324_v4  ;;  %v13340_v60 = vsub.f32 %v13287_v15, %v3842_v35  ;;  %v13342_v6 = vsub.f32 %v3750_v47, %v3846_v10  ;;  %v3759_v26 = vld [vmem:[#allocation7 + $0xd8] sm:$0xff]  ;;  %v13344_v51 = vld [vmem:[#allocation7 + $0xc0] sm:$0xff]  ;;  %v17574_v9 = vand.u32 4294901760, %v17465_v38 }
 0x4f0   :  { %v13316_v46 = vpack.c.bf16 %v17562_v28, %v17560_v20  ;;  %17567 = vst [vmem:[#allocation31_spill] sm:$0xff] %v13326_v27  ;;  %9031 = vmatpush1.bf16.msra.mxu0 %v13231_v19  ;;  %v17569_v28 = vand.u32 4294901760, %v17463_v29  ;;  %17570 = vst [vmem:[#allocation75_spill] sm:$0xff] %v13337_v55  ;;  %v17573_v19 = vand.u32 4294901760, %v17464_v17  ;;  %9155 = vmatpush1.bf16.msra.mxu1 %v13293_v5  ;;  %v3848_v18 = vand.u32 4294901760, %v3753_v45  ;;  %v13356_v20 = vld [vmem:[#allocation7 + $0xd0] sm:$0xff] }
 0x4f1   :  { %17571 = vst [vmem:[#allocation52_spill] sm:$0xff] %v13340_v60  ;;  %17572 = vst [vmem:[#allocation54_spill] sm:$0xff] %v13342_v6  ;;  %9033 = vmatprep.subr.bf16.mxu0 %v13237_v41  ;;  %v13354_v29 = vpack.c.bf16 %v3838_v2, %v3834_v54  ;;  %v3852_v15 = vand.u32 4294901760, %v3755_v56  ;;  %9157 = vmatprep.subr.bf16.mxu1 %v13306_v58  ;;  %v13359_v47 = vpack.c.bf16 %v3844_v11, %v3840_v59  ;;  %v13371_v5 = vld [vmem:[#allocation7 + $0xe0] sm:$0xff] }
 0x4f2   :  { %v13335_v14 = vpack.c.bf16 %v17569_v28, %v17568_v34  ;;  %v13351_v23 = vpack.c.bf16 %v17574_v9, %v17573_v19  ;;  %v3850_v34 = vand.u32 4294901760, %v3752_v49  ;;  %v3854_v41 = vand.u32 4294901760, %v3754_v8  ;;  %v13362_v28 = vld [vmem:[#allocation7 + $0xe8] sm:$0xff]  ;;  %v13369_v9 = vld [vmem:[#allocation7 + $0xf8] sm:$0xff] }
 0x4f3   :  { %17575 = vst [vmem:[#allocation96_spill] sm:$0xff] %v13354_v29  ;;  %17576 = vst [vmem:[#allocation113_spill] sm:$0xff] %v13359_v47  ;;  %v3856_v17 = vand.u32 4294901760, %v13328_v1  ;;  %v13364_v38 = vsub.f32 %v3753_v45, %v3848_v18  ;;  %v13366_v19 = vsub.f32 %v3755_v56, %v3852_v15  ;;  %v3860_v54 = vand.u32 4294901760, %v3759_v26  ;;  %v13382_v56 = vld [vmem:[#allocation7 + $0xf0] sm:$0xff] }
 0x4f4   :  { %v3858_v2 = vand.u32 4294901760, %v13344_v51  ;;  %9035 = vmatpush1.bf16.msra.mxu0 %v13243_v3  ;;  %v13374_v59 = vsub.f32 %v3752_v49, %v3850_v34  ;;  %v13376_v11 = vsub.f32 %v3754_v8, %v3854_v41  ;;  %v3862_v45 = vand.u32 4294901760, %v13356_v20  ;;  %9159 = vmatpush1.bf16.msra.mxu1 %v13354_v29  ;;  %v13396_v8 = vld [vmem:[#allocation7 + $0x118] sm:$0xff] }
 0x4f5   :  { %17577 = vst [vmem:[#allocation114_spill] sm:$0xff] %v13364_v38  ;;  %17578 = vst [vmem:[#allocation115_spill] sm:$0xff] %v13366_v19  ;;  %v13379_v58 = vsub.f32 %v13328_v1, %v3856_v17  ;;  %v13384_v19 = vld [vmem:[#allocation7 + $0x108] sm:$0xff]  ;;  %9037 = vmatprep.subr.bf16.mxu0 %v13250_v22  ;;  %v13388_v38 = vpack.c.bf16 %v3846_v10, %v3842_v35  ;;  %v13390_v3 = vsub.f32 %v3759_v26, %v3860_v54  ;;  %v13408_v26 = vld [vmem:[#allocation7 + $0x110] sm:$0xff] }
 0x4f6   :  { %17579 = vst [vmem:[#allocation88_spill] sm:$0xff] %v13374_v59  ;;  %17580 = vst [vmem:[#allocation16_spill] sm:$0xff] %v13376_v11  ;;  %v13393_v49 = vsub.f32 %v13344_v51, %v3858_v2  ;;  %v3864_v1 = vand.u32 4294901760, %v13362_v28  ;;  %9161 = vmatprep.subr.bf16.mxu1 %v13359_v47  ;;  %v13401_v11 = vpack.c.bf16 %v3852_v15, %v3848_v18  ;;  %v3868_v35 = vand.u32 4294901760, %v13369_v9  ;;  %v13417_v18 = vld [vmem:[#allocation7 + $0x128] sm:$0xff]  ;;  %v13419_v15 = vld [vmem:[#allocation7 + $0x138] sm:$0xff] }
 0x4f7   :  { %17581 = vst [vmem:[#allocation18_spill] sm:$0xff] %v13379_v58  ;;  %17582 = vst [vmem:[#allocation55_spill] sm:$0xff] %v13388_v38  ;;  %v13398_v58 = vld [vmem:[#allocation7 + $0x100] sm:$0xff]  ;;  %v13404_v22 = vsub.f32 %v13356_v20, %v3862_v45  ;;  %v16270_v10 = vand.u32 4294901760, %v13371_v5  ;;  %v13410_v51 = vpack.c.bf16 %v3854_v41, %v3850_v34  ;;  %v3876_v41 = vand.u32 4294901760, %v13396_v8  ;;  %v13434_v47 = vld [vmem:[#allocation7 + $0x130] sm:$0xff] }
 0x4f8   :  { %17583 = vst [vmem:[#allocation57_spill] sm:$0xff] %v13390_v3  ;;  %17584 = vst [vmem:[#allocation20_spill] sm:$0xff] %v13393_v49  ;;  %v13413_v29 = vsub.f32 %v13362_v28, %v3864_v1  ;;  %v3870_v49 = vand.u32 4294901760, %v13382_v56  ;;  %9039 = vmatpush1.bf16.msra.mxu0 %v13256_v12  ;;  %v13423_v20 = vsub.f32 %v13369_v9, %v3868_v35  ;;  %9163 = vmatpush1.bf16.msra.mxu1 %v13388_v38  ;;  %v3772_v3 = vld [vmem:[#allocation7 + $0x140] sm:$0xff] }
 0x4f9   :  { %17585 = vst [vmem:[#allocation22_spill] sm:$0xff] %v13401_v11  ;;  %17586 = vst [vmem:[#allocation24_spill] sm:$0xff] %v13404_v22  ;;  %v13428_v34 = vsub.f32 %v13371_v5, %v16270_v10  ;;  %9041 = vmatprep.subr.bf16.mxu0 %v13316_v46  ;;  %v13438_v12 = vpack.c.bf16 %v3860_v54, %v3856_v17  ;;  %v17593_v10 = vand.u32 4294901760, %v13384_v19  ;;  %v3878_v28 = vand.u32 4294901760, %v13408_v26 }
 0x4fa   :  { %17587 = vst [vmem:[#allocation26_spill] sm:$0xff] %v13410_v51  ;;  %17588 = vst [vmem:[#allocation69_spill] sm:$0xff] %v13413_v29  ;;  %v13432_v29 = vld [vmem:[#allocation7 + $0x120] sm:$0xff]  ;;  %v13441_v9 = vsub.f32 %v13382_v56, %v3870_v49  ;;  %9165 = vmatprep.subr.bf16.mxu1 %v13401_v11  ;;  %v13453_v46 = vsub.f32 %v13396_v8, %v3876_v41  ;;  %v17596_v17 = vand.u32 4294901760, %v13398_v58  ;;  %v3880_v56 = vand.u32 4294901760, %v13417_v18 }
 0x4fb   :  { %17589 = vst [vmem:[#allocation71_spill] sm:$0xff] %v13423_v20  ;;  %17590 = vst [vmem:[#allocation73_spill] sm:$0xff] %v13428_v34  ;;  %v13446_v34 = vsub.f32 %v13384_v19, %v17593_v10  ;;  %v13449_v20 = vld [vmem:[#allocation7 + $0x148] sm:$0xff]  ;;  %v3884_v38 = vand.u32 4294901760, %v13419_v15  ;;  %v3775_v10 = vld [vmem:[#allocation7 + $0x158] sm:$0xff]  ;;  %v13467_v11 = vsub.f32 %v13408_v26, %v3878_v28  ;;  %v3882_v8 = vand.u32 4294901760, %v13432_v29 }
 0x4fc   :  { %17591 = vst [vmem:[#allocation74_spill] sm:$0xff] %v13438_v12  ;;  %17592 = vst [vmem:[#allocation78_spill] sm:$0xff] %v13441_v9  ;;  %v13458_v54 = vsub.f32 %v13398_v58, %v17596_v17  ;;  %v17599_v9 = vand.u32 4294901760, %v17467_v21  ;;  %v3774_v17 = vld [vmem:[#allocation7 + $0x150] sm:$0xff]  ;;  %9043 = vmatpush1.bf16.msra.mxu0 %v13322_v61  ;;  %v13472_v59 = vpack.c.bf16 %v3862_v45, %v3858_v2  ;;  %v3779_v26 = vld [vmem:[#allocation7 + $0x178] sm:$0xff]  ;;  %9167 = vmatpush1.bf16.msra.mxu1 %v13410_v51 }
 0x4fd   :  { %17594 = vst [vmem:[#allocation30_spill] sm:$0xff] %v13446_v34  ;;  %17595 = vst [vmem:[#allocation100_spill] sm:$0xff] %v13453_v46  ;;  %v17598_v34 = vand.u32 4294901760, %v17466_v44  ;;  %v3886_v46 = vand.u32 4294901760, %v13434_v47  ;;  %v13475_v6 = vsub.f32 %v13417_v18, %v3880_v56  ;;  %v13478_v21 = vsub.f32 %v13419_v15, %v3884_v38  ;;  %9045 = vmatprep.subr.bf16.mxu0 %v13335_v14  ;;  %v3778_v14 = vld [vmem:[#allocation7 + $0x170] sm:$0xff] }
 0x4fe   :  { %17597 = vst [vmem:[#allocation101_spill] sm:$0xff] %v13458_v54  ;;  %17600 = vst [vmem:[#allocation102_spill] sm:$0xff] %v13467_v11  ;;  %v3777_v54 = vld [vmem:[#allocation7 + $0x168] sm:$0xff]  ;;  %v3888_v44 = vand.u32 4294901760, %v13449_v20  ;;  %v13486_v61 = vsub.f32 %v13432_v29, %v3882_v8  ;;  %v3892_v45 = vand.u32 4294901760, %v3775_v10  ;;  %9169 = vmatprep.subr.bf16.mxu1 %v13438_v12  ;;  %v3890_v15 = vand.u32 4294901760, %v3772_v3 }
 0x4ff   :  { %v9048_v22 = vpack.c.bf16 %v17599_v9, %v17598_v34  ;;  %17601 = vst [vmem:[#allocation104_spill] sm:$0xff] %v13472_v59  ;;  %17602 = vst [vmem:[#allocation105_spill] sm:$0xff] %v13475_v6  ;;  %v3776_v34 = vld [vmem:[#allocation7 + $0x160] sm:$0xff]  ;;  %v13483_v9 = vpack.c.bf16 %v3868_v35, %v3864_v1  ;;  %v13489_v2 = vsub.f32 %v13434_v47, %v3886_v46  ;;  %v3896_v6 = vand.u32 4294901760, %v3777_v54 }
 0x500   :  { %17603 = vst [vmem:[#allocation106_spill] sm:$0xff] %v13478_v21  ;;  %17605 = vst [vmem:[#allocation108_spill] sm:$0xff] %v13486_v61  ;;  %v13493_v18 = vsub.f32 %v13449_v20, %v3888_v44  ;;  %v3894_v21 = vand.u32 4294901760, %v3774_v17  ;;  %v17608_v51 = vand.u32 4294901760, %v17468_v57  ;;  %v17609_v1 = vand.u32 4294901760, %v17469_v16  ;;  %9047 = vmatpush1.bf16.msra.mxu0 %v13351_v23  ;;  %9171 = vmatpush1.bf16.msra.mxu1 %v13472_v59 }
 0x501   :  { %17604 = vst [vmem:[#allocation107_spill] sm:$0xff] %v13483_v9  ;;  %17606 = vst [vmem:[#allocation110_spill] sm:$0xff] %v13489_v2  ;;  %v13499_v29 = vsub.f32 %v3775_v10, %v3892_v45  ;;  %v3900_v61 = vand.u32 4294901760, %v3779_v26  ;;  %v3898_v47 = vand.u32 4294901760, %v3776_v34  ;;  %v17610_v12 = vand.u32 4294901760, %v17470_v63  ;;  %9049 = vmatprep.subr.bf16.mxu0 %v9048_v22  ;;  %9173 = vmatprep.subr.bf16.mxu1 %v13483_v9  ;;  %v17730_v9 = vld [vmem:[#allocation50_spill] sm:$0xff] }
 0x502   :  { %17607 = vst [vmem:[#allocation111_spill] sm:$0xff] %v13493_v18  ;;  %v9050_v35 = vpack.c.bf16 %v17609_v1, %v17608_v51  ;;  %v17611_v20 = vand.u32 4294901760, %v17471_v53  ;;  %v13506_v2 = vsub.f32 %v3772_v3, %v3890_v15  ;;  %v13508_v11 = vsub.f32 %v3774_v17, %v3894_v21  ;;  %v17645_v1 = vld [vmem:[#allocation72_spill] sm:$0xff] }
 0x503   :  { %v13510_v60 = vsub.f32 %v3777_v54, %v3896_v6  ;;  %v17612_v16 = vand.u32 4294901760, %v13371_v5  ;;  %v13517_v51 = vsub.f32 %v3779_v26, %v3900_v61  ;;  %v3902_v23 = vand.u32 4294901760, %v3778_v14 }
 0x504   :  { %v9052_v18 = vpack.c.bf16 %v17611_v20, %v17610_v12  ;;  %v13519_v63 = vsub.f32 %v3776_v34, %v3898_v47  ;;  %v17614_v53 = vand.u32 4294901760, %v13384_v19  ;;  %9051 = vmatpush1.bf16.msra.mxu0 %v9050_v35  ;;  %v17616_v22 = vand.u32 4294901760, %v17439_v48  ;;  %v17649_v20 = vld [vmem:[#allocation76_spill] sm:$0xff] }
 0x505   :  { %v13515_v57 = vpack.c.bf16 %v3870_v49, %v17612_v16  ;;  %v13526_v12 = vsub.f32 %v3778_v14, %v3902_v23  ;;  %v17617_v5 = vand.u32 4294901760, %v17440_v32  ;;  %v17618_v54 = vand.u32 4294901760, %v17441_v30 }
 0x506   :  { %v13524_v3 = vpack.c.bf16 %v3876_v41, %v17614_v53  ;;  %9053 = vmatprep.subr.bf16.mxu0 %v9052_v18  ;;  %v17619_v10 = vand.u32 4294901760, %v12615_v31  ;;  %v17620_v19 = vand.u32 4294901760, %v13398_v58  ;;  %v13542_v26 = vpack.c.bf16 %v3884_v38, %v3880_v56  ;;  %v17651_v53 = vld [vmem:[#allocation94_spill] sm:$0xff] }
 0x507   :  { %17613 = vst [vmem:[#allocation87_spill] sm:$0xff] %v13515_v57  ;;  %v9054_v49 = vpack.c.bf16 %v17617_v5, %v17616_v22  ;;  %9175 = vmatpush1.bf16.msra.mxu1 %v13515_v57  ;;  %v17623_v48 = vand.u32 4294901760, %v12622_v52  ;;  %v17624_v32 = vand.u32 4294901760, %v12624_v24  ;;  %v17625_v31 = vand.u32 4294901760, %v12626_v50  ;;  %v17653_v22 = vld [vmem:[#allocation80_spill] sm:$0xff] }
 0x508   :  { %17615 = vst [vmem:[#allocation79_spill] sm:$0xff] %v13524_v3  ;;  %v9056_v17 = vpack.c.bf16 %v17619_v10, %v17618_v54  ;;  %v13539_v41 = vpack.c.bf16 %v3878_v28, %v17620_v19  ;;  %9177 = vmatprep.subr.bf16.mxu1 %v13524_v3  ;;  %17622 = vst [vmem:[#allocation62_spill] sm:$0xff] %v13542_v26  ;;  %v17626_v30 = vand.u32 4294901760, %v12633_v7  ;;  %v17629_v52 = vand.u32 4294901760, %v12635_v36  ;;  %v17655_v54 = vld [vmem:[#allocation83_spill] sm:$0xff] }
 0x509   :  { %9055 = vmatpush1.bf16.msra.mxu0 %v9054_v49  ;;  %v9058_v34 = vpack.c.bf16 %v17624_v32, %v17623_v48  ;;  %v13553_v58 = vpack.c.bf16 %v3886_v46, %v3882_v8  ;;  %v13556_v38 = vpack.c.bf16 %v3892_v45, %v3888_v44  ;;  %v17630_v24 = vand.u32 4294901760, %v12642_v25  ;;  %v17659_v32 = vld [vmem:[#allocation67_spill] sm:$0xff] }
 0x50a   :  { %17621 = vst [vmem:[#allocation60_spill] sm:$0xff] %v13539_v41  ;;  %9057 = vmatprep.subr.bf16.mxu0 %v9056_v17  ;;  %v9060_v18 = vpack.c.bf16 %v17626_v30, %v17625_v31  ;;  %v17631_v50 = vand.u32 4294901760, %v12784_v37  ;;  %v17632_v7 = vand.u32 4294901760, %v12786_v39  ;;  %v13567_v46 = vpack.c.bf16 %v3894_v21, %v3890_v15  ;;  %v17657_v17 = vld [vmem:[#allocation84_spill] sm:$0xff]  ;;  %v17661_v31 = vld [vmem:[#allocation77_spill] sm:$0xff]  ;;  %v17662_v30 = vld [vmem:[#allocation86_spill] sm:$0xff] }
 0x50b   :  { %9179 = vmatpush1.bf16.msra.mxu1 %v13539_v41  ;;  %17627 = vst [vmem:[#allocation65_spill] sm:$0xff] %v13553_v58  ;;  %17628 = vst [vmem:[#allocation66_spill] sm:$0xff] %v13556_v38  ;;  %v9062_v28 = vpack.c.bf16 %v17630_v24, %v17629_v52  ;;  %v13570_v8 = vpack.c.bf16 %v3900_v61, %v3896_v6  ;;  %v17635_v36 = vand.u32 4294901760, %v12788_v33  ;;  %v17636_v25 = vand.u32 4294901760, %v12790_v42  ;;  %v17641_v61 = vld [vmem:[#allocation90_spill] sm:$0xff]  ;;  %v17643_v42 = vld [vmem:[#allocation91_spill] sm:$0xff] }
 0x50c   :  { %9181 = vmatprep.subr.bf16.mxu1 %v13542_v26  ;;  %v9064_v56 = vpack.c.bf16 %v17632_v7, %v17631_v50  ;;  %17633 = vst [vmem:[#allocation27_spill] sm:$0xff] %v13567_v46  ;;  %v17637_v37 = vand.u32 4294901760, %v12792_v43  ;;  %v17638_v39 = vand.u32 4294901760, %v12794_v62  ;;  %v13581_v21 = vpack.c.bf16 %v3902_v23, %v3898_v47  ;;  %v17647_v62 = vld [vmem:[#allocation51_spill] sm:$0xff]  ;;  %v17665_v24 = vld [vmem:[#allocation56_spill] sm:$0xff]  ;;  %v17668_v7 = vld [vmem:[#allocation81_spill] sm:$0xff] }
 0x50d   :  { %9059 = vmatpush1.bf16.msra.mxu0 %v9058_v34  ;;  %17634 = vst [vmem:[#allocation68_spill] sm:$0xff] %v13570_v8  ;;  %v9066_v44 = vpack.c.bf16 %v17636_v25, %v17635_v36  ;;  %v17640_v6 = vand.u32 4294901760, %v12796_v0  ;;  %v17642_v33 = vand.u32 4294901760, %v17641_v61  ;;  %v17644_v14 = vand.u32 4294901760, %v17643_v42  ;;  %v17660_v34 = vld [vmem:[#allocation85_spill] sm:$0xff]  ;;  %v17664_v52 = vld [vmem:[#allocation15_spill] sm:$0xff] }
 0x50e   :  { %9061 = vmatprep.subr.bf16.mxu0 %v9060_v18  ;;  %v9068_v45 = vpack.c.bf16 %v17638_v39, %v17637_v37  ;;  %17639 = vst [vmem:[#allocation98_spill] sm:$0xff] %v13581_v21  ;;  %v17646_v43 = vand.u32 4294901760, %v17645_v1  ;;  %v17648_v47 = vand.u32 4294901760, %v17647_v62  ;;  %v17650_v16 = vand.u32 4294901760, %v17649_v20  ;;  %v17663_v18 = vld [vmem:[#allocation53_spill] sm:$0xff]  ;;  %v17667_v50 = vld [vmem:[#allocation63_spill] sm:$0xff] }
 0x50f   :  { %9183 = vmatpush1.bf16.msra.mxu1 %v13553_v58  ;;  %v9070_v15 = vpack.c.bf16 %v17642_v33, %v17640_v6  ;;  %v17652_v0 = vand.u32 4294901760, %v17651_v53  ;;  %v17654_v5 = vand.u32 4294901760, %v17653_v22  ;;  %v17656_v10 = vand.u32 4294901760, %v17655_v54  ;;  %v17670_v36 = vld [vmem:[#allocation28_spill] sm:$0xff]  ;;  %v17671_v25 = vld [vmem:[#allocation97_spill] sm:$0xff]  ;;  %v17673_v37 = vld [vmem:[#allocation103_spill] sm:$0xff] }
 0x510   :  { %9185 = vmatprep.subr.bf16.mxu1 %v13556_v38  ;;  %v9072_v35 = vpack.c.bf16 %v17646_v43, %v17644_v14  ;;  %v9074_v23 = vpack.c.bf16 %v17650_v16, %v17648_v47  ;;  %v17658_v19 = vand.u32 4294901760, %v17657_v17  ;;  %v17674_v39 = vld [vmem:[#allocation109_spill] sm:$0xff]  ;;  %v17676_v6 = vld [vmem:[#allocation116_spill] sm:$0xff]  ;;  %v17678_v33 = vld [vmem:[#allocation118_spill] sm:$0xff] }
 0x511   :  { %9063 = vmatpush1.bf16.msra.mxu0 %v9062_v28  ;;  %v9076_v49 = vpack.c.bf16 %v17654_v5, %v17652_v0  ;;  %v17666_v28 = vld [vmem:[#allocation58_spill] sm:$0xff]  ;;  %v17677_v61 = vld [vmem:[#allocation117_spill] sm:$0xff]  ;;  %v17680_v42 = vld [vmem:[#allocation120_spill] sm:$0xff] }
 0x512   :  { %9065 = vmatprep.subr.bf16.mxu0 %v9064_v56  ;;  %v9078_v48 = vpack.c.bf16 %v17658_v19, %v17656_v10  ;;  %v17669_v56 = vld [vmem:[#allocation95_spill] sm:$0xff]  ;;  %v17681_v14 = vld [vmem:[#allocation121_spill] sm:$0xff]  ;;  %v17682_v1 = vld [vmem:[#allocation122_spill] sm:$0xff] }
 0x513   :  { %9187 = vmatpush1.bf16.msra.mxu1 %v13567_v46  ;;  %v17683_v43 = vld [vmem:[#allocation123_spill] sm:$0xff]  ;;  %v17685_v62 = vld [vmem:[#allocation44_spill] sm:$0xff]  ;;  %v17686_v47 = vld [vmem:[#allocation45_spill] sm:$0xff] }
 0x514   :  { %9189 = vmatprep.subr.bf16.mxu1 %v13570_v8  ;;  %v17687_v20 = vld [vmem:[#allocation46_spill] sm:$0xff]  ;;  %v17688_v16 = vld [vmem:[#allocation47_spill] sm:$0xff]  ;;  %v17690_v53 = vld [vmem:[#allocation32_spill] sm:$0xff] }
 0x515   :  { %9067 = vmatpush1.bf16.msra.mxu0 %v9066_v44  ;;  %v17672_v44 = vld [vmem:[#allocation99_spill] sm:$0xff]  ;;  %v17691_v0 = vld [vmem:[#allocation49_spill] sm:$0xff]  ;;  %v17692_v22 = vld [vmem:[#allocation82_spill] sm:$0xff] }
 0x516   :  { %9069 = vmatprep.subr.bf16.mxu0 %v9068_v45  ;;  %v17675_v45 = vld [vmem:[#allocation112_spill] sm:$0xff]  ;;  %v3780_v17 = vld [vmem:[#allocation7 + $0x180] sm:$0xff] }
 0x517   :  { %9191 = vmatpush1.bf16.msra.mxu1 %v13581_v21  ;;  %v3781_v5 = vld [vmem:[#allocation7 + $0x188] sm:$0xff]  ;;  %v3782_v19 = vld [vmem:[#allocation7 + $0x190] sm:$0xff] }
 0x518   :  { %v3904_v54 = vand.u32 4294901760, %v3781_v5 }
 0x519   :  { %9071 = vmatpush1.bf16.msra.mxu0 %v9070_v15  ;;  %v17679_v15 = vld [vmem:[#allocation119_spill] sm:$0xff] }
 0x51a   :  { %9073 = vmatprep.subr.bf16.mxu0 %v9072_v35  ;;  %v17684_v35 = vld [vmem:[#allocation124_spill] sm:$0xff] }
 0x51d   :  { %9075 = vmatpush1.bf16.msra.mxu0 %v9074_v23  ;;  %v17689_v23 = vld [vmem:[#allocation48_spill] sm:$0xff] }
 0x51e   :  { %9077 = vmatprep.subr.bf16.mxu0 %v9076_v49  ;;  %v3783_v49 = vld [vmem:[#allocation7 + $0x198] sm:$0xff] }
 0x51f   :  { %v3908_v10 = vand.u32 4294901760, %v3783_v49 }
 0x521   :  { %9079 = vmatpush1.bf16.msra.mxu0 %v9078_v48  ;;  %v3906_v48 = vand.u32 4294901760, %v3780_v17  ;;  %v13670_v21 = vsub.f32 %v3783_v49, %v3908_v10 }
 0x522   :  { %9081 = vmatprep.subr.bf16.mxu0 %v17659_v32  ;;  %v3910_v32 = vand.u32 4294901760, %v3782_v19 }
 0x523   :  { %v13672_v8 = vsub.f32 %v3780_v17, %v3906_v48 }
 0x524   :  { %3587 = vmatmul.mubr.f32.vlgmr.msra.gmra.mrb[2].mxu0 %v17660_v34  ;;  %v13674_v46 = vsub.f32 %v3782_v19, %v3910_v32 }
 0x525   :  { %9083 = vmatpush1.bf16.msra.mxu0 %v17661_v31  ;;  %3722 = vmatprep.mubr.f32.mxu0 %v17662_v30  ;;  %v13640_v31 = vpack.c.bf16 %v3908_v10, %v3904_v54  ;;  %v13642_v30 = vpack.c.bf16 %v3910_v32, %v3906_v48 }
 0x526   :  { %9085 = vmatprep.subr.bf16.mxu0 %v17663_v18  ;;  %v3785_v18 = vld [vmem:[#allocation7 + $0x1a8] sm:$0xff] }
 0x527   :  { %17693 = vst [vmem:[#allocation90_spill] sm:$0xff] %v13640_v31  ;;  %17694 = vst [vmem:[#allocation91_spill] sm:$0xff] %v13642_v30  ;;  %9193 = vmatprep.subr.bf16.mxu1 %v13640_v31  ;;  %v13668_v31 = vsub.f32 %v3781_v5, %v3904_v54 }
 0x528   :  { %9195 = vmatpush1.bf16.msra.mxu1 %v13642_v30 }
 0x529   :  { %9087 = vmatpush1.bf16.msra.mxu0 %v17664_v52  ;;  %v3787_v52 = vld [vmem:[#allocation7 + $0x1b8] sm:$0xff] }
 0x52a   :  { %9089 = vmatprep.subr.bf16.mxu0 %v17665_v24  ;;  %v3912_v24 = vand.u32 4294901760, %v3785_v18 }
 0x52d   :  { %9091 = vmatpush1.bf16.msra.mxu0 %v17666_v28  ;;  %v3916_v28 = vand.u32 4294901760, %v3787_v52 }
 0x52e   :  { %9093 = vmatprep.subr.bf16.mxu0 %v17667_v50  ;;  %v3784_v50 = vld [vmem:[#allocation7 + $0x1a0] sm:$0xff] }
 0x52f   :  { %v13678_v38 = vsub.f32 %v3787_v52, %v3916_v28 }
 0x531   :  { %9095 = vmatpush1.bf16.msra.mxu0 %v17668_v7  ;;  %v3914_v7 = vand.u32 4294901760, %v3784_v50 }
 0x532   :  { %9097 = vmatprep.subr.bf16.mxu0 %v17669_v56 }
 0x533   :  { %v13680_v58 = vsub.f32 %v3784_v50, %v3914_v7  ;;  %v17712_v50 = vld [vmem:[#allocation92_spill] sm:$0xff] }
 0x535   :  { %9099 = vmatpush1.bf16.msra.mxu0 %v17670_v36  ;;  %v13646_v36 = vpack.c.bf16 %v3916_v28, %v3912_v24  ;;  %v2434_v28 = vld [vmem:[%s15730_s6] sm:$0x3] }
 0x536   :  { %9101 = vmatprep.subr.bf16.mxu0 %v17671_v25 }
 0x537   :  { %17695 = vst [vmem:[#allocation72_spill] sm:$0xff] %v13646_v36  ;;  %9197 = vmatprep.subr.bf16.mxu1 %v13646_v36 }
 0x539   :  { %9103 = vmatpush1.bf16.msra.mxu0 %v17672_v44  ;;  %v3789_v44 = vld [vmem:[#allocation7 + $0x1c8] sm:$0xff] }
 0x53a   :  { %9105 = vmatprep.subr.bf16.mxu0 %v17673_v37  ;;  %v3791_v37 = vld [vmem:[#allocation7 + $0x1d8] sm:$0xff] }
 0x53d   :  { %9107 = vmatpush1.bf16.msra.mxu0 %v17674_v39  ;;  %v3920_v39 = vand.u32 4294901760, %v3789_v44 }
 0x53e   :  { %9109 = vmatprep.subr.bf16.mxu0 %v17675_v45  ;;  %v3924_v45 = vand.u32 4294901760, %v3791_v37 }
 0x540   :  { %v13687_v5 = vsub.f32 %v3791_v37, %v3924_v45 }
 0x541   :  { %9111 = vmatpush1.bf16.msra.mxu0 %v17676_v6  ;;  %v3788_v6 = vld [vmem:[#allocation7 + $0x1c0] sm:$0xff] }
 0x542   :  { %9113 = vmatprep.subr.bf16.mxu0 %v17677_v61  ;;  %v3790_v61 = vld [vmem:[#allocation7 + $0x1d0] sm:$0xff]  ;;  %17704 = vst [vmem:[#allocation67_spill] sm:$0xff] %v13687_v5 }
 0x545   :  { %9115 = vmatpush1.bf16.msra.mxu0 %v17678_v33  ;;  %v3922_v33 = vand.u32 4294901760, %v3788_v6 }
 0x546   :  { %9117 = vmatprep.subr.bf16.mxu0 %v17679_v15  ;;  %v3926_v15 = vand.u32 4294901760, %v3790_v61 }
 0x547   :  { %v13689_v49 = vsub.f32 %v3788_v6, %v3922_v33 }
 0x548   :  { %v13691_v54 = vsub.f32 %v3790_v61, %v3926_v15  ;;  %v17716_v61 = vld [vmem:[#allocation23_spill] sm:$0xff] }
 0x549   :  { %9119 = vmatpush1.bf16.msra.mxu0 %v17680_v42  ;;  %v13652_v42 = vpack.c.bf16 %v3924_v45, %v3920_v39  ;;  %17705 = vst [vmem:[#allocation85_spill] sm:$0xff] %v13689_v49 }
 0x54a   :  { %9121 = vmatprep.subr.bf16.mxu0 %v17681_v14  ;;  %v13654_v14 = vpack.c.bf16 %v3926_v15, %v3922_v33  ;;  %17706 = vst [vmem:[#allocation77_spill] sm:$0xff] %v13691_v54  ;;  %v16325_v33 = vand.u32 4294901760, %v17716_v61  ;;  %v17717_v15 = vld [vmem:[#allocation25_spill] sm:$0xff] }
 0x54b   :  { %17697 = vst [vmem:[#allocation76_spill] sm:$0xff] %v13652_v42 }
 0x54c   :  { %17698 = vst [vmem:[#allocation94_spill] sm:$0xff] %v13654_v14 }
 0x54d   :  { %9123 = vmatpush1.bf16.msra.mxu0 %v17682_v1  ;;  %v3793_v1 = vld [vmem:[#allocation7 + $0x1e8] sm:$0xff] }
 0x54e   :  { %9125 = vmatprep.subr.bf16.mxu0 %v17683_v43  ;;  %v3795_v43 = vld [vmem:[#allocation7 + $0x1f8] sm:$0xff] }
 0x551   :  { %9127 = vmatpush1.bf16.msra.mxu0 %v17684_v35  ;;  %v3928_v35 = vand.u32 4294901760, %v3793_v1 }
 0x552   :  { %9129 = vmatprep.subr.bf16.mxu0 %v17685_v62  ;;  %v3932_v62 = vand.u32 4294901760, %v3795_v43 }
 0x553   :  { %v13693_v10 = vsub.f32 %v3793_v1, %v3928_v35 }
 0x554   :  { %v13695_v17 = vsub.f32 %v3795_v43, %v3932_v62 }
 0x555   :  { %9131 = vmatpush1.bf16.msra.mxu0 %v17686_v47  ;;  %v3792_v47 = vld [vmem:[#allocation7 + $0x1e0] sm:$0xff]  ;;  %17707 = vst [vmem:[#allocation86_spill] sm:$0xff] %v13693_v10 }
 0x556   :  { %9133 = vmatprep.subr.bf16.mxu0 %v17687_v20  ;;  %v3794_v20 = vld [vmem:[#allocation7 + $0x1f0] sm:$0xff]  ;;  %17708 = vst [vmem:[#allocation53_spill] sm:$0xff] %v13695_v17 }
 0x557   :  { %v3934_v36 = vand.u32 4294901760, %v3794_v20 }
 0x559   :  { %9135 = vmatpush1.bf16.msra.mxu0 %v17688_v16  ;;  %v17699_v16 = vld [vmem:[#allocation17_spill] sm:$0xff]  ;;  %v13701_v32 = vsub.f32 %v3794_v20, %v3934_v36 }
 0x55a   :  { %9137 = vmatprep.subr.bf16.mxu0 %v17689_v23  ;;  %v16320_v23 = vand.u32 4294901760, %v17699_v16 }
 0x55b   :  { %17711 = vst [vmem:[#allocation58_spill] sm:$0xff] %v13701_v32 }
 0x55c   :  { %v3956_v30 = vsub.f32 %v17699_v16, %v16320_v23  ;;  %v13685_v23 = vsub.f32 %v3789_v44, %v3920_v39  ;;  %v17714_v44 = vld [vmem:[#allocation19_spill] sm:$0xff]  ;;  %v17715_v39 = vld [vmem:[#allocation21_spill] sm:$0xff] }
 0x55d   :  { %9139 = vmatpush1.bf16.msra.mxu0 %v17690_v53  ;;  %v17700_v53 = vld [vmem:[#allocation59_spill] sm:$0xff]  ;;  %v16322_v37 = vand.u32 4294901760, %v17714_v44  ;;  %v16321_v45 = vand.u32 4294901760, %v17715_v39 }
 0x55e   :  { %9141 = vmatprep.subr.bf16.mxu0 %v17691_v0  ;;  %v16323_v0 = vand.u32 4294901760, %v17700_v53  ;;  %17703 = vst [vmem:[#allocation84_spill] sm:$0xff] %v13685_v23 }
 0x55f   :  { %v3962_v43 = vsub.f32 %v17714_v44, %v16322_v37  ;;  %v17723_v37 = vld [vmem:[#allocation37_spill] sm:$0xff] }
 0x561   :  { %9143 = vmatpush1.bf16.msra.mxu0 %v17692_v22  ;;  %v3930_v22 = vand.u32 4294901760, %v3792_v47 }
 0x563   :  { %v13697_v19 = vpack.c.bf16 %v3934_v36, %v3930_v22  ;;  %v13699_v48 = vsub.f32 %v3792_v47, %v3930_v22  ;;  %v16328_v47 = vand.u32 4294901760, %v13281_v40  ;;  %v17718_v22 = vld [vmem:[#allocation34_spill] sm:$0xff] }
 0x564   :  { %3724 = vmatmul.mubr.f32.vlgmr.msra.gmra.mrb[2].mxu0 %v17660_v34  ;;  %v3786_v34 = vld [vmem:[#allocation7 + $0x1b0] sm:$0xff] }
 0x565   :  { %v3918_v56 = vand.u32 4294901760, %v3786_v34  ;;  %17709 = vst [vmem:[#allocation15_spill] sm:$0xff] %v13697_v19  ;;  %17710 = vst [vmem:[#allocation56_spill] sm:$0xff] %v13699_v48 }
 0x567   :  { %v13648_v25 = vpack.c.bf16 %v3918_v56, %v3914_v7  ;;  %v13682_v26 = vsub.f32 %v3786_v34, %v3918_v56  ;;  %v2439_v34 = vrot.slane %v2434_v28, %v17712_v50  ;;  %v17713_v7 = vld [vmem:[#allocation93_spill] sm:$0xff] }
 0x568   :  { %v2443_v56 = vrot.slane %v2434_v28, %v17713_v7 }
 0x569   :  { %17696 = vst [vmem:[#allocation51_spill] sm:$0xff] %v13648_v25  ;;  %9199 = vmatpush1.bf16.msra.mxu1 %v13648_v25  ;;  %v13660_v25 = vpack.c.bf16 %v3932_v62, %v3928_v35  ;;  %17702 = vst [vmem:[#allocation83_spill] sm:$0xff] %v13682_v26  ;;  %v3974_v35 = vsub.f32 %v17715_v39, %v16321_v45  ;;  %v3986_v45 = vsub.f32 %v13281_v40, %v16328_v47  ;;  %v17727_v47 = vld [vmem:[#allocation40_spill] sm:$0xff] }
 0x56a   :  { %9201 = vmatprep.subr.bf16.mxu1 %v13652_v42  ;;  %v3968_v42 = vsub.f32 %v17700_v53, %v16323_v0 }
 0x56b   :  { %17701 = vst [vmem:[#allocation80_spill] sm:$0xff] %v13660_v25 }
 0x56c   :  { %v3969_v52 = vand.u32 4294901760, %v3968_v42  ;;  %v16324_v42 = vand.u32 4294901760, %v17717_v15 }
 0x56d   :  { %9203 = vmatpush1.bf16.msra.mxu1 %v13654_v14  ;;  %v13676_v14 = vsub.f32 %v3785_v18, %v3912_v24  ;;  %v3957_v18 = vand.u32 4294901760, %v3956_v30 }
 0x56e   :  { %9205 = vmatprep.subr.bf16.mxu1 %v13660_v25 }
 0x56f   :  { %v9208_v24 = vpack.c.bf16 %v3969_v52, %v3957_v18  ;;  %v16333_v18 = vand.u32 4294901760, %v17718_v22  ;;  %v17719_v52 = vld [vmem:[#allocation35_spill] sm:$0xff] }
 0x571   :  { %9207 = vmatpush1.bf16.msra.mxu1 %v13697_v19 }
 0x572   :  { %9209 = vmatprep.subr.bf16.mxu1 %v9208_v24 }
 0x637   :  { %v3725_v36 = vpop.f32.mrb[2].mxu0 }
 0x638   :  { %v10146_v6 = vadd.f32 %v3725_v36, %v2439_v34  ;;  %v3727_v30 = vpop.f32.mrb[3].mxu0  ;;  %v3980_v34 = vsub.f32 %v17716_v61, %v16325_v33  ;;  %v17725_v33 = vand.u32 4294901760, %v17719_v52 }
 0x639   :  { %v10147_v1 = vadd.f32 %v3727_v30, %v2443_v56  ;;  %v3992_v56 = vsub.f32 %v17717_v15, %v16324_v42  ;;  %v3975_v30 = vand.u32 4294901760, %v3974_v35  ;;  %v3998_v42 = vsub.f32 %v17718_v22, %v16333_v18  ;;  %v17726_v35 = vld [vmem:[#allocation39_spill] sm:$0xff] }
 0x63a   :  { %v3730_v62 = vmax.f32 %v10146_v6, 0.0  ;;  %v3963_v6 = vand.u32 4294901760, %v3962_v43  ;;  %v4004_v43 = vsub.f32 %v17719_v52, %v17725_v33  ;;  %v3981_v50 = vand.u32 4294901760, %v3980_v34  ;;  %v17729_v33 = vld [vmem:[#allocation41_spill] sm:$0xff]  ;;  %v17736_v52 = vld [vmem:[#allocation54_spill] sm:$0xff]  ;;  %v17738_v22 = vld [vmem:[#allocation115_spill] sm:$0xff] }
 0x63b   :  { %v3731_v20 = vmax.f32 %v10147_v1, 0.0  ;;  %v3993_v19 = vand.u32 4294901760, %v3992_v56  ;;  %v17728_v18 = vand.u32 4294901760, %v17723_v37  ;;  %v3987_v56 = vand.u32 4294901760, %v3986_v45  ;;  %v17737_v45 = vld [vmem:[#allocation114_spill] sm:$0xff] }
 0x63c   :  { %v13722_v28 = vand.u32 4294901760, %v3730_v62  ;;  %v3999_v25 = vand.u32 4294901760, %v3998_v42  ;;  %v4005_v59 = vand.u32 4294901760, %v4004_v43  ;;  %v17734_v43 = vand.u32 4294901760, %v13308_v13 }
 0x63d   :  { %v13730_v36 = vand.u32 4294901760, %v3731_v20  ;;  %v4016_v3 = vsub.f32 %v17723_v37, %v17728_v18  ;;  %v17732_v18 = vand.u32 4294901760, %v17727_v47 }
 0x63e   :  { %17720 = vst [vmem:[#allocation63_spill] sm:$0xff] %v13722_v28  ;;  %v13733_v1 = vsub.f32 %v3730_v62, %v13722_v28 }
 0x63f   :  { %17721 = vst [vmem:[#allocation81_spill] sm:$0xff] %v13730_v36  ;;  %v13740_v24 = vsub.f32 %v3731_v20, %v13730_v36  ;;  %v9210_v20 = vpack.c.bf16 %v3975_v30, %v3963_v6  ;;  %v16353_v6 = vand.u32 4294901760, %v17730_v9  ;;  %v9212_v30 = vpack.c.bf16 %v3993_v19, %v3981_v50 }
 0x640   :  { %17722 = vst [vmem:[#allocation95_spill] sm:$0xff] %v13733_v1  ;;  %v16342_v7 = vand.u32 4294901760, %v13733_v1  ;;  %v4022_v57 = vsub.f32 %v17727_v47, %v17732_v18  ;;  %v17733_v19 = vand.u32 4294901760, %v17729_v33  ;;  %v17735_v18 = vld [vmem:[#allocation52_spill] sm:$0xff]  ;;  %v16361_v47 = vand.u32 4294901760, %v17736_v52 }
 0x641   :  { %17724 = vst [vmem:[#allocation28_spill] sm:$0xff] %v13740_v24  ;;  %v16347_v0 = vand.u32 4294901760, %v13740_v24 }
 0x642   :  { %v3945_v41 = vsub.f32 %v13733_v1, %v16342_v7  ;;  %v17731_v7 = vand.u32 4294901760, %v17726_v35  ;;  %v4028_v50 = vsub.f32 %v17729_v33, %v17733_v19  ;;  %v17749_v33 = vld [vmem:[#allocation20_spill] sm:$0xff] }
 0x643   :  { %v3939_v34 = vsub.f32 %v13740_v24, %v16347_v0  ;;  %v4017_v0 = vand.u32 4294901760, %v4016_v3  ;;  %v16377_v40 = vand.u32 4294901760, %v17749_v33 }
 0x644   :  { %v4010_v1 = vsub.f32 %v17726_v35, %v17731_v7  ;;  %v3946_v42 = vand.u32 4294901760, %v3945_v41  ;;  %v4040_v7 = vsub.f32 %v13308_v13, %v17734_v43  ;;  %v9214_v41 = vpack.c.bf16 %v3999_v25, %v3987_v56 }
 0x645   :  { %v3940_v37 = vand.u32 4294901760, %v3939_v34  ;;  %v4034_v34 = vsub.f32 %v17730_v9, %v16353_v6  ;;  %v4023_v43 = vand.u32 4294901760, %v4022_v57  ;;  %v17740_v6 = vand.u32 4294901760, %v13326_v27 }
 0x646   :  { %v4011_v3 = vand.u32 4294901760, %v4010_v1  ;;  %v9216_v1 = vpack.c.bf16 %v4017_v0, %v4005_v59  ;;  %v4029_v56 = vand.u32 4294901760, %v4028_v50  ;;  %v4041_v19 = vand.u32 4294901760, %v4040_v7  ;;  %v17745_v59 = vld [vmem:[#allocation88_spill] sm:$0xff] }
 0x647   :  { %3941 = vmatprep.mubr.f32.mxu1 %v3940_v37  ;;  %v17739_v37 = vand.u32 4294901760, %v13324_v4  ;;  %v4052_v62 = vsub.f32 %v13326_v27, %v17740_v6  ;;  %v17742_v35 = vand.u32 4294901760, %v17735_v18  ;;  %v17744_v27 = vand.u32 4294901760, %v17738_v22  ;;  %v17746_v50 = vld [vmem:[#allocation16_spill] sm:$0xff] }
 0x648   :  { %3947 = vmatmul.mubr.f32.vlgmr.msra.gmra.mrb[4].mxu1 %v3946_v42  ;;  %v17741_v42 = vand.u32 4294901760, %v13337_v55  ;;  %v16375_v7 = vand.u32 4294901760, %v17746_v50 }
 0x649   :  { %9211 = vmatpush1.bf16.msra.mxu1 %v9210_v20  ;;  %4338 = vmatprep.mubr.f32.mxu1 %v13730_v36  ;;  %v4046_v13 = vsub.f32 %v13324_v4, %v17739_v37  ;;  %v4035_v20 = vand.u32 4294901760, %v4034_v34  ;;  %v4058_v57 = vsub.f32 %v17735_v18, %v17742_v35  ;;  %v4070_v37 = vsub.f32 %v17736_v52, %v16361_v47  ;;  %v17747_v47 = vld [vmem:[#allocation18_spill] sm:$0xff]  ;;  %v17748_v4 = vld [vmem:[#allocation57_spill] sm:$0xff] }
 0x64a   :  { %v4064_v25 = vsub.f32 %v13337_v55, %v17741_v42  ;;  %9213 = vmatprep.subr.bf16.mxu1 %v9212_v30  ;;  %v17743_v36 = vand.u32 4294901760, %v17737_v45  ;;  %v4088_v30 = vsub.f32 %v17738_v22, %v17744_v27  ;;  %v9218_v34 = vpack.c.bf16 %v4023_v43, %v4011_v3  ;;  %v17750_v27 = vld [vmem:[#allocation24_spill] sm:$0xff] }
 0x64b   :  { %v4047_v42 = vand.u32 4294901760, %v4046_v13  ;;  %v4053_v35 = vand.u32 4294901760, %v4052_v62  ;;  %v9220_v55 = vpack.c.bf16 %v4041_v19, %v4029_v56  ;;  %v16374_v52 = vand.u32 4294901760, %v17747_v47 }
 0x64c   :  { %v4076_v6 = vsub.f32 %v17737_v45, %v17743_v36  ;;  %v4065_v18 = vand.u32 4294901760, %v4064_v25  ;;  %v16373_v9 = vand.u32 4294901760, %v17748_v4  ;;  %v4059_v36 = vand.u32 4294901760, %v4058_v57  ;;  %v17753_v57 = vld [vmem:[#allocation71_spill] sm:$0xff] }
 0x64d   :  { %9215 = vmatpush1.bf16.msra.mxu1 %v9214_v41  ;;  %v4071_v45 = vand.u32 4294901760, %v4070_v37  ;;  %v16379_v22 = vand.u32 4294901760, %v17750_v27  ;;  %v4089_v24 = vand.u32 4294901760, %v4088_v30  ;;  %v17751_v41 = vand.u32 4294901760, %v17745_v59  ;;  %v17757_v37 = vld [vmem:[#allocation100_spill] sm:$0xff] }
 0x64e   :  { %9217 = vmatprep.subr.bf16.mxu1 %v9216_v1  ;;  %v4077_v0 = vand.u32 4294901760, %v4076_v6  ;;  %v4094_v62 = vsub.f32 %v17746_v50, %v16375_v7  ;;  %v9222_v3 = vpack.c.bf16 %v4047_v42, %v4035_v20  ;;  %v9224_v19 = vpack.c.bf16 %v4065_v18, %v4053_v35  ;;  %v17752_v1 = vld [vmem:[#allocation69_spill] sm:$0xff] }
 0x64f   :  { %v4082_v13 = vsub.f32 %v17745_v59, %v17751_v41  ;;  %v4100_v43 = vsub.f32 %v17747_v47, %v16374_v52  ;;  %v4112_v25 = vsub.f32 %v17748_v4, %v16373_v9  ;;  %v4106_v6 = vsub.f32 %v17749_v33, %v16377_v40  ;;  %v17754_v42 = vld [vmem:[#allocation73_spill] sm:$0xff]  ;;  %v17755_v41 = vld [vmem:[#allocation78_spill] sm:$0xff] }
 0x650   :  { %v9226_v18 = vpack.c.bf16 %v4071_v45, %v4059_v36  ;;  %v9228_v20 = vpack.c.bf16 %v4089_v24, %v4077_v0  ;;  %v17756_v52 = vld [vmem:[#allocation30_spill] sm:$0xff]  ;;  %v17758_v33 = vand.u32 4294901760, %v17752_v1  ;;  %v17759_v24 = vand.u32 4294901760, %v17753_v57  ;;  %v17762_v35 = vld [vmem:[#allocation105_spill] sm:$0xff] }
 0x651   :  { %9219 = vmatpush1.bf16.msra.mxu1 %v9218_v34  ;;  %v4083_v30 = vand.u32 4294901760, %v4082_v13  ;;  %v4095_v34 = vand.u32 4294901760, %v4094_v62  ;;  %v4101_v4 = vand.u32 4294901760, %v4100_v43  ;;  %v4113_v40 = vand.u32 4294901760, %v4112_v25  ;;  %v17760_v13 = vld [vmem:[#allocation101_spill] sm:$0xff] }
 0x652   :  { %9221 = vmatprep.subr.bf16.mxu1 %v9220_v55  ;;  %v4118_v55 = vsub.f32 %v17750_v27, %v16379_v22  ;;  %v4124_v22 = vsub.f32 %v17752_v1, %v17758_v33  ;;  %v4136_v45 = vsub.f32 %v17753_v57, %v17759_v24  ;;  %v4107_v0 = vand.u32 4294901760, %v4106_v6 }
 0x653   :  { %v16384_v62 = vand.u32 4294901760, %v17760_v13  ;;  %v9230_v7 = vpack.c.bf16 %v4095_v34, %v4083_v30  ;;  %v17764_v25 = vand.u32 4294901760, %v17754_v42  ;;  %v17765_v1 = vand.u32 4294901760, %v17755_v41 }
 0x654   :  { %v4119_v36 = vand.u32 4294901760, %v4118_v55  ;;  %v17766_v6 = vand.u32 4294901760, %v17756_v52  ;;  %v17767_v9 = vand.u32 4294901760, %v17757_v37  ;;  %v9232_v34 = vpack.c.bf16 %v4113_v40, %v4101_v4  ;;  %v17771_v40 = vld [vmem:[#allocation108_spill] sm:$0xff] }
 0x655   :  { %9223 = vmatpush1.bf16.msra.mxu1 %v9222_v3  ;;  %v17761_v3 = vld [vmem:[#allocation102_spill] sm:$0xff]  ;;  %v4130_v33 = vsub.f32 %v17754_v42, %v17764_v25  ;;  %v4142_v24 = vsub.f32 %v17755_v41, %v17765_v1  ;;  %v4125_v43 = vand.u32 4294901760, %v4124_v22  ;;  %v4154_v25 = vsub.f32 %v17760_v13, %v16384_v62 }
 0x656   :  { %9225 = vmatprep.subr.bf16.mxu1 %v9224_v19  ;;  %v17763_v19 = vld [vmem:[#allocation106_spill] sm:$0xff]  ;;  %v4148_v55 = vsub.f32 %v17756_v52, %v17766_v6  ;;  %v4160_v30 = vsub.f32 %v17757_v37, %v17767_v9  ;;  %v9234_v56 = vpack.c.bf16 %v4119_v36, %v4107_v0  ;;  %v17768_v42 = vand.u32 4294901760, %v17761_v3 }
 0x657   :  { %v17769_v41 = vand.u32 4294901760, %v17762_v35  ;;  %v17770_v52 = vand.u32 4294901760, %v17763_v19  ;;  %v17772_v22 = vld [vmem:[#allocation110_spill] sm:$0xff]  ;;  %v4143_v0 = vand.u32 4294901760, %v4142_v24  ;;  %v16391_v37 = vand.u32 4294901760, %v13499_v29 }
 0x658   :  { %v4166_v1 = vsub.f32 %v17761_v3, %v17768_v42  ;;  %v4149_v36 = vand.u32 4294901760, %v4148_v55  ;;  %v4161_v62 = vand.u32 4294901760, %v4160_v30  ;;  %v17773_v42 = vld [vmem:[#allocation111_spill] sm:$0xff]  ;;  %v16392_v57 = vand.u32 4294901760, %v13506_v2 }
 0x659   :  { %9227 = vmatpush1.bf16.msra.mxu1 %v9226_v18  ;;  %v4137_v18 = vand.u32 4294901760, %v4136_v45  ;;  %v4172_v6 = vsub.f32 %v17762_v35, %v17769_v41  ;;  %v4184_v9 = vsub.f32 %v17763_v19, %v17770_v52  ;;  %v4131_v45 = vand.u32 4294901760, %v4130_v33 }
 0x65a   :  { %9229 = vmatprep.subr.bf16.mxu1 %v9228_v20  ;;  %v16404_v20 = vand.u32 4294901760, %v17772_v22  ;;  %v16403_v3 = vand.u32 4294901760, %v17773_v42  ;;  %v4155_v41 = vand.u32 4294901760, %v4154_v25  ;;  %v4167_v35 = vand.u32 4294901760, %v4166_v1 }
 0x65b   :  { %v9236_v13 = vpack.c.bf16 %v4137_v18, %v4125_v43  ;;  %v16393_v52 = vand.u32 4294901760, %v13508_v11  ;;  %v4173_v4 = vand.u32 4294901760, %v4172_v6  ;;  %v4185_v19 = vand.u32 4294901760, %v4184_v9 }
 0x65c   :  { %v4190_v43 = vsub.f32 %v17772_v22, %v16404_v20  ;;  %v9238_v24 = vpack.c.bf16 %v4143_v0, %v4131_v45  ;;  %v9240_v55 = vpack.c.bf16 %v4161_v62, %v4149_v36  ;;  %v4196_v30 = vsub.f32 %v17773_v42, %v16403_v3 }
 0x65d   :  { %9231 = vmatpush1.bf16.msra.mxu1 %v9230_v7  ;;  %v17774_v7 = vand.u32 4294901760, %v17771_v40  ;;  %v16402_v18 = vand.u32 4294901760, %v13510_v60  ;;  %v16394_v25 = vand.u32 4294901760, %v13517_v51  ;;  %v4202_v1 = vsub.f32 %v13506_v2, %v16392_v57 }
 0x65e   :  { %9233 = vmatprep.subr.bf16.mxu1 %v9232_v34  ;;  %v4208_v34 = vsub.f32 %v13499_v29, %v16391_v37  ;;  %v9244_v62 = vpack.c.bf16 %v4185_v19, %v4173_v4  ;;  %v4191_v9 = vand.u32 4294901760, %v4190_v43  ;;  %v16395_v45 = vand.u32 4294901760, %v13519_v63 }
 0x65f   :  { %v4178_v33 = vsub.f32 %v17771_v40, %v17774_v7  ;;  %v16396_v0 = vand.u32 4294901760, %v13526_v12  ;;  %v16397_v36 = vand.u32 4294901760, %v13668_v31  ;;  %v16400_v7 = vand.u32 4294901760, %v13670_v21 }
 0x660   :  { %v4197_v37 = vand.u32 4294901760, %v4196_v30  ;;  %v4209_v57 = vand.u32 4294901760, %v4208_v34  ;;  %v4203_v19 = vand.u32 4294901760, %v4202_v1  ;;  %v4226_v30 = vsub.f32 %v13519_v63, %v16395_v45 }
 0x661   :  { %9235 = vmatpush1.bf16.msra.mxu1 %v9234_v56  ;;  %v4214_v56 = vsub.f32 %v13508_v11, %v16393_v52  ;;  %v4179_v6 = vand.u32 4294901760, %v4178_v33  ;;  %v4220_v52 = vsub.f32 %v13510_v60, %v16402_v18  ;;  %v16399_v33 = vand.u32 4294901760, %v13674_v46 }
 0x662   :  { %9237 = vmatprep.subr.bf16.mxu1 %v9236_v13  ;;  %v9242_v13 = vpack.c.bf16 %v4167_v35, %v4155_v41  ;;  %v4232_v35 = vsub.f32 %v13517_v51, %v16394_v25  ;;  %v16398_v41 = vand.u32 4294901760, %v13672_v8  ;;  %v4238_v34 = vsub.f32 %v13526_v12, %v16396_v0 }
 0x663   :  { %v4215_v4 = vand.u32 4294901760, %v4214_v56  ;;  %v9246_v43 = vpack.c.bf16 %v4191_v9, %v4179_v6  ;;  %v4244_v1 = vsub.f32 %v13668_v31, %v16397_v36  ;;  %v4256_v56 = vsub.f32 %v13670_v21, %v16400_v7 }
 0x664   :  { %v9248_v6 = vpack.c.bf16 %v4209_v57, %v4197_v37  ;;  %v4221_v9 = vand.u32 4294901760, %v4220_v52  ;;  %v4250_v45 = vsub.f32 %v13672_v8, %v16398_v41  ;;  %v4262_v0 = vsub.f32 %v13674_v46, %v16399_v33 }
 0x665   :  { %9239 = vmatpush1.bf16.msra.mxu1 %v9238_v24  ;;  %v16401_v24 = vand.u32 4294901760, %v13676_v14  ;;  %v9250_v25 = vpack.c.bf16 %v4215_v4, %v4203_v19  ;;  %v16415_v57 = vand.u32 4294901760, %v13680_v58  ;;  %v16414_v37 = vand.u32 4294901760, %v13682_v26 }
 0x666   :  { %9241 = vmatprep.subr.bf16.mxu1 %v9240_v55  ;;  %v16405_v55 = vand.u32 4294901760, %v13678_v38  ;;  %v4227_v52 = vand.u32 4294901760, %v4226_v30  ;;  %v4245_v19 = vand.u32 4294901760, %v4244_v1  ;;  %v4257_v4 = vand.u32 4294901760, %v4256_v56 }
 0x667   :  { %v4268_v36 = vsub.f32 %v13676_v14, %v16401_v24  ;;  %v16413_v33 = vand.u32 4294901760, %v13685_v23  ;;  %v16406_v7 = vand.u32 4294901760, %v13687_v5  ;;  %v4251_v24 = vand.u32 4294901760, %v4250_v45 }
 0x668   :  { %v4263_v18 = vand.u32 4294901760, %v4262_v0  ;;  %v16412_v1 = vand.u32 4294901760, %v13689_v49  ;;  %v16408_v56 = vand.u32 4294901760, %v13691_v54 }
 0x669   :  { %9243 = vmatpush1.bf16.msra.mxu1 %v9242_v13  ;;  %v4233_v13 = vand.u32 4294901760, %v4232_v35  ;;  %v4239_v35 = vand.u32 4294901760, %v4238_v34  ;;  %v4269_v3 = vand.u32 4294901760, %v4268_v36  ;;  %v9256_v34 = vpack.c.bf16 %v4257_v4, %v4245_v19 }
 0x66a   :  { %9245 = vmatprep.subr.bf16.mxu1 %v9244_v62  ;;  %v4280_v62 = vsub.f32 %v13678_v38, %v16405_v55  ;;  %v4274_v55 = vsub.f32 %v13680_v58, %v16415_v57  ;;  %v4292_v45 = vsub.f32 %v13685_v23, %v16413_v33  ;;  %v4304_v0 = vsub.f32 %v13687_v5, %v16406_v7  ;;  %v17795_v57 = vld [vmem:[#allocation71_spill] sm:$0xff] }
 0x66b   :  { %v9252_v41 = vpack.c.bf16 %v4233_v13, %v4221_v9  ;;  %v9254_v30 = vpack.c.bf16 %v4239_v35, %v4227_v52  ;;  %v16407_v36 = vand.u32 4294901760, %v13693_v10  ;;  %v4310_v52 = vsub.f32 %v13691_v54, %v16408_v56 }
 0x66c   :  { %v4281_v20 = vand.u32 4294901760, %v4280_v62  ;;  %v4275_v13 = vand.u32 4294901760, %v4274_v55  ;;  %v16411_v35 = vand.u32 4294901760, %v13699_v48  ;;  %v16410_v19 = vand.u32 4294901760, %v13701_v32 }
 0x66d   :  { %9247 = vmatpush1.bf16.msra.mxu1 %v9246_v43  ;;  %v4286_v43 = vsub.f32 %v13682_v26, %v16414_v37  ;;  %v4293_v4 = vand.u32 4294901760, %v4292_v45  ;;  %v4305_v7 = vand.u32 4294901760, %v4304_v0  ;;  %v4311_v55 = vand.u32 4294901760, %v4310_v52  ;;  %v17776_v52 = vld [vmem:[#allocation33_spill] sm:$0xff] }
 0x66e   :  { %9249 = vmatprep.subr.bf16.mxu1 %v9248_v6  ;;  %v16409_v6 = vand.u32 4294901760, %v13695_v17  ;;  %v9260_v9 = vpack.c.bf16 %v4281_v20, %v4269_v3  ;;  %v4316_v3 = vsub.f32 %v13693_v10, %v16407_v36 }
 0x66f   :  { %v4287_v62 = vand.u32 4294901760, %v4286_v43  ;;  %v4322_v43 = vsub.f32 %v13699_v48, %v16411_v35  ;;  %v17791_v35 = vld [vmem:[#allocation115_spill] sm:$0xff] }
 0x670   :  { %v4328_v20 = vsub.f32 %v13695_v17, %v16409_v6  ;;  %v4317_v45 = vand.u32 4294901760, %v4316_v3 }
 0x671   :  { %9251 = vmatpush1.bf16.msra.mxu1 %v9250_v25  ;;  %v9258_v25 = vpack.c.bf16 %v4263_v18, %v4251_v24  ;;  %v9262_v18 = vpack.c.bf16 %v4287_v62, %v4275_v13  ;;  %v4323_v56 = vand.u32 4294901760, %v4322_v43  ;;  %v9272_v62 = vpack.c.bf16 %v17700_v53, %v17699_v16  ;;  %v17783_v43 = vld [vmem:[#allocation43_spill] sm:$0xff] }
 0x672   :  { %9253 = vmatprep.subr.bf16.mxu1 %v9252_v41  ;;  %v4298_v41 = vsub.f32 %v13689_v49, %v16412_v1  ;;  %v4329_v0 = vand.u32 4294901760, %v4328_v20  ;;  %v17780_v20 = vld [vmem:[#allocation39_spill] sm:$0xff] }
 0x674   :  { %v4299_v24 = vand.u32 4294901760, %v4298_v41  ;;  %v9274_v41 = vpack.c.bf16 %v17715_v39, %v17714_v44 }
 0x675   :  { %9255 = vmatpush1.bf16.msra.mxu1 %v9254_v30  ;;  %v4334_v30 = vsub.f32 %v13701_v32, %v16410_v19 }
 0x676   :  { %9257 = vmatprep.subr.bf16.mxu1 %v9256_v34  ;;  %v9264_v34 = vpack.c.bf16 %v4305_v7, %v4293_v4  ;;  %v9266_v36 = vpack.c.bf16 %v4311_v55, %v4299_v24  ;;  %v9276_v7 = vpack.c.bf16 %v17717_v15, %v17716_v61  ;;  %v17779_v4 = vld [vmem:[#allocation37_spill] sm:$0xff] }
 0x677   :  { %v4335_v6 = vand.u32 4294901760, %v4334_v30  ;;  %v17782_v55 = vld [vmem:[#allocation41_spill] sm:$0xff] }
 0x678   :  { %v9284_v30 = vpack.c.bf16 %v17783_v43, %v17782_v55 }
 0x679   :  { %9259 = vmatpush1.bf16.msra.mxu1 %v9258_v25  ;;  %v9268_v25 = vpack.c.bf16 %v4329_v0, %v4317_v45  ;;  %v9270_v13 = vpack.c.bf16 %v4335_v6, %v4323_v56  ;;  %v17778_v6 = vld [vmem:[#allocation35_spill] sm:$0xff]  ;;  %v17785_v45 = vld [vmem:[#allocation70_spill] sm:$0xff] }
 0x67a   :  { %9261 = vmatprep.subr.bf16.mxu1 %v9260_v9  ;;  %v17775_v9 = vld [vmem:[#allocation28_spill] sm:$0xff]  ;;  %v9280_v3 = vpack.c.bf16 %v17779_v4, %v17778_v6 }
 0x67d   :  { %9263 = vmatpush1.bf16.msra.mxu1 %v9262_v18  ;;  %v17781_v18 = vld [vmem:[#allocation40_spill] sm:$0xff] }
 0x67e   :  { %9265 = vmatprep.subr.bf16.mxu1 %v9264_v34  ;;  %v9282_v24 = vpack.c.bf16 %v17781_v18, %v17780_v20  ;;  %v17784_v34 = vld [vmem:[#allocation50_spill] sm:$0xff] }
 0x67f   :  { %v9286_v0 = vpack.c.bf16 %v17785_v45, %v17784_v34 }
 0x681   :  { %9267 = vmatpush1.bf16.msra.mxu1 %v9266_v36  ;;  %v17777_v36 = vld [vmem:[#allocation34_spill] sm:$0xff] }
 0x682   :  { %9269 = vmatprep.subr.bf16.mxu1 %v9268_v25  ;;  %v9278_v56 = vpack.c.bf16 %v17777_v36, %v17776_v52  ;;  %v17786_v25 = vld [vmem:[#allocation31_spill] sm:$0xff] }
 0x685   :  { %9271 = vmatpush1.bf16.msra.mxu1 %v9270_v13  ;;  %v17787_v13 = vld [vmem:[#allocation75_spill] sm:$0xff] }
 0x686   :  { %9273 = vmatprep.subr.bf16.mxu1 %v9272_v62  ;;  %v9288_v62 = vpack.c.bf16 %v17787_v13, %v17786_v25 }
 0x688   :  { %4340 = vmatmul.mubr.f32.vlgmr.msra.gmra.mrb[4].mxu1 %v13722_v28 }
 0x689   :  { %9275 = vmatpush1.bf16.msra.mxu1 %v9274_v41  ;;  %4540 = vmatprep.mubr.f32.mxu1 %v17775_v9  ;;  %v17788_v41 = vld [vmem:[#allocation52_spill] sm:$0xff] }
 0x68a   :  { %9277 = vmatprep.subr.bf16.mxu1 %v9276_v7  ;;  %v17789_v7 = vld [vmem:[#allocation54_spill] sm:$0xff] }
 0x68b   :  { %v9290_v19 = vpack.c.bf16 %v17789_v7, %v17788_v41  ;;  %v17797_v7 = vld [vmem:[#allocation78_spill] sm:$0xff] }
 0x68d   :  { %9279 = vmatpush1.bf16.msra.mxu1 %v9278_v56  ;;  %v17790_v56 = vld [vmem:[#allocation114_spill] sm:$0xff] }
 0x68e   :  { %9281 = vmatprep.subr.bf16.mxu1 %v9280_v3  ;;  %v9292_v1 = vpack.c.bf16 %v17791_v35, %v17790_v56  ;;  %v9294_v3 = vpack.c.bf16 %v17746_v50, %v17745_v59  ;;  %v17799_v56 = vld [vmem:[#allocation100_spill] sm:$0xff]  ;;  %v17801_v59 = vld [vmem:[#allocation102_spill] sm:$0xff] }
 0x691   :  { %9283 = vmatpush1.bf16.msra.mxu1 %v9282_v24  ;;  %v17792_v24 = vld [vmem:[#allocation57_spill] sm:$0xff] }
 0x692   :  { %9285 = vmatprep.subr.bf16.mxu1 %v9284_v30  ;;  %v9296_v33 = vpack.c.bf16 %v17792_v24, %v17747_v47  ;;  %v17793_v30 = vld [vmem:[#allocation20_spill] sm:$0xff]  ;;  %v17803_v47 = vld [vmem:[#allocation106_spill] sm:$0xff] }
 0x693   :  { %v9298_v37 = vpack.c.bf16 %v17750_v27, %v17793_v30 }
 0x695   :  { %9287 = vmatpush1.bf16.msra.mxu1 %v9286_v0  ;;  %v17794_v0 = vld [vmem:[#allocation69_spill] sm:$0xff] }
 0x696   :  { %9289 = vmatprep.subr.bf16.mxu1 %v9288_v62  ;;  %v9300_v28 = vpack.c.bf16 %v17795_v57, %v17794_v0  ;;  %v17796_v62 = vld [vmem:[#allocation73_spill] sm:$0xff] }
 0x697   :  { %v9302_v35 = vpack.c.bf16 %v17797_v7, %v17796_v62 }
 0x699   :  { %9291 = vmatpush1.bf16.msra.mxu1 %v9290_v19  ;;  %v17798_v19 = vld [vmem:[#allocation30_spill] sm:$0xff] }
 0x69a   :  { %9293 = vmatprep.subr.bf16.mxu1 %v9292_v1  ;;  %v9304_v50 = vpack.c.bf16 %v17799_v56, %v17798_v19  ;;  %v17800_v1 = vld [vmem:[#allocation101_spill] sm:$0xff] }
 0x69b   :  { %v9306_v24 = vpack.c.bf16 %v17801_v59, %v17800_v1 }
 0x69d   :  { %9295 = vmatpush1.bf16.msra.mxu1 %v9294_v3  ;;  %v17802_v3 = vld [vmem:[#allocation105_spill] sm:$0xff] }
 0x69e   :  { %9297 = vmatprep.subr.bf16.mxu1 %v9296_v33  ;;  %v9308_v27 = vpack.c.bf16 %v17803_v47, %v17802_v3  ;;  %v9310_v33 = vpack.c.bf16 %v17772_v22, %v17771_v40 }
 0x6a1   :  { %9299 = vmatpush1.bf16.msra.mxu1 %v9298_v37  ;;  %v9312_v37 = vpack.c.bf16 %v13499_v29, %v17773_v42 }
 0x6a2   :  { %9301 = vmatprep.subr.bf16.mxu1 %v9300_v28  ;;  %v9314_v28 = vpack.c.bf16 %v13508_v11, %v13506_v2 }
 0x6a5   :  { %9303 = vmatpush1.bf16.msra.mxu1 %v9302_v35  ;;  %v9316_v35 = vpack.c.bf16 %v13517_v51, %v13510_v60 }
 0x6a6   :  { %9305 = vmatprep.subr.bf16.mxu1 %v9304_v50  ;;  %v9318_v50 = vpack.c.bf16 %v13526_v12, %v13519_v63 }
 0x6a9   :  { %9307 = vmatpush1.bf16.msra.mxu1 %v9306_v24  ;;  %v9320_v24 = vpack.c.bf16 %v13670_v21, %v13668_v31 }
 0x6aa   :  { %9309 = vmatprep.subr.bf16.mxu1 %v9308_v27  ;;  %v9322_v27 = vpack.c.bf16 %v13674_v46, %v13672_v8 }
 0x6ad   :  { %9311 = vmatpush1.bf16.msra.mxu1 %v9310_v33  ;;  %v9324_v33 = vpack.c.bf16 %v13678_v38, %v13676_v14 }
 0x6ae   :  { %9313 = vmatprep.subr.bf16.mxu1 %v9312_v37  ;;  %v9326_v37 = vpack.c.bf16 %v13682_v26, %v13680_v58  ;;  %v17806_v26 = vld [vmem:[#allocation61_spill] sm:$0xff] }
 0x6b1   :  { %9315 = vmatpush1.bf16.msra.mxu1 %v9314_v28  ;;  %v9328_v28 = vpack.c.bf16 %v13687_v5, %v13685_v23  ;;  %v5107_v23 = vld [vmem:[#allocation8 + $0x68] sm:$0xff] }
 0x6b2   :  { %9317 = vmatprep.subr.bf16.mxu1 %v9316_v35  ;;  %v9330_v35 = vpack.c.bf16 %v13691_v54, %v13689_v49  ;;  %v17808_v54 = vld [vmem:[#allocation64_spill] sm:$0xff] }
 0x6b3   :  { %v5104_v49 = vld [vmem:[#allocation8 + $0x50] sm:$0xff] }
 0x6b5   :  { %9319 = vmatpush1.bf16.msra.mxu1 %v9318_v50  ;;  %v9332_v50 = vpack.c.bf16 %v13695_v17, %v13693_v10  ;;  %v17810_v17 = vld [vmem:[#allocation36_spill] sm:$0xff] }
 0x6b6   :  { %9321 = vmatprep.subr.bf16.mxu1 %v9320_v24  ;;  %v9334_v24 = vpack.c.bf16 %v13701_v32, %v13699_v48  ;;  %v17812_v32 = vld [vmem:[#allocation42_spill] sm:$0xff] }
 0x6b9   :  { %9323 = vmatpush1.bf16.msra.mxu1 %v9322_v27  ;;  %v17804_v27 = vld [vmem:[#allocation89_spill] sm:$0xff] }
 0x6ba   :  { %9325 = vmatprep.subr.bf16.mxu1 %v9324_v33  ;;  %v17805_v33 = vld [vmem:[#allocation95_spill] sm:$0xff] }
 0x6bd   :  { %9327 = vmatpush1.bf16.msra.mxu1 %v9326_v37  ;;  %v17807_v37 = vand.u32 4294901760, %v17775_v9  ;;  %v17817_v9 = vld [vmem:[#allocation26_spill] sm:$0xff] }
 0x6be   :  { %9329 = vmatprep.subr.bf16.mxu1 %v9328_v28  ;;  %v17809_v28 = vld [vmem:[#allocation29_spill] sm:$0xff] }
 0x6c1   :  { %9331 = vmatpush1.bf16.msra.mxu1 %v9330_v35  ;;  %v17811_v35 = vld [vmem:[#allocation38_spill] sm:$0xff] }
 0x6c2   :  { %9333 = vmatprep.subr.bf16.mxu1 %v9332_v50  ;;  %v17813_v50 = vld [vmem:[#allocation96_spill] sm:$0xff] }
 0x6c5   :  { %9335 = vmatpush1.bf16.msra.mxu1 %v9334_v24  ;;  %v17814_v24 = vld [vmem:[#allocation113_spill] sm:$0xff] }
 0x6c6   :  { %9337 = vmatprep.subr.bf16.mxu1 %v17804_v27  ;;  %v17815_v27 = vld [vmem:[#allocation55_spill] sm:$0xff] }
 0x6c8   :  { %4543 = vmatmul.mubr.f32.vlgmr.msra.gmra.mrb[4].mxu1 %v17805_v33 }
 0x6c9   :  { %9339 = vmatpush1.bf16.msra.mxu1 %v17806_v26  ;;  %4680 = vmatprep.mubr.f32.mxu1 %v17807_v37  ;;  %v17816_v26 = vld [vmem:[#allocation22_spill] sm:$0xff] }
 0x6ca   :  { %9341 = vmatprep.subr.bf16.mxu1 %v17808_v54  ;;  %v17818_v37 = vld [vmem:[#allocation74_spill] sm:$0xff]  ;;  %v17819_v54 = vld [vmem:[#allocation104_spill] sm:$0xff] }
 0x6cd   :  { %9343 = vmatpush1.bf16.msra.mxu1 %v17809_v28  ;;  %v17820_v28 = vld [vmem:[#allocation107_spill] sm:$0xff] }
 0x6ce   :  { %9345 = vmatprep.subr.bf16.mxu1 %v17810_v17  ;;  %v17821_v17 = vld [vmem:[#allocation87_spill] sm:$0xff] }
 0x6d1   :  { %9347 = vmatpush1.bf16.msra.mxu1 %v17811_v35  ;;  %v17822_v35 = vld [vmem:[#allocation79_spill] sm:$0xff] }
 0x6d2   :  { %9349 = vmatprep.subr.bf16.mxu1 %v17812_v32  ;;  %v17823_v32 = vld [vmem:[#allocation60_spill] sm:$0xff] }
 0x6d5   :  { %9351 = vmatpush1.bf16.msra.mxu1 %v17813_v50  ;;  %v17824_v50 = vld [vmem:[#allocation62_spill] sm:$0xff] }
 0x6d6   :  { %9353 = vmatprep.subr.bf16.mxu1 %v17814_v24  ;;  %v17825_v24 = vld [vmem:[#allocation65_spill] sm:$0xff] }
 0x6d9   :  { %9355 = vmatpush1.bf16.msra.mxu1 %v17815_v27  ;;  %v17826_v27 = vld [vmem:[#allocation66_spill] sm:$0xff] }
 0x6da   :  { %9357 = vmatprep.subr.bf16.mxu1 %v17816_v26  ;;  %v17827_v26 = vld [vmem:[#allocation27_spill] sm:$0xff] }
 0x6dd   :  { %9359 = vmatpush1.bf16.msra.mxu1 %v17817_v9  ;;  %v17828_v9 = vld [vmem:[#allocation68_spill] sm:$0xff] }
 0x6de   :  { %9361 = vmatprep.subr.bf16.mxu1 %v17818_v37  ;;  %v17829_v37 = vld [vmem:[#allocation98_spill] sm:$0xff] }
 0x6e1   :  { %9363 = vmatpush1.bf16.msra.mxu1 %v17819_v54  ;;  %v17830_v54 = vld [vmem:[#allocation90_spill] sm:$0xff] }
 0x6e2   :  { %9365 = vmatprep.subr.bf16.mxu1 %v17820_v28  ;;  %v17831_v28 = vld [vmem:[#allocation91_spill] sm:$0xff] }
 0x6e5   :  { %9367 = vmatpush1.bf16.msra.mxu1 %v17821_v17  ;;  %v17832_v17 = vld [vmem:[#allocation72_spill] sm:$0xff] }
 0x6e6   :  { %9369 = vmatprep.subr.bf16.mxu1 %v17822_v35  ;;  %v17833_v35 = vld [vmem:[#allocation51_spill] sm:$0xff] }
 0x6e9   :  { %9371 = vmatpush1.bf16.msra.mxu1 %v17823_v32  ;;  %v17834_v32 = vld [vmem:[#allocation76_spill] sm:$0xff] }
 0x6ea   :  { %9373 = vmatprep.subr.bf16.mxu1 %v17824_v50  ;;  %v17835_v50 = vld [vmem:[#allocation94_spill] sm:$0xff] }
 0x6ed   :  { %9375 = vmatpush1.bf16.msra.mxu1 %v17825_v24  ;;  %v17836_v24 = vld [vmem:[#allocation80_spill] sm:$0xff] }
 0x6ee   :  { %9377 = vmatprep.subr.bf16.mxu1 %v17826_v27 }
 0x6f1   :  { %9379 = vmatpush1.bf16.msra.mxu1 %v17827_v26  ;;  %v17837_v26 = vand.u32 4294901760, %v17699_v16  ;;  %v17845_v16 = vand.u32 4294901760, %v17777_v36  ;;  %v17853_v36 = vand.u32 4294901760, %v17784_v34  ;;  %v17860_v34 = vld [vmem:[#allocation81_spill] sm:$0xff] }
 0x6f2   :  { %9381 = vmatprep.subr.bf16.mxu1 %v17828_v9  ;;  %v17838_v9 = vand.u32 4294901760, %v17700_v53  ;;  %v17847_v53 = vand.u32 4294901760, %v17779_v4 }
 0x6f4   :  { %v9400_v27 = vpack.c.bf16 %v17838_v9, %v17837_v26  ;;  %v17846_v26 = vand.u32 4294901760, %v17778_v6  ;;  %v17854_v6 = vand.u32 4294901760, %v17785_v45  ;;  %v17861_v45 = vld [vmem:[#allocation114_spill] sm:$0xff] }
 0x6f5   :  { %9383 = vmatpush1.bf16.msra.mxu1 %v17829_v37  ;;  %v17839_v37 = vld [vmem:[#allocation15_spill] sm:$0xff] }
 0x6f6   :  { %9385 = vmatprep.subr.bf16.mxu1 %v17830_v54  ;;  %v17840_v54 = vand.u32 4294901760, %v17714_v44  ;;  %v9408_v9 = vpack.c.bf16 %v17847_v53, %v17846_v26  ;;  %v17848_v44 = vand.u32 4294901760, %v17780_v20  ;;  %v14115_v4 = vpack.c.bf16 %v17854_v6, %v17853_v36  ;;  %v17863_v53 = vld [vmem:[#allocation115_spill] sm:$0xff]  ;;  %v17865_v36 = vld [vmem:[#allocation88_spill] sm:$0xff] }
 0x6f7   :  { %v17855_v20 = vand.u32 4294901760, %v17786_v25  ;;  %v17862_v26 = vand.u32 4294901760, %v17861_v45  ;;  %v17864_v25 = vand.u32 4294901760, %v17863_v53  ;;  %v17866_v6 = vand.u32 4294901760, %v17865_v36  ;;  %v5098_v45 = vld [vmem:[#allocation8 + $0x20] sm:$0xff]  ;;  %v5100_v53 = vld [vmem:[#allocation8 + $0x30] sm:$0xff] }
 0x6f8   :  { %v5102_v36 = vld [vmem:[#allocation8 + $0x40] sm:$0xff] }
 0x6f9   :  { %9387 = vmatpush1.bf16.msra.mxu1 %v17831_v28  ;;  %v17841_v28 = vand.u32 4294901760, %v17715_v39 }
 0x6fa   :  { %9389 = vmatprep.subr.bf16.mxu1 %v17832_v17 }
 0x6fb   :  { %v9402_v17 = vpack.c.bf16 %v17841_v28, %v17840_v54  ;;  %v17849_v54 = vand.u32 4294901760, %v17781_v18  ;;  %v17856_v18 = vand.u32 4294901760, %v17787_v13  ;;  %v17858_v28 = vld [vmem:[#allocation54_spill] sm:$0xff] }
 0x6fd   :  { %9391 = vmatpush1.bf16.msra.mxu1 %v17833_v35  ;;  %v17842_v35 = vand.u32 4294901760, %v17716_v61  ;;  %v14101_v39 = vpack.c.bf16 %v17849_v54, %v17848_v44  ;;  %v17850_v61 = vand.u32 4294901760, %v17805_v33  ;;  %v17857_v33 = vand.u32 4294901760, %v17788_v41 }
 0x6fe   :  { %9393 = vmatprep.subr.bf16.mxu1 %v17834_v32  ;;  %v17843_v32 = vand.u32 4294901760, %v17717_v15  ;;  %v17852_v15 = vand.u32 4294901760, %v17783_v43  ;;  %v5095_v43 = vld [vmem:[#allocation8 + $0x8] sm:$0xff]  ;;  %v14134_v44 = vpack.c.bf16 %v17864_v25, %v17862_v26 }
 0x6ff   :  { %v5170_v13 = vand.u32 4294901760, %v5095_v43  ;;  %v5103_v26 = vld [vmem:[#allocation8 + $0x48] sm:$0xff] }
 0x701   :  { %9395 = vmatpush1.bf16.msra.mxu1 %v17835_v50  ;;  %v9404_v50 = vpack.c.bf16 %v17843_v32, %v17842_v35  ;;  %v17851_v32 = vand.u32 4294901760, %v17782_v55  ;;  %v17859_v55 = vand.u32 4294901760, %v17858_v28 }
 0x702   :  { %9397 = vmatprep.subr.bf16.mxu1 %v17836_v24  ;;  %v17844_v24 = vand.u32 4294901760, %v17776_v52 }
 0x703   :  { %v14109_v52 = vpack.c.bf16 %v17852_v15, %v17851_v32  ;;  %v14127_v35 = vpack.c.bf16 %v17859_v55, %v17857_v33  ;;  %v5099_v32 = vld [vmem:[#allocation8 + $0x28] sm:$0xff]  ;;  %v5101_v15 = vld [vmem:[#allocation8 + $0x38] sm:$0xff] }
 0x704   :  { %v9406_v48 = vpack.c.bf16 %v17845_v16, %v17844_v24  ;;  %v5097_v24 = vld [vmem:[#allocation8 + $0x18] sm:$0xff]  ;;  %v5094_v16 = vld [vmem:[#allocation8] sm:$0xff]  ;;  %v5178_v28 = vand.u32 4294901760, %v5099_v32  ;;  %v5182_v55 = vand.u32 4294901760, %v5101_v15 }
 0x705   :  { %9399 = vmatpush1.bf16.msra.mxu1 %v17839_v37  ;;  %v5174_v54 = vand.u32 4294901760, %v5097_v24  ;;  %v5172_v41 = vand.u32 4294901760, %v5094_v16  ;;  %v14144_v37 = vsub.f32 %v5095_v43, %v5170_v13 }
 0x706   :  { %9401 = vmatprep.subr.bf16.mxu1 %v9400_v27  ;;  %v14121_v27 = vpack.c.bf16 %v17856_v18, %v17855_v20  ;;  %v17867_v20 = vld [vmem:[#allocation16_spill] sm:$0xff]  ;;  %v14156_v5 = vsub.f32 %v5099_v32, %v5178_v28  ;;  %v14159_v43 = vsub.f32 %v5101_v15, %v5182_v55 }
 0x707   :  { %v17868_v18 = vand.u32 4294901760, %v17867_v20  ;;  %v14142_v25 = vpack.c.bf16 %v5174_v54, %v5170_v13  ;;  %17870 = vst [vmem:[#allocation99_spill] sm:$0xff] %v14144_v37  ;;  %v14148_v10 = vsub.f32 %v5094_v16, %v5172_v41  ;;  %v5184_v16 = vand.u32 4294901760, %v5100_v53  ;;  %v5108_v32 = vld [vmem:[#allocation8 + $0x70] sm:$0xff] }
 0x708   :  { %4684 = vmatmul.mubr.f32.vlgmr.msra.gmra.mrb[4].mxu1 %v17850_v61  ;;  %v5096_v61 = vld [vmem:[#allocation8 + $0x10] sm:$0xff]  ;;  %17876 = vst [vmem:[#allocation118_spill] sm:$0xff] %v14156_v5  ;;  %17877 = vst [vmem:[#allocation119_spill] sm:$0xff] %v14159_v43  ;;  %v5186_v13 = vand.u32 4294901760, %v5103_v26  ;;  %v14171_v43 = vld [vmem:[#allocation8 + $0x80] sm:$0xff] }
 0x709   :  { %9403 = vmatpush1.bf16.msra.mxu1 %v9402_v17  ;;  %4947 = vmatprep.mubr.f32.mxu1 %v17860_v34  ;;  %v14140_v17 = vpack.c.bf16 %v17868_v18, %v17866_v6  ;;  %v5176_v33 = vand.u32 4294901760, %v5096_v61  ;;  %17869 = vst [vmem:[#allocation97_spill] sm:$0xff] %v14142_v25  ;;  %v14146_v34 = vsub.f32 %v5097_v24, %v5174_v54  ;;  %17872 = vst [vmem:[#allocation109_spill] sm:$0xff] %v14148_v10  ;;  %v5109_v54 = vld [vmem:[#allocation8 + $0x78] sm:$0xff]  ;;  %v5106_v10 = vld [vmem:[#allocation8 + $0x60] sm:$0xff] }
 0x70a   :  { %9405 = vmatprep.subr.bf16.mxu1 %v9404_v50  ;;  %v5105_v50 = vld [vmem:[#allocation8 + $0x58] sm:$0xff]  ;;  %v14154_v18 = vpack.c.bf16 %v5182_v55, %v5178_v28  ;;  %9529 = vmatprep.subr.bf16.mxu0 %v14142_v25  ;;  %v5180_v24 = vand.u32 4294901760, %v5098_v45  ;;  %v14167_v15 = vsub.f32 %v5100_v53, %v5184_v16  ;;  %v14169_v55 = vsub.f32 %v5103_v26, %v5186_v13  ;;  %v5111_v25 = vld [vmem:[#allocation8 + $0x88] sm:$0xff] }
 0x70b   :  { %17871 = vst [vmem:[#allocation103_spill] sm:$0xff] %v14146_v34  ;;  %v14150_v20 = vpack.c.bf16 %v5176_v33, %v5172_v41  ;;  %v14152_v6 = vsub.f32 %v5096_v61, %v5176_v33  ;;  %v5190_v41 = vand.u32 4294901760, %v5105_v50  ;;  %v5188_v61 = vand.u32 4294901760, %v5102_v36 }
 0x70c   :  { %17875 = vst [vmem:[#allocation117_spill] sm:$0xff] %v14154_v18  ;;  %v5192_v33 = vand.u32 4294901760, %v5104_v49  ;;  %v14165_v28 = vsub.f32 %v5098_v45, %v5180_v24  ;;  %17880 = vst [vmem:[#allocation122_spill] sm:$0xff] %v14167_v15  ;;  %v5198_v53 = vand.u32 4294901760, %v5109_v54 }
 0x70d   :  { %17873 = vst [vmem:[#allocation112_spill] sm:$0xff] %v14150_v20  ;;  %17874 = vst [vmem:[#allocation116_spill] sm:$0xff] %v14152_v6  ;;  %9407 = vmatpush1.bf16.msra.mxu1 %v9406_v48  ;;  %9531 = vmatpush1.bf16.msra.mxu0 %v14150_v20  ;;  %v5194_v6 = vand.u32 4294901760, %v5107_v23  ;;  %v14163_v48 = vpack.c.bf16 %v5184_v16, %v5180_v24  ;;  %v14173_v20 = vpack.c.bf16 %v5190_v41, %v5186_v13 }
 0x70e   :  { %9409 = vmatprep.subr.bf16.mxu1 %v9408_v9  ;;  %9533 = vmatprep.subr.bf16.mxu0 %v14154_v18  ;;  %17879 = vst [vmem:[#allocation121_spill] sm:$0xff] %v14165_v28  ;;  %17881 = vst [vmem:[#allocation123_spill] sm:$0xff] %v14169_v55  ;;  %v5113_v9 = vld [vmem:[#allocation8 + $0x98] sm:$0xff]  ;;  %v14175_v5 = vsub.f32 %v5105_v50, %v5190_v41  ;;  %v14177_v34 = vpack.c.bf16 %v5192_v33, %v5188_v61  ;;  %v5112_v18 = vld [vmem:[#allocation8 + $0x90] sm:$0xff]  ;;  %v5196_v24 = vand.u32 4294901760, %v5106_v10 }
 0x70f   :  { %17878 = vst [vmem:[#allocation120_spill] sm:$0xff] %v14163_v48  ;;  %17882 = vst [vmem:[#allocation124_spill] sm:$0xff] %v14173_v20  ;;  %v14179_v37 = vsub.f32 %v5102_v36, %v5188_v61  ;;  %v14182_v45 = vsub.f32 %v5104_v49, %v5192_v33  ;;  %v14184_v26 = vsub.f32 %v5107_v23, %v5194_v6  ;;  %v5200_v16 = vand.u32 4294901760, %v5108_v32  ;;  %v5115_v61 = vld [vmem:[#allocation8 + $0xa8] sm:$0xff]  ;;  %v5117_v33 = vld [vmem:[#allocation8 + $0xb8] sm:$0xff] }
 0x710   :  { %17883 = vst [vmem:[#allocation44_spill] sm:$0xff] %v14175_v5  ;;  %17884 = vst [vmem:[#allocation45_spill] sm:$0xff] %v14177_v34  ;;  %v5202_v50 = vand.u32 4294901760, %v5111_v25  ;;  %v5206_v13 = vand.u32 4294901760, %v5113_v9  ;;  %v5204_v41 = vand.u32 4294901760, %v14171_v43  ;;  %v14190_v36 = vpack.c.bf16 %v5198_v53, %v5194_v6  ;;  %v17896_v55 = vld [vmem:[#allocation24_spill] sm:$0xff] }
 0x711   :  { %17885 = vst [vmem:[#allocation46_spill] sm:$0xff] %v14179_v37  ;;  %9411 = vmatpush1.bf16.msra.mxu1 %v14101_v39  ;;  %17886 = vst [vmem:[#allocation47_spill] sm:$0xff] %v14182_v45  ;;  %9535 = vmatpush1.bf16.msra.mxu0 %v14163_v48  ;;  %v14192_v39 = vsub.f32 %v5109_v54, %v5198_v53  ;;  %v14194_v49 = vsub.f32 %v5106_v10, %v5196_v24  ;;  %v5208_v23 = vand.u32 4294901760, %v5112_v18  ;;  %v17893_v45 = vld [vmem:[#allocation57_spill] sm:$0xff]  ;;  %v5114_v10 = vld [vmem:[#allocation8 + $0xa0] sm:$0xff] }
 0x712   :  { %17887 = vst [vmem:[#allocation48_spill] sm:$0xff] %v14184_v26  ;;  %9413 = vmatprep.subr.bf16.mxu1 %v14109_v52  ;;  %9537 = vmatprep.subr.bf16.mxu0 %v14173_v20  ;;  %17888 = vst [vmem:[#allocation32_spill] sm:$0xff] %v14190_v36  ;;  %v17891_v26 = vld [vmem:[#allocation18_spill] sm:$0xff]  ;;  %v17894_v48 = vand.u32 4294901760, %v17893_v45  ;;  %v17895_v5 = vand.u32 4294901760, %v17793_v30  ;;  %v17897_v15 = vand.u32 4294901760, %v17896_v55  ;;  %v14208_v6 = vsub.f32 %v5108_v32, %v5200_v16 }
 0x713   :  { %17889 = vst [vmem:[#allocation49_spill] sm:$0xff] %v14192_v39  ;;  %17890 = vst [vmem:[#allocation82_spill] sm:$0xff] %v14194_v49  ;;  %v17892_v52 = vand.u32 4294901760, %v17891_v26  ;;  %v14210_v54 = vsub.f32 %v5111_v25, %v5202_v50  ;;  %v5116_v53 = vld [vmem:[#allocation8 + $0xb0] sm:$0xff]  ;;  %v14212_v49 = vld [vmem:[#allocation8 + $0xc8] sm:$0xff]  ;;  %v17900_v45 = vand.u32 4294901760, %v17794_v0  ;;  %v14221_v30 = vsub.f32 %v5113_v9, %v5206_v13 }
 0x714   :  { %v14206_v20 = vpack.c.bf16 %v17897_v15, %v17895_v5  ;;  %17898 = vst [vmem:[#allocation17_spill] sm:$0xff] %v14208_v6  ;;  %v14224_v5 = vsub.f32 %v14171_v43, %v5204_v41  ;;  %v14226_v32 = vsub.f32 %v5112_v18, %v5208_v23  ;;  %v5121_v25 = vld [vmem:[#allocation8 + $0xd8] sm:$0xff]  ;;  %v14228_v15 = vld [vmem:[#allocation8 + $0xc0] sm:$0xff]  ;;  %v17906_v0 = vand.u32 4294901760, %v17797_v7 }
 0x715   :  { %v14200_v37 = vpack.c.bf16 %v17894_v48, %v17892_v52  ;;  %17899 = vst [vmem:[#allocation59_spill] sm:$0xff] %v14210_v54  ;;  %9415 = vmatpush1.bf16.msra.mxu1 %v14115_v4  ;;  %v17901_v48 = vand.u32 4294901760, %v17795_v57  ;;  %17902 = vst [vmem:[#allocation19_spill] sm:$0xff] %v14221_v30  ;;  %v17905_v4 = vand.u32 4294901760, %v17796_v62  ;;  %9539 = vmatpush1.bf16.msra.mxu0 %v14177_v34  ;;  %v5210_v9 = vand.u32 4294901760, %v5115_v61  ;;  %v14240_v52 = vld [vmem:[#allocation8 + $0xd0] sm:$0xff] }
 0x716   :  { %17903 = vst [vmem:[#allocation21_spill] sm:$0xff] %v14224_v5  ;;  %17904 = vst [vmem:[#allocation23_spill] sm:$0xff] %v14226_v32  ;;  %9417 = vmatprep.subr.bf16.mxu1 %v14121_v27  ;;  %v14238_v57 = vpack.c.bf16 %v5200_v16, %v5196_v24  ;;  %v5214_v43 = vand.u32 4294901760, %v5117_v33  ;;  %9541 = vmatprep.subr.bf16.mxu0 %v14190_v36  ;;  %v14243_v18 = vpack.c.bf16 %v5206_v13, %v5202_v50  ;;  %v14255_v34 = vld [vmem:[#allocation8 + $0xe0] sm:$0xff] }
 0x717   :  { %v14219_v26 = vpack.c.bf16 %v17901_v48, %v17900_v45  ;;  %v14235_v55 = vpack.c.bf16 %v17906_v0, %v17905_v4  ;;  %v5212_v45 = vand.u32 4294901760, %v5114_v10  ;;  %v5216_v27 = vand.u32 4294901760, %v5116_v53  ;;  %v14246_v48 = vld [vmem:[#allocation8 + $0xe8] sm:$0xff]  ;;  %v14253_v0 = vld [vmem:[#allocation8 + $0xf8] sm:$0xff] }
 0x718   :  { %17907 = vst [vmem:[#allocation25_spill] sm:$0xff] %v14238_v57  ;;  %17908 = vst [vmem:[#allocation108_spill] sm:$0xff] %v14243_v18  ;;  %v5218_v62 = vand.u32 4294901760, %v14212_v49  ;;  %v14248_v7 = vsub.f32 %v5115_v61, %v5210_v9  ;;  %v14250_v4 = vsub.f32 %v5117_v33, %v5214_v43  ;;  %v5222_v24 = vand.u32 4294901760, %v5121_v25  ;;  %v14266_v33 = vld [vmem:[#allocation8 + $0xf0] sm:$0xff] }
 0x719   :  { %v5220_v16 = vand.u32 4294901760, %v14228_v15  ;;  %9419 = vmatpush1.bf16.msra.mxu1 %v14127_v35  ;;  %v14258_v50 = vsub.f32 %v5114_v10, %v5212_v45  ;;  %v14260_v13 = vsub.f32 %v5116_v53, %v5216_v27  ;;  %v5224_v61 = vand.u32 4294901760, %v14240_v52  ;;  %9543 = vmatpush1.bf16.msra.mxu0 %v14238_v57  ;;  %v14280_v53 = vld [vmem:[#allocation8 + $0x118] sm:$0xff] }
 0x71a   :  { %17909 = vst [vmem:[#allocation110_spill] sm:$0xff] %v14248_v7  ;;  %17910 = vst [vmem:[#allocation111_spill] sm:$0xff] %v14250_v4  ;;  %v14263_v36 = vsub.f32 %v14212_v49, %v5218_v62  ;;  %v14268_v4 = vld [vmem:[#allocation8 + $0x108] sm:$0xff]  ;;  %9421 = vmatprep.subr.bf16.mxu1 %v14134_v44  ;;  %v14272_v7 = vpack.c.bf16 %v5208_v23, %v5204_v41  ;;  %v14274_v35 = vsub.f32 %v5121_v25, %v5222_v24  ;;  %v14292_v25 = vld [vmem:[#allocation8 + $0x110] sm:$0xff] }
 0x71b   :  { %17911 = vst [vmem:[#allocation28_spill] sm:$0xff] %v14258_v50  ;;  %17912 = vst [vmem:[#allocation33_spill] sm:$0xff] %v14260_v13  ;;  %v14277_v10 = vsub.f32 %v14228_v15, %v5220_v16  ;;  %v5226_v49 = vand.u32 4294901760, %v14246_v48  ;;  %9545 = vmatprep.subr.bf16.mxu0 %v14243_v18  ;;  %v14285_v13 = vpack.c.bf16 %v5214_v43, %v5210_v9  ;;  %v5230_v41 = vand.u32 4294901760, %v14253_v0  ;;  %v14301_v9 = vld [vmem:[#allocation8 + $0x128] sm:$0xff]  ;;  %v14303_v43 = vld [vmem:[#allocation8 + $0x138] sm:$0xff] }
 0x71c   :  { %17913 = vst [vmem:[#allocation34_spill] sm:$0xff] %v14263_v36  ;;  %17914 = vst [vmem:[#allocation35_spill] sm:$0xff] %v14272_v7  ;;  %v14282_v36 = vld [vmem:[#allocation8 + $0x100] sm:$0xff]  ;;  %v14288_v44 = vsub.f32 %v14240_v52, %v5224_v61  ;;  %v16468_v23 = vand.u32 4294901760, %v14255_v34  ;;  %v14294_v15 = vpack.c.bf16 %v5216_v27, %v5212_v45  ;;  %v5238_v27 = vand.u32 4294901760, %v14280_v53  ;;  %v14318_v18 = vld [vmem:[#allocation8 + $0x130] sm:$0xff] }
 0x71d   :  { %17915 = vst [vmem:[#allocation37_spill] sm:$0xff] %v14274_v35  ;;  %17916 = vst [vmem:[#allocation39_spill] sm:$0xff] %v14277_v10  ;;  %v14297_v57 = vsub.f32 %v14246_v48, %v5226_v49  ;;  %v5232_v10 = vand.u32 4294901760, %v14266_v33  ;;  %9423 = vmatpush1.bf16.msra.mxu1 %v14140_v17  ;;  %v14307_v52 = vsub.f32 %v14253_v0, %v5230_v41  ;;  %9547 = vmatpush1.bf16.msra.mxu0 %v14272_v7  ;;  %v5134_v35 = vld [vmem:[#allocation8 + $0x140] sm:$0xff] }
 0x71e   :  { %17917 = vst [vmem:[#allocation40_spill] sm:$0xff] %v14285_v13  ;;  %17918 = vst [vmem:[#allocation41_spill] sm:$0xff] %v14288_v44  ;;  %v14312_v45 = vsub.f32 %v14255_v34, %v16468_v23  ;;  %9425 = vmatprep.subr.bf16.mxu1 %v14200_v37  ;;  %v14322_v17 = vpack.c.bf16 %v5222_v24, %v5218_v62  ;;  %v17925_v23 = vand.u32 4294901760, %v14268_v4  ;;  %v5240_v48 = vand.u32 4294901760, %v14292_v25 }
 0x71f   :  { %17919 = vst [vmem:[#allocation43_spill] sm:$0xff] %v14294_v15  ;;  %17920 = vst [vmem:[#allocation50_spill] sm:$0xff] %v14297_v57  ;;  %v14316_v57 = vld [vmem:[#allocation8 + $0x120] sm:$0xff]  ;;  %v14325_v0 = vsub.f32 %v14266_v33, %v5232_v10  ;;  %9549 = vmatprep.subr.bf16.mxu0 %v14285_v13  ;;  %v14337_v37 = vsub.f32 %v14280_v53, %v5238_v27  ;;  %v17928_v62 = vand.u32 4294901760, %v14282_v36  ;;  %v5242_v33 = vand.u32 4294901760, %v14301_v9 }
 0x720   :  { %17921 = vst [vmem:[#allocation70_spill] sm:$0xff] %v14307_v52  ;;  %17922 = vst [vmem:[#allocation31_spill] sm:$0xff] %v14312_v45  ;;  %v14330_v45 = vsub.f32 %v14268_v4, %v17925_v23  ;;  %v14333_v52 = vld [vmem:[#allocation8 + $0x148] sm:$0xff]  ;;  %v5246_v7 = vand.u32 4294901760, %v14303_v43  ;;  %v5137_v23 = vld [vmem:[#allocation8 + $0x158] sm:$0xff]  ;;  %v14351_v13 = vsub.f32 %v14292_v25, %v5240_v48  ;;  %v5244_v53 = vand.u32 4294901760, %v14316_v57 }
 0x721   :  { %17923 = vst [vmem:[#allocation75_spill] sm:$0xff] %v14322_v17  ;;  %17924 = vst [vmem:[#allocation52_spill] sm:$0xff] %v14325_v0  ;;  %v14342_v24 = vsub.f32 %v14282_v36, %v17928_v62  ;;  %v17931_v0 = vand.u32 4294901760, %v17799_v56  ;;  %v5136_v62 = vld [vmem:[#allocation8 + $0x150] sm:$0xff]  ;;  %9427 = vmatpush1.bf16.msra.mxu1 %v14206_v20  ;;  %v14356_v50 = vpack.c.bf16 %v5224_v61, %v5220_v16  ;;  %v5141_v25 = vld [vmem:[#allocation8 + $0x178] sm:$0xff]  ;;  %9551 = vmatpush1.bf16.msra.mxu0 %v14294_v15 }
 0x722   :  { %17926 = vst [vmem:[#allocation20_spill] sm:$0xff] %v14330_v45  ;;  %17927 = vst [vmem:[#allocation69_spill] sm:$0xff] %v14337_v37  ;;  %v17930_v45 = vand.u32 4294901760, %v17798_v19  ;;  %v5248_v37 = vand.u32 4294901760, %v14318_v18  ;;  %v14359_v32 = vsub.f32 %v14301_v9, %v5242_v33  ;;  %v14362_v56 = vsub.f32 %v14303_v43, %v5246_v7  ;;  %9429 = vmatprep.subr.bf16.mxu1 %v14219_v26  ;;  %v5140_v26 = vld [vmem:[#allocation8 + $0x170] sm:$0xff] }
 0x723   :  { %17929 = vst [vmem:[#allocation71_spill] sm:$0xff] %v14342_v24  ;;  %17932 = vst [vmem:[#allocation73_spill] sm:$0xff] %v14351_v13  ;;  %v5139_v24 = vld [vmem:[#allocation8 + $0x168] sm:$0xff]  ;;  %v5250_v19 = vand.u32 4294901760, %v14333_v52  ;;  %v14370_v20 = vsub.f32 %v14316_v57, %v5244_v53  ;;  %v5254_v61 = vand.u32 4294901760, %v5137_v23  ;;  %9553 = vmatprep.subr.bf16.mxu0 %v14322_v17  ;;  %v5252_v43 = vand.u32 4294901760, %v5134_v35 }
 0x724   :  { %v9432_v44 = vpack.c.bf16 %v17931_v0, %v17930_v45  ;;  %17933 = vst [vmem:[#allocation78_spill] sm:$0xff] %v14356_v50  ;;  %17934 = vst [vmem:[#allocation30_spill] sm:$0xff] %v14359_v32  ;;  %v5138_v45 = vld [vmem:[#allocation8 + $0x160] sm:$0xff]  ;;  %v14367_v0 = vpack.c.bf16 %v5230_v41, %v5226_v49  ;;  %v14373_v16 = vsub.f32 %v14318_v18, %v5248_v37  ;;  %v5258_v32 = vand.u32 4294901760, %v5139_v24 }
 0x725   :  { %17935 = vst [vmem:[#allocation100_spill] sm:$0xff] %v14362_v56  ;;  %17937 = vst [vmem:[#allocation102_spill] sm:$0xff] %v14370_v20  ;;  %v14377_v9 = vsub.f32 %v14333_v52, %v5250_v19  ;;  %v5256_v56 = vand.u32 4294901760, %v5136_v62  ;;  %v17940_v15 = vand.u32 4294901760, %v17800_v1  ;;  %v17941_v49 = vand.u32 4294901760, %v17801_v59  ;;  %9431 = vmatpush1.bf16.msra.mxu1 %v14235_v55  ;;  %9555 = vmatpush1.bf16.msra.mxu0 %v14356_v50 }
 0x726   :  { %17936 = vst [vmem:[#allocation101_spill] sm:$0xff] %v14367_v0  ;;  %17938 = vst [vmem:[#allocation105_spill] sm:$0xff] %v14373_v16  ;;  %v14383_v57 = vsub.f32 %v5137_v23, %v5254_v61  ;;  %v5262_v20 = vand.u32 4294901760, %v5141_v25  ;;  %v5260_v18 = vand.u32 4294901760, %v5138_v45  ;;  %v17942_v17 = vand.u32 4294901760, %v17802_v3  ;;  %9433 = vmatprep.subr.bf16.mxu1 %v9432_v44  ;;  %9557 = vmatprep.subr.bf16.mxu0 %v14367_v0  ;;  %v18060_v0 = vld [vmem:[#allocation82_spill] sm:$0xff] }
 0x727   :  { %17939 = vst [vmem:[#allocation106_spill] sm:$0xff] %v14377_v9  ;;  %v9434_v41 = vpack.c.bf16 %v17941_v49, %v17940_v15  ;;  %v17943_v52 = vand.u32 4294901760, %v17803_v47  ;;  %v14390_v16 = vsub.f32 %v5134_v35, %v5252_v43  ;;  %v14392_v13 = vsub.f32 %v5136_v62, %v5256_v56  ;;  %v17977_v49 = vld [vmem:[#allocation67_spill] sm:$0xff] }
 0x728   :  { %v14394_v5 = vsub.f32 %v5139_v24, %v5258_v32  ;;  %v17944_v59 = vand.u32 4294901760, %v14255_v34  ;;  %v14401_v15 = vsub.f32 %v5141_v25, %v5262_v20  ;;  %v5264_v55 = vand.u32 4294901760, %v5140_v26 }
 0x729   :  { %v9436_v9 = vpack.c.bf16 %v17943_v52, %v17942_v17  ;;  %v14403_v3 = vsub.f32 %v5138_v45, %v5260_v18  ;;  %v17946_v47 = vand.u32 4294901760, %v14268_v4  ;;  %9435 = vmatpush1.bf16.msra.mxu1 %v9434_v41  ;;  %v17948_v44 = vand.u32 4294901760, %v17771_v40  ;;  %v17981_v52 = vld [vmem:[#allocation77_spill] sm:$0xff] }
 0x72a   :  { %v14399_v1 = vpack.c.bf16 %v5232_v10, %v17944_v59  ;;  %v14410_v17 = vsub.f32 %v5140_v26, %v5264_v55  ;;  %v17949_v34 = vand.u32 4294901760, %v17772_v22  ;;  %v17950_v24 = vand.u32 4294901760, %v17773_v42 }
 0x72b   :  { %v14408_v35 = vpack.c.bf16 %v5238_v27, %v17946_v47  ;;  %9437 = vmatprep.subr.bf16.mxu1 %v9436_v9  ;;  %v17951_v23 = vand.u32 4294901760, %v13499_v29  ;;  %v17952_v4 = vand.u32 4294901760, %v14282_v36  ;;  %v14426_v25 = vpack.c.bf16 %v5246_v7, %v5242_v33  ;;  %v17983_v47 = vld [vmem:[#allocation86_spill] sm:$0xff] }
 0x72c   :  { %17945 = vst [vmem:[#allocation95_spill] sm:$0xff] %v14399_v1  ;;  %v9438_v10 = vpack.c.bf16 %v17949_v34, %v17948_v44  ;;  %9559 = vmatpush1.bf16.msra.mxu0 %v14399_v1  ;;  %v17955_v40 = vand.u32 4294901760, %v13506_v2  ;;  %v17956_v22 = vand.u32 4294901760, %v13508_v11  ;;  %v17957_v29 = vand.u32 4294901760, %v13510_v60  ;;  %v17985_v44 = vld [vmem:[#allocation53_spill] sm:$0xff] }
 0x72d   :  { %17947 = vst [vmem:[#allocation54_spill] sm:$0xff] %v14408_v35  ;;  %v9440_v62 = vpack.c.bf16 %v17951_v23, %v17950_v24  ;;  %v14423_v27 = vpack.c.bf16 %v5240_v48, %v17952_v4  ;;  %9561 = vmatprep.subr.bf16.mxu0 %v14408_v35  ;;  %17954 = vst [vmem:[#allocation115_spill] sm:$0xff] %v14426_v25  ;;  %v17958_v42 = vand.u32 4294901760, %v13517_v51  ;;  %v17961_v2 = vand.u32 4294901760, %v13519_v63  ;;  %v17987_v24 = vld [vmem:[#allocation56_spill] sm:$0xff] }
 0x72e   :  { %9439 = vmatpush1.bf16.msra.mxu1 %v9438_v10  ;;  %v9442_v45 = vpack.c.bf16 %v17956_v22, %v17955_v40  ;;  %v14437_v36 = vpack.c.bf16 %v5248_v37, %v5244_v53  ;;  %v14440_v7 = vpack.c.bf16 %v5254_v61, %v5250_v19  ;;  %v17962_v11 = vand.u32 4294901760, %v13526_v12  ;;  %v17991_v22 = vld [vmem:[#allocation89_spill] sm:$0xff] }
 0x72f   :  { %17953 = vst [vmem:[#allocation114_spill] sm:$0xff] %v14423_v27  ;;  %9441 = vmatprep.subr.bf16.mxu1 %v9440_v62  ;;  %v9444_v9 = vpack.c.bf16 %v17958_v42, %v17957_v29  ;;  %v17963_v60 = vand.u32 4294901760, %v13668_v31  ;;  %v17964_v51 = vand.u32 4294901760, %v13670_v21  ;;  %v14451_v37 = vpack.c.bf16 %v5256_v56, %v5252_v43  ;;  %v17989_v62 = vld [vmem:[#allocation58_spill] sm:$0xff]  ;;  %v17993_v29 = vld [vmem:[#allocation61_spill] sm:$0xff] }
 0x730   :  { %9563 = vmatpush1.bf16.msra.mxu0 %v14423_v27  ;;  %17959 = vst [vmem:[#allocation88_spill] sm:$0xff] %v14437_v36  ;;  %17960 = vst [vmem:[#allocation16_spill] sm:$0xff] %v14440_v7  ;;  %v9446_v48 = vpack.c.bf16 %v17962_v11, %v17961_v2  ;;  %v14454_v53 = vpack.c.bf16 %v5262_v20, %v5258_v32  ;;  %v17967_v63 = vand.u32 4294901760, %v13672_v8  ;;  %v17968_v12 = vand.u32 4294901760, %v13674_v46  ;;  %v17973_v20 = vld [vmem:[#allocation83_spill] sm:$0xff]  ;;  %v17975_v46 = vld [vmem:[#allocation84_spill] sm:$0xff] }
 0x731   :  { %9565 = vmatprep.subr.bf16.mxu0 %v14426_v25  ;;  %v9448_v33 = vpack.c.bf16 %v17964_v51, %v17963_v60  ;;  %17965 = vst [vmem:[#allocation18_spill] sm:$0xff] %v14451_v37  ;;  %v17969_v31 = vand.u32 4294901760, %v13676_v14  ;;  %v17970_v21 = vand.u32 4294901760, %v13678_v38  ;;  %v14465_v56 = vpack.c.bf16 %v5264_v55, %v5260_v18  ;;  %v17979_v38 = vld [vmem:[#allocation85_spill] sm:$0xff]  ;;  %v17997_v11 = vld [vmem:[#allocation36_spill] sm:$0xff]  ;;  %v17999_v60 = vld [vmem:[#allocation42_spill] sm:$0xff] }
 0x732   :  { %9443 = vmatpush1.bf16.msra.mxu1 %v9442_v45  ;;  %17966 = vst [vmem:[#allocation57_spill] sm:$0xff] %v14454_v53  ;;  %v9450_v19 = vpack.c.bf16 %v17968_v12, %v17967_v63  ;;  %v17972_v32 = vand.u32 4294901760, %v13680_v58  ;;  %v17974_v8 = vand.u32 4294901760, %v17973_v20  ;;  %v17976_v26 = vand.u32 4294901760, %v17975_v46  ;;  %v17992_v45 = vld [vmem:[#allocation63_spill] sm:$0xff]  ;;  %v17994_v42 = vld [vmem:[#allocation81_spill] sm:$0xff] }
 0x733   :  { %9445 = vmatprep.subr.bf16.mxu1 %v9444_v9  ;;  %v9452_v61 = vpack.c.bf16 %v17970_v21, %v17969_v31  ;;  %17971 = vst [vmem:[#allocation24_spill] sm:$0xff] %v14465_v56  ;;  %v17978_v14 = vand.u32 4294901760, %v17977_v49  ;;  %v17980_v18 = vand.u32 4294901760, %v17979_v38  ;;  %v17982_v59 = vand.u32 4294901760, %v17981_v52  ;;  %v17995_v9 = vld [vmem:[#allocation64_spill] sm:$0xff]  ;;  %v17996_v2 = vld [vmem:[#allocation29_spill] sm:$0xff] }
 0x734   :  { %9567 = vmatpush1.bf16.msra.mxu0 %v14437_v36  ;;  %v9454_v43 = vpack.c.bf16 %v17974_v8, %v17972_v32  ;;  %v17984_v58 = vand.u32 4294901760, %v17983_v47  ;;  %v17986_v34 = vand.u32 4294901760, %v17985_v44  ;;  %v17988_v23 = vand.u32 4294901760, %v17987_v24  ;;  %v18000_v51 = vld [vmem:[#allocation96_spill] sm:$0xff]  ;;  %v18002_v63 = vld [vmem:[#allocation55_spill] sm:$0xff]  ;;  %v18003_v12 = vld [vmem:[#allocation22_spill] sm:$0xff] }
 0x735   :  { %9569 = vmatprep.subr.bf16.mxu0 %v14440_v7  ;;  %v9456_v41 = vpack.c.bf16 %v17978_v14, %v17976_v26  ;;  %v9458_v55 = vpack.c.bf16 %v17982_v59, %v17980_v18  ;;  %v17990_v4 = vand.u32 4294901760, %v17989_v62  ;;  %v18005_v31 = vld [vmem:[#allocation74_spill] sm:$0xff]  ;;  %v18006_v21 = vld [vmem:[#allocation104_spill] sm:$0xff]  ;;  %v18008_v32 = vld [vmem:[#allocation87_spill] sm:$0xff] }
 0x736   :  { %9447 = vmatpush1.bf16.msra.mxu1 %v9446_v48  ;;  %v9460_v10 = vpack.c.bf16 %v17986_v34, %v17984_v58  ;;  %v17998_v48 = vld [vmem:[#allocation38_spill] sm:$0xff]  ;;  %v18009_v20 = vld [vmem:[#allocation79_spill] sm:$0xff]  ;;  %v18010_v8 = vld [vmem:[#allocation60_spill] sm:$0xff] }
 0x737   :  { %9449 = vmatprep.subr.bf16.mxu1 %v9448_v33  ;;  %v9462_v40 = vpack.c.bf16 %v17990_v4, %v17988_v23  ;;  %v18001_v33 = vld [vmem:[#allocation113_spill] sm:$0xff]  ;;  %v18013_v26 = vld [vmem:[#allocation66_spill] sm:$0xff]  ;;  %v18014_v49 = vld [vmem:[#allocation27_spill] sm:$0xff] }
 0x738   :  { %9571 = vmatpush1.bf16.msra.mxu0 %v14451_v37  ;;  %v18012_v46 = vld [vmem:[#allocation65_spill] sm:$0xff]  ;;  %v18015_v14 = vld [vmem:[#allocation68_spill] sm:$0xff]  ;;  %v18017_v38 = vld [vmem:[#allocation90_spill] sm:$0xff] }
 0x739   :  { %9573 = vmatprep.subr.bf16.mxu0 %v14454_v53  ;;  %v18018_v18 = vld [vmem:[#allocation91_spill] sm:$0xff]  ;;  %v18019_v52 = vld [vmem:[#allocation72_spill] sm:$0xff]  ;;  %v18022_v47 = vld [vmem:[#allocation94_spill] sm:$0xff] }
 0x73a   :  { %9451 = vmatpush1.bf16.msra.mxu1 %v9450_v19  ;;  %v18004_v19 = vld [vmem:[#allocation26_spill] sm:$0xff]  ;;  %v18020_v59 = vld [vmem:[#allocation51_spill] sm:$0xff]  ;;  %v18023_v58 = vld [vmem:[#allocation80_spill] sm:$0xff] }
 0x73b   :  { %9453 = vmatprep.subr.bf16.mxu1 %v9452_v61  ;;  %v18007_v61 = vld [vmem:[#allocation107_spill] sm:$0xff]  ;;  %v5144_v4 = vld [vmem:[#allocation8 + $0x190] sm:$0xff] }
 0x73c   :  { %9575 = vmatpush1.bf16.msra.mxu0 %v14465_v56  ;;  %v18024_v44 = vld [vmem:[#allocation15_spill] sm:$0xff] }
 0x73d   :  { %v5143_v34 = vld [vmem:[#allocation8 + $0x188] sm:$0xff]  ;;  %v5142_v62 = vld [vmem:[#allocation8 + $0x180] sm:$0xff] }
 0x73e   :  { %9455 = vmatpush1.bf16.msra.mxu1 %v9454_v43  ;;  %v18011_v43 = vld [vmem:[#allocation62_spill] sm:$0xff]  ;;  %v5266_v24 = vand.u32 4294901760, %v5143_v34 }
 0x73f   :  { %9457 = vmatprep.subr.bf16.mxu1 %v9456_v41  ;;  %v18016_v41 = vld [vmem:[#allocation98_spill] sm:$0xff] }
 0x742   :  { %9459 = vmatpush1.bf16.msra.mxu1 %v9458_v55  ;;  %v18021_v55 = vld [vmem:[#allocation76_spill] sm:$0xff] }
 0x743   :  { %9461 = vmatprep.subr.bf16.mxu1 %v9460_v10  ;;  %v5145_v10 = vld [vmem:[#allocation8 + $0x198] sm:$0xff] }
 0x744   :  { %v5270_v23 = vand.u32 4294901760, %v5145_v10 }
 0x746   :  { %9463 = vmatpush1.bf16.msra.mxu1 %v9462_v40  ;;  %v5268_v40 = vand.u32 4294901760, %v5142_v62  ;;  %v14554_v56 = vsub.f32 %v5145_v10, %v5270_v23 }
 0x747   :  { %9465 = vmatprep.subr.bf16.mxu1 %v17991_v22  ;;  %v5272_v22 = vand.u32 4294901760, %v5144_v4 }
 0x748   :  { %v14556_v53 = vsub.f32 %v5142_v62, %v5268_v40 }
 0x749   :  { %4949 = vmatmul.mubr.f32.vlgmr.msra.gmra.mrb[4].mxu1 %v17992_v45  ;;  %v14558_v37 = vsub.f32 %v5144_v4, %v5272_v22 }
 0x74a   :  { %9467 = vmatpush1.bf16.msra.mxu1 %v17993_v29  ;;  %5084 = vmatprep.mubr.f32.mxu1 %v17994_v42  ;;  %v14524_v29 = vpack.c.bf16 %v5270_v23, %v5266_v24  ;;  %v14526_v42 = vpack.c.bf16 %v5272_v22, %v5268_v40 }
 0x74b   :  { %9469 = vmatprep.subr.bf16.mxu1 %v17995_v9  ;;  %v5147_v9 = vld [vmem:[#allocation8 + $0x1a8] sm:$0xff] }
 0x74c   :  { %18025 = vst [vmem:[#allocation83_spill] sm:$0xff] %v14524_v29  ;;  %18026 = vst [vmem:[#allocation84_spill] sm:$0xff] %v14526_v42  ;;  %9577 = vmatprep.subr.bf16.mxu0 %v14524_v29  ;;  %v14552_v29 = vsub.f32 %v5143_v34, %v5266_v24 }
 0x74d   :  { %9579 = vmatpush1.bf16.msra.mxu0 %v14526_v42 }
 0x74e   :  { %9471 = vmatpush1.bf16.msra.mxu1 %v17996_v2  ;;  %v5149_v2 = vld [vmem:[#allocation8 + $0x1b8] sm:$0xff] }
 0x74f   :  { %9473 = vmatprep.subr.bf16.mxu1 %v17997_v11  ;;  %v5274_v11 = vand.u32 4294901760, %v5147_v9 }
 0x752   :  { %9475 = vmatpush1.bf16.msra.mxu1 %v17998_v48  ;;  %v5278_v48 = vand.u32 4294901760, %v5149_v2 }
 0x753   :  { %9477 = vmatprep.subr.bf16.mxu1 %v17999_v60  ;;  %v5146_v60 = vld [vmem:[#allocation8 + $0x1a0] sm:$0xff] }
 0x754   :  { %v14562_v7 = vsub.f32 %v5149_v2, %v5278_v48 }
 0x756   :  { %9479 = vmatpush1.bf16.msra.mxu1 %v18000_v51  ;;  %v5276_v51 = vand.u32 4294901760, %v5146_v60 }
 0x757   :  { %9481 = vmatprep.subr.bf16.mxu1 %v18001_v33 }
 0x758   :  { %v14564_v36 = vsub.f32 %v5146_v60, %v5276_v51  ;;  %v18042_v60 = vld [vmem:[#allocation92_spill] sm:$0xff] }
 0x75a   :  { %9483 = vmatpush1.bf16.msra.mxu1 %v18002_v63  ;;  %v14530_v63 = vpack.c.bf16 %v5278_v48, %v5274_v11  ;;  %v3796_v48 = vld [vmem:[%s15732_s8] sm:$0x3]  ;;  %s7865_s8 = sshll.u32 %s10348_s18, 4  ;;  %s7866_s8 = int_to_ptr.vmem [resolvable:$true] %s7865_s8 }
 0x75b   :  { %9485 = vmatprep.subr.bf16.mxu1 %v18003_v12  ;;  %s10309_s22 = scalar_lea.vmem %s7866_s8, 32  ;;  %p10314_p5 = scmp.lt.s32.totalorder %s7866_s8, %s7866_s8 }
 0x75c   :  { %18027 = vst [vmem:[#allocation67_spill] sm:$0xff] %v14530_v63  ;;  %9581 = vmatprep.subr.bf16.mxu0 %v14530_v63  ;;  %p10310_p4 = scmp.ne.s32.totalorder %s7866_s8, %s10309_s22  ;;  %p10315_p6 = scmp.lt.s32.totalorder %s10309_s22, %s10309_s22 }
 0x75e   :  { %9487 = vmatpush1.bf16.msra.mxu1 %v18004_v19  ;;  %v5151_v19 = vld [vmem:[#allocation8 + $0x1c8] sm:$0xff]  ;;  %p10316_p7 = por %p10315_p6, %p10314_p5 }
 0x75f   :  { %9489 = vmatprep.subr.bf16.mxu1 %v18005_v31  ;;  %v5153_v31 = vld [vmem:[#allocation8 + $0x1d8] sm:$0xff] }
 0x760   :  { %p10317_p8 = pnand %p10316_p7, %p10310_p4 }
 0x762   :  { %9491 = vmatpush1.bf16.msra.mxu1 %v18006_v21  ;;  %v5282_v21 = vand.u32 4294901760, %v5151_v19 }
 0x763   :  { %9493 = vmatprep.subr.bf16.mxu1 %v18007_v61  ;;  %v5286_v61 = vand.u32 4294901760, %v5153_v31 }
 0x765   :  { %v14571_v34 = vsub.f32 %v5153_v31, %v5286_v61 }
 0x766   :  { %9495 = vmatpush1.bf16.msra.mxu1 %v18008_v32  ;;  %v5150_v32 = vld [vmem:[#allocation8 + $0x1c0] sm:$0xff] }
 0x767   :  { %9497 = vmatprep.subr.bf16.mxu1 %v18009_v20  ;;  %v5152_v20 = vld [vmem:[#allocation8 + $0x1d0] sm:$0xff] }
 0x76a   :  { %9499 = vmatpush1.bf16.msra.mxu1 %v18010_v8  ;;  %v5284_v8 = vand.u32 4294901760, %v5150_v32 }
 0x76b   :  { %9501 = vmatprep.subr.bf16.mxu1 %v18011_v43  ;;  %v5288_v43 = vand.u32 4294901760, %v5152_v20 }
 0x76c   :  { %v14573_v10 = vsub.f32 %v5150_v32, %v5284_v8 }
 0x76d   :  { %v14575_v24 = vsub.f32 %v5152_v20, %v5288_v43  ;;  %v18046_v20 = vld [vmem:[#allocation118_spill] sm:$0xff] }
 0x76e   :  { %9503 = vmatpush1.bf16.msra.mxu1 %v18012_v46  ;;  %v14536_v46 = vpack.c.bf16 %v5286_v61, %v5282_v21  ;;  %18035 = vst [vmem:[#allocation58_spill] sm:$0xff] %v14573_v10 }
 0x76f   :  { %9505 = vmatprep.subr.bf16.mxu1 %v18013_v26  ;;  %v14538_v26 = vpack.c.bf16 %v5288_v43, %v5284_v8  ;;  %18036 = vst [vmem:[#allocation89_spill] sm:$0xff] %v14575_v24  ;;  %v16523_v8 = vand.u32 4294901760, %v18046_v20  ;;  %v18047_v43 = vld [vmem:[#allocation119_spill] sm:$0xff] }
 0x770   :  { %18029 = vst [vmem:[#allocation77_spill] sm:$0xff] %v14536_v46 }
 0x771   :  { %18030 = vst [vmem:[#allocation86_spill] sm:$0xff] %v14538_v26 }
 0x772   :  { %9507 = vmatpush1.bf16.msra.mxu1 %v18014_v49  ;;  %v5155_v49 = vld [vmem:[#allocation8 + $0x1e8] sm:$0xff] }
 0x773   :  { %9509 = vmatprep.subr.bf16.mxu1 %v18015_v14  ;;  %v5157_v14 = vld [vmem:[#allocation8 + $0x1f8] sm:$0xff] }
 0x776   :  { %9511 = vmatpush1.bf16.msra.mxu1 %v18016_v41  ;;  %v5290_v41 = vand.u32 4294901760, %v5155_v49 }
 0x777   :  { %9513 = vmatprep.subr.bf16.mxu1 %v18017_v38  ;;  %v5294_v38 = vand.u32 4294901760, %v5157_v14 }
 0x778   :  { %v14577_v23 = vsub.f32 %v5155_v49, %v5290_v41 }
 0x779   :  { %v14579_v62 = vsub.f32 %v5157_v14, %v5294_v38 }
 0x77a   :  { %9515 = vmatpush1.bf16.msra.mxu1 %v18018_v18  ;;  %v5154_v18 = vld [vmem:[#allocation8 + $0x1e0] sm:$0xff]  ;;  %18037 = vst [vmem:[#allocation63_spill] sm:$0xff] %v14577_v23 }
 0x77b   :  { %9517 = vmatprep.subr.bf16.mxu1 %v18019_v52  ;;  %v5156_v52 = vld [vmem:[#allocation8 + $0x1f0] sm:$0xff]  ;;  %18038 = vst [vmem:[#allocation61_spill] sm:$0xff] %v14579_v62 }
 0x77c   :  { %v5296_v63 = vand.u32 4294901760, %v5156_v52 }
 0x77e   :  { %9519 = vmatpush1.bf16.msra.mxu1 %v18020_v59  ;;  %v18031_v59 = vld [vmem:[#allocation99_spill] sm:$0xff]  ;;  %v14585_v22 = vsub.f32 %v5156_v52, %v5296_v63 }
 0x77f   :  { %9521 = vmatprep.subr.bf16.mxu1 %v18021_v55  ;;  %v16518_v55 = vand.u32 4294901760, %v18031_v59 }
 0x780   :  { %18041 = vst [vmem:[#allocation29_spill] sm:$0xff] %v14585_v22 }
 0x781   :  { %v5318_v42 = vsub.f32 %v18031_v59, %v16518_v55  ;;  %v14569_v55 = vsub.f32 %v5151_v19, %v5282_v21  ;;  %v18044_v19 = vld [vmem:[#allocation109_spill] sm:$0xff]  ;;  %v18045_v21 = vld [vmem:[#allocation116_spill] sm:$0xff] }
 0x782   :  { %9523 = vmatpush1.bf16.msra.mxu1 %v18022_v47  ;;  %v18032_v47 = vld [vmem:[#allocation103_spill] sm:$0xff]  ;;  %v16520_v31 = vand.u32 4294901760, %v18044_v19  ;;  %v16519_v61 = vand.u32 4294901760, %v18045_v21 }
 0x783   :  { %9525 = vmatprep.subr.bf16.mxu1 %v18023_v58  ;;  %v16521_v58 = vand.u32 4294901760, %v18032_v47 }
 0x784   :  { %v5324_v14 = vsub.f32 %v18044_v19, %v16520_v31  ;;  %v18053_v31 = vld [vmem:[#allocation44_spill] sm:$0xff] }
 0x786   :  { %9527 = vmatpush1.bf16.msra.mxu1 %v18024_v44  ;;  %v5292_v44 = vand.u32 4294901760, %v5154_v18 }
 0x788   :  { %v14581_v4 = vpack.c.bf16 %v5296_v63, %v5292_v44  ;;  %v14583_v40 = vsub.f32 %v5154_v18, %v5292_v44  ;;  %v16526_v18 = vand.u32 4294901760, %v14165_v28  ;;  %v18048_v44 = vld [vmem:[#allocation122_spill] sm:$0xff] }
 0x789   :  { %5086 = vmatmul.mubr.f32.vlgmr.msra.gmra.mrb[4].mxu1 %v17992_v45  ;;  %v5148_v45 = vld [vmem:[#allocation8 + $0x1b0] sm:$0xff] }
 0x78a   :  { %v5280_v33 = vand.u32 4294901760, %v5148_v45  ;;  %18039 = vst [vmem:[#allocation81_spill] sm:$0xff] %v14581_v4  ;;  %18040 = vst [vmem:[#allocation64_spill] sm:$0xff] %v14583_v40 }
 0x78c   :  { %v14532_v12 = vpack.c.bf16 %v5280_v33, %v5276_v51  ;;  %v14566_v25 = vsub.f32 %v5148_v45, %v5280_v33  ;;  %v3801_v45 = vrot.slane %v3796_v48, %v18042_v60  ;;  %v18043_v51 = vld [vmem:[#allocation93_spill] sm:$0xff] }
 0x78d   :  { %v3805_v33 = vrot.slane %v3796_v48, %v18043_v51 }
 0x78e   :  { %18028 = vst [vmem:[#allocation85_spill] sm:$0xff] %v14532_v12  ;;  %9583 = vmatpush1.bf16.msra.mxu0 %v14532_v12  ;;  %v14544_v12 = vpack.c.bf16 %v5294_v38, %v5290_v41  ;;  %18034 = vst [vmem:[#allocation56_spill] sm:$0xff] %v14566_v25  ;;  %v5336_v41 = vsub.f32 %v18045_v21, %v16519_v61  ;;  %v5348_v61 = vsub.f32 %v14165_v28, %v16526_v18  ;;  %v18057_v18 = vld [vmem:[#allocation47_spill] sm:$0xff] }
 0x78f   :  { %9585 = vmatprep.subr.bf16.mxu0 %v14536_v46  ;;  %v5330_v46 = vsub.f32 %v18032_v47, %v16521_v58 }
 0x790   :  { %18033 = vst [vmem:[#allocation53_spill] sm:$0xff] %v14544_v12 }
 0x791   :  { %v5331_v2 = vand.u32 4294901760, %v5330_v46  ;;  %v16522_v46 = vand.u32 4294901760, %v18047_v43 }
 0x792   :  { %9587 = vmatpush1.bf16.msra.mxu0 %v14538_v26  ;;  %v14560_v26 = vsub.f32 %v5147_v9, %v5274_v11  ;;  %v5319_v9 = vand.u32 4294901760, %v5318_v42 }
 0x793   :  { %9589 = vmatprep.subr.bf16.mxu0 %v14544_v12 }
 0x794   :  { %v9592_v11 = vpack.c.bf16 %v5331_v2, %v5319_v9  ;;  %v16531_v9 = vand.u32 4294901760, %v18048_v44  ;;  %v18049_v2 = vld [vmem:[#allocation123_spill] sm:$0xff] }
 0x796   :  { %9591 = vmatpush1.bf16.msra.mxu0 %v14581_v4 }
 0x797   :  { %9593 = vmatprep.subr.bf16.mxu0 %v9592_v11 }
 0x85c   :  { %v5087_v63 = vpop.f32.mrb[4].mxu1 }
 0x85d   :  { %v10148_v32 = vadd.f32 %v5087_v63, %v3801_v45  ;;  %v5089_v42 = vpop.f32.mrb[5].mxu1  ;;  %v5342_v45 = vsub.f32 %v18046_v20, %v16523_v8  ;;  %v18055_v8 = vand.u32 4294901760, %v18049_v2 }
 0x85e   :  { %v10149_v49 = vadd.f32 %v5089_v42, %v3805_v33  ;;  %v5354_v33 = vsub.f32 %v18047_v43, %v16522_v46  ;;  %v5337_v42 = vand.u32 4294901760, %v5336_v41  ;;  %v5360_v46 = vsub.f32 %v18048_v44, %v16531_v9  ;;  %v18056_v41 = vld [vmem:[#allocation46_spill] sm:$0xff]  ;;  %v18068_v44 = vld [vmem:[#allocation111_spill] sm:$0xff] }
 0x85f   :  { %v5092_v38 = vmax.f32 %v10148_v32, 0.0  ;;  %v5325_v32 = vand.u32 4294901760, %v5324_v14  ;;  %v5366_v14 = vsub.f32 %v18049_v2, %v18055_v8  ;;  %v5343_v60 = vand.u32 4294901760, %v5342_v45  ;;  %v18059_v8 = vld [vmem:[#allocation48_spill] sm:$0xff]  ;;  %v18066_v2 = vld [vmem:[#allocation23_spill] sm:$0xff] }
 0x860   :  { %v5093_v52 = vmax.f32 %v10149_v49, 0.0  ;;  %v5355_v4 = vand.u32 4294901760, %v5354_v33  ;;  %v18058_v9 = vand.u32 4294901760, %v18053_v31  ;;  %v5349_v33 = vand.u32 4294901760, %v5348_v61  ;;  %v18067_v61 = vld [vmem:[#allocation110_spill] sm:$0xff] }
 0x861   :  { %v14606_v48 = vand.u32 4294901760, %v5092_v38  ;;  %v5361_v12 = vand.u32 4294901760, %v5360_v46  ;;  %v5367_v50 = vand.u32 4294901760, %v5366_v14  ;;  %v18064_v14 = vand.u32 4294901760, %v14192_v39 }
 0x862   :  { %v14614_v63 = vand.u32 4294901760, %v5093_v52  ;;  %v5378_v35 = vsub.f32 %v18053_v31, %v18058_v9  ;;  %v18062_v9 = vand.u32 4294901760, %v18057_v18 }
 0x863   :  { %18050 = vst [vmem:[#allocation36_spill] sm:$0xff] %v14606_v48  ;;  %v14617_v49 = vsub.f32 %v5092_v38, %v14606_v48 }
 0x864   :  { %18051 = vst [vmem:[#allocation38_spill] sm:$0xff] %v14614_v63  ;;  %v14624_v11 = vsub.f32 %v5093_v52, %v14614_v63  ;;  %v9594_v52 = vpack.c.bf16 %v5337_v42, %v5325_v32  ;;  %v16551_v32 = vand.u32 4294901760, %v18060_v0  ;;  %v9596_v42 = vpack.c.bf16 %v5355_v4, %v5343_v60 }
 0x865   :  { %18052 = vst [vmem:[#allocation42_spill] sm:$0xff] %v14617_v49  ;;  %v16540_v51 = vand.u32 4294901760, %v14617_v49  ;;  %v5384_v1 = vsub.f32 %v18057_v18, %v18062_v9  ;;  %v18063_v4 = vand.u32 4294901760, %v18059_v8  ;;  %v18065_v9 = vld [vmem:[#allocation21_spill] sm:$0xff]  ;;  %v16559_v18 = vand.u32 4294901760, %v18066_v2 }
 0x866   :  { %18054 = vst [vmem:[#allocation96_spill] sm:$0xff] %v14624_v11  ;;  %v16545_v58 = vand.u32 4294901760, %v14624_v11 }
 0x867   :  { %v5307_v27 = vsub.f32 %v14617_v49, %v16540_v51  ;;  %v18061_v51 = vand.u32 4294901760, %v18056_v41  ;;  %v5390_v60 = vsub.f32 %v18059_v8, %v18063_v4  ;;  %v18079_v8 = vld [vmem:[#allocation39_spill] sm:$0xff] }
 0x868   :  { %v5301_v45 = vsub.f32 %v14624_v11, %v16545_v58  ;;  %v5379_v58 = vand.u32 4294901760, %v5378_v35  ;;  %v16575_v28 = vand.u32 4294901760, %v18079_v8 }
 0x869   :  { %v5372_v49 = vsub.f32 %v18056_v41, %v18061_v51  ;;  %v5308_v46 = vand.u32 4294901760, %v5307_v27  ;;  %v5402_v51 = vsub.f32 %v14192_v39, %v18064_v14  ;;  %v9598_v27 = vpack.c.bf16 %v5361_v12, %v5349_v33 }
 0x86a   :  { %v5302_v31 = vand.u32 4294901760, %v5301_v45  ;;  %v5396_v45 = vsub.f32 %v18060_v0, %v16551_v32  ;;  %v5385_v14 = vand.u32 4294901760, %v5384_v1  ;;  %v18070_v32 = vand.u32 4294901760, %v14210_v54 }
 0x86b   :  { %v5373_v35 = vand.u32 4294901760, %v5372_v49  ;;  %v9600_v49 = vpack.c.bf16 %v5379_v58, %v5367_v50  ;;  %v5391_v33 = vand.u32 4294901760, %v5390_v60  ;;  %v5403_v4 = vand.u32 4294901760, %v5402_v51  ;;  %v18075_v50 = vld [vmem:[#allocation28_spill] sm:$0xff]  ;;  %v18076_v60 = vld [vmem:[#allocation33_spill] sm:$0xff] }
 0x86c   :  { %5303 = vmatprep.mubr.f32.mxu0 %v5302_v31  ;;  %v18069_v31 = vand.u32 4294901760, %v14208_v6  ;;  %v5414_v38 = vsub.f32 %v14210_v54, %v18070_v32  ;;  %v18072_v41 = vand.u32 4294901760, %v18065_v9  ;;  %v18074_v54 = vand.u32 4294901760, %v18068_v44 }
 0x86d   :  { %5309 = vmatmul.mubr.f32.vlgmr.msra.gmra.mrb[4].mxu0 %v5308_v46  ;;  %v18071_v46 = vand.u32 4294901760, %v14221_v30  ;;  %v16573_v51 = vand.u32 4294901760, %v18076_v60 }
 0x86e   :  { %9595 = vmatpush1.bf16.msra.mxu0 %v9594_v52  ;;  %5700 = vmatprep.mubr.f32.mxu0 %v14614_v63  ;;  %v5408_v39 = vsub.f32 %v14208_v6, %v18069_v31  ;;  %v5397_v52 = vand.u32 4294901760, %v5396_v45  ;;  %v5420_v1 = vsub.f32 %v18065_v9, %v18072_v41  ;;  %v5432_v31 = vsub.f32 %v18066_v2, %v16559_v18  ;;  %v18077_v18 = vld [vmem:[#allocation34_spill] sm:$0xff]  ;;  %v18078_v6 = vld [vmem:[#allocation37_spill] sm:$0xff] }
 0x86f   :  { %v5426_v12 = vsub.f32 %v14221_v30, %v18071_v46  ;;  %9597 = vmatprep.subr.bf16.mxu0 %v9596_v42  ;;  %v18073_v63 = vand.u32 4294901760, %v18067_v61  ;;  %v5450_v42 = vsub.f32 %v18068_v44, %v18074_v54  ;;  %v9602_v45 = vpack.c.bf16 %v5385_v14, %v5373_v35  ;;  %v18080_v54 = vld [vmem:[#allocation41_spill] sm:$0xff] }
 0x870   :  { %v5409_v46 = vand.u32 4294901760, %v5408_v39  ;;  %v5415_v41 = vand.u32 4294901760, %v5414_v38  ;;  %v9604_v30 = vpack.c.bf16 %v5403_v4, %v5391_v33  ;;  %v16572_v2 = vand.u32 4294901760, %v18077_v18 }
 0x871   :  { %v5438_v32 = vsub.f32 %v18067_v61, %v18073_v63  ;;  %v5427_v9 = vand.u32 4294901760, %v5426_v12  ;;  %v16571_v0 = vand.u32 4294901760, %v18078_v6  ;;  %v5421_v63 = vand.u32 4294901760, %v5420_v1  ;;  %v18083_v1 = vld [vmem:[#allocation70_spill] sm:$0xff] }
 0x872   :  { %9599 = vmatpush1.bf16.msra.mxu0 %v9598_v27  ;;  %v5433_v61 = vand.u32 4294901760, %v5432_v31  ;;  %v16577_v44 = vand.u32 4294901760, %v18080_v54  ;;  %v5451_v11 = vand.u32 4294901760, %v5450_v42  ;;  %v18081_v27 = vand.u32 4294901760, %v18075_v50  ;;  %v18087_v31 = vld [vmem:[#allocation69_spill] sm:$0xff] }
 0x873   :  { %9601 = vmatprep.subr.bf16.mxu0 %v9600_v49  ;;  %v5439_v58 = vand.u32 4294901760, %v5438_v32  ;;  %v5456_v38 = vsub.f32 %v18076_v60, %v16573_v51  ;;  %v9606_v35 = vpack.c.bf16 %v5409_v46, %v5397_v52  ;;  %v9608_v4 = vpack.c.bf16 %v5427_v9, %v5415_v41  ;;  %v18082_v49 = vld [vmem:[#allocation50_spill] sm:$0xff]  ;;  %v18084_v46 = vld [vmem:[#allocation31_spill] sm:$0xff] }
 0x874   :  { %v5444_v39 = vsub.f32 %v18075_v50, %v18081_v27  ;;  %v5462_v14 = vsub.f32 %v18077_v18, %v16572_v2  ;;  %v5474_v12 = vsub.f32 %v18078_v6, %v16571_v0  ;;  %v5468_v32 = vsub.f32 %v18079_v8, %v16575_v28  ;;  %v18085_v27 = vld [vmem:[#allocation52_spill] sm:$0xff]  ;;  %v18092_v41 = vld [vmem:[#allocation30_spill] sm:$0xff] }
 0x875   :  { %v9610_v9 = vpack.c.bf16 %v5433_v61, %v5421_v63  ;;  %v9612_v52 = vpack.c.bf16 %v5451_v11, %v5439_v58  ;;  %v18086_v2 = vld [vmem:[#allocation20_spill] sm:$0xff]  ;;  %v18088_v8 = vand.u32 4294901760, %v18082_v49  ;;  %v18089_v11 = vand.u32 4294901760, %v18083_v1 }
 0x876   :  { %9603 = vmatpush1.bf16.msra.mxu0 %v9602_v45  ;;  %v5445_v42 = vand.u32 4294901760, %v5444_v39  ;;  %v5457_v45 = vand.u32 4294901760, %v5456_v38  ;;  %v5463_v6 = vand.u32 4294901760, %v5462_v14  ;;  %v5475_v28 = vand.u32 4294901760, %v5474_v12  ;;  %v18090_v39 = vld [vmem:[#allocation71_spill] sm:$0xff] }
 0x877   :  { %9605 = vmatprep.subr.bf16.mxu0 %v9604_v30  ;;  %v5480_v30 = vsub.f32 %v18080_v54, %v16577_v44  ;;  %v5486_v44 = vsub.f32 %v18082_v49, %v18088_v8  ;;  %v5498_v61 = vsub.f32 %v18083_v1, %v18089_v11  ;;  %v5469_v58 = vand.u32 4294901760, %v5468_v32 }
 0x878   :  { %v16582_v38 = vand.u32 4294901760, %v18090_v39  ;;  %v9614_v51 = vpack.c.bf16 %v5457_v45, %v5445_v42  ;;  %v18094_v12 = vand.u32 4294901760, %v18084_v46  ;;  %v18095_v49 = vand.u32 4294901760, %v18085_v27 }
 0x879   :  { %v5481_v63 = vand.u32 4294901760, %v5480_v30  ;;  %v18096_v32 = vand.u32 4294901760, %v18086_v2  ;;  %v18097_v0 = vand.u32 4294901760, %v18087_v31  ;;  %v9616_v45 = vpack.c.bf16 %v5475_v28, %v5463_v6  ;;  %v18101_v28 = vld [vmem:[#allocation102_spill] sm:$0xff] }
 0x87a   :  { %9607 = vmatpush1.bf16.msra.mxu0 %v9606_v35  ;;  %v18091_v35 = vld [vmem:[#allocation73_spill] sm:$0xff]  ;;  %v5492_v8 = vsub.f32 %v18084_v46, %v18094_v12  ;;  %v5504_v11 = vsub.f32 %v18085_v27, %v18095_v49  ;;  %v5487_v14 = vand.u32 4294901760, %v5486_v44  ;;  %v5516_v12 = vsub.f32 %v18090_v39, %v16582_v38 }
 0x87b   :  { %9609 = vmatprep.subr.bf16.mxu0 %v9608_v4  ;;  %v18093_v4 = vld [vmem:[#allocation100_spill] sm:$0xff]  ;;  %v5510_v30 = vsub.f32 %v18086_v2, %v18096_v32  ;;  %v5522_v42 = vsub.f32 %v18087_v31, %v18097_v0  ;;  %v9618_v33 = vpack.c.bf16 %v5481_v63, %v5469_v58  ;;  %v18098_v46 = vand.u32 4294901760, %v18091_v35  ;;  %v18102_v44 = vld [vmem:[#allocation105_spill] sm:$0xff] }
 0x87c   :  { %v18099_v27 = vand.u32 4294901760, %v18092_v41  ;;  %v18100_v2 = vand.u32 4294901760, %v18093_v4  ;;  %v5505_v58 = vand.u32 4294901760, %v5504_v11  ;;  %v16589_v31 = vand.u32 4294901760, %v14383_v57 }
 0x87d   :  { %v5528_v49 = vsub.f32 %v18091_v35, %v18098_v46  ;;  %v5511_v63 = vand.u32 4294901760, %v5510_v30  ;;  %v5523_v38 = vand.u32 4294901760, %v5522_v42  ;;  %v18103_v46 = vld [vmem:[#allocation106_spill] sm:$0xff]  ;;  %v16590_v1 = vand.u32 4294901760, %v14390_v16 }
 0x87e   :  { %9611 = vmatpush1.bf16.msra.mxu0 %v9610_v9  ;;  %v5499_v9 = vand.u32 4294901760, %v5498_v61  ;;  %v5534_v32 = vsub.f32 %v18092_v41, %v18099_v27  ;;  %v5546_v0 = vsub.f32 %v18093_v4, %v18100_v2  ;;  %v5493_v61 = vand.u32 4294901760, %v5492_v8 }
 0x87f   :  { %9613 = vmatprep.subr.bf16.mxu0 %v9612_v52  ;;  %v16602_v52 = vand.u32 4294901760, %v18102_v44  ;;  %v16601_v35 = vand.u32 4294901760, %v18103_v46  ;;  %v5517_v27 = vand.u32 4294901760, %v5516_v12  ;;  %v5529_v41 = vand.u32 4294901760, %v5528_v49 }
 0x880   :  { %v9620_v39 = vpack.c.bf16 %v5499_v9, %v5487_v14  ;;  %v16591_v2 = vand.u32 4294901760, %v14392_v13  ;;  %v5535_v6 = vand.u32 4294901760, %v5534_v32  ;;  %v5547_v4 = vand.u32 4294901760, %v5546_v0 }
 0x881   :  { %v5552_v14 = vsub.f32 %v18102_v44, %v16602_v52  ;;  %v9622_v11 = vpack.c.bf16 %v5505_v58, %v5493_v61  ;;  %v9624_v30 = vpack.c.bf16 %v5523_v38, %v5511_v63  ;;  %v5558_v42 = vsub.f32 %v18103_v46, %v16601_v35 }
 0x882   :  { %9615 = vmatpush1.bf16.msra.mxu0 %v9614_v51  ;;  %v18104_v51 = vand.u32 4294901760, %v18101_v28  ;;  %v16600_v9 = vand.u32 4294901760, %v14394_v5  ;;  %v16592_v12 = vand.u32 4294901760, %v14401_v15  ;;  %v5564_v49 = vsub.f32 %v14390_v16, %v16590_v1 }
 0x883   :  { %9617 = vmatprep.subr.bf16.mxu0 %v9616_v45  ;;  %v5570_v45 = vsub.f32 %v14383_v57, %v16589_v31  ;;  %v9628_v38 = vpack.c.bf16 %v5547_v4, %v5535_v6  ;;  %v5553_v0 = vand.u32 4294901760, %v5552_v14  ;;  %v16593_v61 = vand.u32 4294901760, %v14403_v3 }
 0x884   :  { %v5540_v8 = vsub.f32 %v18101_v28, %v18104_v51  ;;  %v16594_v58 = vand.u32 4294901760, %v14410_v17  ;;  %v16595_v63 = vand.u32 4294901760, %v14552_v29  ;;  %v16598_v51 = vand.u32 4294901760, %v14554_v56 }
 0x885   :  { %v5559_v31 = vand.u32 4294901760, %v5558_v42  ;;  %v5571_v1 = vand.u32 4294901760, %v5570_v45  ;;  %v5565_v4 = vand.u32 4294901760, %v5564_v49  ;;  %v5588_v42 = vsub.f32 %v14403_v3, %v16593_v61 }
 0x886   :  { %9619 = vmatpush1.bf16.msra.mxu0 %v9618_v33  ;;  %v5576_v33 = vsub.f32 %v14392_v13, %v16591_v2  ;;  %v5541_v32 = vand.u32 4294901760, %v5540_v8  ;;  %v5582_v2 = vsub.f32 %v14394_v5, %v16600_v9  ;;  %v16597_v8 = vand.u32 4294901760, %v14558_v37 }
 0x887   :  { %9621 = vmatprep.subr.bf16.mxu0 %v9620_v39  ;;  %v9626_v39 = vpack.c.bf16 %v5529_v41, %v5517_v27  ;;  %v5594_v41 = vsub.f32 %v14401_v15, %v16592_v12  ;;  %v16596_v27 = vand.u32 4294901760, %v14556_v53  ;;  %v5600_v45 = vsub.f32 %v14410_v17, %v16594_v58 }
 0x888   :  { %v5577_v6 = vand.u32 4294901760, %v5576_v33  ;;  %v9630_v14 = vpack.c.bf16 %v5553_v0, %v5541_v32  ;;  %v5606_v49 = vsub.f32 %v14552_v29, %v16595_v63  ;;  %v5618_v33 = vsub.f32 %v14554_v56, %v16598_v51 }
 0x889   :  { %v9632_v32 = vpack.c.bf16 %v5571_v1, %v5559_v31  ;;  %v5583_v0 = vand.u32 4294901760, %v5582_v2  ;;  %v5612_v61 = vsub.f32 %v14556_v53, %v16596_v27  ;;  %v5624_v58 = vsub.f32 %v14558_v37, %v16597_v8 }
 0x88a   :  { %9623 = vmatpush1.bf16.msra.mxu0 %v9622_v11  ;;  %v16599_v11 = vand.u32 4294901760, %v14560_v26  ;;  %v9634_v12 = vpack.c.bf16 %v5577_v6, %v5565_v4  ;;  %v16613_v1 = vand.u32 4294901760, %v14564_v36  ;;  %v16612_v31 = vand.u32 4294901760, %v14566_v25 }
 0x88b   :  { %9625 = vmatprep.subr.bf16.mxu0 %v9624_v30  ;;  %v16603_v30 = vand.u32 4294901760, %v14562_v7  ;;  %v5589_v2 = vand.u32 4294901760, %v5588_v42  ;;  %v5607_v4 = vand.u32 4294901760, %v5606_v49  ;;  %v5619_v6 = vand.u32 4294901760, %v5618_v33 }
 0x88c   :  { %v5630_v63 = vsub.f32 %v14560_v26, %v16599_v11  ;;  %v16611_v8 = vand.u32 4294901760, %v14569_v55  ;;  %v16604_v51 = vand.u32 4294901760, %v14571_v34  ;;  %v5613_v11 = vand.u32 4294901760, %v5612_v61 }
 0x88d   :  { %v5625_v9 = vand.u32 4294901760, %v5624_v58  ;;  %v16610_v49 = vand.u32 4294901760, %v14573_v10  ;;  %v16606_v33 = vand.u32 4294901760, %v14575_v24 }
 0x88e   :  { %9627 = vmatpush1.bf16.msra.mxu0 %v9626_v39  ;;  %v5595_v39 = vand.u32 4294901760, %v5594_v41  ;;  %v5601_v41 = vand.u32 4294901760, %v5600_v45  ;;  %v5631_v35 = vand.u32 4294901760, %v5630_v63  ;;  %v9640_v45 = vpack.c.bf16 %v5619_v6, %v5607_v4 }
 0x88f   :  { %9629 = vmatprep.subr.bf16.mxu0 %v9628_v38  ;;  %v5642_v38 = vsub.f32 %v14562_v7, %v16603_v30  ;;  %v5636_v30 = vsub.f32 %v14564_v36, %v16613_v1  ;;  %v5654_v61 = vsub.f32 %v14569_v55, %v16611_v8  ;;  %v5666_v58 = vsub.f32 %v14571_v34, %v16604_v51  ;;  %v18125_v1 = vld [vmem:[#allocation70_spill] sm:$0xff] }
 0x890   :  { %v9636_v27 = vpack.c.bf16 %v5595_v39, %v5583_v0  ;;  %v9638_v42 = vpack.c.bf16 %v5601_v41, %v5589_v2  ;;  %v16605_v63 = vand.u32 4294901760, %v14577_v23  ;;  %v5672_v2 = vsub.f32 %v14575_v24, %v16606_v33 }
 0x891   :  { %v5643_v52 = vand.u32 4294901760, %v5642_v38  ;;  %v5637_v39 = vand.u32 4294901760, %v5636_v30  ;;  %v16609_v41 = vand.u32 4294901760, %v14583_v40  ;;  %v16608_v4 = vand.u32 4294901760, %v14585_v22 }
 0x892   :  { %9631 = vmatpush1.bf16.msra.mxu0 %v9630_v14  ;;  %v5648_v14 = vsub.f32 %v14566_v25, %v16612_v31  ;;  %v5655_v6 = vand.u32 4294901760, %v5654_v61  ;;  %v5667_v51 = vand.u32 4294901760, %v5666_v58  ;;  %v5673_v30 = vand.u32 4294901760, %v5672_v2  ;;  %v18106_v2 = vld [vmem:[#allocation121_spill] sm:$0xff] }
 0x893   :  { %9633 = vmatprep.subr.bf16.mxu0 %v9632_v32  ;;  %v16607_v32 = vand.u32 4294901760, %v14579_v62  ;;  %v9644_v0 = vpack.c.bf16 %v5643_v52, %v5631_v35  ;;  %v5678_v35 = vsub.f32 %v14577_v23, %v16605_v63 }
 0x894   :  { %v5649_v38 = vand.u32 4294901760, %v5648_v14  ;;  %v5684_v14 = vsub.f32 %v14583_v40, %v16609_v41  ;;  %v18121_v41 = vld [vmem:[#allocation111_spill] sm:$0xff] }
 0x895   :  { %v5690_v52 = vsub.f32 %v14579_v62, %v16607_v32  ;;  %v5679_v61 = vand.u32 4294901760, %v5678_v35 }
 0x896   :  { %9635 = vmatpush1.bf16.msra.mxu0 %v9634_v12  ;;  %v9642_v12 = vpack.c.bf16 %v5625_v9, %v5613_v11  ;;  %v9646_v9 = vpack.c.bf16 %v5649_v38, %v5637_v39  ;;  %v5685_v33 = vand.u32 4294901760, %v5684_v14  ;;  %v9656_v38 = vpack.c.bf16 %v18032_v47, %v18031_v59  ;;  %v18113_v14 = vld [vmem:[#allocation49_spill] sm:$0xff] }
 0x897   :  { %9637 = vmatprep.subr.bf16.mxu0 %v9636_v27  ;;  %v5660_v27 = vsub.f32 %v14573_v10, %v16610_v49  ;;  %v5691_v58 = vand.u32 4294901760, %v5690_v52  ;;  %v18110_v52 = vld [vmem:[#allocation46_spill] sm:$0xff] }
 0x899   :  { %v5661_v11 = vand.u32 4294901760, %v5660_v27  ;;  %v9658_v27 = vpack.c.bf16 %v18045_v21, %v18044_v19 }
 0x89a   :  { %9639 = vmatpush1.bf16.msra.mxu0 %v9638_v42  ;;  %v5696_v42 = vsub.f32 %v14585_v22, %v16608_v4 }
 0x89b   :  { %9641 = vmatprep.subr.bf16.mxu0 %v9640_v45  ;;  %v9648_v45 = vpack.c.bf16 %v5667_v51, %v5655_v6  ;;  %v9650_v63 = vpack.c.bf16 %v5673_v30, %v5661_v11  ;;  %v9660_v51 = vpack.c.bf16 %v18047_v43, %v18046_v20  ;;  %v18109_v6 = vld [vmem:[#allocation44_spill] sm:$0xff] }
 0x89c   :  { %v5697_v32 = vand.u32 4294901760, %v5696_v42  ;;  %v18112_v30 = vld [vmem:[#allocation48_spill] sm:$0xff] }
 0x89d   :  { %v9668_v42 = vpack.c.bf16 %v18113_v14, %v18112_v30 }
 0x89e   :  { %9643 = vmatpush1.bf16.msra.mxu0 %v9642_v12  ;;  %v9652_v12 = vpack.c.bf16 %v5691_v58, %v5679_v61  ;;  %v9654_v39 = vpack.c.bf16 %v5697_v32, %v5685_v33  ;;  %v18108_v32 = vld [vmem:[#allocation123_spill] sm:$0xff]  ;;  %v18115_v61 = vld [vmem:[#allocation17_spill] sm:$0xff] }
 0x89f   :  { %9645 = vmatprep.subr.bf16.mxu0 %v9644_v0  ;;  %v18105_v0 = vld [vmem:[#allocation96_spill] sm:$0xff]  ;;  %v9664_v35 = vpack.c.bf16 %v18109_v6, %v18108_v32 }
 0x8a2   :  { %9647 = vmatpush1.bf16.msra.mxu0 %v9646_v9  ;;  %v18111_v9 = vld [vmem:[#allocation47_spill] sm:$0xff] }
 0x8a3   :  { %9649 = vmatprep.subr.bf16.mxu0 %v9648_v45  ;;  %v9666_v11 = vpack.c.bf16 %v18111_v9, %v18110_v52  ;;  %v18114_v45 = vld [vmem:[#allocation82_spill] sm:$0xff] }
 0x8a4   :  { %v9670_v58 = vpack.c.bf16 %v18115_v61, %v18114_v45 }
 0x8a6   :  { %9651 = vmatpush1.bf16.msra.mxu0 %v9650_v63  ;;  %v18107_v63 = vld [vmem:[#allocation122_spill] sm:$0xff] }
 0x8a7   :  { %9653 = vmatprep.subr.bf16.mxu0 %v9652_v12  ;;  %v9662_v33 = vpack.c.bf16 %v18107_v63, %v18106_v2  ;;  %v18116_v12 = vld [vmem:[#allocation59_spill] sm:$0xff] }
 0x8aa   :  { %9655 = vmatpush1.bf16.msra.mxu0 %v9654_v39  ;;  %v18117_v39 = vld [vmem:[#allocation19_spill] sm:$0xff] }
 0x8ab   :  { %9657 = vmatprep.subr.bf16.mxu0 %v9656_v38  ;;  %v9672_v38 = vpack.c.bf16 %v18117_v39, %v18116_v12 }
 0x8ad   :  { %5702 = vmatmul.mubr.f32.vlgmr.msra.gmra.mrb[4].mxu0 %v14606_v48 }
 0x8ae   :  { %9659 = vmatpush1.bf16.msra.mxu0 %v9658_v27  ;;  %5902 = vmatprep.mubr.f32.mxu0 %v18105_v0  ;;  %v18118_v27 = vld [vmem:[#allocation21_spill] sm:$0xff] }
 0x8af   :  { %9661 = vmatprep.subr.bf16.mxu0 %v9660_v51  ;;  %v18119_v51 = vld [vmem:[#allocation23_spill] sm:$0xff] }
 0x8b0   :  { %v9674_v4 = vpack.c.bf16 %v18119_v51, %v18118_v27  ;;  %v18127_v51 = vld [vmem:[#allocation52_spill] sm:$0xff] }
 0x8b2   :  { %9663 = vmatpush1.bf16.msra.mxu0 %v9662_v33  ;;  %v18120_v33 = vld [vmem:[#allocation110_spill] sm:$0xff] }
 0x8b3   :  { %9665 = vmatprep.subr.bf16.mxu0 %v9664_v35  ;;  %v9676_v49 = vpack.c.bf16 %v18121_v41, %v18120_v33  ;;  %v9678_v35 = vpack.c.bf16 %v18076_v60, %v18075_v50  ;;  %v18129_v33 = vld [vmem:[#allocation69_spill] sm:$0xff] }
 0x8b4   :  { %v18131_v50 = vld [vmem:[#allocation73_spill] sm:$0xff] }
 0x8b6   :  { %9667 = vmatpush1.bf16.msra.mxu0 %v9666_v11  ;;  %v18122_v11 = vld [vmem:[#allocation37_spill] sm:$0xff] }
 0x8b7   :  { %9669 = vmatprep.subr.bf16.mxu0 %v9668_v42  ;;  %v9680_v8 = vpack.c.bf16 %v18122_v11, %v18077_v18  ;;  %v18123_v42 = vld [vmem:[#allocation39_spill] sm:$0xff]  ;;  %v18133_v18 = vld [vmem:[#allocation100_spill] sm:$0xff] }
 0x8b8   :  { %v9682_v31 = vpack.c.bf16 %v18080_v54, %v18123_v42 }
 0x8ba   :  { %9671 = vmatpush1.bf16.msra.mxu0 %v9670_v58  ;;  %v18124_v58 = vld [vmem:[#allocation50_spill] sm:$0xff] }
 0x8bb   :  { %9673 = vmatprep.subr.bf16.mxu0 %v9672_v38  ;;  %v9684_v48 = vpack.c.bf16 %v18125_v1, %v18124_v58  ;;  %v18126_v38 = vld [vmem:[#allocation31_spill] sm:$0xff] }
 0x8bc   :  { %v9686_v41 = vpack.c.bf16 %v18127_v51, %v18126_v38 }
 0x8be   :  { %9675 = vmatpush1.bf16.msra.mxu0 %v9674_v4  ;;  %v18128_v4 = vld [vmem:[#allocation20_spill] sm:$0xff] }
 0x8bf   :  { %9677 = vmatprep.subr.bf16.mxu0 %v9676_v49  ;;  %v9688_v60 = vpack.c.bf16 %v18129_v33, %v18128_v4  ;;  %v18130_v49 = vld [vmem:[#allocation71_spill] sm:$0xff] }
 0x8c0   :  { %v9690_v11 = vpack.c.bf16 %v18131_v50, %v18130_v49 }
 0x8c2   :  { %9679 = vmatpush1.bf16.msra.mxu0 %v9678_v35  ;;  %v18132_v35 = vld [vmem:[#allocation30_spill] sm:$0xff] }
 0x8c3   :  { %9681 = vmatprep.subr.bf16.mxu0 %v9680_v8  ;;  %v9692_v54 = vpack.c.bf16 %v18133_v18, %v18132_v35  ;;  %v9694_v8 = vpack.c.bf16 %v18102_v44, %v18101_v28 }
 0x8c6   :  { %9683 = vmatpush1.bf16.msra.mxu0 %v9682_v31  ;;  %v9696_v31 = vpack.c.bf16 %v14383_v57, %v18103_v46 }
 0x8c7   :  { %9685 = vmatprep.subr.bf16.mxu0 %v9684_v48  ;;  %v9698_v48 = vpack.c.bf16 %v14392_v13, %v14390_v16 }
 0x8ca   :  { %9687 = vmatpush1.bf16.msra.mxu0 %v9686_v41  ;;  %v9700_v41 = vpack.c.bf16 %v14401_v15, %v14394_v5 }
 0x8cb   :  { %9689 = vmatprep.subr.bf16.mxu0 %v9688_v60  ;;  %v9702_v60 = vpack.c.bf16 %v14410_v17, %v14403_v3 }
 0x8ce   :  { %9691 = vmatpush1.bf16.msra.mxu0 %v9690_v11  ;;  %v9704_v11 = vpack.c.bf16 %v14554_v56, %v14552_v29 }
 0x8cf   :  { %9693 = vmatprep.subr.bf16.mxu0 %v9692_v54  ;;  %v9706_v54 = vpack.c.bf16 %v14558_v37, %v14556_v53 }
 0x8d2   :  { %9695 = vmatpush1.bf16.msra.mxu0 %v9694_v8  ;;  %v9708_v8 = vpack.c.bf16 %v14562_v7, %v14560_v26 }
 0x8d3   :  { %9697 = vmatprep.subr.bf16.mxu0 %v9696_v31  ;;  %v9710_v31 = vpack.c.bf16 %v14566_v25, %v14564_v36  ;;  %v18136_v25 = vld [vmem:[#allocation112_spill] sm:$0xff] }
 0x8d6   :  { %9699 = vmatpush1.bf16.msra.mxu0 %v9698_v48  ;;  %v9712_v48 = vpack.c.bf16 %v14571_v34, %v14569_v55 }
 0x8d7   :  { %9701 = vmatprep.subr.bf16.mxu0 %v9700_v41  ;;  %v9714_v41 = vpack.c.bf16 %v14575_v24, %v14573_v10  ;;  %v18138_v24 = vld [vmem:[#allocation117_spill] sm:$0xff] }
 0x8da   :  { %9703 = vmatpush1.bf16.msra.mxu0 %v9702_v60  ;;  %v9716_v60 = vpack.c.bf16 %v14579_v62, %v14577_v23  ;;  %v18140_v62 = vld [vmem:[#allocation124_spill] sm:$0xff] }
 0x8db   :  { %9705 = vmatprep.subr.bf16.mxu0 %v9704_v11  ;;  %v9718_v11 = vpack.c.bf16 %v14585_v22, %v14583_v40  ;;  %v18142_v22 = vld [vmem:[#allocation32_spill] sm:$0xff] }
 0x8de   :  { %9707 = vmatpush1.bf16.msra.mxu0 %v9706_v54  ;;  %v18134_v54 = vld [vmem:[#allocation97_spill] sm:$0xff] }
 0x8df   :  { %9709 = vmatprep.subr.bf16.mxu0 %v9708_v8  ;;  %v18135_v8 = vld [vmem:[#allocation42_spill] sm:$0xff] }
 0x8e2   :  { %9711 = vmatpush1.bf16.msra.mxu0 %v9710_v31  ;;  %v18137_v31 = vand.u32 4294901760, %v18105_v0  ;;  %v18147_v0 = vld [vmem:[#allocation43_spill] sm:$0xff] }
 0x8e3   :  { %9713 = vmatprep.subr.bf16.mxu0 %v9712_v48  ;;  %v18139_v48 = vld [vmem:[#allocation120_spill] sm:$0xff] }
 0x8e6   :  { %9715 = vmatpush1.bf16.msra.mxu0 %v9714_v41  ;;  %v18141_v41 = vld [vmem:[#allocation45_spill] sm:$0xff] }
 0x8e7   :  { %9717 = vmatprep.subr.bf16.mxu0 %v9716_v60  ;;  %v18143_v60 = vld [vmem:[#allocation25_spill] sm:$0xff] }
 0x8ea   :  { %9719 = vmatpush1.bf16.msra.mxu0 %v9718_v11  ;;  %v18144_v11 = vld [vmem:[#allocation108_spill] sm:$0xff] }
 0x8eb   :  { %9721 = vmatprep.subr.bf16.mxu0 %v18134_v54  ;;  %v18145_v54 = vld [vmem:[#allocation35_spill] sm:$0xff] }
 0x8ed   :  { %5905 = vmatmul.mubr.f32.vlgmr.msra.gmra.mrb[4].mxu0 %v18135_v8 }
 0x8ee   :  { %9723 = vmatpush1.bf16.msra.mxu0 %v18136_v25  ;;  %6042 = vmatprep.mubr.f32.mxu0 %v18137_v31  ;;  %v18146_v25 = vld [vmem:[#allocation40_spill] sm:$0xff]  ;;  %v18148_v31 = vld [vmem:[#allocation75_spill] sm:$0xff] }
 0x8ef   :  { %9725 = vmatprep.subr.bf16.mxu0 %v18138_v24  ;;  %v18149_v24 = vld [vmem:[#allocation78_spill] sm:$0xff] }
 0x8f2   :  { %9727 = vmatpush1.bf16.msra.mxu0 %v18139_v48  ;;  %v18150_v48 = vld [vmem:[#allocation101_spill] sm:$0xff] }
 0x8f3   :  { %9729 = vmatprep.subr.bf16.mxu0 %v18140_v62  ;;  %v18151_v62 = vld [vmem:[#allocation95_spill] sm:$0xff] }
 0x8f6   :  { %9731 = vmatpush1.bf16.msra.mxu0 %v18141_v41  ;;  %v18152_v41 = vld [vmem:[#allocation54_spill] sm:$0xff] }
 0x8f7   :  { %9733 = vmatprep.subr.bf16.mxu0 %v18142_v22  ;;  %v18153_v22 = vld [vmem:[#allocation114_spill] sm:$0xff] }
 0x8fa   :  { %9735 = vmatpush1.bf16.msra.mxu0 %v18143_v60  ;;  %v18154_v60 = vld [vmem:[#allocation115_spill] sm:$0xff] }
 0x8fb   :  { %9737 = vmatprep.subr.bf16.mxu0 %v18144_v11  ;;  %v18155_v11 = vld [vmem:[#allocation88_spill] sm:$0xff] }
 0x8fe   :  { %9739 = vmatpush1.bf16.msra.mxu0 %v18145_v54  ;;  %v18156_v54 = vld [vmem:[#allocation16_spill] sm:$0xff] }
 0x8ff   :  { %9741 = vmatprep.subr.bf16.mxu0 %v18146_v25  ;;  %v18157_v25 = vld [vmem:[#allocation18_spill] sm:$0xff] }
 0x902   :  { %9743 = vmatpush1.bf16.msra.mxu0 %v18147_v0  ;;  %v18158_v0 = vld [vmem:[#allocation57_spill] sm:$0xff] }
 0x903   :  { %9745 = vmatprep.subr.bf16.mxu0 %v18148_v31  ;;  %v18159_v31 = vld [vmem:[#allocation24_spill] sm:$0xff] }
 0x906   :  { %9747 = vmatpush1.bf16.msra.mxu0 %v18149_v24  ;;  %v18160_v24 = vld [vmem:[#allocation83_spill] sm:$0xff] }
 0x907   :  { %9749 = vmatprep.subr.bf16.mxu0 %v18150_v48  ;;  %v18161_v48 = vld [vmem:[#allocation84_spill] sm:$0xff] }
 0x90a   :  { %9751 = vmatpush1.bf16.msra.mxu0 %v18151_v62  ;;  %v18162_v62 = vld [vmem:[#allocation67_spill] sm:$0xff] }
 0x90b   :  { %9753 = vmatprep.subr.bf16.mxu0 %v18152_v41  ;;  %v18163_v41 = vld [vmem:[#allocation85_spill] sm:$0xff] }
 0x90e   :  { %9755 = vmatpush1.bf16.msra.mxu0 %v18153_v22  ;;  %v18164_v22 = vld [vmem:[#allocation77_spill] sm:$0xff] }
 0x90f   :  { %9757 = vmatprep.subr.bf16.mxu0 %v18154_v60  ;;  %v18165_v60 = vld [vmem:[#allocation86_spill] sm:$0xff] }
 0x912   :  { %9759 = vmatpush1.bf16.msra.mxu0 %v18155_v11  ;;  %v18166_v11 = vld [vmem:[#allocation53_spill] sm:$0xff] }
 0x913   :  { %9761 = vmatprep.subr.bf16.mxu0 %v18156_v54 }
 0x916   :  { %9763 = vmatpush1.bf16.msra.mxu0 %v18157_v25  ;;  %v18167_v25 = vand.u32 4294901760, %v18031_v59  ;;  %v18175_v59 = vand.u32 4294901760, %v18106_v2  ;;  %v18180_v2 = vand.u32 4294901760, %v18110_v52  ;;  %v18182_v52 = vand.u32 4294901760, %v18112_v30 }
 0x917   :  { %9765 = vmatprep.subr.bf16.mxu0 %v18158_v0  ;;  %v18168_v0 = vand.u32 4294901760, %v18032_v47 }
 0x919   :  { %v9784_v54 = vpack.c.bf16 %v18168_v0, %v18167_v25  ;;  %v18176_v25 = vand.u32 4294901760, %v18107_v63  ;;  %v18177_v0 = vand.u32 4294901760, %v18108_v32  ;;  %v18181_v63 = vand.u32 4294901760, %v18111_v9 }
 0x91a   :  { %9767 = vmatpush1.bf16.msra.mxu0 %v18159_v31  ;;  %v18169_v31 = vld [vmem:[#allocation81_spill] sm:$0xff]  ;;  %v18183_v9 = vand.u32 4294901760, %v18113_v14 }
 0x91b   :  { %9769 = vmatprep.subr.bf16.mxu0 %v18160_v24  ;;  %v18170_v24 = vand.u32 4294901760, %v18044_v19  ;;  %v9790_v47 = vpack.c.bf16 %v18176_v25, %v18175_v59  ;;  %v18178_v19 = vand.u32 4294901760, %v18109_v6  ;;  %v9794_v32 = vpack.c.bf16 %v18181_v63, %v18180_v2  ;;  %v6459_v2 = vld [vmem:[%s15735_s11 + $0x18] sm:$0xff] }
 0x91e   :  { %9771 = vmatpush1.bf16.msra.mxu0 %v18161_v48  ;;  %v18171_v48 = vand.u32 4294901760, %v18045_v21  ;;  %v9792_v21 = vpack.c.bf16 %v18178_v19, %v18177_v0  ;;  %v6458_v19 = vld [vmem:[%s15735_s11 + $0x10] sm:$0xff] }
 0x91f   :  { %9773 = vmatprep.subr.bf16.mxu0 %v18162_v62 }
 0x920   :  { %v9786_v62 = vpack.c.bf16 %v18171_v48, %v18170_v24  ;;  %v6472_v24 = vld [vmem:[%s15735_s11 + $0x80] sm:$0xff] }
 0x921   :  { %v6544_v6 = vand.u32 4294901760, %v6472_v24 }
 0x922   :  { %9775 = vmatpush1.bf16.msra.mxu0 %v18163_v41  ;;  %v18172_v41 = vand.u32 4294901760, %v18046_v20  ;;  %v6456_v20 = vld [vmem:[%s15735_s11] sm:$0xff] }
 0x923   :  { %9777 = vmatprep.subr.bf16.mxu0 %v18164_v22  ;;  %v18173_v22 = vand.u32 4294901760, %v18047_v43  ;;  %v18179_v43 = vld [vmem:[#allocation38_spill] sm:$0xff]  ;;  %v6496_v48 = vand.u32 4294901760, %v6456_v20  ;;  %v15021_v30 = vsub.f32 %v6472_v24, %v6544_v6 }
 0x925   :  { %18185 = vst [vmem:[#allocation55_spill] sm:$0xff] %v15021_v30 }
 0x926   :  { %9779 = vmatpush1.bf16.msra.mxu0 %v18165_v60  ;;  %v9788_v60 = vpack.c.bf16 %v18173_v22, %v18172_v41  ;;  %v6473_v22 = vld [vmem:[%s15735_s11 + $0x88] sm:$0xff]  ;;  %v6474_v41 = vld [vmem:[%s15735_s11 + $0x90] sm:$0xff] }
 0x927   :  { %9781 = vmatprep.subr.bf16.mxu0 %v18166_v11  ;;  %v18174_v11 = vand.u32 4294901760, %v18135_v8  ;;  %v6457_v8 = vld [vmem:[%s15735_s11 + $0x8] sm:$0xff]  ;;  %v6550_v25 = vand.u32 4294901760, %v6474_v41 }
 0x928   :  { %v6499_v59 = vand.u32 4294901760, %v6457_v8 }
 0x92a   :  { %9783 = vmatpush1.bf16.msra.mxu0 %v18169_v31  ;;  %v6460_v31 = vld [vmem:[%s15735_s11 + $0x20] sm:$0xff]  ;;  %v15036_v40 = vpack.c.bf16 %v6499_v59, %v6496_v48  ;;  %v15038_v24 = vsub.f32 %v6457_v8, %v6499_v59 }
 0x92b   :  { %9785 = vmatprep.subr.bf16.mxu0 %v9784_v54  ;;  %v6547_v54 = vand.u32 4294901760, %v6473_v22 }
 0x92c   :  { %18188 = vst [vmem:[#allocation74_spill] sm:$0xff] %v15036_v40  ;;  %18189 = vst [vmem:[#allocation104_spill] sm:$0xff] %v15038_v24 }
 0x92d   :  { %6046 = vmatmul.mubr.f32.vlgmr.msra.gmra.mrb[4].mxu0 %v18174_v11  ;;  %v9796_v11 = vpack.c.bf16 %v18183_v9, %v18182_v52  ;;  %v15019_v63 = vpack.c.bf16 %v6547_v54, %v6544_v6  ;;  %v15023_v14 = vsub.f32 %v6473_v22, %v6547_v54  ;;  %v15025_v52 = vsub.f32 %v6456_v20, %v6496_v48  ;;  %v6477_v9 = vld [vmem:[%s15735_s11 + $0xa8] sm:$0xff]  ;;  %v6478_v6 = vld [vmem:[%s15735_s11 + $0xb0] sm:$0xff] }
 0x92e   :  { %9787 = vmatpush1.bf16.msra.mxu0 %v9786_v62  ;;  %6309 = vmatprep.mubr.f32.mxu0 %v18179_v43  ;;  %v6475_v62 = vld [vmem:[%s15735_s11 + $0x98] sm:$0xff]  ;;  %v6461_v43 = vld [vmem:[%s15735_s11 + $0x28] sm:$0xff]  ;;  %v15042_v20 = vsub.f32 %v6474_v41, %v6550_v25  ;;  %v6559_v8 = vand.u32 4294901760, %v6477_v9  ;;  %v6508_v48 = vand.u32 4294901760, %v6460_v31 }
 0x92f   :  { %9789 = vmatprep.subr.bf16.mxu0 %v9788_v60  ;;  %v6553_v0 = vand.u32 4294901760, %v6475_v62  ;;  %v6476_v60 = vld [vmem:[%s15735_s11 + $0xa0] sm:$0xff]  ;;  %18184 = vst [vmem:[#allocation113_spill] sm:$0xff] %v15019_v63  ;;  %18186 = vst [vmem:[#allocation22_spill] sm:$0xff] %v15023_v14  ;;  %9913 = vmatprep.subr.bf16.mxu1 %v15019_v63  ;;  %v6505_v14 = vand.u32 4294901760, %v6459_v2  ;;  %v6511_v59 = vand.u32 4294901760, %v6461_v43 }
 0x930   :  { %18187 = vst [vmem:[#allocation26_spill] sm:$0xff] %v15025_v52  ;;  %18191 = vst [vmem:[#allocation87_spill] sm:$0xff] %v15042_v20  ;;  %v6502_v52 = vand.u32 4294901760, %v6458_v19  ;;  %v6556_v30 = vand.u32 4294901760, %v6476_v60  ;;  %9915 = vmatpush3.bf16.msra.mxu1 %v15036_v40  ;;  %v6479_v41 = vld [vmem:[%s15735_s11 + $0xb8] sm:$0xff]  ;;  %v18194_v20 = vand.u32 4294901760, %v18115_v61  ;;  %v15077_v10 = vsub.f32 %v6460_v31, %v6508_v48 }
 0x931   :  { %v15040_v22 = vpack.c.bf16 %v6553_v0, %v6550_v25  ;;  %v15048_v54 = vsub.f32 %v6475_v62, %v6553_v0  ;;  %v6562_v25 = vand.u32 4294901760, %v6478_v6  ;;  %v6463_v63 = vld [vmem:[%s15735_s11 + $0x38] sm:$0xff] }
 0x932   :  { %9791 = vmatpush1.bf16.msra.mxu0 %v9790_v47  ;;  %v6462_v47 = vld [vmem:[%s15735_s11 + $0x30] sm:$0xff]  ;;  %v15058_v62 = vpack.c.bf16 %v6505_v14, %v6502_v52  ;;  %v15060_v0 = vsub.f32 %v6458_v19, %v6502_v52  ;;  %v15064_v40 = vsub.f32 %v6476_v60, %v6556_v30  ;;  %v15073_v23 = vpack.c.bf16 %v6559_v8, %v6556_v30 }
 0x933   :  { %18190 = vst [vmem:[#allocation107_spill] sm:$0xff] %v15040_v22  ;;  %18192 = vst [vmem:[#allocation79_spill] sm:$0xff] %v15048_v54  ;;  %9793 = vmatprep.subr.bf16.mxu0 %v9792_v21  ;;  %9917 = vmatprep.subr.bf16.mxu1 %v15040_v22  ;;  %v15062_v21 = vsub.f32 %v6459_v2, %v6505_v14  ;;  %v18193_v54 = vand.u32 4294901760, %v18114_v45  ;;  %v15075_v22 = vsub.f32 %v6477_v9, %v6559_v8 }
 0x934   :  { %v15079_v19 = vsub.f32 %v6461_v43, %v6511_v59  ;;  %v6565_v2 = vand.u32 4294901760, %v6479_v41  ;;  %v15081_v60 = vsub.f32 %v6478_v6, %v6562_v25  ;;  %v6514_v14 = vand.u32 4294901760, %v6462_v47  ;;  %9919 = vmatpush3.bf16.msra.mxu1 %v15058_v62 }
 0x935   :  { %v9798_v24 = vpack.c.bf16 %v18194_v20, %v18193_v54  ;;  %v18195_v52 = vand.u32 4294901760, %v18116_v12  ;;  %v18196_v45 = vand.u32 4294901760, %v18117_v39  ;;  %v15088_v30 = vpack.c.bf16 %v6511_v59, %v6508_v48  ;;  %9921 = vmatprep.subr.bf16.mxu1 %v15073_v23  ;;  %v18201_v39 = vld [vmem:[#allocation23_spill] sm:$0xff]  ;;  %v18203_v54 = vld [vmem:[#allocation110_spill] sm:$0xff] }
 0x936   :  { %9795 = vmatpush1.bf16.msra.mxu0 %v9794_v32  ;;  %v6517_v9 = vand.u32 4294901760, %v6463_v63  ;;  %v15091_v31 = vpack.c.bf16 %v6565_v2, %v6562_v25  ;;  %v15093_v43 = vsub.f32 %v6479_v41, %v6565_v2  ;;  %v15095_v32 = vsub.f32 %v6462_v47, %v6514_v14  ;;  %v18205_v48 = vld [vmem:[#allocation111_spill] sm:$0xff]  ;;  %v18210_v25 = vld [vmem:[#allocation33_spill] sm:$0xff]  ;;  %v18212_v2 = vld [vmem:[#allocation34_spill] sm:$0xff] }
 0x937   :  { %9797 = vmatprep.subr.bf16.mxu0 %v9796_v11  ;;  %v9800_v61 = vpack.c.bf16 %v18196_v45, %v18195_v52  ;;  %v18200_v12 = vand.u32 4294901760, %v18118_v27  ;;  %v18202_v11 = vand.u32 4294901760, %v18201_v39  ;;  %v18204_v8 = vand.u32 4294901760, %v18203_v54 }
 0x938   :  { %18197 = vst [vmem:[#allocation60_spill] sm:$0xff] %v15091_v31  ;;  %18198 = vst [vmem:[#allocation62_spill] sm:$0xff] %v15095_v32  ;;  %v15097_v20 = vsub.f32 %v6463_v63, %v6517_v9  ;;  %v18206_v59 = vand.u32 4294901760, %v18205_v48  ;;  %9923 = vmatpush3.bf16.msra.mxu1 %v15088_v30  ;;  %v15108_v41 = vpack.c.bf16 %v6517_v9, %v6514_v14  ;;  %v18208_v63 = vld [vmem:[#allocation28_spill] sm:$0xff]  ;;  %v18211_v27 = vand.u32 4294901760, %v18210_v25  ;;  %v18217_v9 = vld [vmem:[#allocation41_spill] sm:$0xff] }
 0x939   :  { %v9802_v6 = vpack.c.bf16 %v18202_v11, %v18200_v12  ;;  %9925 = vmatprep.subr.bf16.mxu1 %v15091_v31  ;;  %v18213_v45 = vand.u32 4294901760, %v18212_v2  ;;  %v18216_v14 = vand.u32 4294901760, %v18123_v42  ;;  %v18218_v11 = vand.u32 4294901760, %v18217_v9 }
 0x93a   :  { %18199 = vst [vmem:[#allocation65_spill] sm:$0xff] %v15097_v20  ;;  %9799 = vmatpush1.bf16.msra.mxu0 %v9798_v24  ;;  %v9804_v52 = vpack.c.bf16 %v18206_v59, %v18204_v8  ;;  %18207 = vst [vmem:[#allocation66_spill] sm:$0xff] %v15108_v41  ;;  %v18209_v24 = vand.u32 4294901760, %v18208_v63  ;;  %v18220_v8 = vand.u32 4294901760, %v18125_v1  ;;  %v18221_v59 = vand.u32 4294901760, %v18126_v38 }
 0x93b   :  { %9801 = vmatprep.subr.bf16.mxu0 %v9800_v61  ;;  %v18214_v61 = vld [vmem:[#allocation37_spill] sm:$0xff]  ;;  %v9810_v54 = vpack.c.bf16 %v18218_v11, %v18216_v14  ;;  %v18224_v42 = vand.u32 4294901760, %v18129_v33  ;;  %v18227_v1 = vand.u32 4294901760, %v18132_v35  ;;  %v18228_v38 = vand.u32 4294901760, %v18133_v18 }
 0x93c   :  { %v9806_v47 = vpack.c.bf16 %v18211_v27, %v18209_v24  ;;  %v18215_v12 = vand.u32 4294901760, %v18214_v61  ;;  %9927 = vmatpush3.bf16.msra.mxu1 %v15108_v41  ;;  %v18223_v24 = vand.u32 4294901760, %v18128_v4  ;;  %v18225_v27 = vand.u32 4294901760, %v18130_v49 }
 0x93d   :  { %v9820_v2 = vpack.c.bf16 %v18228_v38, %v18227_v1  ;;  %v18230_v4 = vand.u32 4294901760, %v18102_v44  ;;  %v18231_v33 = vand.u32 4294901760, %v18103_v46  ;;  %v18232_v49 = vand.u32 4294901760, %v14383_v57  ;;  %v18263_v38 = vld [vmem:[#allocation36_spill] sm:$0xff] }
 0x93e   :  { %9803 = vmatpush1.bf16.msra.mxu0 %v9802_v6  ;;  %v9808_v39 = vpack.c.bf16 %v18215_v12, %v18213_v45  ;;  %v18219_v6 = vand.u32 4294901760, %v18124_v58  ;;  %v9816_v25 = vpack.c.bf16 %v18224_v42, %v18223_v24  ;;  %v18226_v58 = vand.u32 4294901760, %v18131_v50  ;;  %v18256_v42 = vld [vmem:[#allocation61_spill] sm:$0xff] }
 0x93f   :  { %9805 = vmatprep.subr.bf16.mxu0 %v9804_v52  ;;  %v18222_v52 = vand.u32 4294901760, %v18127_v51  ;;  %v18229_v51 = vand.u32 4294901760, %v18101_v28  ;;  %v9824_v61 = vpack.c.bf16 %v18232_v49, %v18231_v33  ;;  %v18233_v50 = vand.u32 4294901760, %v14390_v16  ;;  %v18268_v33 = vld [vmem:[#allocation124_spill] sm:$0xff]  ;;  %v18269_v49 = vld [vmem:[#allocation45_spill] sm:$0xff] }
 0x940   :  { %v9812_v48 = vpack.c.bf16 %v18220_v8, %v18219_v6  ;;  %v18234_v35 = vand.u32 4294901760, %v14392_v13  ;;  %v18235_v18 = vand.u32 4294901760, %v14394_v5  ;;  %v18236_v28 = vand.u32 4294901760, %v14401_v15  ;;  %v18246_v6 = vld [vmem:[#allocation56_spill] sm:$0xff] }
 0x941   :  { %v9814_v63 = vpack.c.bf16 %v18222_v52, %v18221_v59  ;;  %v9822_v45 = vpack.c.bf16 %v18230_v4, %v18229_v51  ;;  %v18237_v44 = vand.u32 4294901760, %v14403_v3  ;;  %v18238_v46 = vand.u32 4294901760, %v14410_v17  ;;  %v18252_v52 = vld [vmem:[#allocation89_spill] sm:$0xff]  ;;  %v18265_v51 = vld [vmem:[#allocation38_spill] sm:$0xff] }
 0x942   :  { %9807 = vmatpush1.bf16.msra.mxu0 %v9806_v47  ;;  %v9818_v47 = vpack.c.bf16 %v18226_v58, %v18225_v27  ;;  %v9826_v12 = vpack.c.bf16 %v18234_v35, %v18233_v50  ;;  %v18239_v57 = vand.u32 4294901760, %v14552_v29  ;;  %v18240_v16 = vand.u32 4294901760, %v14554_v56  ;;  %v18258_v27 = vld [vmem:[#allocation64_spill] sm:$0xff]  ;;  %v18266_v4 = vld [vmem:[#allocation117_spill] sm:$0xff] }
 0x943   :  { %9809 = vmatprep.subr.bf16.mxu0 %v9808_v39  ;;  %v9828_v39 = vpack.c.bf16 %v18236_v28, %v18235_v18  ;;  %v9830_v14 = vpack.c.bf16 %v18238_v46, %v18237_v44  ;;  %v18241_v13 = vand.u32 4294901760, %v14556_v53  ;;  %v18242_v5 = vand.u32 4294901760, %v14558_v37  ;;  %v18250_v37 = vld [vmem:[#allocation58_spill] sm:$0xff]  ;;  %v18271_v50 = vld [vmem:[#allocation25_spill] sm:$0xff]  ;;  %v18272_v35 = vld [vmem:[#allocation108_spill] sm:$0xff] }
 0x944   :  { %v9832_v9 = vpack.c.bf16 %v18240_v16, %v18239_v57  ;;  %v18243_v15 = vand.u32 4294901760, %v14560_v26  ;;  %v18244_v3 = vand.u32 4294901760, %v14562_v7  ;;  %v18245_v17 = vand.u32 4294901760, %v14564_v36  ;;  %v18254_v7 = vld [vmem:[#allocation63_spill] sm:$0xff]  ;;  %v18274_v18 = vld [vmem:[#allocation40_spill] sm:$0xff]  ;;  %v18277_v44 = vld [vmem:[#allocation78_spill] sm:$0xff] }
 0x945   :  { %v9834_v11 = vpack.c.bf16 %v18242_v5, %v18241_v13  ;;  %v18247_v29 = vand.u32 4294901760, %v18246_v6  ;;  %v18248_v56 = vand.u32 4294901760, %v14569_v55  ;;  %v18249_v53 = vand.u32 4294901760, %v14571_v34  ;;  %v18262_v34 = vld [vmem:[#allocation97_spill] sm:$0xff]  ;;  %v18275_v28 = vld [vmem:[#allocation43_spill] sm:$0xff]  ;;  %v18280_v57 = vld [vmem:[#allocation54_spill] sm:$0xff] }
 0x946   :  { %9811 = vmatpush1.bf16.msra.mxu0 %v9810_v54  ;;  %v9836_v54 = vpack.c.bf16 %v18244_v3, %v18243_v15  ;;  %v18251_v59 = vand.u32 4294901760, %v18250_v37  ;;  %v18253_v26 = vand.u32 4294901760, %v18252_v52  ;;  %v18255_v24 = vand.u32 4294901760, %v18254_v7  ;;  %v18278_v46 = vld [vmem:[#allocation101_spill] sm:$0xff]  ;;  %v18281_v16 = vld [vmem:[#allocation114_spill] sm:$0xff]  ;;  %v18283_v13 = vld [vmem:[#allocation88_spill] sm:$0xff] }
 0x947   :  { %9813 = vmatprep.subr.bf16.mxu0 %v9812_v48  ;;  %v9838_v8 = vpack.c.bf16 %v18247_v29, %v18245_v17  ;;  %v9840_v48 = vpack.c.bf16 %v18249_v53, %v18248_v56  ;;  %v18257_v36 = vand.u32 4294901760, %v18256_v42  ;;  %v18259_v58 = vand.u32 4294901760, %v18258_v27  ;;  %v18284_v5 = vld [vmem:[#allocation16_spill] sm:$0xff]  ;;  %v18286_v15 = vld [vmem:[#allocation57_spill] sm:$0xff]  ;;  %v18290_v6 = vld [vmem:[#allocation67_spill] sm:$0xff] }
 0x948   :  { %v18287_v3 = vld [vmem:[#allocation24_spill] sm:$0xff]  ;;  %v18291_v29 = vld [vmem:[#allocation85_spill] sm:$0xff]  ;;  %v18293_v56 = vld [vmem:[#allocation86_spill] sm:$0xff] }
 0x949   :  { %v18289_v17 = vld [vmem:[#allocation84_spill] sm:$0xff]  ;;  %v18294_v53 = vld [vmem:[#allocation53_spill] sm:$0xff]  ;;  %v6480_v37 = vld [vmem:[%s15735_s11 + $0xc0] sm:$0xff] }
 0x94a   :  { %9815 = vmatpush1.bf16.msra.mxu0 %v9814_v63  ;;  %v9842_v63 = vpack.c.bf16 %v18253_v26, %v18251_v59  ;;  %v6481_v59 = vld [vmem:[%s15735_s11 + $0xc8] sm:$0xff]  ;;  %v6568_v52 = vand.u32 4294901760, %v6480_v37  ;;  %v6482_v27 = vld [vmem:[%s15735_s11 + $0xd0] sm:$0xff] }
 0x94b   :  { %9817 = vmatprep.subr.bf16.mxu0 %v9816_v25  ;;  %v9844_v25 = vpack.c.bf16 %v18257_v36, %v18255_v24  ;;  %v6571_v26 = vand.u32 4294901760, %v6481_v59  ;;  %v6465_v7 = vld [vmem:[%s15735_s11 + $0x48] sm:$0xff] }
 0x94c   :  { %v6523_v42 = vand.u32 4294901760, %v6465_v7 }
 0x94d   :  { %v15243_v36 = vpack.c.bf16 %v6571_v26, %v6568_v52 }
 0x94e   :  { %9819 = vmatpush1.bf16.msra.mxu0 %v9818_v47  ;;  %v18260_v47 = vld [vmem:[#allocation29_spill] sm:$0xff] }
 0x94f   :  { %9821 = vmatprep.subr.bf16.mxu0 %v9820_v2  ;;  %v18261_v55 = vand.u32 4294901760, %v18260_v47  ;;  %v18264_v2 = vld [vmem:[#allocation112_spill] sm:$0xff]  ;;  %18296 = vst [vmem:[#allocation27_spill] sm:$0xff] %v15243_v36  ;;  %9929 = vmatprep.subr.bf16.mxu1 %v15243_v36  ;;  %v6574_v47 = vand.u32 4294901760, %v6482_v27 }
 0x951   :  { %v9846_v1 = vpack.c.bf16 %v18261_v55, %v18259_v58  ;;  %v6483_v58 = vld [vmem:[%s15735_s11 + $0xd8] sm:$0xff] }
 0x952   :  { %9823 = vmatpush1.bf16.msra.mxu0 %v9822_v45  ;;  %v18267_v45 = vld [vmem:[#allocation120_spill] sm:$0xff]  ;;  %v6577_v55 = vand.u32 4294901760, %v6483_v58 }
 0x953   :  { %9825 = vmatprep.subr.bf16.mxu0 %v9824_v61  ;;  %v18270_v61 = vld [vmem:[#allocation32_spill] sm:$0xff] }
 0x956   :  { %9827 = vmatpush1.bf16.msra.mxu0 %v9826_v12  ;;  %v18273_v12 = vld [vmem:[#allocation35_spill] sm:$0xff] }
 0x957   :  { %9829 = vmatprep.subr.bf16.mxu0 %v9828_v39  ;;  %v18276_v39 = vld [vmem:[#allocation75_spill] sm:$0xff] }
 0x95a   :  { %9831 = vmatpush1.bf16.msra.mxu0 %v9830_v14  ;;  %v18279_v14 = vld [vmem:[#allocation95_spill] sm:$0xff] }
 0x95b   :  { %9833 = vmatprep.subr.bf16.mxu0 %v9832_v9  ;;  %v18282_v9 = vld [vmem:[#allocation115_spill] sm:$0xff] }
 0x95e   :  { %9835 = vmatpush1.bf16.msra.mxu0 %v9834_v11  ;;  %v18285_v11 = vld [vmem:[#allocation18_spill] sm:$0xff] }
 0x95f   :  { %9837 = vmatprep.subr.bf16.mxu0 %v9836_v54  ;;  %v18288_v54 = vld [vmem:[#allocation83_spill] sm:$0xff] }
 0x962   :  { %9839 = vmatpush1.bf16.msra.mxu0 %v9838_v8  ;;  %v18292_v8 = vld [vmem:[#allocation77_spill] sm:$0xff] }
 0x963   :  { %9841 = vmatprep.subr.bf16.mxu0 %v9840_v48  ;;  %v18295_v48 = vld [vmem:[#allocation81_spill] sm:$0xff] }
 0x966   :  { %9843 = vmatpush1.bf16.msra.mxu0 %v9842_v63  ;;  %v6464_v63 = vld [vmem:[%s15735_s11 + $0x40] sm:$0xff] }
 0x967   :  { %9845 = vmatprep.subr.bf16.mxu0 %v9844_v25  ;;  %v6520_v24 = vand.u32 4294901760, %v6464_v63 }
 0x969   :  { %v15245_v25 = vpack.c.bf16 %v6523_v42, %v6520_v24 }
 0x96a   :  { %9847 = vmatpush1.bf16.msra.mxu0 %v9846_v1  ;;  %v6466_v1 = vld [vmem:[%s15735_s11 + $0x50] sm:$0xff] }
 0x96b   :  { %9849 = vmatprep.subr.bf16.mxu0 %v18262_v34  ;;  %18297 = vst [vmem:[#allocation68_spill] sm:$0xff] %v15245_v25  ;;  %v6467_v34 = vld [vmem:[%s15735_s11 + $0x58] sm:$0xff]  ;;  %9931 = vmatpush3.bf16.msra.mxu1 %v15245_v25  ;;  %v15319_v25 = vsub.f32 %v6483_v58, %v6577_v55 }
 0x96d   :  { %6311 = vmatmul.mubr.f32.vlgmr.msra.gmra.mrb[4].mxu0 %v18263_v38  ;;  %18312 = vst [vmem:[#allocation103_spill] sm:$0xff] %v15319_v25 }
 0x96e   :  { %9851 = vmatpush1.bf16.msra.mxu0 %v18264_v2  ;;  %6446 = vmatprep.mubr.f32.mxu0 %v18265_v51  ;;  %v6529_v2 = vand.u32 4294901760, %v6467_v34  ;;  %v15261_v51 = vpack.c.bf16 %v6577_v55, %v6574_v47 }
 0x96f   :  { %9853 = vmatprep.subr.bf16.mxu0 %v18266_v4 }
 0x970   :  { %18298 = vst [vmem:[#allocation98_spill] sm:$0xff] %v15261_v51  ;;  %9933 = vmatprep.subr.bf16.mxu1 %v15261_v51  ;;  %v15315_v51 = vsub.f32 %v6465_v7, %v6523_v42 }
 0x972   :  { %9855 = vmatpush1.bf16.msra.mxu0 %v18267_v45  ;;  %v6484_v45 = vld [vmem:[%s15735_s11 + $0xe0] sm:$0xff]  ;;  %18310 = vst [vmem:[#allocation15_spill] sm:$0xff] %v15315_v51 }
 0x973   :  { %9857 = vmatprep.subr.bf16.mxu0 %v18268_v33  ;;  %v6485_v33 = vld [vmem:[%s15735_s11 + $0xe8] sm:$0xff] }
 0x976   :  { %9859 = vmatpush1.bf16.msra.mxu0 %v18269_v49  ;;  %v6580_v49 = vand.u32 4294901760, %v6484_v45 }
 0x977   :  { %9861 = vmatprep.subr.bf16.mxu0 %v18270_v61  ;;  %v6583_v61 = vand.u32 4294901760, %v6485_v33 }
 0x97a   :  { %9863 = vmatpush1.bf16.msra.mxu0 %v18271_v50  ;;  %v6468_v50 = vld [vmem:[%s15735_s11 + $0x60] sm:$0xff] }
 0x97b   :  { %9865 = vmatprep.subr.bf16.mxu0 %v18272_v35  ;;  %v6469_v35 = vld [vmem:[%s15735_s11 + $0x68] sm:$0xff] }
 0x97e   :  { %9867 = vmatpush1.bf16.msra.mxu0 %v18273_v12  ;;  %v6532_v12 = vand.u32 4294901760, %v6468_v50 }
 0x97f   :  { %9869 = vmatprep.subr.bf16.mxu0 %v18274_v18  ;;  %v6535_v18 = vand.u32 4294901760, %v6469_v35 }
 0x982   :  { %9871 = vmatpush1.bf16.msra.mxu0 %v18275_v28  ;;  %v15279_v28 = vpack.c.bf16 %v6583_v61, %v6580_v49 }
 0x983   :  { %9873 = vmatprep.subr.bf16.mxu0 %v18276_v39  ;;  %v15281_v39 = vpack.c.bf16 %v6535_v18, %v6532_v12 }
 0x984   :  { %18300 = vst [vmem:[#allocation91_spill] sm:$0xff] %v15279_v28 }
 0x985   :  { %18301 = vst [vmem:[#allocation72_spill] sm:$0xff] %v15281_v39 }
 0x986   :  { %9875 = vmatpush1.bf16.msra.mxu0 %v18277_v44  ;;  %v6486_v44 = vld [vmem:[%s15735_s11 + $0xf0] sm:$0xff] }
 0x987   :  { %9877 = vmatprep.subr.bf16.mxu0 %v18278_v46  ;;  %v6487_v46 = vld [vmem:[%s15735_s11 + $0xf8] sm:$0xff] }
 0x98a   :  { %9879 = vmatpush1.bf16.msra.mxu0 %v18279_v14  ;;  %v6586_v14 = vand.u32 4294901760, %v6486_v44 }
 0x98b   :  { %9881 = vmatprep.subr.bf16.mxu0 %v18280_v57  ;;  %v6589_v57 = vand.u32 4294901760, %v6487_v46 }
 0x98e   :  { %9883 = vmatpush1.bf16.msra.mxu0 %v18281_v16  ;;  %v6470_v16 = vld [vmem:[%s15735_s11 + $0x70] sm:$0xff] }
 0x98f   :  { %9885 = vmatprep.subr.bf16.mxu0 %v18282_v9  ;;  %v6471_v9 = vld [vmem:[%s15735_s11 + $0x78] sm:$0xff] }
 0x992   :  { %9887 = vmatpush1.bf16.msra.mxu0 %v18283_v13  ;;  %v18302_v13 = vld [vmem:[#allocation55_spill] sm:$0xff] }
 0x993   :  { %9889 = vmatprep.subr.bf16.mxu0 %v18284_v5  ;;  %v16651_v5 = vand.u32 4294901760, %v18302_v13 }
 0x996   :  { %9891 = vmatpush1.bf16.msra.mxu0 %v18285_v11  ;;  %v18303_v11 = vld [vmem:[#allocation22_spill] sm:$0xff] }
 0x997   :  { %9893 = vmatprep.subr.bf16.mxu0 %v18286_v15  ;;  %v16652_v15 = vand.u32 4294901760, %v18303_v11 }
 0x99a   :  { %9895 = vmatpush1.bf16.msra.mxu0 %v18287_v3  ;;  %v6538_v3 = vand.u32 4294901760, %v6470_v16 }
 0x99b   :  { %9897 = vmatprep.subr.bf16.mxu0 %v18288_v54  ;;  %v6541_v54 = vand.u32 4294901760, %v6471_v9 }
 0x99d   :  { %v15338_v7 = vpack.c.bf16 %v6541_v54, %v6538_v3  ;;  %v15342_v42 = vsub.f32 %v6471_v9, %v6541_v54  ;;  %v16653_v9 = vand.u32 4294901760, %v15077_v10 }
 0x99e   :  { %9899 = vmatpush1.bf16.msra.mxu0 %v18289_v17  ;;  %v18304_v17 = vld [vmem:[#allocation26_spill] sm:$0xff] }
 0x99f   :  { %9901 = vmatprep.subr.bf16.mxu0 %v18290_v6  ;;  %v15317_v6 = vsub.f32 %v6482_v27, %v6574_v47  ;;  %18321 = vst [vmem:[#allocation121_spill] sm:$0xff] %v15338_v7  ;;  %18323 = vst [vmem:[#allocation123_spill] sm:$0xff] %v15342_v42  ;;  %v18324_v47 = vand.u32 4294901760, %v18304_v17  ;;  %v16689_v41 = vand.u32 4294901760, %v15342_v42 }
 0x9a1   :  { %18311 = vst [vmem:[#allocation99_spill] sm:$0xff] %v15317_v6  ;;  %v6611_v55 = vsub.f32 %v18304_v17, %v18324_v47 }
 0x9a2   :  { %9903 = vmatpush1.bf16.msra.mxu0 %v18291_v29  ;;  %v15300_v29 = vpack.c.bf16 %v6589_v57, %v6586_v14 }
 0x9a3   :  { %9905 = vmatprep.subr.bf16.mxu0 %v18292_v8  ;;  %v6723_v8 = vsub.f32 %v18302_v13, %v16651_v5  ;;  %v15323_v5 = vsub.f32 %v6467_v34, %v6529_v2  ;;  %v18325_v34 = vld [vmem:[#allocation87_spill] sm:$0xff] }
 0x9a4   :  { %18305 = vst [vmem:[#allocation51_spill] sm:$0xff] %v15300_v29 }
 0x9a5   :  { %18314 = vst [vmem:[#allocation116_spill] sm:$0xff] %v15323_v5  ;;  %v6724_v27 = vand.u32 4294901760, %v6723_v8 }
 0x9a6   :  { %9907 = vmatpush1.bf16.msra.mxu0 %v18293_v56  ;;  %v6730_v56 = vsub.f32 %v18303_v11, %v16652_v15  ;;  %v15326_v15 = vsub.f32 %v6484_v45, %v6580_v49 }
 0x9a7   :  { %9909 = vmatprep.subr.bf16.mxu0 %v18294_v53  ;;  %v18306_v53 = vld [vmem:[#allocation104_spill] sm:$0xff] }
 0x9a8   :  { %18315 = vst [vmem:[#allocation118_spill] sm:$0xff] %v15326_v15  ;;  %v6731_v58 = vand.u32 4294901760, %v6730_v56 }
 0x9aa   :  { %9911 = vmatpush1.bf16.msra.mxu0 %v18295_v48  ;;  %v16673_v48 = vand.u32 4294901760, %v18306_v53  ;;  %v9944_v49 = vpack.c.bf16 %v6731_v58, %v6724_v27 }
 0x9ad   :  { %6448 = vmatmul.mubr.f32.vlgmr.msra.gmra.mrb[4].mxu0 %v18263_v38  ;;  %v6526_v38 = vand.u32 4294901760, %v6466_v1 }
 0x9af   :  { %v15263_v4 = vpack.c.bf16 %v6529_v2, %v6526_v38  ;;  %v15321_v36 = vsub.f32 %v6466_v1, %v6526_v38  ;;  %v6618_v1 = vsub.f32 %v18306_v53, %v16673_v48  ;;  %v16669_v38 = vand.u32 4294901760, %v18325_v34  ;;  %v18326_v2 = vld [vmem:[#allocation79_spill] sm:$0xff] }
 0x9b0   :  { %v16664_v45 = vand.u32 4294901760, %v18326_v2 }
 0x9b1   :  { %18299 = vst [vmem:[#allocation90_spill] sm:$0xff] %v15263_v4  ;;  %9935 = vmatpush3.bf16.msra.mxu1 %v15263_v4  ;;  %v15311_v4 = vsub.f32 %v6481_v59, %v6571_v26  ;;  %18313 = vst [vmem:[#allocation109_spill] sm:$0xff] %v15321_v36  ;;  %v15330_v59 = vsub.f32 %v6468_v50, %v6532_v12  ;;  %v15334_v26 = vsub.f32 %v6486_v44, %v6586_v14 }
 0x9b2   :  { %9937 = vmatprep.subr.bf16.mxu1 %v15279_v28  ;;  %v15309_v28 = vsub.f32 %v6480_v37, %v6568_v52  ;;  %v15328_v37 = vsub.f32 %v6485_v33, %v6583_v61  ;;  %v15332_v52 = vsub.f32 %v6469_v35, %v6535_v18  ;;  %v16661_v33 = vand.u32 4294901760, %v15060_v0 }
 0x9b3   :  { %18308 = vst [vmem:[#allocation94_spill] sm:$0xff] %v15311_v4  ;;  %18317 = vst [vmem:[#allocation102_spill] sm:$0xff] %v15330_v59  ;;  %v6612_v61 = vand.u32 4294901760, %v6611_v55  ;;  %v16660_v50 = vand.u32 4294901760, %v15062_v21  ;;  %v16656_v35 = vand.u32 4294901760, %v15064_v40  ;;  %v6619_v12 = vand.u32 4294901760, %v6618_v1 }
 0x9b4   :  { %18307 = vst [vmem:[#allocation76_spill] sm:$0xff] %v15309_v28  ;;  %18316 = vst [vmem:[#allocation119_spill] sm:$0xff] %v15328_v37  ;;  %v6737_v18 = vsub.f32 %v18325_v34, %v16669_v38  ;;  %v6744_v44 = vsub.f32 %v18326_v2, %v16664_v45  ;;  %v6639_v55 = vsub.f32 %v15077_v10, %v16653_v9  ;;  %v16662_v9 = vand.u32 4294901760, %v15097_v20 }
 0x9b5   :  { %9939 = vmatpush3.bf16.msra.mxu1 %v15281_v39  ;;  %v15313_v39 = vsub.f32 %v6464_v63, %v6520_v24  ;;  %18318 = vst [vmem:[#allocation105_spill] sm:$0xff] %v15332_v52  ;;  %18319 = vst [vmem:[#allocation106_spill] sm:$0xff] %v15334_v26  ;;  %v15336_v63 = vsub.f32 %v6487_v46, %v6589_v57  ;;  %v15340_v24 = vsub.f32 %v6470_v16, %v6538_v3 }
 0x9b6   :  { %9941 = vmatprep.subr.bf16.mxu1 %v15300_v29  ;;  %v6625_v46 = vsub.f32 %v15060_v0, %v16661_v33  ;;  %v6632_v14 = vsub.f32 %v15062_v21, %v16660_v50  ;;  %v6751_v57 = vsub.f32 %v15064_v40, %v16656_v35  ;;  %v16655_v16 = vand.u32 4294901760, %v15075_v22 }
 0x9b7   :  { %18309 = vst [vmem:[#allocation80_spill] sm:$0xff] %v15313_v39  ;;  %18320 = vst [vmem:[#allocation96_spill] sm:$0xff] %v15336_v63  ;;  %v15373_v3 = vpack.c.bf16 %v6619_v12, %v6612_v61  ;;  %v6738_v54 = vand.u32 4294901760, %v6737_v18  ;;  %v6745_v8 = vand.u32 4294901760, %v6744_v44  ;;  %v16657_v61 = vand.u32 4294901760, %v15081_v60 }
 0x9b8   :  { %18322 = vst [vmem:[#allocation122_spill] sm:$0xff] %v15340_v24  ;;  %v6626_v56 = vand.u32 4294901760, %v6625_v46  ;;  %v6633_v27 = vand.u32 4294901760, %v6632_v14  ;;  %v6752_v58 = vand.u32 4294901760, %v6751_v57  ;;  %v6758_v47 = vsub.f32 %v15075_v22, %v16655_v16 }
 0x9b9   :  { %9943 = vmatpush3.bf16.msra.mxu1 %v15338_v7  ;;  %v15381_v1 = vpack.c.bf16 %v6745_v8, %v6738_v54  ;;  %v16658_v12 = vand.u32 4294901760, %v15093_v43  ;;  %v6640_v46 = vand.u32 4294901760, %v6639_v55  ;;  %v16659_v14 = vand.u32 4294901760, %v15095_v32 }
 0x9ba   :  { %9945 = vmatprep.subr.bf16.mxu1 %v9944_v49  ;;  %v16654_v49 = vand.u32 4294901760, %v15079_v19  ;;  %v15386_v18 = vpack.c.bf16 %v6633_v27, %v6626_v56  ;;  %v6759_v44 = vand.u32 4294901760, %v6758_v47  ;;  %v6765_v54 = vsub.f32 %v15081_v60, %v16657_v61 }
 0x9bb   :  { %v6772_v8 = vsub.f32 %v15093_v43, %v16658_v12  ;;  %v6653_v27 = vsub.f32 %v15095_v32, %v16659_v14  ;;  %v16663_v47 = vand.u32 4294901760, %v15309_v28  ;;  %v16668_v55 = vand.u32 4294901760, %v15311_v4 }
 0x9bc   :  { %v6646_v57 = vsub.f32 %v15079_v19, %v16654_v49  ;;  %v15399_v56 = vpack.c.bf16 %v6759_v44, %v6752_v58  ;;  %v6766_v16 = vand.u32 4294901760, %v6765_v54  ;;  %v6660_v61 = vsub.f32 %v15097_v20, %v16662_v9 }
 0x9bd   :  { %v6773_v35 = vand.u32 4294901760, %v6772_v8  ;;  %v6654_v12 = vand.u32 4294901760, %v6653_v27  ;;  %v6779_v58 = vsub.f32 %v15309_v28, %v16663_v47  ;;  %v6786_v44 = vsub.f32 %v15311_v4, %v16668_v55 }
 0x9be   :  { %v6647_v49 = vand.u32 4294901760, %v6646_v57  ;;  %v16665_v14 = vand.u32 4294901760, %v15313_v39  ;;  %v6661_v54 = vand.u32 4294901760, %v6660_v61  ;;  %v16666_v8 = vand.u32 4294901760, %v15315_v51 }
 0x9bf   :  { %v15418_v57 = vpack.c.bf16 %v6773_v35, %v6766_v16  ;;  %v6780_v33 = vand.u32 4294901760, %v6779_v58  ;;  %v6787_v9 = vand.u32 4294901760, %v6786_v44  ;;  %v16667_v47 = vand.u32 4294901760, %v15317_v6 }
 0x9c0   :  { %v15416_v50 = vpack.c.bf16 %v6647_v49, %v6640_v46  ;;  %v6667_v27 = vsub.f32 %v15313_v39, %v16665_v14  ;;  %v15425_v45 = vpack.c.bf16 %v6661_v54, %v6654_v12  ;;  %v6674_v49 = vsub.f32 %v15315_v51, %v16666_v8 }
 0x9c1   :  { %v16670_v35 = vand.u32 4294901760, %v15319_v25  ;;  %v16671_v16 = vand.u32 4294901760, %v15321_v36  ;;  %v15432_v61 = vpack.c.bf16 %v6787_v9, %v6780_v33  ;;  %v6793_v58 = vsub.f32 %v15317_v6, %v16667_v47 }
 0x9c2   :  { %v6668_v46 = vand.u32 4294901760, %v6667_v27  ;;  %v16672_v44 = vand.u32 4294901760, %v15323_v5  ;;  %v6675_v14 = vand.u32 4294901760, %v6674_v49  ;;  %v16674_v9 = vand.u32 4294901760, %v15326_v15 }
 0x9c3   :  { %v6800_v12 = vsub.f32 %v15319_v25, %v16670_v35  ;;  %v6681_v54 = vsub.f32 %v15321_v36, %v16671_v16  ;;  %v6794_v8 = vand.u32 4294901760, %v6793_v58  ;;  %v16677_v27 = vand.u32 4294901760, %v15328_v37 }
 0x9c4   :  { %v6688_v33 = vsub.f32 %v15323_v5, %v16672_v44  ;;  %v15449_v47 = vpack.c.bf16 %v6675_v14, %v6668_v46  ;;  %v16683_v38 = vand.u32 4294901760, %v15330_v59  ;;  %v6807_v16 = vsub.f32 %v15326_v15, %v16674_v9 }
 0x9c5   :  { %v6801_v49 = vand.u32 4294901760, %v6800_v12  ;;  %v6682_v55 = vand.u32 4294901760, %v6681_v54  ;;  %v6814_v58 = vsub.f32 %v15328_v37, %v16677_v27  ;;  %v16682_v44 = vand.u32 4294901760, %v15332_v52 }
 0x9c6   :  { %v6689_v35 = vand.u32 4294901760, %v6688_v33  ;;  %v6695_v14 = vsub.f32 %v15330_v59, %v16683_v38  ;;  %v6808_v12 = vand.u32 4294901760, %v6807_v16  ;;  %v16686_v7 = vand.u32 4294901760, %v15334_v26 }
 0x9c7   :  { %v15459_v48 = vpack.c.bf16 %v6801_v49, %v6794_v8  ;;  %v6815_v54 = vand.u32 4294901760, %v6814_v58  ;;  %v6702_v33 = vsub.f32 %v15332_v52, %v16682_v44  ;;  %v16687_v27 = vand.u32 4294901760, %v15336_v63 }
 0x9c8   :  { %v15464_v46 = vpack.c.bf16 %v6689_v35, %v6682_v55  ;;  %v6696_v9 = vand.u32 4294901760, %v6695_v14  ;;  %v16688_v8 = vand.u32 4294901760, %v15340_v24  ;;  %v6821_v55 = vsub.f32 %v15334_v26, %v16686_v7 }
 0x9c9   :  { %v9968_v49 = vpack.c.bf16 %v6815_v54, %v6808_v12  ;;  %v6703_v29 = vand.u32 4294901760, %v6702_v33  ;;  %v6828_v35 = vsub.f32 %v15336_v63, %v16687_v27  ;;  %v6716_v14 = vsub.f32 %v15342_v42, %v16689_v41 }
 0x9ca   :  { %v6709_v16 = vsub.f32 %v15340_v24, %v16688_v8  ;;  %v6822_v12 = vand.u32 4294901760, %v6821_v55  ;;  %v9976_v7 = vpack.c.bf16 %v18303_v11, %v18302_v13  ;;  %v9978_v27 = vpack.c.bf16 %v18306_v53, %v18304_v17 }
 0x9cb   :  { %v9970_v58 = vpack.c.bf16 %v6703_v29, %v6696_v9  ;;  %v6829_v54 = vand.u32 4294901760, %v6828_v35  ;;  %v6717_v44 = vand.u32 4294901760, %v6716_v14  ;;  %v9980_v8 = vpack.c.bf16 %v18326_v2, %v18325_v34 }
 0x9cc   :  { %v6710_v33 = vand.u32 4294901760, %v6709_v16  ;;  %v9982_v29 = vpack.c.bf16 %v15062_v21, %v15060_v0  ;;  %v9984_v9 = vpack.c.bf16 %v15075_v22, %v15064_v40  ;;  %v9986_v55 = vpack.c.bf16 %v15079_v19, %v15077_v10 }
 0x9cd   :  { %v9972_v38 = vpack.c.bf16 %v6829_v54, %v6822_v12  ;;  %v9990_v35 = vpack.c.bf16 %v15097_v20, %v15095_v32  ;;  %v9992_v16 = vpack.c.bf16 %v15311_v4, %v15309_v28  ;;  %v9994_v14 = vpack.c.bf16 %v15315_v51, %v15313_v39  ;;  %v5158_v51 = vld [vmem:[%s15734_s10] sm:$0x3]  ;;  %v18328_v39 = vld [vmem:[#allocation93_spill] sm:$0xff] }
 0x9ce   :  { %v9974_v31 = vpack.c.bf16 %v6717_v44, %v6710_v33  ;;  %v9988_v44 = vpack.c.bf16 %v15093_v43, %v15081_v60  ;;  %v9996_v12 = vpack.c.bf16 %v15319_v25, %v15317_v6  ;;  %v9998_v54 = vpack.c.bf16 %v15323_v5, %v15321_v36  ;;  %v18327_v25 = vld [vmem:[#allocation92_spill] sm:$0xff] }
 0x9cf   :  { %v10000_v33 = vpack.c.bf16 %v15328_v37, %v15326_v15  ;;  %v10002_v41 = vpack.c.bf16 %v15332_v52, %v15330_v59  ;;  %v10004_v20 = vpack.c.bf16 %v15336_v63, %v15334_v26  ;;  %v10006_v4 = vpack.c.bf16 %v15342_v42, %v15340_v24 }
 0x9d0   :  { %v5163_v6 = vrot.slane %v5158_v51, %v18327_v25  ;;  %v5167_v5 = vrot.slane %v5158_v51, %v18328_v39 }
 0xa80   :  { %v6449_v36 = vpop.f32.mrb[4].mxu0 }
 0xa81   :  { %v10150_v28 = vadd.f32 %v6449_v36, %v5163_v6  ;;  %v6451_v37 = vpop.f32.mrb[5].mxu0  ;;  %v18336_v6 = vld [vmem:[#allocation98_spill] sm:$0xff] }
 0xa82   :  { %v10151_v15 = vadd.f32 %v6451_v37, %v5167_v5  ;;  %v18331_v5 = vld [vmem:[#allocation107_spill] sm:$0xff] }
 0xa83   :  { %v6454_v32 = vmax.f32 %v10150_v28, 0.0  ;;  %v18338_v37 = vld [vmem:[#allocation91_spill] sm:$0xff] }
 0xa84   :  { %v6455_v52 = vmax.f32 %v10151_v15, 0.0  ;;  %v18332_v15 = vld [vmem:[#allocation60_spill] sm:$0xff] }
 0xa85   :  { %v15522_v59 = vand.u32 4294901760, %v6454_v32 }
 0xa86   :  { %v15524_v63 = vand.u32 4294901760, %v6455_v52 }
 0xa87   :  { %v15527_v42 = vsub.f32 %v6454_v32, %v15522_v59  ;;  %v18330_v32 = vld [vmem:[#allocation74_spill] sm:$0xff] }
 0xa88   :  { %v6592_v24 = vsub.f32 %v6455_v52, %v15524_v63  ;;  %v18339_v52 = vld [vmem:[#allocation72_spill] sm:$0xff] }
 0xa89   :  { %v6599_v26 = vand.u32 4294901760, %v15527_v42 }
 0xa8a   :  { %v6593_v25 = vand.u32 4294901760, %v6592_v24 }
 0xa8b   :  { %v6600_v36 = vsub.f32 %v15527_v42, %v6599_v26 }
 0xa8c   :  { %v6594_v51 = vsub.f32 %v6592_v24, %v6593_v25 }
 0xa8d   :  { %v6601_v28 = vand.u32 4294901760, %v6600_v36 }
 0xa8e   :  { %v6595_v39 = vand.u32 4294901760, %v6594_v51  ;;  %v18374_v51 = vld [vmem:[#allocation116_spill] sm:$0xff] }
 0xa90   :  { %6596 = vmatprep.mubr.f32.mxu1 %v6595_v39  ;;  %v18375_v39 = vand.u32 4294901760, %v18374_v51 }
 0xa91   :  { %6602 = vmatmul.mubr.f32.vlgmr.msra.gmra.mrb[6].mxu1 %v6601_v28 }
 0xa92   :  { %9947 = vmatpush3.bf16.msra.mxu1 %v15373_v3  ;;  %6832 = vmatprep.mubr.f32.mxu1 %v15524_v63  ;;  %v18344_v3 = vand.u32 4294901760, %v18304_v17 }
 0xa93   :  { %9949 = vmatprep.subr.bf16.mxu1 %v15381_v1  ;;  %v18345_v1 = vand.u32 4294901760, %v18306_v53  ;;  %v18350_v53 = vand.u32 4294901760, %v15064_v40 }
 0xa96   :  { %9951 = vmatpush3.bf16.msra.mxu1 %v15386_v18  ;;  %v10042_v18 = vpack.c.bf16 %v18345_v1, %v18344_v3 }
 0xa97   :  { %9953 = vmatprep.subr.bf16.mxu1 %v15399_v56  ;;  %v18346_v56 = vand.u32 4294901760, %v18325_v34 }
 0xa9a   :  { %9955 = vmatpush3.bf16.msra.mxu1 %v15416_v50  ;;  %v18343_v50 = vld [vmem:[#allocation121_spill] sm:$0xff] }
 0xa9b   :  { %9957 = vmatprep.subr.bf16.mxu1 %v15418_v57 }
 0xa9e   :  { %9959 = vmatpush3.bf16.msra.mxu1 %v15425_v45 }
 0xa9f   :  { %9961 = vmatprep.subr.bf16.mxu1 %v15432_v61  ;;  %v18351_v61 = vand.u32 4294901760, %v15075_v22  ;;  %v18360_v22 = vld [vmem:[#allocation76_spill] sm:$0xff] }
 0xaa1   :  { %v10048_v34 = vpack.c.bf16 %v18351_v61, %v18350_v53  ;;  %v18386_v53 = vld [vmem:[#allocation96_spill] sm:$0xff] }
 0xaa2   :  { %9963 = vmatpush3.bf16.msra.mxu1 %v15449_v47  ;;  %v18347_v47 = vand.u32 4294901760, %v18326_v2  ;;  %v18352_v2 = vand.u32 4294901760, %v15077_v10  ;;  %v18387_v61 = vand.u32 4294901760, %v18386_v53 }
 0xaa3   :  { %9965 = vmatprep.subr.bf16.mxu1 %v15459_v48  ;;  %v18337_v48 = vld [vmem:[#allocation90_spill] sm:$0xff] }
 0xaa4   :  { %v10044_v57 = vpack.c.bf16 %v18347_v47, %v18346_v56  ;;  %v18382_v47 = vld [vmem:[#allocation105_spill] sm:$0xff] }
 0xaa6   :  { %9967 = vmatpush3.bf16.msra.mxu1 %v15464_v46 }
 0xaa7   :  { %9969 = vmatprep.subr.bf16.mxu1 %v9968_v49  ;;  %v18358_v49 = vld [vmem:[#allocation65_spill] sm:$0xff] }
 0xaa8   :  { %v18359_v40 = vand.u32 4294901760, %v18358_v49  ;;  %v18392_v49 = vmov 0.0  }
 0xaa9   :  { %8126 = vmatprep.mubr.msk.f32.mxu0 %vm10347_vm0, %v18392_v49 }
 0xaaa   :  { %9971 = vmatpush3.bf16.msra.mxu1 %v9970_v58 }
 0xaab   :  { %9973 = vmatprep.subr.bf16.mxu1 %v9972_v38  ;;  %v18342_v38 = vand.u32 4294901760, %v18303_v11  ;;  %v18349_v11 = vand.u32 4294901760, %v15062_v21  ;;  %v18356_v21 = vld [vmem:[#allocation62_spill] sm:$0xff] }
 0xaae   :  { %9975 = vmatpush3.bf16.msra.mxu1 %v9974_v31  ;;  %v18329_v31 = vld [vmem:[#allocation113_spill] sm:$0xff] }
 0xaaf   :  { %9977 = vmatprep.subr.bf16.mxu1 %v9976_v7  ;;  %v18340_v7 = vld [vmem:[#allocation51_spill] sm:$0xff] }
 0xab1   :  { %6834 = vmatmul.mubr.f32.vlgmr.msra.gmra.mrb[8].mxu1 %v15522_v59 }
 0xab2   :  { %9979 = vmatpush3.bf16.msra.mxu1 %v9978_v27  ;;  %6969 = vmatprep.mubr.f32.mxu1 %v6592_v24  ;;  %v18341_v24 = vand.u32 4294901760, %v18302_v13  ;;  %v18348_v13 = vand.u32 4294901760, %v15060_v0  ;;  %v18354_v27 = vand.u32 4294901760, %v15081_v60  ;;  %v18355_v0 = vand.u32 4294901760, %v15093_v43  ;;  %v18368_v43 = vld [vmem:[#allocation99_spill] sm:$0xff] }
 0xab3   :  { %9981 = vmatprep.subr.bf16.mxu1 %v9980_v8  ;;  %v18357_v8 = vand.u32 4294901760, %v18356_v21 }
 0xab4   :  { %v10040_v45 = vpack.c.bf16 %v18342_v38, %v18341_v24  ;;  %v10046_v17 = vpack.c.bf16 %v18349_v11, %v18348_v13  ;;  %v10052_v46 = vpack.c.bf16 %v18355_v0, %v18354_v27  ;;  %v18376_v24 = vld [vmem:[#allocation118_spill] sm:$0xff] }
 0xab5   :  { %v10054_v58 = vpack.c.bf16 %v18359_v40, %v18357_v8  ;;  %v18377_v38 = vand.u32 4294901760, %v18376_v24  ;;  %v18384_v11 = vld [vmem:[#allocation106_spill] sm:$0xff] }
 0xab6   :  { %9983 = vmatpush3.bf16.msra.mxu1 %v9982_v29  ;;  %v18361_v29 = vand.u32 4294901760, %v18360_v22 }
 0xab7   :  { %9985 = vmatprep.subr.bf16.mxu1 %v9984_v9  ;;  %v18362_v9 = vld [vmem:[#allocation94_spill] sm:$0xff] }
 0xab8   :  { %v18363_v10 = vand.u32 4294901760, %v18362_v9 }
 0xaba   :  { %9987 = vmatpush3.bf16.msra.mxu1 %v9986_v55  ;;  %v10056_v55 = vpack.c.bf16 %v18363_v10, %v18361_v29 }
 0xabb   :  { %9989 = vmatprep.subr.bf16.mxu1 %v9988_v44 }
 0xabe   :  { %9991 = vmatpush3.bf16.msra.mxu1 %v9990_v35  ;;  %v18366_v35 = vld [vmem:[#allocation15_spill] sm:$0xff] }
 0xabf   :  { %9993 = vmatprep.subr.bf16.mxu1 %v9992_v16  ;;  %v18367_v60 = vand.u32 4294901760, %v18366_v35 }
 0xac2   :  { %9995 = vmatpush3.bf16.msra.mxu1 %v9994_v14  ;;  %v18369_v14 = vand.u32 4294901760, %v18368_v43 }
 0xac3   :  { %9997 = vmatprep.subr.bf16.mxu1 %v9996_v12  ;;  %v18370_v12 = vld [vmem:[#allocation103_spill] sm:$0xff] }
 0xac6   :  { %9999 = vmatpush3.bf16.msra.mxu1 %v9998_v54  ;;  %v18371_v54 = vand.u32 4294901760, %v18370_v12 }
 0xac7   :  { %10001 = vmatprep.subr.bf16.mxu1 %v10000_v33 }
 0xac8   :  { %v10060_v33 = vpack.c.bf16 %v18371_v54, %v18369_v14 }
 0xaca   :  { %10003 = vmatpush3.bf16.msra.mxu1 %v10002_v41  ;;  %v18333_v41 = vld [vmem:[#allocation66_spill] sm:$0xff] }
 0xacb   :  { %10005 = vmatprep.subr.bf16.mxu1 %v10004_v20  ;;  %v18334_v20 = vld [vmem:[#allocation27_spill] sm:$0xff] }
 0xace   :  { %10007 = vmatpush3.bf16.msra.mxu1 %v10006_v4  ;;  %v18335_v4 = vld [vmem:[#allocation68_spill] sm:$0xff] }
 0xacf   :  { %10009 = vmatprep.subr.bf16.mxu1 %v18329_v31 }
 0xad1   :  { %6972 = vmatmul.mubr.f32.vlgmr.msra.gmra.mrb[10].mxu1 %v15527_v42  ;;  %v18353_v42 = vand.u32 4294901760, %v15079_v19  ;;  %v18364_v19 = vld [vmem:[#allocation80_spill] sm:$0xff] }
 0xad2   :  { %10011 = vmatpush3.bf16.msra.mxu1 %v18330_v32  ;;  %7076 = vmatprep.mubr.f32.mxu1 %v6593_v25  ;;  %v18365_v44 = vand.u32 4294901760, %v18364_v19  ;;  %v18372_v25 = vld [vmem:[#allocation109_spill] sm:$0xff] }
 0xad3   :  { %10013 = vmatprep.subr.bf16.mxu1 %v18331_v5  ;;  %v18373_v36 = vand.u32 4294901760, %v18372_v25 }
 0xad4   :  { %v10058_v16 = vpack.c.bf16 %v18367_v60, %v18365_v44 }
 0xad5   :  { %v10062_v28 = vpack.c.bf16 %v18375_v39, %v18373_v36 }
 0xad6   :  { %10015 = vmatpush3.bf16.msra.mxu1 %v15058_v62 }
 0xad7   :  { %10017 = vmatprep.subr.bf16.mxu1 %v15073_v23 }
 0xada   :  { %10019 = vmatpush3.bf16.msra.mxu1 %v15088_v30 }
 0xadb   :  { %10021 = vmatprep.subr.bf16.mxu1 %v18332_v15 }
 0xade   :  { %10023 = vmatpush3.bf16.msra.mxu1 %v18333_v41 }
 0xadf   :  { %10025 = vmatprep.subr.bf16.mxu1 %v18334_v20 }
 0xae2   :  { %10027 = vmatpush3.bf16.msra.mxu1 %v18335_v4 }
 0xae3   :  { %10029 = vmatprep.subr.bf16.mxu1 %v18336_v6 }
 0xae6   :  { %10031 = vmatpush3.bf16.msra.mxu1 %v18337_v48 }
 0xae7   :  { %10033 = vmatprep.subr.bf16.mxu1 %v18338_v37 }
 0xaea   :  { %10035 = vmatpush3.bf16.msra.mxu1 %v18339_v52 }
 0xaeb   :  { %10037 = vmatprep.subr.bf16.mxu1 %v18340_v7 }
 0xaee   :  { %10039 = vmatpush3.bf16.msra.mxu1 %v18343_v50 }
 0xaef   :  { %10041 = vmatprep.subr.bf16.mxu1 %v10040_v45  ;;  %v18378_v45 = vld [vmem:[#allocation119_spill] sm:$0xff] }
 0xaf0   :  { %v18379_v3 = vand.u32 4294901760, %v18378_v45 }
 0xaf1   :  { %7080 = vmatmul.mubr.f32.vlgmr.msra.gmra.mrb[12].mxu1 %v6599_v26  ;;  %v10050_v26 = vpack.c.bf16 %v18353_v42, %v18352_v2  ;;  %v18388_v2 = vld [vmem:[#allocation122_spill] sm:$0xff] }
 0xaf2   :  { %10043 = vmatpush3.bf16.msra.mxu1 %v10042_v18  ;;  %7246 = vmatprep.mubr.f32.mxu1 %v15524_v63  ;;  %v10064_v1 = vpack.c.bf16 %v18379_v3, %v18377_v38  ;;  %v18380_v18 = vld [vmem:[#allocation102_spill] sm:$0xff]  ;;  %v18389_v42 = vand.u32 4294901760, %v18388_v2 }
 0xaf3   :  { %10045 = vmatprep.subr.bf16.mxu1 %v10044_v57  ;;  %v18381_v56 = vand.u32 4294901760, %v18380_v18  ;;  %v18383_v57 = vand.u32 4294901760, %v18382_v47 }
 0xaf5   :  { %v10066_v13 = vpack.c.bf16 %v18383_v57, %v18381_v56 }
 0xaf6   :  { %10047 = vmatpush3.bf16.msra.mxu1 %v10046_v17  ;;  %v18385_v17 = vand.u32 4294901760, %v18384_v11 }
 0xaf7   :  { %10049 = vmatprep.subr.bf16.mxu1 %v10048_v34 }
 0xaf8   :  { %v10068_v34 = vpack.c.bf16 %v18387_v61, %v18385_v17 }
 0xafa   :  { %10051 = vmatpush3.bf16.msra.mxu1 %v10050_v26  ;;  %v18390_v26 = vld [vmem:[#allocation123_spill] sm:$0xff] }
 0xafb   :  { %10053 = vmatprep.subr.bf16.mxu1 %v10052_v46  ;;  %v18391_v27 = vand.u32 4294901760, %v18390_v26  ;;  %v7361_v46 = vld [vmem:[%s15737_s13 + $0x18] sm:$0xff] }
 0xafc   :  { %v7383_v8 = vand.u32 4294901760, %v7361_v46 }
 0xafd   :  { %v10070_v0 = vpack.c.bf16 %v18391_v27, %v18389_v42 }
 0xafe   :  { %10055 = vmatpush3.bf16.msra.mxu1 %v10054_v58  ;;  %v7475_v9 = vsub.f32 %v7361_v46, %v7383_v8 }
 0xaff   :  { %10057 = vmatprep.subr.bf16.mxu1 %v10056_v55 }
 0xb00   :  { %v7476_v35 = vand.u32 4294901760, %v7475_v9 }
 0xb02   :  { %10059 = vmatpush3.bf16.msra.mxu1 %v10058_v16  ;;  %v7477_v43 = vsub.f32 %v7475_v9, %v7476_v35 }
 0xb03   :  { %10061 = vmatprep.subr.bf16.mxu1 %v10060_v33 }
 0xb04   :  { %v7478_v54 = vand.u32 4294901760, %v7477_v43 }
 0xb06   :  { %10063 = vmatpush3.bf16.msra.mxu1 %v10062_v28 }
 0xb07   :  { %10065 = vmatprep.subr.bf16.mxu1 %v10064_v1 }
 0xb0a   :  { %10067 = vmatpush3.bf16.msra.mxu1 %v10066_v13 }
 0xb0b   :  { %10069 = vmatprep.subr.bf16.mxu1 %v10068_v34 }
 0xb0e   :  { %10071 = vmatpush3.bf16.msra.mxu1 %v10070_v0 }
 0xb0f   :  { %10073 = vmatprep.subr.bf16.mxu1 %v18329_v31 }
 0xb11   :  { %7248 = vmatmul.mubr.f32.vlgmr.msra.gmra.mrb[14].mxu1 %v15522_v59 }
 0xb12   :  { %10075 = vmatpush3.bf16.msra.mxu1 %v18330_v32  ;;  %7350 = vmatprep.mubr.f32.mxu1 %v15524_v63  ;;  %v7876_v63 = vld [vmem:[%s15736_s12] ss:$0 sm:$0xff] }
 0xb13   :  { %10077 = vmatprep.subr.bf16.mxu1 %v18331_v5 }
 0xb16   :  { %10079 = vmatpush3.bf16.msra.mxu1 %v15058_v62 }
 0xb17   :  { %10081 = vmatprep.subr.bf16.mxu1 %v15073_v23 }
 0xb1a   :  { %10083 = vmatpush3.bf16.msra.mxu1 %v15088_v30 }
 0xb1b   :  { %10085 = vmatprep.subr.bf16.mxu1 %v18332_v15 }
 0xb1e   :  { %10087 = vmatpush3.bf16.msra.mxu1 %v18333_v41 }
 0xb1f   :  { %10089 = vmatprep.subr.bf16.mxu1 %v18334_v20  ;;  %v7358_v20 = vld [vmem:[%s15737_s13] sm:$0xff] }
 0xb22   :  { %10091 = vmatpush3.bf16.msra.mxu1 %v18335_v4  ;;  %v7374_v4 = vand.u32 4294901760, %v7358_v20 }
 0xb23   :  { %10093 = vmatprep.subr.bf16.mxu1 %v18336_v6 }
 0xb26   :  { %10095 = vmatpush3.bf16.msra.mxu1 %v18337_v48 }
 0xb27   :  { %10097 = vmatprep.subr.bf16.mxu1 %v18338_v37  ;;  %v15661_v37 = vsub.f32 %v7358_v20, %v7374_v4 }
 0xb29   :  { %v7455_v40 = vand.u32 4294901760, %v15661_v37 }
 0xb2a   :  { %10099 = vmatpush3.bf16.msra.mxu1 %v18339_v52 }
 0xb2b   :  { %10101 = vmatprep.subr.bf16.mxu1 %v18340_v7  ;;  %v10346_v7 = vmov 0.0|0.0   ;;  %v7456_v10 = vsub.f32 %v15661_v37, %v7455_v40 }
 0xb2c   :  { %10104 = vmatprep.subr.bf16.mxu0 %v10346_v7 }
 0xb2d   :  { %v7457_v19 = vand.u32 4294901760, %v7456_v10 }
 0xb2e   :  { %10103 = vmatpush3.bf16.msra.mxu1 %v18343_v50  ;;  %v7360_v50 = vld [vmem:[%s15737_s13 + $0x10] sm:$0xff] }
 0xb2f   :  { %v7380_v21 = vand.u32 4294901760, %v7360_v50 }
 0xb31   :  { %7352 = vmatmul.mubr.f32.vlgmr.msra.gmra.mrb[16].mxu1 %v15522_v59  ;;  %v7359_v59 = vld [vmem:[%s15737_s13 + $0x8] sm:$0xff]  ;;  %v15678_v22 = vpack.c.bf16 %v7383_v8, %v7380_v21  ;;  %v7468_v29 = vsub.f32 %v7360_v50, %v7380_v21 }
 0xb32   :  { %v7377_v6 = vand.u32 4294901760, %v7359_v59 }
 0xb33   :  { %v7469_v44 = vand.u32 4294901760, %v7468_v29  ;;  %v10120_v36 = vpack.c.bf16 %v7475_v9, %v7468_v29 }
 0xb34   :  { %v15659_v48 = vpack.c.bf16 %v7377_v6, %v7374_v4  ;;  %v15663_v52 = vsub.f32 %v7359_v59, %v7377_v6 }
 0xb35   :  { %v7470_v16 = vsub.f32 %v7468_v29, %v7469_v44  ;;  %v10132_v45 = vpack.c.bf16 %v7476_v35, %v7469_v44 }
 0xb36   :  { %10106 = vmatpush3.bf16.msra.mxu0 %v15659_v48  ;;  %v7462_v58 = vand.u32 4294901760, %v15663_v52  ;;  %v10117_v25 = vpack.c.bf16 %v15663_v52, %v15661_v37 }
 0xb37   :  { %10107 = vmatprep.subr.bf16.mxu0 %v10346_v7  ;;  %v7471_v12 = vand.u32 4294901760, %v7470_v16 }
 0xb38   :  { %v7463_v55 = vsub.f32 %v15663_v52, %v7462_v58  ;;  %v10129_v38 = vpack.c.bf16 %v7462_v58, %v7455_v40 }
 0xb39   :  { %v10114_v33 = vpack.c.bf16 %v7478_v54, %v7471_v12 }
 0xb3a   :  { %10109 = vmatpush3.bf16.msra.mxu0 %v15678_v22  ;;  %v7464_v60 = vand.u32 4294901760, %v7463_v55 }
 0xb3b   :  { %10110 = vmatprep.subr.bf16.mxu0 %v10346_v7 }
 0xb3c   :  { %v10111_v14 = vpack.c.bf16 %v7464_v60, %v7457_v19 }
 0xb64   :  { %v7910_v23 = vpop.f32.mrb[6].mxu1 }
 0xb65   :  { %v7911_v62 = vpop.f32.mrb[7].mxu1 }
 0xb66   :  { %v7912_v30 = vadd.f32 %v7911_v62, %v7910_v23 }
 0xb68   :  { %v6604_v5 = vadd.f32 %v7912_v30, %v7876_v63  ;;  %v7877_v30 = vld [vmem:[%s15738_s14] ss:$0 sm:$0xff] }
 0xb84   :  { %v7945_v31 = vpop.f32.mrb[8].mxu1 }
 0xb85   :  { %v7946_v32 = vpop.f32.mrb[9].mxu1 }
 0xb86   :  { %v7947_v15 = vadd.f32 %v7946_v32, %v7945_v31 }
 0xb88   :  { %v6836_v41 = vadd.f32 %v7947_v15, %v6604_v5 }
 0xba4   :  { %v7980_v51 = vpop.f32.mrb[10].mxu1 }
 0xba5   :  { %v7981_v39 = vpop.f32.mrb[11].mxu1 }
 0xba6   :  { %v7982_v28 = vadd.f32 %v7981_v39, %v7980_v51 }
 0xba8   :  { %v6974_v24 = vadd.f32 %v7982_v28, %v6836_v41 }
 0xbc4   :  { %v8015_v3 = vpop.f32.mrb[12].mxu1 }
 0xbc5   :  { %v8016_v1 = vpop.f32.mrb[13].mxu1 }
 0xbc6   :  { %v8017_v18 = vadd.f32 %v8016_v1, %v8015_v3 }
 0xbc8   :  { %v7082_v56 = vadd.f32 %v8017_v18, %v6974_v24 }
 0xbe4   :  { %v8050_v47 = vpop.f32.mrb[14].mxu1 }
 0xbe5   :  { %v8051_v57 = vpop.f32.mrb[15].mxu1 }
 0xbe6   :  { %v8052_v13 = vadd.f32 %v8051_v57, %v8050_v47 }
 0xbe8   :  { %v7250_v11 = vadd.f32 %v8052_v13, %v7082_v56 }
 0xc04   :  { %v8085_v17 = vpop.f32.mrb[16].mxu1 }
 0xc05   :  { %v8086_v53 = vpop.f32.mrb[17].mxu1 }
 0xc06   :  { %v8087_v61 = vadd.f32 %v8086_v53, %v8085_v17 }
 0xc08   :  { %v7354_v34 = vadd.f32 %v8087_v61, %v7250_v11 }
 0xc0a   :  { %v7357_v2 = vmax.f32 %v7354_v34, 0.0 }
 0xc0c   :  { %v7371_v42 = vsel %vm7369_vm1, %v7357_v2, 0 }
 0xc0d   :  { %v7442_v26 = vand.u32 4294901760, %v7371_v42 }
 0xc0f   :  { %v7443_v27 = vsub.f32 %v7371_v42, %v7442_v26 }
 0xc11   :  { %v7444_v0 = vand.u32 4294901760, %v7443_v27 }
 0xc13   :  { %v7445_v23 = vsub.f32 %v7443_v27, %v7444_v0 }
 0xc15   :  { %v7446_v62 = vand.u32 4294901760, %v7445_v23 }
 0xc17   :  { %8127 = vmatmul.mubr.f32.vlgmr.msra.gmra.mrb[6].mxu0 %v7446_v62 }
 0xc18   :  { %10112 = vmatpush3.bf16.msra.mxu0 %v10111_v14  ;;  %8137 = vmatprep.mubr.msk.f32.mxu0 %vm10347_vm0, %v18392_v49 }
 0xc19   :  { %10113 = vmatprep.subr.bf16.mxu0 %v10346_v7 }
 0xc1c   :  { %10115 = vmatpush3.bf16.msra.mxu0 %v10114_v33 }
 0xc1d   :  { %10116 = vmatprep.subr.bf16.mxu0 %v10346_v7 }
 0xc1f   :  { %8138 = vmatmul.mubr.f32.vlgmr.msra.gmra.mrb[6].mxu0 %v7442_v26 }
 0xc20   :  { %10118 = vmatpush3.bf16.msra.mxu0 %v10117_v25  ;;  %8148 = vmatprep.mubr.msk.f32.mxu0 %vm10347_vm0, %v18392_v49 }
 0xc21   :  { %10119 = vmatprep.subr.bf16.mxu0 %v10346_v7 }
 0xc24   :  { %10121 = vmatpush3.bf16.msra.mxu0 %v10120_v36 }
 0xc25   :  { %10122 = vmatprep.subr.bf16.mxu0 %v10346_v7 }
 0xc27   :  { %8149 = vmatmul.mubr.f32.vlgmr.msra.gmra.mrb[6].mxu0 %v7443_v27 }
 0xc28   :  { %10124 = vmatpush3.bf16.msra.mxu0 %v15659_v48  ;;  %8159 = vmatprep.mubr.msk.f32.mxu0 %vm10347_vm0, %v18392_v49 }
 0xc29   :  { %10125 = vmatprep.subr.bf16.mxu0 %v10346_v7 }
 0xc2c   :  { %10127 = vmatpush3.bf16.msra.mxu0 %v15678_v22 }
 0xc2d   :  { %10128 = vmatprep.subr.bf16.mxu0 %v10346_v7 }
 0xc2f   :  { %8160 = vmatmul.mubr.f32.vlgmr.msra.gmra.mrb[6].mxu0 %v7444_v0 }
 0xc30   :  { %10130 = vmatpush3.bf16.msra.mxu0 %v10129_v38  ;;  %8170 = vmatprep.mubr.msk.f32.mxu0 %vm10347_vm0, %v18392_v49 }
 0xc31   :  { %10131 = vmatprep.subr.bf16.mxu0 %v10346_v7 }
 0xc34   :  { %10133 = vmatpush3.bf16.msra.mxu0 %v10132_v45 }
 0xc35   :  { %10134 = vmatprep.subr.bf16.mxu0 %v10346_v7 }
 0xc37   :  { %8171 = vmatmul.mubr.f32.vlgmr.msra.gmra.mrb[6].mxu0 %v7442_v26 }
 0xc38   :  { %10136 = vmatpush3.bf16.msra.mxu0 %v15659_v48  ;;  %8181 = vmatprep.mubr.msk.f32.mxu0 %vm10347_vm0, %v18392_v49 }
 0xc39   :  { %10137 = vmatprep.subr.bf16.mxu0 %v10346_v7 }
 0xc3c   :  { %10139 = vmatpush3.bf16.msra.mxu0 %v15678_v22 }
 0xc3f   :  { %8182 = vmatmul.mubr.f32.vlgmr.msra.gmra.mrb[6].mxu0 %v7442_v26 }
 0xd12   :  { %v7854_v63 = vpop.f32.mrb[6].mxu0 }
 0xd13   :  { %v10152_v31 = vadd.f32 %v7877_v30, %v7854_v63  ;;  %v8183_v32 = vpop.f32.mrb[7].mxu0 }
 0xd15   :  { %7858 = vst [vmem:[#allocation10] sm:$0x3] %v10152_v31 }
 0xd16   :  { %10320 = shalt.err (!%p10317_p8)
}
 0xd17   :  { %s10321_s25 = scalar_lea.hbm %s15739_s15, 32 }
 0xd18   :  { %p10322_p9 = scmp.ne.s32.totalorder %s15739_s15, %s10321_s25  ;;  %p10325_p10 = scmp.lt.u32.totalorder %s10321_s25, %s15739_s15 }
 0xd1a   :  { %p10327_p11 = pnand %p10325_p10, %p10322_p9 }
 0xd1c   :  { %10330 = shalt.err (!%p10327_p11)
}
 0xd1d   :  { %7868 = dma.vmem_to_hbm [thread:$0]  %s7866_s8, 32, %s15739_s15, [#allocation4]  }
 0xd1e   :  { %10337 = dma.done.wait [#allocation4], 32  }
 0xd1f   :  { %10338 = vsyncadd [#allocation4], 4294967264 }
 0xd20   :  { %7872 = vsyncpa [#allocation3], 1 }
 0xd21   :  { %7873 = vsyncpa [#allocation6], 1 }
 0xd22   :  { %7874 = vsyncpa [#allocation9], 1 }
 0xd23   :  { %7875 = vsyncpa [#allocation4], 1 }

</bundles_post_ra>
